<compile_context>
chip_gen: v7x
topology: tpu7x:2x2x1
jax: 0.10.0
libtpu: 0.0.40
codegen_flags: <defaults>
</compile_context>

<pallas_src>
import numpy as np
import jax
import jax.numpy as jnp
from jax.experimental import pallas as pl
from jax.experimental.pallas import tpu as pltpu

LEAKY_SLOPE = 0.01
LN_EPS = 1e-5
BN_EPS = 1e-5


def _leaky(x):
    return jnp.where(x >= 0, x, LEAKY_SLOPE * x)


def _layer_norm(h, g, b):
    mu = jnp.mean(h, axis=-1, keepdims=True)
    var = jnp.mean((h - mu) ** 2, axis=-1, keepdims=True)
    return (h - mu) * jax.lax.rsqrt(var + LN_EPS) * g + b


# --------------------------------------------------------------------------
# Host-side parameter packing (plain numpy, runs once at setup).
# --------------------------------------------------------------------------
def _mlp_output_permutation():
    # Kernel wants the MLP output ordered as (row, x, channel); torch's
    # reshape(B, 16, 4, 4) orders it as (channel, row, x).
    perm = np.empty(256, np.int64)
    for r in range(4):
        for x in range(4):
            for c in range(16):
                perm[r * 64 + x * 16 + c] = c * 16 + r * 4 + x
    return perm


def _pack_deconv_layer(w, b, width, cin, cout):
    """ConvTranspose2d(k=3, s=2, p=1, op=1) -> one combined matmul weight.

    Activations are lane-packed as (rows, width*cin) with lane index x*cin + ci;
    the kernel feeds [row r, row r+1] concatenated on lanes, so the combined
    weight uses
        row index   j_in  = dy*(width*cin) + x_src*cin + ci        (dy in {0,1})
        col index   j_out = py*(2*width*cout) + x_out*cout + co    (py in {0,1})
    with x_out = 2*x_in + px and the stride-2 transposed-conv taps
        parity 0 -> (shift, k) in {(0,1)};  parity 1 -> {(0,2),(1,0)}.
    """
    w = np.asarray(w, np.float32)          # (cin, cout, 3, 3)
    b = np.asarray(b, np.float32)
    jin = 2 * width * cin
    jout = 4 * width * cout
    wc = np.zeros((jin, jout), np.float32)
    taps = {0: ((0, 1),), 1: ((0, 2), (1, 0))}
    for py in (0, 1):
        for dy, ky in taps[py]:
            for px in (0, 1):
                for dx, kx in taps[px]:
                    for x_in in range(width):
                        x_src = x_in + dx
                        if x_src >= width:       # falls off the right edge -> zero
                            continue
                        ji = dy * (width * cin) + x_src * cin
                        jo = py * (2 * width * cout) + (2 * x_in + px) * cout
                        wc[ji:ji + cin, jo:jo + cout] += w[:, :, ky, kx]
    bias_row = np.tile(b, 4 * width).reshape(1, jout)
    return wc, bias_row


def pack_decoder1_params(w1, b1, g1, be1, w2, b2, g2, be2, deconv_w, deconv_b):
    """Repack PyTorch-layout parameters into the fused kernel's operands."""
    perm = _mlp_output_permutation()
    w2n, b2n = np.asarray(w2, np.float32), np.asarray(b2, np.float32)
    g2n, be2n = np.asarray(g2, np.float32), np.asarray(be2, np.float32)
    operands = [
        jnp.asarray(w1, jnp.float32),
        jnp.asarray(b1, jnp.float32).reshape(1, -1),
        jnp.asarray(g1, jnp.float32).reshape(1, -1),
        jnp.asarray(be1, jnp.float32).reshape(1, -1),
        jnp.asarray(w2n[:, perm]),
        jnp.asarray(b2n[perm]).reshape(1, -1),
        jnp.asarray(g2n[perm]).reshape(1, -1),
        jnp.asarray(be2n[perm]).reshape(1, -1),
    ]
    layer_cfgs = []
    rows, width = 4, 4
    n_layers = len(deconv_w)
    for li in range(n_layers):
        cin, cout = int(deconv_w[li].shape[0]), int(deconv_w[li].shape[1])
        has_bn = li < n_layers - 1
        wc, bias_row = _pack_deconv_layer(deconv_w[li], deconv_b[li], width, cin, cout)
        operands += [jnp.asarray(wc), jnp.asarray(bias_row)]
        if has_bn:
            jout = 4 * width * cout
            # one-hot channel-grouping matmuls (column j belongs to channel j % cout)
            gmat = np.tile(np.eye(cout, dtype=np.float32), (4 * width, 1))   # (jout, cout)
            # fresh BatchNorm2d module => weight = 1, bias = 0 (training-mode batch stats)
            gam_cols = np.tile(np.ones((cout,), np.float32), 4 * width).reshape(1, jout)
            bet_cols = np.tile(np.zeros((cout,), np.float32), 4 * width).reshape(1, jout)
            operands += [
                jnp.asarray(gmat),                           # (jout, cout)
                jnp.asarray(np.ascontiguousarray(gmat.T)),   # (cout, jout)
                jnp.asarray(gam_cols),                       # gamma broadcast to columns
                jnp.asarray(bet_cols),                       # beta  broadcast to columns
            ]
        layer_cfgs.append(dict(width=width, rows=rows, cin=cin, cout=cout, has_bn=has_bn))
        rows, width = 2 * rows, 2 * width
    return operands, layer_cfgs


# --------------------------------------------------------------------------
# The fused kernel.
# --------------------------------------------------------------------------
def _make_decoder_kernel(batch, layer_cfgs):
    n_mlp_refs = 9  # x + (w1, b1, g1, be1, w2, b2, g2, be2)

    def kernel(*refs):
        out_ref = refs[-1]
        (x_ref, w1_ref, b1_ref, g1_ref, be1_ref,
         w2_ref, b2_ref, g2_ref, be2_ref) = refs[:n_mlp_refs]

        # ---- MLP front-end: fc1 -> ln1 -> lrelu -> fc2 -> ln2 -> lrelu ----
        h = jnp.dot(x_ref[...], w1_ref[...],
                    preferred_element_type=jnp.float32) + b1_ref[...]
        h = _leaky(_layer_norm(h, g1_ref[...], be1_ref[...]))
        h = jnp.dot(h, w2_ref[...],
                    preferred_element_type=jnp.float32) + b2_ref[...]
        h = _leaky(_layer_norm(h, g2_ref[...], be2_ref[...]))       # (B, 256)

        # (B, 256) -> (B, 4 rows, 4*16 lanes): lane index = x*cin + ci.
        t = jnp.concatenate(
            [h[:, r * 64:(r + 1) * 64].reshape(batch, 1, 64) for r in range(4)],
            axis=1)

        # ---- deconv stack, fully VMEM-resident ----
        idx = n_mlp_refs
        for cfg in layer_cfgs:
            width, rows, cin, cout, has_bn = (cfg["width"], cfg["rows"],
                                              cfg["cin"], cfg["cout"], cfg["has_bn"])
            if has_bn:
                (wc_ref, bias_ref, g_ref, gt_ref,
                 gcol_ref, bcol_ref) = refs[idx:idx + 6]
                idx += 6
            else:
                wc_ref, bias_ref = refs[idx:idx + 2]
                idx += 2

            lanes = width * cin
            # rows r and r+1 (zero halo at the bottom), concatenated on lanes.
            zrow = jnp.zeros((batch, 1, lanes), jnp.float32)
            tdn = jnp.concatenate([t[:, 1:, :], zrow], axis=1)
            xcat = jnp.concatenate([t, tdn], axis=-1)                # (B, R, 2*lanes)

            m = batch * rows
            o = jnp.dot(xcat.reshape(m, 2 * lanes), wc_ref[...],
                        preferred_element_type=jnp.float32) + bias_ref[...]
            jout = 4 * width * cout                                  # cols = (py, x_out, co)

            if has_bn:
                # Training-mode batch stats per true channel (column j belongs to
                # channel j % cout), vectorized via one-hot grouping matmuls.
                count = float(m * (jout // cout))
                colsum = jnp.sum(o, axis=0, keepdims=True)
                mean_c = jnp.dot(colsum, g_ref[...],
                                 preferred_element_type=jnp.float32) * (1.0 / count)
                mean_cols = jnp.dot(mean_c, gt_ref[...],
                                    preferred_element_type=jnp.float32)
                d = o - mean_cols
                sqsum = jnp.sum(d * d, axis=0, keepdims=True)
                var_c = jnp.dot(sqsum, g_ref[...],
                                preferred_element_type=jnp.float32) * (1.0 / count)
                var_cols = jnp.dot(var_c, gt_ref[...],
                                   preferred_element_type=jnp.float32)
                scale_cols = gcol_ref[...] * jax.lax.rsqrt(var_cols + BN_EPS)
                o = _leaky(d * scale_cols + bcol_ref[...])

            # Stride-2 row interleave: output rows 2r / 2r+1 are the two column
            # halves.  Major-dim reshape only; the x interleave is already
            # encoded in the column ordering, so lanes stay put.
            half = jout // 2
            o3 = o.reshape(batch, rows, jout)
            a0 = o3[:, :, :half][:, :, None, :]
            a1 = o3[:, :, half:][:, :, None, :]
            t = jnp.concatenate([a0, a1], axis=2).reshape(batch, 2 * rows, half)

        out_ref[...] = t                                             # (B, 128, 128)

    return kernel


def decoder1_forward(x, operands, layer_cfgs):
    batch = x.shape[0]
    n_in = 1 + 8 + sum(6 if c["has_bn"] else 2 for c in layer_cfgs)
    last = layer_cfgs[-1]
    out_rows = 2 * last["rows"]
    out_lanes = 2 * last["width"] * last["cout"]
    vmem = pl.BlockSpec(memory_space=pltpu.MemorySpace.VMEM)
    out = pl.pallas_call(
        _make_decoder_kernel(batch, layer_cfgs),
        out_shape=jax.ShapeDtypeStruct((batch, out_rows, out_lanes), jnp.float32),
        in_specs=[vmem] * n_in,
        out_specs=vmem,
    )(x, *operands)
    # (B, 128, 128) -> (B, 1, 128, 128): pure row-major relabel (cout == 1).
    return out.reshape(batch, last["cout"], out_rows, 2 * last["width"])


# --------------------------------------------------------------------------
# Pure-JAX reference (independent of the packing), HIGHEST precision.
# --------------------------------------------------------------------------
def decoder1_reference(x, w1, b1, g1, be1, w2, b2, g2, be2, deconv_w, deconv_b):
    hp = jax.lax.Precision.HIGHEST
    h = jnp.dot(x, w1, precision=hp) + b1
    h = _leaky(_layer_norm(h, g1, be1))
    h = jnp.dot(h, w2, precision=hp) + b2
    h = _leaky(_layer_norm(h, g2, be2))
    t = h.reshape(x.shape[0], 16, 4, 4)
    n = len(deconv_w)
    for li in range(n):
        w = deconv_w[li]                                   # (cin, cout, 3, 3)
        rhs = jnp.flip(w, axis=(2, 3)).transpose(1, 0, 2, 3)  # (cout, cin, 3, 3)
        t = jax.lax.conv_general_dilated(
            t, rhs, window_strides=(1, 1), padding=((1, 2), (1, 2)),
            lhs_dilation=(2, 2), dimension_numbers=("NCHW", "OIHW", "NCHW"),
            precision=hp)
        t = t + deconv_b[li].reshape(1, -1, 1, 1)
        if li < n - 1:
            # fresh BatchNorm2d in training mode: batch stats, gamma=1, beta=0
            mu = jnp.mean(t, axis=(0, 2, 3), keepdims=True)
            var = jnp.mean((t - mu) ** 2, axis=(0, 2, 3), keepdims=True)
            t = _leaky((t - mu) * jax.lax.rsqrt(var + BN_EPS))
    return t


if __name__ == "__main__":
    key = jax.random.PRNGKey(0)
    ks = jax.random.split(key, 16)

    B, F = 2, 128
    x = jax.random.normal(ks[0], (B, F), jnp.float32)

    # Parameters (linear weights stored as (in_features, out_features), i.e. torch W.T).
    w1 = 0.05 * jax.random.normal(ks[1], (F, F), jnp.float32)
    b1 = 0.01 * jax.random.normal(ks[2], (F,), jnp.float32)
    g1, be1 = jnp.ones((F,), jnp.float32), jnp.zeros((F,), jnp.float32)
    w2 = 0.05 * jax.random.normal(ks[3], (F, 256), jnp.float32)
    b2 = 0.01 * jax.random.normal(ks[4], (256,), jnp.float32)
    g2, be2 = jnp.ones((256,), jnp.float32), jnp.zeros((256,), jnp.float32)

    deconv_cfg = [(16, 8), (8, 8), (8, 4), (4, 4), (4, 1)]
    deconv_w, deconv_b = [], []
    for li, (cin, cout) in enumerate(deconv_cfg):
        deconv_w.append(0.1 * jax.random.normal(ks[5 + 2 * li], (cin, cout, 3, 3), jnp.float32))
        deconv_b.append(0.01 * jax.random.normal(ks[6 + 2 * li], (cout,), jnp.float32))

    operands, layer_cfgs = pack_decoder1_params(
        w1, b1, g1, be1, w2, b2, g2, be2, deconv_w, deconv_b)

    fwd = jax.jit(lambda xx, ops: decoder1_forward(xx, ops, layer_cfgs))
    out = jax.block_until_ready(fwd(x, tuple(operands)))

    assert out.shape == (B, 1, 128, 128), out.shape
    assert bool(jnp.all(jnp.isfinite(out)))

    # Independent numerical check against lax.conv_general_dilated reference.
    ref = decoder1_reference(x, w1, b1, g1, be1, w2, b2, g2, be2, deconv_w, deconv_b)
    max_err = float(jnp.max(jnp.abs(out - ref)))
    assert max_err < 5e-3, f"max abs error vs reference: {max_err}"

    # TODO(synk): BatchNorm running_mean/running_var momentum updates (training-time
    # buffer side effects) are not emitted; the forward math uses batch stats as torch does.
    print("KERNEL_OK")
</pallas_src>

<mosaic_0001>
module attributes {stable_mosaic.version = 11 : i64} {
  func.func @kernel(%arg0: memref<2x128xf32, #tpu.memory_space<vmem>>, %arg1: memref<128x128xf32, #tpu.memory_space<vmem>>, %arg2: memref<1x128xf32, #tpu.memory_space<vmem>>, %arg3: memref<1x128xf32, #tpu.memory_space<vmem>>, %arg4: memref<1x128xf32, #tpu.memory_space<vmem>>, %arg5: memref<128x256xf32, #tpu.memory_space<vmem>>, %arg6: memref<1x256xf32, #tpu.memory_space<vmem>>, %arg7: memref<1x256xf32, #tpu.memory_space<vmem>>, %arg8: memref<1x256xf32, #tpu.memory_space<vmem>>, %arg9: memref<128x128xf32, #tpu.memory_space<vmem>>, %arg10: memref<1x128xf32, #tpu.memory_space<vmem>>, %arg11: memref<128x8xf32, #tpu.memory_space<vmem>>, %arg12: memref<8x128xf32, #tpu.memory_space<vmem>>, %arg13: memref<1x128xf32, #tpu.memory_space<vmem>>, %arg14: memref<1x128xf32, #tpu.memory_space<vmem>>, %arg15: memref<128x256xf32, #tpu.memory_space<vmem>>, %arg16: memref<1x256xf32, #tpu.memory_space<vmem>>, %arg17: memref<256x8xf32, #tpu.memory_space<vmem>>, %arg18: memref<8x256xf32, #tpu.memory_space<vmem>>, %arg19: memref<1x256xf32, #tpu.memory_space<vmem>>, %arg20: memref<1x256xf32, #tpu.memory_space<vmem>>, %arg21: memref<256x256xf32, #tpu.memory_space<vmem>>, %arg22: memref<1x256xf32, #tpu.memory_space<vmem>>, %arg23: memref<256x4xf32, #tpu.memory_space<vmem>>, %arg24: memref<4x256xf32, #tpu.memory_space<vmem>>, %arg25: memref<1x256xf32, #tpu.memory_space<vmem>>, %arg26: memref<1x256xf32, #tpu.memory_space<vmem>>, %arg27: memref<256x512xf32, #tpu.memory_space<vmem>>, %arg28: memref<1x512xf32, #tpu.memory_space<vmem>>, %arg29: memref<512x4xf32, #tpu.memory_space<vmem>>, %arg30: memref<4x512xf32, #tpu.memory_space<vmem>>, %arg31: memref<1x512xf32, #tpu.memory_space<vmem>>, %arg32: memref<1x512xf32, #tpu.memory_space<vmem>>, %arg33: memref<512x256xf32, #tpu.memory_space<vmem>>, %arg34: memref<1x256xf32, #tpu.memory_space<vmem>>, %arg35: memref<2x128x128xf32, #tpu.memory_space<vmem>>) attributes {dimension_semantics = [], scalar_prefetch = 0 : i64, scratch_operands = 0 : i64, tpu.core_type = #tpu.core_type<tc>} {
    %c0 = arith.constant 0 : index
    %c0_0 = arith.constant 0 : index
    %0 = vector.load %arg0[%c0, %c0_0] : memref<2x128xf32, #tpu.memory_space<vmem>>, vector<2x128xf32>
    %c0_1 = arith.constant 0 : index
    %c0_2 = arith.constant 0 : index
    %1 = vector.load %arg1[%c0_1, %c0_2] : memref<128x128xf32, #tpu.memory_space<vmem>>, vector<128x128xf32>
    %cst = arith.constant dense<0.000000e+00> : vector<2x128xf32>
    %2 = tpu.matmul %0, %1, %cst {dimension_numbers = #tpu.dot_dimension_numbers<[1], [0], [0], [1], [0, 0, 1, 1], [], []>} : vector<2x128xf32>, vector<128x128xf32>, vector<2x128xf32> -> vector<2x128xf32>
    %c0_3 = arith.constant 0 : index
    %c0_4 = arith.constant 0 : index
    %3 = vector.load %arg2[%c0_3, %c0_4] : memref<1x128xf32, #tpu.memory_space<vmem>>, vector<1x128xf32>
    %4 = vector.broadcast %3 : vector<1x128xf32> to vector<2x128xf32>
    %5 = arith.addf %2, %4 : vector<2x128xf32>
    %c0_5 = arith.constant 0 : index
    %c0_6 = arith.constant 0 : index
    %6 = vector.load %arg3[%c0_5, %c0_6] : memref<1x128xf32, #tpu.memory_space<vmem>>, vector<1x128xf32>
    %c0_7 = arith.constant 0 : index
    %c0_8 = arith.constant 0 : index
    %7 = vector.load %arg4[%c0_7, %c0_8] : memref<1x128xf32, #tpu.memory_space<vmem>>, vector<1x128xf32>
    %cst_9 = arith.constant dense<0.000000e+00> : vector<2xf32>
    %8 = vector.multi_reduction <add>, %5, %cst_9 [1] : vector<2x128xf32> to vector<2xf32>
    %9 = vector.shape_cast %8 : vector<2xf32> to vector<2x1xf32>
    %cst_10 = arith.constant 1.280000e+02 : f32
    %10 = vector.broadcast %cst_10 : f32 to vector<2x1xf32>
    %11 = arith.divf %9, %10 : vector<2x1xf32>
    %12 = vector.broadcast %11 : vector<2x1xf32> to vector<2x128xf32>
    %13 = arith.subf %5, %12 : vector<2x128xf32>
    %14 = arith.mulf %13, %13 : vector<2x128xf32>
    %cst_11 = arith.constant dense<0.000000e+00> : vector<2xf32>
    %15 = vector.multi_reduction <add>, %14, %cst_11 [1] : vector<2x128xf32> to vector<2xf32>
    %16 = vector.shape_cast %15 : vector<2xf32> to vector<2x1xf32>
    %cst_12 = arith.constant 1.280000e+02 : f32
    %17 = vector.broadcast %cst_12 : f32 to vector<2x1xf32>
    %18 = arith.divf %16, %17 : vector<2x1xf32>
    %19 = vector.broadcast %11 : vector<2x1xf32> to vector<2x128xf32>
    %20 = arith.subf %5, %19 : vector<2x128xf32>
    %cst_13 = arith.constant 9.99999974E-6 : f32
    %21 = vector.broadcast %cst_13 : f32 to vector<2x1xf32>
    %22 = arith.addf %18, %21 : vector<2x1xf32>
    %23 = math.rsqrt %22 : vector<2x1xf32>
    %24 = vector.broadcast %23 : vector<2x1xf32> to vector<2x128xf32>
    %25 = arith.mulf %20, %24 : vector<2x128xf32>
    %26 = vector.broadcast %6 : vector<1x128xf32> to vector<2x128xf32>
    %27 = arith.mulf %25, %26 : vector<2x128xf32>
    %28 = vector.broadcast %7 : vector<1x128xf32> to vector<2x128xf32>
    %29 = arith.addf %27, %28 : vector<2x128xf32>
    %cst_14 = arith.constant 0.000000e+00 : f32
    %30 = vector.broadcast %cst_14 : f32 to vector<2x128xf32>
    %31 = arith.cmpf oge, %29, %30 : vector<2x128xf32>
    %cst_15 = arith.constant 0.00999999977 : f32
    %32 = vector.broadcast %cst_15 : f32 to vector<2x128xf32>
    %33 = arith.mulf %32, %29 : vector<2x128xf32>
    %34 = arith.select %31, %29, %33 : vector<2x128xi1>, vector<2x128xf32>
    %c0_16 = arith.constant 0 : index
    %c0_17 = arith.constant 0 : index
    %35 = vector.load %arg5[%c0_16, %c0_17] : memref<128x256xf32, #tpu.memory_space<vmem>>, vector<128x256xf32>
    %cst_18 = arith.constant dense<0.000000e+00> : vector<2x256xf32>
    %36 = tpu.matmul %34, %35, %cst_18 {dimension_numbers = #tpu.dot_dimension_numbers<[1], [0], [0], [1], [0, 0, 1, 1], [], []>} : vector<2x128xf32>, vector<128x256xf32>, vector<2x256xf32> -> vector<2x256xf32>
    %c0_19 = arith.constant 0 : index
    %c0_20 = arith.constant 0 : index
    %37 = vector.load %arg6[%c0_19, %c0_20] : memref<1x256xf32, #tpu.memory_space<vmem>>, vector<1x256xf32>
    %38 = vector.broadcast %37 : vector<1x256xf32> to vector<2x256xf32>
    %39 = arith.addf %36, %38 : vector<2x256xf32>
    %c0_21 = arith.constant 0 : index
    %c0_22 = arith.constant 0 : index
    %40 = vector.load %arg7[%c0_21, %c0_22] : memref<1x256xf32, #tpu.memory_space<vmem>>, vector<1x256xf32>
    %c0_23 = arith.constant 0 : index
    %c0_24 = arith.constant 0 : index
    %41 = vector.load %arg8[%c0_23, %c0_24] : memref<1x256xf32, #tpu.memory_space<vmem>>, vector<1x256xf32>
    %cst_25 = arith.constant dense<0.000000e+00> : vector<2xf32>
    %42 = vector.multi_reduction <add>, %39, %cst_25 [1] : vector<2x256xf32> to vector<2xf32>
    %43 = vector.shape_cast %42 : vector<2xf32> to vector<2x1xf32>
    %cst_26 = arith.constant 2.560000e+02 : f32
    %44 = vector.broadcast %cst_26 : f32 to vector<2x1xf32>
    %45 = arith.divf %43, %44 : vector<2x1xf32>
    %46 = vector.broadcast %45 : vector<2x1xf32> to vector<2x256xf32>
    %47 = arith.subf %39, %46 : vector<2x256xf32>
    %48 = arith.mulf %47, %47 : vector<2x256xf32>
    %cst_27 = arith.constant dense<0.000000e+00> : vector<2xf32>
    %49 = vector.multi_reduction <add>, %48, %cst_27 [1] : vector<2x256xf32> to vector<2xf32>
    %50 = vector.shape_cast %49 : vector<2xf32> to vector<2x1xf32>
    %cst_28 = arith.constant 2.560000e+02 : f32
    %51 = vector.broadcast %cst_28 : f32 to vector<2x1xf32>
    %52 = arith.divf %50, %51 : vector<2x1xf32>
    %53 = vector.broadcast %45 : vector<2x1xf32> to vector<2x256xf32>
    %54 = arith.subf %39, %53 : vector<2x256xf32>
    %cst_29 = arith.constant 9.99999974E-6 : f32
    %55 = vector.broadcast %cst_29 : f32 to vector<2x1xf32>
    %56 = arith.addf %52, %55 : vector<2x1xf32>
    %57 = math.rsqrt %56 : vector<2x1xf32>
    %58 = vector.broadcast %57 : vector<2x1xf32> to vector<2x256xf32>
    %59 = arith.mulf %54, %58 : vector<2x256xf32>
    %60 = vector.broadcast %40 : vector<1x256xf32> to vector<2x256xf32>
    %61 = arith.mulf %59, %60 : vector<2x256xf32>
    %62 = vector.broadcast %41 : vector<1x256xf32> to vector<2x256xf32>
    %63 = arith.addf %61, %62 : vector<2x256xf32>
    %cst_30 = arith.constant 0.000000e+00 : f32
    %64 = vector.broadcast %cst_30 : f32 to vector<2x256xf32>
    %65 = arith.cmpf oge, %63, %64 : vector<2x256xf32>
    %cst_31 = arith.constant 0.00999999977 : f32
    %66 = vector.broadcast %cst_31 : f32 to vector<2x256xf32>
    %67 = arith.mulf %66, %63 : vector<2x256xf32>
    %68 = arith.select %65, %63, %67 : vector<2x256xi1>, vector<2x256xf32>
    %69 = vector.extract_strided_slice %68 {offsets = [0, 0], sizes = [2, 64], strides = [1, 1]} : vector<2x256xf32> to vector<2x64xf32>
    %70 = vector.shape_cast %69 : vector<2x64xf32> to vector<2x1x64xf32>
    %71 = vector.extract_strided_slice %68 {offsets = [0, 64], sizes = [2, 64], strides = [1, 1]} : vector<2x256xf32> to vector<2x64xf32>
    %72 = vector.shape_cast %71 : vector<2x64xf32> to vector<2x1x64xf32>
    %73 = vector.extract_strided_slice %68 {offsets = [0, 128], sizes = [2, 64], strides = [1, 1]} : vector<2x256xf32> to vector<2x64xf32>
    %74 = vector.shape_cast %73 : vector<2x64xf32> to vector<2x1x64xf32>
    %75 = vector.extract_strided_slice %68 {offsets = [0, 192], sizes = [2, 64], strides = [1, 1]} : vector<2x256xf32> to vector<2x64xf32>
    %76 = vector.shape_cast %75 : vector<2x64xf32> to vector<2x1x64xf32>
    %77 = tpu.concatenate %70, %72, %74, %76 in 1 : vector<2x1x64xf32>, vector<2x1x64xf32>, vector<2x1x64xf32>, vector<2x1x64xf32> -> vector<2x4x64xf32>
    %cst_32 = arith.constant 0.000000e+00 : f32
    %78 = vector.broadcast %cst_32 : f32 to vector<2x1x64xf32>
    %79 = vector.extract_strided_slice %77 {offsets = [0, 1, 0], sizes = [2, 3, 64], strides = [1, 1, 1]} : vector<2x4x64xf32> to vector<2x3x64xf32>
    %80 = tpu.concatenate %79, %78 in 1 : vector<2x3x64xf32>, vector<2x1x64xf32> -> vector<2x4x64xf32>
    %81 = tpu.concatenate %77, %80 in 2 : vector<2x4x64xf32>, vector<2x4x64xf32> -> vector<2x4x128xf32>
    %82 = vector.shape_cast %81 : vector<2x4x128xf32> to vector<8x128xf32>
    %c0_33 = arith.constant 0 : index
    %c0_34 = arith.constant 0 : index
    %83 = vector.load %arg9[%c0_33, %c0_34] : memref<128x128xf32, #tpu.memory_space<vmem>>, vector<128x128xf32>
    %cst_35 = arith.constant dense<0.000000e+00> : vector<8x128xf32>
    %84 = tpu.matmul %82, %83, %cst_35 {dimension_numbers = #tpu.dot_dimension_numbers<[1], [0], [0], [1], [0, 0, 1, 1], [], []>} : vector<8x128xf32>, vector<128x128xf32>, vector<8x128xf32> -> vector<8x128xf32>
    %c0_36 = arith.constant 0 : index
    %c0_37 = arith.constant 0 : index
    %85 = vector.load %arg10[%c0_36, %c0_37] : memref<1x128xf32, #tpu.memory_space<vmem>>, vector<1x128xf32>
    %86 = vector.broadcast %85 : vector<1x128xf32> to vector<8x128xf32>
    %87 = arith.addf %84, %86 : vector<8x128xf32>
    %cst_38 = arith.constant dense<0.000000e+00> : vector<128xf32>
    %88 = vector.multi_reduction <add>, %87, %cst_38 [0] : vector<8x128xf32> to vector<128xf32>
    %89 = vector.shape_cast %88 : vector<128xf32> to vector<1x128xf32>
    %c0_39 = arith.constant 0 : index
    %c0_40 = arith.constant 0 : index
    %90 = vector.load %arg11[%c0_39, %c0_40] : memref<128x8xf32, #tpu.memory_space<vmem>>, vector<128x8xf32>
    %cst_41 = arith.constant dense<0.000000e+00> : vector<1x8xf32>
    %91 = tpu.matmul %89, %90, %cst_41 {dimension_numbers = #tpu.dot_dimension_numbers<[1], [0], [0], [1], [0, 0, 1, 1], [], []>} : vector<1x128xf32>, vector<128x8xf32>, vector<1x8xf32> -> vector<1x8xf32>
    %cst_42 = arith.constant 7.812500e-03 : f32
    %92 = vector.broadcast %cst_42 : f32 to vector<1x8xf32>
    %93 = arith.mulf %91, %92 : vector<1x8xf32>
    %c0_43 = arith.constant 0 : index
    %c0_44 = arith.constant 0 : index
    %94 = vector.load %arg12[%c0_43, %c0_44] : memref<8x128xf32, #tpu.memory_space<vmem>>, vector<8x128xf32>
    %cst_45 = arith.constant dense<0.000000e+00> : vector<1x128xf32>
    %95 = tpu.matmul %93, %94, %cst_45 {dimension_numbers = #tpu.dot_dimension_numbers<[1], [0], [0], [1], [0, 0, 1, 1], [], []>} : vector<1x8xf32>, vector<8x128xf32>, vector<1x128xf32> -> vector<1x128xf32>
    %96 = vector.broadcast %95 : vector<1x128xf32> to vector<8x128xf32>
    %97 = arith.subf %87, %96 : vector<8x128xf32>
    %98 = arith.mulf %97, %97 : vector<8x128xf32>
    %cst_46 = arith.constant dense<0.000000e+00> : vector<128xf32>
    %99 = vector.multi_reduction <add>, %98, %cst_46 [0] : vector<8x128xf32> to vector<128xf32>
    %100 = vector.shape_cast %99 : vector<128xf32> to vector<1x128xf32>
    %c0_47 = arith.constant 0 : index
    %c0_48 = arith.constant 0 : index
    %101 = vector.load %arg11[%c0_47, %c0_48] : memref<128x8xf32, #tpu.memory_space<vmem>>, vector<128x8xf32>
    %cst_49 = arith.constant dense<0.000000e+00> : vector<1x8xf32>
    %102 = tpu.matmul %100, %101, %cst_49 {dimension_numbers = #tpu.dot_dimension_numbers<[1], [0], [0], [1], [0, 0, 1, 1], [], []>} : vector<1x128xf32>, vector<128x8xf32>, vector<1x8xf32> -> vector<1x8xf32>
    %cst_50 = arith.constant 7.812500e-03 : f32
    %103 = vector.broadcast %cst_50 : f32 to vector<1x8xf32>
    %104 = arith.mulf %102, %103 : vector<1x8xf32>
    %c0_51 = arith.constant 0 : index
    %c0_52 = arith.constant 0 : index
    %105 = vector.load %arg12[%c0_51, %c0_52] : memref<8x128xf32, #tpu.memory_space<vmem>>, vector<8x128xf32>
    %cst_53 = arith.constant dense<0.000000e+00> : vector<1x128xf32>
    %106 = tpu.matmul %104, %105, %cst_53 {dimension_numbers = #tpu.dot_dimension_numbers<[1], [0], [0], [1], [0, 0, 1, 1], [], []>} : vector<1x8xf32>, vector<8x128xf32>, vector<1x128xf32> -> vector<1x128xf32>
    %c0_54 = arith.constant 0 : index
    %c0_55 = arith.constant 0 : index
    %107 = vector.load %arg13[%c0_54, %c0_55] : memref<1x128xf32, #tpu.memory_space<vmem>>, vector<1x128xf32>
    %cst_56 = arith.constant 9.99999974E-6 : f32
    %108 = vector.broadcast %cst_56 : f32 to vector<1x128xf32>
    %109 = arith.addf %106, %108 : vector<1x128xf32>
    %110 = math.rsqrt %109 : vector<1x128xf32>
    %111 = arith.mulf %107, %110 : vector<1x128xf32>
    %112 = vector.broadcast %111 : vector<1x128xf32> to vector<8x128xf32>
    %113 = arith.mulf %97, %112 : vector<8x128xf32>
    %c0_57 = arith.constant 0 : index
    %c0_58 = arith.constant 0 : index
    %114 = vector.load %arg14[%c0_57, %c0_58] : memref<1x128xf32, #tpu.memory_space<vmem>>, vector<1x128xf32>
    %115 = vector.broadcast %114 : vector<1x128xf32> to vector<8x128xf32>
    %116 = arith.addf %113, %115 : vector<8x128xf32>
    %cst_59 = arith.constant 0.000000e+00 : f32
    %117 = vector.broadcast %cst_59 : f32 to vector<8x128xf32>
    %118 = arith.cmpf oge, %116, %117 : vector<8x128xf32>
    %cst_60 = arith.constant 0.00999999977 : f32
    %119 = vector.broadcast %cst_60 : f32 to vector<8x128xf32>
    %120 = arith.mulf %119, %116 : vector<8x128xf32>
    %121 = arith.select %118, %116, %120 : vector<8x128xi1>, vector<8x128xf32>
    %122 = vector.shape_cast %121 : vector<8x128xf32> to vector<2x4x128xf32>
    %123 = vector.extract_strided_slice %122 {offsets = [0, 0, 0], sizes = [2, 4, 64], strides = [1, 1, 1]} : vector<2x4x128xf32> to vector<2x4x64xf32>
    %124 = vector.shape_cast %123 : vector<2x4x64xf32> to vector<2x4x1x64xf32>
    %125 = vector.extract_strided_slice %122 {offsets = [0, 0, 64], sizes = [2, 4, 64], strides = [1, 1, 1]} : vector<2x4x128xf32> to vector<2x4x64xf32>
    %126 = vector.shape_cast %125 : vector<2x4x64xf32> to vector<2x4x1x64xf32>
    %127 = tpu.concatenate %124, %126 in 2 : vector<2x4x1x64xf32>, vector<2x4x1x64xf32> -> vector<2x4x2x64xf32>
    %128 = vector.shape_cast %127 : vector<2x4x2x64xf32> to vector<2x8x64xf32>
    %cst_61 = arith.constant 0.000000e+00 : f32
    %129 = vector.broadcast %cst_61 : f32 to vector<2x1x64xf32>
    %130 = vector.extract_strided_slice %128 {offsets = [0, 1, 0], sizes = [2, 7, 64], strides = [1, 1, 1]} : vector<2x8x64xf32> to vector<2x7x64xf32>
    %131 = tpu.concatenate %130, %129 in 1 : vector<2x7x64xf32>, vector<2x1x64xf32> -> vector<2x8x64xf32>
    %132 = tpu.concatenate %128, %131 in 2 : vector<2x8x64xf32>, vector<2x8x64xf32> -> vector<2x8x128xf32>
    %133 = vector.shape_cast %132 : vector<2x8x128xf32> to vector<16x128xf32>
    %c0_62 = arith.constant 0 : index
    %c0_63 = arith.constant 0 : index
    %134 = vector.load %arg15[%c0_62, %c0_63] : memref<128x256xf32, #tpu.memory_space<vmem>>, vector<128x256xf32>
    %cst_64 = arith.constant dense<0.000000e+00> : vector<16x256xf32>
    %135 = tpu.matmul %133, %134, %cst_64 {dimension_numbers = #tpu.dot_dimension_numbers<[1], [0], [0], [1], [0, 0, 1, 1], [], []>} : vector<16x128xf32>, vector<128x256xf32>, vector<16x256xf32> -> vector<16x256xf32>
    %c0_65 = arith.constant 0 : index
    %c0_66 = arith.constant 0 : index
    %136 = vector.load %arg16[%c0_65, %c0_66] : memref<1x256xf32, #tpu.memory_space<vmem>>, vector<1x256xf32>
    %137 = vector.broadcast %136 : vector<1x256xf32> to vector<16x256xf32>
    %138 = arith.addf %135, %137 : vector<16x256xf32>
    %cst_67 = arith.constant dense<0.000000e+00> : vector<256xf32>
    %139 = vector.multi_reduction <add>, %138, %cst_67 [0] : vector<16x256xf32> to vector<256xf32>
    %140 = vector.shape_cast %139 : vector<256xf32> to vector<1x256xf32>
    %c0_68 = arith.constant 0 : index
    %c0_69 = arith.constant 0 : index
    %141 = vector.load %arg17[%c0_68, %c0_69] : memref<256x8xf32, #tpu.memory_space<vmem>>, vector<256x8xf32>
    %cst_70 = arith.constant dense<0.000000e+00> : vector<1x8xf32>
    %142 = tpu.matmul %140, %141, %cst_70 {dimension_numbers = #tpu.dot_dimension_numbers<[1], [0], [0], [1], [0, 0, 1, 1], [], []>} : vector<1x256xf32>, vector<256x8xf32>, vector<1x8xf32> -> vector<1x8xf32>
    %cst_71 = arith.constant 0.001953125 : f32
    %143 = vector.broadcast %cst_71 : f32 to vector<1x8xf32>
    %144 = arith.mulf %142, %143 : vector<1x8xf32>
    %c0_72 = arith.constant 0 : index
    %c0_73 = arith.constant 0 : index
    %145 = vector.load %arg18[%c0_72, %c0_73] : memref<8x256xf32, #tpu.memory_space<vmem>>, vector<8x256xf32>
    %cst_74 = arith.constant dense<0.000000e+00> : vector<1x256xf32>
    %146 = tpu.matmul %144, %145, %cst_74 {dimension_numbers = #tpu.dot_dimension_numbers<[1], [0], [0], [1], [0, 0, 1, 1], [], []>} : vector<1x8xf32>, vector<8x256xf32>, vector<1x256xf32> -> vector<1x256xf32>
    %147 = vector.broadcast %146 : vector<1x256xf32> to vector<16x256xf32>
    %148 = arith.subf %138, %147 : vector<16x256xf32>
    %149 = arith.mulf %148, %148 : vector<16x256xf32>
    %cst_75 = arith.constant dense<0.000000e+00> : vector<256xf32>
    %150 = vector.multi_reduction <add>, %149, %cst_75 [0] : vector<16x256xf32> to vector<256xf32>
    %151 = vector.shape_cast %150 : vector<256xf32> to vector<1x256xf32>
    %c0_76 = arith.constant 0 : index
    %c0_77 = arith.constant 0 : index
    %152 = vector.load %arg17[%c0_76, %c0_77] : memref<256x8xf32, #tpu.memory_space<vmem>>, vector<256x8xf32>
    %cst_78 = arith.constant dense<0.000000e+00> : vector<1x8xf32>
    %153 = tpu.matmul %151, %152, %cst_78 {dimension_numbers = #tpu.dot_dimension_numbers<[1], [0], [0], [1], [0, 0, 1, 1], [], []>} : vector<1x256xf32>, vector<256x8xf32>, vector<1x8xf32> -> vector<1x8xf32>
    %cst_79 = arith.constant 0.001953125 : f32
    %154 = vector.broadcast %cst_79 : f32 to vector<1x8xf32>
    %155 = arith.mulf %153, %154 : vector<1x8xf32>
    %c0_80 = arith.constant 0 : index
    %c0_81 = arith.constant 0 : index
    %156 = vector.load %arg18[%c0_80, %c0_81] : memref<8x256xf32, #tpu.memory_space<vmem>>, vector<8x256xf32>
    %cst_82 = arith.constant dense<0.000000e+00> : vector<1x256xf32>
    %157 = tpu.matmul %155, %156, %cst_82 {dimension_numbers = #tpu.dot_dimension_numbers<[1], [0], [0], [1], [0, 0, 1, 1], [], []>} : vector<1x8xf32>, vector<8x256xf32>, vector<1x256xf32> -> vector<1x256xf32>
    %c0_83 = arith.constant 0 : index
    %c0_84 = arith.constant 0 : index
    %158 = vector.load %arg19[%c0_83, %c0_84] : memref<1x256xf32, #tpu.memory_space<vmem>>, vector<1x256xf32>
    %cst_85 = arith.constant 9.99999974E-6 : f32
    %159 = vector.broadcast %cst_85 : f32 to vector<1x256xf32>
    %160 = arith.addf %157, %159 : vector<1x256xf32>
    %161 = math.rsqrt %160 : vector<1x256xf32>
    %162 = arith.mulf %158, %161 : vector<1x256xf32>
    %163 = vector.broadcast %162 : vector<1x256xf32> to vector<16x256xf32>
    %164 = arith.mulf %148, %163 : vector<16x256xf32>
    %c0_86 = arith.constant 0 : index
    %c0_87 = arith.constant 0 : index
    %165 = vector.load %arg20[%c0_86, %c0_87] : memref<1x256xf32, #tpu.memory_space<vmem>>, vector<1x256xf32>
    %166 = vector.broadcast %165 : vector<1x256xf32> to vector<16x256xf32>
    %167 = arith.addf %164, %166 : vector<16x256xf32>
    %cst_88 = arith.constant 0.000000e+00 : f32
    %168 = vector.broadcast %cst_88 : f32 to vector<16x256xf32>
    %169 = arith.cmpf oge, %167, %168 : vector<16x256xf32>
    %cst_89 = arith.constant 0.00999999977 : f32
    %170 = vector.broadcast %cst_89 : f32 to vector<16x256xf32>
    %171 = arith.mulf %170, %167 : vector<16x256xf32>
    %172 = arith.select %169, %167, %171 : vector<16x256xi1>, vector<16x256xf32>
    %173 = vector.shape_cast %172 : vector<16x256xf32> to vector<2x8x256xf32>
    %174 = vector.extract_strided_slice %173 {offsets = [0, 0, 0], sizes = [2, 8, 128], strides = [1, 1, 1]} : vector<2x8x256xf32> to vector<2x8x128xf32>
    %175 = vector.shape_cast %174 : vector<2x8x128xf32> to vector<2x8x1x128xf32>
    %176 = vector.extract_strided_slice %173 {offsets = [0, 0, 128], sizes = [2, 8, 128], strides = [1, 1, 1]} : vector<2x8x256xf32> to vector<2x8x128xf32>
    %177 = vector.shape_cast %176 : vector<2x8x128xf32> to vector<2x8x1x128xf32>
    %178 = tpu.concatenate %175, %177 in 2 : vector<2x8x1x128xf32>, vector<2x8x1x128xf32> -> vector<2x8x2x128xf32>
    %179 = vector.shape_cast %178 : vector<2x8x2x128xf32> to vector<2x16x128xf32>
    %cst_90 = arith.constant 0.000000e+00 : f32
    %180 = vector.broadcast %cst_90 : f32 to vector<2x1x128xf32>
    %181 = vector.extract_strided_slice %179 {offsets = [0, 1, 0], sizes = [2, 15, 128], strides = [1, 1, 1]} : vector<2x16x128xf32> to vector<2x15x128xf32>
    %182 = tpu.concatenate %181, %180 in 1 : vector<2x15x128xf32>, vector<2x1x128xf32> -> vector<2x16x128xf32>
    %183 = tpu.concatenate %179, %182 in 2 : vector<2x16x128xf32>, vector<2x16x128xf32> -> vector<2x16x256xf32>
    %184 = vector.shape_cast %183 : vector<2x16x256xf32> to vector<32x256xf32>
    %c0_91 = arith.constant 0 : index
    %c0_92 = arith.constant 0 : index
    %185 = vector.load %arg21[%c0_91, %c0_92] : memref<256x256xf32, #tpu.memory_space<vmem>>, vector<256x256xf32>
    %cst_93 = arith.constant dense<0.000000e+00> : vector<32x256xf32>
    %186 = tpu.matmul %184, %185, %cst_93 {dimension_numbers = #tpu.dot_dimension_numbers<[1], [0], [0], [1], [0, 0, 1, 1], [], []>} : vector<32x256xf32>, vector<256x256xf32>, vector<32x256xf32> -> vector<32x256xf32>
    %c0_94 = arith.constant 0 : index
    %c0_95 = arith.constant 0 : index
    %187 = vector.load %arg22[%c0_94, %c0_95] : memref<1x256xf32, #tpu.memory_space<vmem>>, vector<1x256xf32>
    %188 = vector.broadcast %187 : vector<1x256xf32> to vector<32x256xf32>
    %189 = arith.addf %186, %188 : vector<32x256xf32>
    %cst_96 = arith.constant dense<0.000000e+00> : vector<256xf32>
    %190 = vector.multi_reduction <add>, %189, %cst_96 [0] : vector<32x256xf32> to vector<256xf32>
    %191 = vector.shape_cast %190 : vector<256xf32> to vector<1x256xf32>
    %c0_97 = arith.constant 0 : index
    %c0_98 = arith.constant 0 : index
    %192 = vector.load %arg23[%c0_97, %c0_98] : memref<256x4xf32, #tpu.memory_space<vmem>>, vector<256x4xf32>
    %cst_99 = arith.constant dense<0.000000e+00> : vector<1x4xf32>
    %193 = tpu.matmul %191, %192, %cst_99 {dimension_numbers = #tpu.dot_dimension_numbers<[1], [0], [0], [1], [0, 0, 1, 1], [], []>} : vector<1x256xf32>, vector<256x4xf32>, vector<1x4xf32> -> vector<1x4xf32>
    %cst_100 = arith.constant 4.8828125E-4 : f32
    %194 = vector.broadcast %cst_100 : f32 to vector<1x4xf32>
    %195 = arith.mulf %193, %194 : vector<1x4xf32>
    %c0_101 = arith.constant 0 : index
    %c0_102 = arith.constant 0 : index
    %196 = vector.load %arg24[%c0_101, %c0_102] : memref<4x256xf32, #tpu.memory_space<vmem>>, vector<4x256xf32>
    %cst_103 = arith.constant dense<0.000000e+00> : vector<1x256xf32>
    %197 = tpu.matmul %195, %196, %cst_103 {dimension_numbers = #tpu.dot_dimension_numbers<[1], [0], [0], [1], [0, 0, 1, 1], [], []>} : vector<1x4xf32>, vector<4x256xf32>, vector<1x256xf32> -> vector<1x256xf32>
    %198 = vector.broadcast %197 : vector<1x256xf32> to vector<32x256xf32>
    %199 = arith.subf %189, %198 : vector<32x256xf32>
    %200 = arith.mulf %199, %199 : vector<32x256xf32>
    %cst_104 = arith.constant dense<0.000000e+00> : vector<256xf32>
    %201 = vector.multi_reduction <add>, %200, %cst_104 [0] : vector<32x256xf32> to vector<256xf32>
    %202 = vector.shape_cast %201 : vector<256xf32> to vector<1x256xf32>
    %c0_105 = arith.constant 0 : index
    %c0_106 = arith.constant 0 : index
    %203 = vector.load %arg23[%c0_105, %c0_106] : memref<256x4xf32, #tpu.memory_space<vmem>>, vector<256x4xf32>
    %cst_107 = arith.constant dense<0.000000e+00> : vector<1x4xf32>
    %204 = tpu.matmul %202, %203, %cst_107 {dimension_numbers = #tpu.dot_dimension_numbers<[1], [0], [0], [1], [0, 0, 1, 1], [], []>} : vector<1x256xf32>, vector<256x4xf32>, vector<1x4xf32> -> vector<1x4xf32>
    %cst_108 = arith.constant 4.8828125E-4 : f32
    %205 = vector.broadcast %cst_108 : f32 to vector<1x4xf32>
    %206 = arith.mulf %204, %205 : vector<1x4xf32>
    %c0_109 = arith.constant 0 : index
    %c0_110 = arith.constant 0 : index
    %207 = vector.load %arg24[%c0_109, %c0_110] : memref<4x256xf32, #tpu.memory_space<vmem>>, vector<4x256xf32>
    %cst_111 = arith.constant dense<0.000000e+00> : vector<1x256xf32>
    %208 = tpu.matmul %206, %207, %cst_111 {dimension_numbers = #tpu.dot_dimension_numbers<[1], [0], [0], [1], [0, 0, 1, 1], [], []>} : vector<1x4xf32>, vector<4x256xf32>, vector<1x256xf32> -> vector<1x256xf32>
    %c0_112 = arith.constant 0 : index
    %c0_113 = arith.constant 0 : index
    %209 = vector.load %arg25[%c0_112, %c0_113] : memref<1x256xf32, #tpu.memory_space<vmem>>, vector<1x256xf32>
    %cst_114 = arith.constant 9.99999974E-6 : f32
    %210 = vector.broadcast %cst_114 : f32 to vector<1x256xf32>
    %211 = arith.addf %208, %210 : vector<1x256xf32>
    %212 = math.rsqrt %211 : vector<1x256xf32>
    %213 = arith.mulf %209, %212 : vector<1x256xf32>
    %214 = vector.broadcast %213 : vector<1x256xf32> to vector<32x256xf32>
    %215 = arith.mulf %199, %214 : vector<32x256xf32>
    %c0_115 = arith.constant 0 : index
    %c0_116 = arith.constant 0 : index
    %216 = vector.load %arg26[%c0_115, %c0_116] : memref<1x256xf32, #tpu.memory_space<vmem>>, vector<1x256xf32>
    %217 = vector.broadcast %216 : vector<1x256xf32> to vector<32x256xf32>
    %218 = arith.addf %215, %217 : vector<32x256xf32>
    %cst_117 = arith.constant 0.000000e+00 : f32
    %219 = vector.broadcast %cst_117 : f32 to vector<32x256xf32>
    %220 = arith.cmpf oge, %218, %219 : vector<32x256xf32>
    %cst_118 = arith.constant 0.00999999977 : f32
    %221 = vector.broadcast %cst_118 : f32 to vector<32x256xf32>
    %222 = arith.mulf %221, %218 : vector<32x256xf32>
    %223 = arith.select %220, %218, %222 : vector<32x256xi1>, vector<32x256xf32>
    %224 = vector.shape_cast %223 : vector<32x256xf32> to vector<2x16x256xf32>
    %225 = vector.extract_strided_slice %224 {offsets = [0, 0, 0], sizes = [2, 16, 128], strides = [1, 1, 1]} : vector<2x16x256xf32> to vector<2x16x128xf32>
    %226 = vector.shape_cast %225 : vector<2x16x128xf32> to vector<2x16x1x128xf32>
    %227 = vector.extract_strided_slice %224 {offsets = [0, 0, 128], sizes = [2, 16, 128], strides = [1, 1, 1]} : vector<2x16x256xf32> to vector<2x16x128xf32>
    %228 = vector.shape_cast %227 : vector<2x16x128xf32> to vector<2x16x1x128xf32>
    %229 = tpu.concatenate %226, %228 in 2 : vector<2x16x1x128xf32>, vector<2x16x1x128xf32> -> vector<2x16x2x128xf32>
    %230 = vector.shape_cast %229 : vector<2x16x2x128xf32> to vector<2x32x128xf32>
    %cst_119 = arith.constant 0.000000e+00 : f32
    %231 = vector.broadcast %cst_119 : f32 to vector<2x1x128xf32>
    %232 = vector.extract_strided_slice %230 {offsets = [0, 1, 0], sizes = [2, 31, 128], strides = [1, 1, 1]} : vector<2x32x128xf32> to vector<2x31x128xf32>
    %233 = tpu.concatenate %232, %231 in 1 : vector<2x31x128xf32>, vector<2x1x128xf32> -> vector<2x32x128xf32>
    %234 = tpu.concatenate %230, %233 in 2 : vector<2x32x128xf32>, vector<2x32x128xf32> -> vector<2x32x256xf32>
    %235 = vector.shape_cast %234 : vector<2x32x256xf32> to vector<64x256xf32>
    %c0_120 = arith.constant 0 : index
    %c0_121 = arith.constant 0 : index
    %236 = vector.load %arg27[%c0_120, %c0_121] : memref<256x512xf32, #tpu.memory_space<vmem>>, vector<256x512xf32>
    %cst_122 = arith.constant dense<0.000000e+00> : vector<64x512xf32>
    %237 = tpu.matmul %235, %236, %cst_122 {dimension_numbers = #tpu.dot_dimension_numbers<[1], [0], [0], [1], [0, 0, 1, 1], [], []>} : vector<64x256xf32>, vector<256x512xf32>, vector<64x512xf32> -> vector<64x512xf32>
    %c0_123 = arith.constant 0 : index
    %c0_124 = arith.constant 0 : index
    %238 = vector.load %arg28[%c0_123, %c0_124] : memref<1x512xf32, #tpu.memory_space<vmem>>, vector<1x512xf32>
    %239 = vector.broadcast %238 : vector<1x512xf32> to vector<64x512xf32>
    %240 = arith.addf %237, %239 : vector<64x512xf32>
    %cst_125 = arith.constant dense<0.000000e+00> : vector<512xf32>
    %241 = vector.multi_reduction <add>, %240, %cst_125 [0] : vector<64x512xf32> to vector<512xf32>
    %242 = vector.shape_cast %241 : vector<512xf32> to vector<1x512xf32>
    %c0_126 = arith.constant 0 : index
    %c0_127 = arith.constant 0 : index
    %243 = vector.load %arg29[%c0_126, %c0_127] : memref<512x4xf32, #tpu.memory_space<vmem>>, vector<512x4xf32>
    %cst_128 = arith.constant dense<0.000000e+00> : vector<1x4xf32>
    %244 = tpu.matmul %242, %243, %cst_128 {dimension_numbers = #tpu.dot_dimension_numbers<[1], [0], [0], [1], [0, 0, 1, 1], [], []>} : vector<1x512xf32>, vector<512x4xf32>, vector<1x4xf32> -> vector<1x4xf32>
    %cst_129 = arith.constant 1.22070313E-4 : f32
    %245 = vector.broadcast %cst_129 : f32 to vector<1x4xf32>
    %246 = arith.mulf %244, %245 : vector<1x4xf32>
    %c0_130 = arith.constant 0 : index
    %c0_131 = arith.constant 0 : index
    %247 = vector.load %arg30[%c0_130, %c0_131] : memref<4x512xf32, #tpu.memory_space<vmem>>, vector<4x512xf32>
    %cst_132 = arith.constant dense<0.000000e+00> : vector<1x512xf32>
    %248 = tpu.matmul %246, %247, %cst_132 {dimension_numbers = #tpu.dot_dimension_numbers<[1], [0], [0], [1], [0, 0, 1, 1], [], []>} : vector<1x4xf32>, vector<4x512xf32>, vector<1x512xf32> -> vector<1x512xf32>
    %249 = vector.broadcast %248 : vector<1x512xf32> to vector<64x512xf32>
    %250 = arith.subf %240, %249 : vector<64x512xf32>
    %251 = arith.mulf %250, %250 : vector<64x512xf32>
    %cst_133 = arith.constant dense<0.000000e+00> : vector<512xf32>
    %252 = vector.multi_reduction <add>, %251, %cst_133 [0] : vector<64x512xf32> to vector<512xf32>
    %253 = vector.shape_cast %252 : vector<512xf32> to vector<1x512xf32>
    %c0_134 = arith.constant 0 : index
    %c0_135 = arith.constant 0 : index
    %254 = vector.load %arg29[%c0_134, %c0_135] : memref<512x4xf32, #tpu.memory_space<vmem>>, vector<512x4xf32>
    %cst_136 = arith.constant dense<0.000000e+00> : vector<1x4xf32>
    %255 = tpu.matmul %253, %254, %cst_136 {dimension_numbers = #tpu.dot_dimension_numbers<[1], [0], [0], [1], [0, 0, 1, 1], [], []>} : vector<1x512xf32>, vector<512x4xf32>, vector<1x4xf32> -> vector<1x4xf32>
    %cst_137 = arith.constant 1.22070313E-4 : f32
    %256 = vector.broadcast %cst_137 : f32 to vector<1x4xf32>
    %257 = arith.mulf %255, %256 : vector<1x4xf32>
    %c0_138 = arith.constant 0 : index
    %c0_139 = arith.constant 0 : index
    %258 = vector.load %arg30[%c0_138, %c0_139] : memref<4x512xf32, #tpu.memory_space<vmem>>, vector<4x512xf32>
    %cst_140 = arith.constant dense<0.000000e+00> : vector<1x512xf32>
    %259 = tpu.matmul %257, %258, %cst_140 {dimension_numbers = #tpu.dot_dimension_numbers<[1], [0], [0], [1], [0, 0, 1, 1], [], []>} : vector<1x4xf32>, vector<4x512xf32>, vector<1x512xf32> -> vector<1x512xf32>
    %c0_141 = arith.constant 0 : index
    %c0_142 = arith.constant 0 : index
    %260 = vector.load %arg31[%c0_141, %c0_142] : memref<1x512xf32, #tpu.memory_space<vmem>>, vector<1x512xf32>
    %cst_143 = arith.constant 9.99999974E-6 : f32
    %261 = vector.broadcast %cst_143 : f32 to vector<1x512xf32>
    %262 = arith.addf %259, %261 : vector<1x512xf32>
    %263 = math.rsqrt %262 : vector<1x512xf32>
    %264 = arith.mulf %260, %263 : vector<1x512xf32>
    %265 = vector.broadcast %264 : vector<1x512xf32> to vector<64x512xf32>
    %266 = arith.mulf %250, %265 : vector<64x512xf32>
    %c0_144 = arith.constant 0 : index
    %c0_145 = arith.constant 0 : index
    %267 = vector.load %arg32[%c0_144, %c0_145] : memref<1x512xf32, #tpu.memory_space<vmem>>, vector<1x512xf32>
    %268 = vector.broadcast %267 : vector<1x512xf32> to vector<64x512xf32>
    %269 = arith.addf %266, %268 : vector<64x512xf32>
    %cst_146 = arith.constant 0.000000e+00 : f32
    %270 = vector.broadcast %cst_146 : f32 to vector<64x512xf32>
    %271 = arith.cmpf oge, %269, %270 : vector<64x512xf32>
    %cst_147 = arith.constant 0.00999999977 : f32
    %272 = vector.broadcast %cst_147 : f32 to vector<64x512xf32>
    %273 = arith.mulf %272, %269 : vector<64x512xf32>
    %274 = arith.select %271, %269, %273 : vector<64x512xi1>, vector<64x512xf32>
    %275 = vector.shape_cast %274 : vector<64x512xf32> to vector<2x32x512xf32>
    %276 = vector.extract_strided_slice %275 {offsets = [0, 0, 0], sizes = [2, 32, 256], strides = [1, 1, 1]} : vector<2x32x512xf32> to vector<2x32x256xf32>
    %277 = vector.shape_cast %276 : vector<2x32x256xf32> to vector<2x32x1x256xf32>
    %278 = vector.extract_strided_slice %275 {offsets = [0, 0, 256], sizes = [2, 32, 256], strides = [1, 1, 1]} : vector<2x32x512xf32> to vector<2x32x256xf32>
    %279 = vector.shape_cast %278 : vector<2x32x256xf32> to vector<2x32x1x256xf32>
    %280 = tpu.concatenate %277, %279 in 2 : vector<2x32x1x256xf32>, vector<2x32x1x256xf32> -> vector<2x32x2x256xf32>
    %281 = vector.shape_cast %280 : vector<2x32x2x256xf32> to vector<2x64x256xf32>
    %cst_148 = arith.constant 0.000000e+00 : f32
    %282 = vector.broadcast %cst_148 : f32 to vector<2x1x256xf32>
    %283 = vector.extract_strided_slice %281 {offsets = [0, 1, 0], sizes = [2, 63, 256], strides = [1, 1, 1]} : vector<2x64x256xf32> to vector<2x63x256xf32>
    %284 = tpu.concatenate %283, %282 in 1 : vector<2x63x256xf32>, vector<2x1x256xf32> -> vector<2x64x256xf32>
    %285 = tpu.concatenate %281, %284 in 2 : vector<2x64x256xf32>, vector<2x64x256xf32> -> vector<2x64x512xf32>
    %286 = vector.shape_cast %285 : vector<2x64x512xf32> to vector<128x512xf32>
    %c0_149 = arith.constant 0 : index
    %c0_150 = arith.constant 0 : index
    %287 = vector.load %arg33[%c0_149, %c0_150] : memref<512x256xf32, #tpu.memory_space<vmem>>, vector<512x256xf32>
    %cst_151 = arith.constant dense<0.000000e+00> : vector<128x256xf32>
    %288 = tpu.matmul %286, %287, %cst_151 {dimension_numbers = #tpu.dot_dimension_numbers<[1], [0], [0], [1], [0, 0, 1, 1], [], []>} : vector<128x512xf32>, vector<512x256xf32>, vector<128x256xf32> -> vector<128x256xf32>
    %c0_152 = arith.constant 0 : index
    %c0_153 = arith.constant 0 : index
    %289 = vector.load %arg34[%c0_152, %c0_153] : memref<1x256xf32, #tpu.memory_space<vmem>>, vector<1x256xf32>
    %290 = vector.broadcast %289 : vector<1x256xf32> to vector<128x256xf32>
    %291 = arith.addf %288, %290 : vector<128x256xf32>
    %292 = vector.shape_cast %291 : vector<128x256xf32> to vector<2x64x256xf32>
    %293 = vector.extract_strided_slice %292 {offsets = [0, 0, 0], sizes = [2, 64, 128], strides = [1, 1, 1]} : vector<2x64x256xf32> to vector<2x64x128xf32>
    %294 = vector.shape_cast %293 : vector<2x64x128xf32> to vector<2x64x1x128xf32>
    %295 = vector.extract_strided_slice %292 {offsets = [0, 0, 128], sizes = [2, 64, 128], strides = [1, 1, 1]} : vector<2x64x256xf32> to vector<2x64x128xf32>
    %296 = vector.shape_cast %295 : vector<2x64x128xf32> to vector<2x64x1x128xf32>
    %297 = tpu.concatenate %294, %296 in 2 : vector<2x64x1x128xf32>, vector<2x64x1x128xf32> -> vector<2x64x2x128xf32>
    %298 = vector.shape_cast %297 : vector<2x64x2x128xf32> to vector<2x128x128xf32>
    %c0_154 = arith.constant 0 : index
    %c0_155 = arith.constant 0 : index
    %c0_156 = arith.constant 0 : index
    %299 = vector.load %arg35[%c0_154, %c0_155, %c0_156] : memref<2x128x128xf32, #tpu.memory_space<vmem>>, vector<2x128x128xf32>
    tpu.vector_store %arg35[%c0_154, %c0_155, %c0_156], %298 {strides = array<i32>} : memref<2x128x128xf32, #tpu.memory_space<vmem>>, vector<2x128x128xf32>,
    return
  }
}

</mosaic_0001>

<bundles_post_ra>
// kernel: _lambda_.1
= control target key start
LH: loop header
LB: loop body
LE: loop exit
PB: predicated region body
PF: predicated region fallthrough
CT: control target
= control target key end

     0   :  { %s14369_s6 = smov 1   ;;  %s14370_s10 = smov 2   ;;  %s18304_s0 = inlined_call_operand.smem [shape: u32[36], index: -1, kind: input, shape index: {}] }
   0x1   :  { %s14446_s5 = sld [smem:[%s18304_s0]]   ;;  %s14371_s14 = smov 3  }
   0x2   :  { %s14451_s9 = sld [smem:[%s18304_s0 + %s14369_s6]]   ;;  %s14372_s18 = smov 4  }
   0x3   :  { %s14456_s13 = sld [smem:[%s18304_s0 + %s14370_s10]]   ;;  %s14373_s22 = smov 5  }
   0x4   :  { %s14461_s17 = sld [smem:[%s18304_s0 + %s14371_s14]]   ;;  %s14374_s26 = smov 6  }
   0x5   :  { %s14466_s21 = sld [smem:[%s18304_s0 + %s14372_s18]]   ;;  %s14375_s30 = smov 7  }
   0x6   :  { %s14471_s25 = sld [smem:[%s18304_s0 + %s14373_s22]]   ;;  %s14376_s4 = smov 8  }
   0x7   :  { %s14476_s29 = sld [smem:[%s18304_s0 + %s14374_s26]]   ;;  %s14377_s10 = smov 9  }
   0x8   :  { %s14481_s3 = sld [smem:[%s18304_s0 + %s14375_s30]]   ;;  %s14378_s15 = smov 10  }
   0x9   :  { %18396 = sst [smem:[#allocation52_spill]] %s14456_s13  ;;  %s14379_s20 = smov 11  }
   0xa   :  { %s14486_s8 = sld [smem:[%s18304_s0 + %s14376_s4]]   ;;  %s14380_s26 = smov 12  }
   0xb   :  { %s14491_s14 = sld [smem:[%s18304_s0 + %s14377_s10]]   ;;  %s14381_s1 = smov 13  }
   0xc   :  { %18397 = sst [smem:[#allocation53_spill]] %s14471_s25  ;;  %s14382_s7 = smov 14  }
   0xd   :  { %s14496_s19 = sld [smem:[%s18304_s0 + %s14378_s15]]   ;;  %s14383_s15 = smov 15  }
   0xe   :  { %s14501_s24 = sld [smem:[%s18304_s0 + %s14379_s20]]   ;;  %s14384_s22 = smov 16  }
   0xf   :  { %s14506_s30 = sld [smem:[%s18304_s0 + %s14380_s26]]   ;;  %s14385_s28 = smov 17  }
  0x10   :  { %18398 = sst [smem:[#allocation54_spill]] %s14486_s8 }
  0x11   :  { %s14511_s6 = sld [smem:[%s18304_s0 + %s14381_s1]]  }
  0x12   :  { %s14516_s12 = sld [smem:[%s18304_s0 + %s14382_s7]]   ;;  %s14386_s7 = smov 18  }
  0x13   :  { %18399 = sst [smem:[#allocation55_spill]] %s14496_s19 }
  0x14   :  { %18400 = sst [smem:[#allocation56_spill]] %s14501_s24 }
  0x15   :  { %s14521_s20 = sld [smem:[%s18304_s0 + %s14383_s15]]   ;;  %s14387_s15 = smov 19  }
  0x16   :  { %s14526_s27 = sld [smem:[%s18304_s0 + %s14384_s22]]   ;;  %s14388_s22 = smov 20  }
  0x17   :  { %18401 = sst [smem:[#allocation57_spill]] %s14511_s6 }
  0x18   :  { %s14531_s4 = sld [smem:[%s18304_s0 + %s14385_s28]]   ;;  %s14389_s28 = smov 21  }
  0x19   :  { %s14536_s24 = sld [smem:[%s18304_s0 + %s14386_s7]]   ;;  %s14390_s7 = smov 22  }
  0x1a   :  { %s14541_s25 = sld [smem:[%s18304_s0 + %s14387_s15]]   ;;  %s14391_s15 = smov 23  }
  0x1b   :  { %18402 = sst [smem:[#allocation58_spill]] %s14521_s20 }
  0x1c   :  { %s14546_s13 = sld [smem:[%s18304_s0 + %s14388_s22]]   ;;  %s14392_s22 = smov 24  }
  0x1d   :  { %s14566_s20 = sld [smem:[%s18304_s0 + %s14392_s22]]   ;;  %s14396_s22 = smov 28  }
  0x1e   :  { %18403 = sst [smem:[#allocation59_spill]] %s14531_s4 }
  0x1f   :  { %18404 = sst [smem:[#allocation60_spill]] %s14536_s24 }
  0x20   :  { %18405 = sst [smem:[#allocation61_spill]] %s14541_s25 }
  0x21   :  { %s14551_s4 = sld [smem:[%s18304_s0 + %s14389_s28]]   ;;  %s14393_s28 = smov 25  }
  0x22   :  { %s14556_s24 = sld [smem:[%s18304_s0 + %s14390_s7]]   ;;  %s14394_s7 = smov 26  }
  0x23   :  { %s14561_s25 = sld [smem:[%s18304_s0 + %s14391_s15]]   ;;  %s14395_s15 = smov 27  }
  0x24   :  { %18408 = sst [smem:[#allocation64_spill]] %s14566_s20 }
  0x25   :  { %s14576_s6 = sld [smem:[%s18304_s0 + %s14394_s7]]   ;;  %s14398_s7 = smov 30  }
  0x26   :  { %s14586_s20 = sld [smem:[%s18304_s0 + %s14396_s22]]   ;;  %s14400_s22 = smov 32  }
  0x27   :  { %18406 = sst [smem:[#allocation62_spill]] %s14551_s4 }
  0x28   :  { %s14571_s4 = sld [smem:[%s18304_s0 + %s14393_s28]]   ;;  %s14397_s28 = smov 29  }
  0x29   :  { %18407 = sst [smem:[#allocation63_spill]] %s14561_s25 }
  0x2a   :  { %s14581_s25 = sld [smem:[%s18304_s0 + %s14395_s15]]   ;;  %s14399_s15 = smov 31  }
  0x2b   :  { %18409 = sst [smem:[#allocation65_spill]] %s14576_s6 }
  0x2c   :  { %18411 = sst [smem:[#allocation67_spill]] %s14586_s20 }
  0x2d   :  { %s14591_s19 = sld [smem:[%s18304_s0 + %s14397_s28]]   ;;  %s14401_s28 = smov 33  }
  0x2e   :  { %s14596_s6 = sld [smem:[%s18304_s0 + %s14398_s7]]   ;;  %s14402_s7 = smov 34  }
  0x2f   :  { %s14606_s20 = sld [smem:[%s18304_s0 + %s14400_s22]]  }
  0x30   :  { %18410 = sst [smem:[#allocation66_spill]] %s14581_s25 }
  0x31   :  { %s14601_s25 = sld [smem:[%s18304_s0 + %s14399_s15]]   ;;  %s14403_s15 = smov 35  }
  0x32   :  { %s14616_s8 = sld [smem:[%s18304_s0 + %s14402_s7]]  }
  0x33   :  { %18412 = sst [smem:[#allocation68_spill]] %s14591_s19 }
  0x34   :  { %s14611_s19 = sld [smem:[%s18304_s0 + %s14401_s28]]  }
  0x37   :  { %18413 = sst [smem:[#allocation69_spill]] %s14601_s25 }
  0x38   :  { %s14621_s25 = sld [smem:[%s18304_s0 + %s14403_s15]]  }
  0x39   :  { %76 = vsyncpa [#allocation3], 0 }
  0x3a   :  { %77 = vsyncpa [#allocation6], 0 }
  0x3b   :  { %78 = vsyncpa [#allocation9], 0 }
  0x3c   :  { %79 = vsyncpa [#allocation12], 0 }
  0x3d   :  { %80 = vsyncpa [#allocation15], 0 }
  0x3e   :  { %81 = vsyncpa [#allocation18], 0 }
  0x3f   :  { %82 = vsyncpa [#allocation21], 0 }
  0x40   :  { %83 = vsyncpa [#allocation24], 0 }
  0x41   :  { %84 = vsyncpa [#allocation27], 0 }
  0x42   :  { %85 = vsyncpa [#allocation30], 0 }
  0x43   :  { %86 = vsyncpa [#allocation33], 0 }
  0x44   :  { %87 = vsyncpa [#allocation36], 0 }
  0x45   :  { %88 = vsyncpa [#allocation4], 0  ;;  %s14404_s22 = smov [#allocation5]   ;;  %s13815_s0 = scalar_lea.hbm %s14451_s9, 2048 }
  0x46   :  { %s104_s23 = sshll.u32 %s14404_s22, 4  ;;  %p13816_p0 = scmp.ne.s32.totalorder %s14451_s9, %s13815_s0  ;;  %s105_s23 = int_to_ptr.vmem [resolvable:$true] %s104_s23 }
  0x47   :  { %p13819_p1 = scmp.lt.u32.totalorder %s13815_s0, %s14451_s9 }
  0x49   :  { %p13821_p2 = pnand %p13819_p1, %p13816_p0 }
  0x4b   :  { %13824 = shalt.err (!%p13821_p2)
}
  0x4c   :  { %s13825_s26 = scalar_lea.vmem %s105_s23, 2048  ;;  %p13830_p4 = scmp.lt.s32.totalorder %s105_s23, %s105_s23 }
  0x4d   :  { %p13826_p3 = scmp.ne.s32.totalorder %s105_s23, %s13825_s26  ;;  %p13831_p5 = scmp.lt.s32.totalorder %s13825_s26, %s13825_s26 }
  0x4f   :  { %p13832_p6 = por %p13831_p5, %p13830_p4 }
  0x51   :  { %p13833_p7 = pnand %p13832_p6, %p13826_p3 }
  0x53   :  { %13836 = shalt.err (!%p13833_p7)
}
  0x54   :  { %s14405_s28 = smov 128   ;;  %s14406_s1 = smov 8  }
  0x55   :  { %110 = dma.hbm_to_vmem [thread:$0]  %s14451_s9, 2048, %s105_s23, [#allocation6], %s14405_s28, %s14405_s28, %s14406_s1  }
  0x56   :  { %s14407_s2 = smov [#allocation8]   ;;  %s14408_s10 = smov [#allocation11]  }
  0x57   :  { %s129_s7 = sshll.u32 %s14407_s2, 4  ;;  %s151_s11 = sshll.u32 %s14408_s10, 4  ;;  %s130_s7 = int_to_ptr.vmem [resolvable:$true] %s129_s7  ;;  %s152_s11 = int_to_ptr.vmem [resolvable:$true] %s151_s11 }
  0x58   :  { %s13837_s15 = scalar_lea.hbm %s14466_s21, 16 }
  0x59   :  { %p13838_p8 = scmp.ne.s32.totalorder %s14466_s21, %s13837_s15  ;;  %p13841_p9 = scmp.lt.u32.totalorder %s13837_s15, %s14466_s21 }
  0x5b   :  { %p13843_p10 = pnand %p13841_p9, %p13838_p8 }
  0x5d   :  { %13846 = shalt.err (!%p13843_p10)
}
  0x5e   :  { %s13847_s16 = scalar_lea.vmem %s130_s7, 16  ;;  %s13851_s18 = scalar_lea.vmem %s130_s7, 32 }
  0x5f   :  { %p13848_p11 = scmp.ne.s32.totalorder %s130_s7, %s13847_s16  ;;  %p13852_p12 = scmp.lt.s32.totalorder %s130_s7, %s130_s7 }
  0x60   :  { %p13853_p13 = scmp.lt.s32.totalorder %s13851_s18, %s13847_s16 }
  0x62   :  { %p13854_p0 = por %p13853_p13, %p13852_p12 }
  0x64   :  { %p13855_p1 = pnand %p13854_p0, %p13848_p11 }
  0x66   :  { %13858 = shalt.err (!%p13855_p1)
}
  0x67   :  { %132 = dma.hbm_to_vmem [thread:$0]  %s14466_s21, 16, %s130_s7, [#allocation9]  }
  0x68   :  { %s13859_s9 = scalar_lea.hbm %s14481_s3, 32 }
  0x69   :  { %p13860_p2 = scmp.ne.s32.totalorder %s14481_s3, %s13859_s9  ;;  %p13863_p3 = scmp.lt.u32.totalorder %s13859_s9, %s14481_s3 }
  0x6b   :  { %p13865_p4 = pnand %p13863_p3, %p13860_p2 }
  0x6d   :  { %13868 = shalt.err (!%p13865_p4)
}
  0x6e   :  { %s13869_s22 = scalar_lea.vmem %s152_s11, 32  ;;  %p13874_p6 = scmp.lt.s32.totalorder %s152_s11, %s152_s11 }
  0x6f   :  { %p13870_p5 = scmp.ne.s32.totalorder %s152_s11, %s13869_s22  ;;  %p13875_p7 = scmp.lt.s32.totalorder %s13869_s22, %s13869_s22 }
  0x71   :  { %p13876_p8 = por %p13875_p7, %p13874_p6 }
  0x73   :  { %p13877_p9 = pnand %p13876_p8, %p13870_p5 }
  0x75   :  { %13880 = shalt.err (!%p13877_p9)
}
  0x76   :  { %154 = dma.hbm_to_vmem [thread:$0]  %s14481_s3, 32, %s152_s11, [#allocation12]  }
  0x77   :  { %s14409_s23 = smov [#allocation14]   ;;  %s14410_s0 = smov [#allocation17]  }
  0x78   :  { %s170_s21 = sshll.u32 %s14409_s23, 4  ;;  %s195_s26 = sshll.u32 %s14410_s0, 4  ;;  %s171_s21 = int_to_ptr.vmem [resolvable:$true] %s170_s21  ;;  %s196_s26 = int_to_ptr.vmem [resolvable:$true] %s195_s26 }
  0x79   :  { %s13881_s2 = scalar_lea.hbm %s14491_s14, 2048 }
  0x7a   :  { %p13882_p10 = scmp.ne.s32.totalorder %s14491_s14, %s13881_s2  ;;  %p13885_p11 = scmp.lt.u32.totalorder %s13881_s2, %s14491_s14 }
  0x7c   :  { %p13887_p12 = pnand %p13885_p11, %p13882_p10 }
  0x7e   :  { %13890 = shalt.err (!%p13887_p12)
}
  0x7f   :  { %s13891_s7 = scalar_lea.vmem %s171_s21, 2048  ;;  %p13896_p0 = scmp.lt.s32.totalorder %s171_s21, %s171_s21 }
  0x80   :  { %p13892_p13 = scmp.ne.s32.totalorder %s171_s21, %s13891_s7  ;;  %p13897_p1 = scmp.lt.s32.totalorder %s13891_s7, %s13891_s7 }
  0x82   :  { %p13898_p2 = por %p13897_p1, %p13896_p0 }
  0x84   :  { %p13899_p3 = pnand %p13898_p2, %p13892_p13 }
  0x86   :  { %13902 = shalt.err (!%p13899_p3)
}
  0x87   :  { %176 = dma.hbm_to_vmem [thread:$0]  %s14491_s14, 2048, %s171_s21, [#allocation15], %s14405_s28, %s14405_s28, %s14406_s1  }
  0x88   :  { %s13903_s3 = scalar_lea.hbm %s14506_s30, 128 }
  0x89   :  { %p13904_p4 = scmp.ne.s32.totalorder %s14506_s30, %s13903_s3  ;;  %p13907_p5 = scmp.lt.u32.totalorder %s13903_s3, %s14506_s30 }
  0x8b   :  { %p13909_p6 = pnand %p13907_p5, %p13904_p4 }
  0x8d   :  { %13912 = shalt.err (!%p13909_p6)
}
  0x8e   :  { %s13913_s10 = scalar_lea.vmem %s196_s26, 128  ;;  %p13918_p8 = scmp.lt.s32.totalorder %s196_s26, %s196_s26 }
  0x8f   :  { %p13914_p7 = scmp.ne.s32.totalorder %s196_s26, %s13913_s10  ;;  %p13919_p9 = scmp.lt.s32.totalorder %s13913_s10, %s13913_s10 }
  0x91   :  { %p13920_p10 = por %p13919_p9, %p13918_p8 }
  0x93   :  { %p13921_p11 = pnand %p13920_p10, %p13914_p7 }
  0x95   :  { %13924 = shalt.err (!%p13921_p11)
}
  0x96   :  { %198 = dma.hbm_to_vmem [thread:$0]  %s14506_s30, 128, %s196_s26, [#allocation18]  }
  0x97   :  { %s14411_s11 = smov [#allocation20]   ;;  %s14412_s15 = smov [#allocation23]  }
  0x98   :  { %s215_s14 = sshll.u32 %s14411_s11, 4  ;;  %s237_s16 = sshll.u32 %s14412_s15, 4  ;;  %s216_s14 = int_to_ptr.vmem [resolvable:$true] %s215_s14  ;;  %s238_s16 = int_to_ptr.vmem [resolvable:$true] %s237_s16 }
  0x99   :  { %s13925_s18 = scalar_lea.hbm %s14516_s12, 16 }
  0x9a   :  { %p13926_p12 = scmp.ne.s32.totalorder %s14516_s12, %s13925_s18  ;;  %p13929_p13 = scmp.lt.u32.totalorder %s13925_s18, %s14516_s12 }
  0x9c   :  { %p13931_p0 = pnand %p13929_p13, %p13926_p12 }
  0x9e   :  { %13934 = shalt.err (!%p13931_p0)
}
  0x9f   :  { %s13935_s9 = scalar_lea.vmem %s216_s14, 16  ;;  %s13939_s22 = scalar_lea.vmem %s216_s14, 32 }
  0xa0   :  { %p13936_p1 = scmp.ne.s32.totalorder %s216_s14, %s13935_s9  ;;  %p13940_p2 = scmp.lt.s32.totalorder %s216_s14, %s216_s14 }
  0xa1   :  { %p13941_p3 = scmp.lt.s32.totalorder %s13939_s22, %s13935_s9 }
  0xa3   :  { %p13942_p4 = por %p13941_p3, %p13940_p2 }
  0xa5   :  { %p13943_p5 = pnand %p13942_p4, %p13936_p1 }
  0xa7   :  { %13946 = shalt.err (!%p13943_p5)
}
  0xa8   :  { %218 = dma.hbm_to_vmem [thread:$0]  %s14516_s12, 16, %s216_s14, [#allocation21]  }
  0xa9   :  { %s13947_s30 = scalar_lea.hbm %s14526_s27, 32 }
  0xaa   :  { %p13948_p6 = scmp.ne.s32.totalorder %s14526_s27, %s13947_s30  ;;  %p13951_p7 = scmp.lt.u32.totalorder %s13947_s30, %s14526_s27 }
  0xac   :  { %p13953_p8 = pnand %p13951_p7, %p13948_p6 }
  0xae   :  { %13956 = shalt.err (!%p13953_p8)
}
  0xaf   :  { %s13957_s23 = scalar_lea.vmem %s238_s16, 32  ;;  %p13962_p10 = scmp.lt.s32.totalorder %s238_s16, %s238_s16 }
  0xb0   :  { %p13958_p9 = scmp.ne.s32.totalorder %s238_s16, %s13957_s23  ;;  %p13963_p11 = scmp.lt.s32.totalorder %s13957_s23, %s13957_s23 }
  0xb2   :  { %p13964_p12 = por %p13963_p11, %p13962_p10 }
  0xb4   :  { %p13965_p13 = pnand %p13964_p12, %p13958_p9 }
  0xb6   :  { %13968 = shalt.err (!%p13965_p13)
}
  0xb7   :  { %240 = dma.hbm_to_vmem [thread:$0]  %s14526_s27, 32, %s238_s16, [#allocation24]  }
  0xb8   :  { %s14413_s21 = smov [#allocation26]   ;;  %s14414_s0 = smov [#allocation29]  }
  0xb9   :  { %s261_s12 = sshll.u32 %s14413_s21, 4  ;;  %s283_s26 = sshll.u32 %s14414_s0, 4  ;;  %s262_s12 = int_to_ptr.vmem [resolvable:$true] %s261_s12  ;;  %s284_s26 = int_to_ptr.vmem [resolvable:$true] %s283_s26 }
  0xba   :  { %s13969_s2 = scalar_lea.hbm %s14546_s13, 32 }
  0xbb   :  { %p13970_p0 = scmp.ne.s32.totalorder %s14546_s13, %s13969_s2  ;;  %p13973_p1 = scmp.lt.u32.totalorder %s13969_s2, %s14546_s13 }
  0xbd   :  { %p13975_p2 = pnand %p13973_p1, %p13970_p0 }
  0xbf   :  { %13978 = shalt.err (!%p13975_p2)
}
  0xc0   :  { %s13979_s7 = scalar_lea.vmem %s262_s12, 32  ;;  %p13984_p4 = scmp.lt.s32.totalorder %s262_s12, %s262_s12 }
  0xc1   :  { %p13980_p3 = scmp.ne.s32.totalorder %s262_s12, %s13979_s7  ;;  %p13985_p5 = scmp.lt.s32.totalorder %s13979_s7, %s13979_s7 }
  0xc3   :  { %p13986_p6 = por %p13985_p5, %p13984_p4 }
  0xc5   :  { %p13987_p7 = pnand %p13986_p6, %p13980_p3 }
  0xc7   :  { %13990 = shalt.err (!%p13987_p7)
}
  0xc8   :  { %264 = dma.hbm_to_vmem [thread:$0]  %s14546_s13, 32, %s262_s12, [#allocation27]  }
  0xc9   :  { %s13991_s27 = scalar_lea.hbm %s14556_s24, 32 }
  0xca   :  { %p13992_p8 = scmp.ne.s32.totalorder %s14556_s24, %s13991_s27  ;;  %p13995_p9 = scmp.lt.u32.totalorder %s13991_s27, %s14556_s24 }
  0xcc   :  { %p13997_p10 = pnand %p13995_p9, %p13992_p8 }
  0xce   :  { %14000 = shalt.err (!%p13997_p10)
}
  0xcf   :  { %s14001_s3 = scalar_lea.vmem %s284_s26, 32  ;;  %p14006_p12 = scmp.lt.s32.totalorder %s284_s26, %s284_s26 }
  0xd0   :  { %p14002_p11 = scmp.ne.s32.totalorder %s284_s26, %s14001_s3  ;;  %p14007_p13 = scmp.lt.s32.totalorder %s14001_s3, %s14001_s3 }
  0xd2   :  { %p14008_p0 = por %p14007_p13, %p14006_p12 }
  0xd4   :  { %p14009_p1 = pnand %p14008_p0, %p14002_p11 }
  0xd6   :  { %14012 = shalt.err (!%p14009_p1)
}
  0xd7   :  { %286 = dma.hbm_to_vmem [thread:$0]  %s14556_s24, 32, %s284_s26, [#allocation30]  }
  0xd8   :  { %s14415_s10 = smov [#allocation32]   ;;  %s14416_s11 = smov [#allocation35]  }
  0xd9   :  { %s305_s13 = sshll.u32 %s14415_s10, 4  ;;  %s331_s14 = sshll.u32 %s14416_s11, 4  ;;  %s306_s13 = int_to_ptr.vmem [resolvable:$true] %s305_s13  ;;  %s332_s14 = int_to_ptr.vmem [resolvable:$true] %s331_s14 }
  0xda   :  { %s14013_s15 = scalar_lea.hbm %s14571_s4, 32 }
  0xdb   :  { %p14014_p2 = scmp.ne.s32.totalorder %s14571_s4, %s14013_s15  ;;  %p14017_p3 = scmp.lt.u32.totalorder %s14013_s15, %s14571_s4 }
  0xdd   :  { %p14019_p4 = pnand %p14017_p3, %p14014_p2 }
  0xdf   :  { %14022 = shalt.err (!%p14019_p4)
}
  0xe0   :  { %s14023_s16 = scalar_lea.vmem %s306_s13, 32  ;;  %p14028_p6 = scmp.lt.s32.totalorder %s306_s13, %s306_s13 }
  0xe1   :  { %p14024_p5 = scmp.ne.s32.totalorder %s306_s13, %s14023_s16  ;;  %p14029_p7 = scmp.lt.s32.totalorder %s14023_s16, %s14023_s16 }
  0xe3   :  { %p14030_p8 = por %p14029_p7, %p14028_p6 }
  0xe5   :  { %p14031_p9 = pnand %p14030_p8, %p14024_p5 }
  0xe7   :  { %14034 = shalt.err (!%p14031_p9)
}
  0xe8   :  { %308 = dma.hbm_to_vmem [thread:$0]  %s14571_s4, 32, %s306_s13, [#allocation33]  }
  0xe9   :  { %s14035_s24 = scalar_lea.hbm %s14596_s6, 256 }
  0xea   :  { %p14036_p10 = scmp.ne.s32.totalorder %s14596_s6, %s14035_s24  ;;  %p14039_p11 = scmp.lt.u32.totalorder %s14035_s24, %s14596_s6 }
  0xec   :  { %p14041_p12 = pnand %p14039_p11, %p14036_p10 }
  0xee   :  { %14044 = shalt.err (!%p14041_p12)
}
  0xef   :  { %s14045_s18 = scalar_lea.vmem %s332_s14, 256  ;;  %p14050_p0 = scmp.lt.s32.totalorder %s332_s14, %s332_s14 }
  0xf0   :  { %p14046_p13 = scmp.ne.s32.totalorder %s332_s14, %s14045_s18  ;;  %p14051_p1 = scmp.lt.s32.totalorder %s14045_s18, %s14045_s18 }
  0xf2   :  { %p14052_p2 = por %p14051_p1, %p14050_p0 }
  0xf4   :  { %p14053_p3 = pnand %p14052_p2, %p14046_p13 }
  0xf6   :  { %14056 = shalt.err (!%p14053_p3)
}
  0xf7   :  { %334 = dma.hbm_to_vmem [thread:$0]  %s14596_s6, 256, %s332_s14, [#allocation36]  }
  0xf8   :  { %s14417_s9 = smov [#allocation2]   ;;  %s14418_s22 = smov [#allocation7]  }
  0xf9   :  { %s95_s4 = sshll.u32 %s14417_s9, 4  ;;  %s119_s30 = sshll.u32 %s14418_s22, 4  ;;  %s96_s4 = int_to_ptr.vmem [resolvable:$true] %s95_s4  ;;  %s120_s30 = int_to_ptr.vmem [resolvable:$true] %s119_s30 }
  0xfa   :  { %s14057_s23 = scalar_lea.hbm %s14446_s5, 32 }
  0xfb   :  { %p14058_p4 = scmp.ne.s32.totalorder %s14446_s5, %s14057_s23  ;;  %p14061_p5 = scmp.lt.u32.totalorder %s14057_s23, %s14446_s5 }
  0xfd   :  { %p14063_p6 = pnand %p14061_p5, %p14058_p4 }
  0xff   :  { %14066 = shalt.err (!%p14063_p6)
}
 0x100   :  { %s14067_s21 = scalar_lea.vmem %s96_s4, 32  ;;  %p14072_p8 = scmp.lt.s32.totalorder %s96_s4, %s96_s4 }
 0x101   :  { %p14068_p7 = scmp.ne.s32.totalorder %s96_s4, %s14067_s21  ;;  %p14073_p9 = scmp.lt.s32.totalorder %s14067_s21, %s14067_s21 }
 0x103   :  { %p14074_p10 = por %p14073_p9, %p14072_p8 }
 0x105   :  { %p14075_p11 = pnand %p14074_p10, %p14068_p7 }
 0x107   :  { %14078 = shalt.err (!%p14075_p11)
}
 0x108   :  { %98 = dma.hbm_to_vmem [thread:$0]  %s14446_s5, 32, %s96_s4, [#allocation3]  }
 0x109   :  { %s14079_s6 = scalar_lea.hbm %s14461_s17, 16 }
 0x10a   :  { %p14080_p12 = scmp.ne.s32.totalorder %s14461_s17, %s14079_s6  ;;  %p14083_p13 = scmp.lt.u32.totalorder %s14079_s6, %s14461_s17 }
 0x10c   :  { %p14085_p0 = pnand %p14083_p13, %p14080_p12 }
 0x10e   :  { %14088 = shalt.err (!%p14085_p0)
}
 0x10f   :  { %s14089_s12 = scalar_lea.vmem %s120_s30, 16  ;;  %s14093_s0 = scalar_lea.vmem %s120_s30, 32 }
 0x110   :  { %p14090_p1 = scmp.ne.s32.totalorder %s120_s30, %s14089_s12  ;;  %p14094_p2 = scmp.lt.s32.totalorder %s120_s30, %s120_s30 }
 0x111   :  { %p14095_p3 = scmp.lt.s32.totalorder %s14093_s0, %s14089_s12 }
 0x113   :  { %p14096_p4 = por %p14095_p3, %p14094_p2 }
 0x115   :  { %p14097_p5 = pnand %p14096_p4, %p14090_p1 }
 0x117   :  { %14100 = shalt.err (!%p14097_p5)
}
 0x118   :  { %122 = dma.hbm_to_vmem [thread:$0]  %s14461_s17, 16, %s120_s30, [#allocation6]  }
 0x119   :  { %s14419_s5 = smov [#allocation10]   ;;  %s14420_s2 = smov [#allocation13]  }
 0x11a   :  { %s141_s26 = sshll.u32 %s14419_s5, 4  ;;  %s161_s7 = sshll.u32 %s14420_s2, 4  ;;  %s142_s26 = int_to_ptr.vmem [resolvable:$true] %s141_s26  ;;  %s162_s7 = int_to_ptr.vmem [resolvable:$true] %s161_s7 }
 0x11b   :  { %s14101_s27 = scalar_lea.hbm %s14476_s29, 32 }
 0x11c   :  { %p14102_p6 = scmp.ne.s32.totalorder %s14476_s29, %s14101_s27  ;;  %p14105_p7 = scmp.lt.u32.totalorder %s14101_s27, %s14476_s29 }
 0x11e   :  { %p14107_p8 = pnand %p14105_p7, %p14102_p6 }
 0x120   :  { %14110 = shalt.err (!%p14107_p8)
}
 0x121   :  { %s14111_s3 = scalar_lea.vmem %s142_s26, 32  ;;  %p14116_p10 = scmp.lt.s32.totalorder %s142_s26, %s142_s26 }
 0x122   :  { %p14112_p9 = scmp.ne.s32.totalorder %s142_s26, %s14111_s3  ;;  %p14117_p11 = scmp.lt.s32.totalorder %s14111_s3, %s14111_s3 }
 0x124   :  { %p14118_p12 = por %p14117_p11, %p14116_p10 }
 0x126   :  { %p14119_p13 = pnand %p14118_p12, %p14112_p9 }
 0x128   :  { %14122 = shalt.err (!%p14119_p13)
}
 0x129   :  { %s18414_s10 = sld [smem:[#allocation54_spill]] }
 0x12a   :  { %144 = dma.hbm_to_vmem [thread:$0]  %s14476_s29, 32, %s142_s26, [#allocation9]  }
 0x12f   :  { %s14123_s17 = scalar_lea.hbm %s18414_s10, 32 }
 0x130   :  { %p14124_p0 = scmp.ne.s32.totalorder %s18414_s10, %s14123_s17  ;;  %p14127_p1 = scmp.lt.u32.totalorder %s14123_s17, %s18414_s10 }
 0x132   :  { %p14129_p2 = pnand %p14127_p1, %p14124_p0 }
 0x134   :  { %14132 = shalt.err (!%p14129_p2)
}
 0x135   :  { %s14133_s13 = scalar_lea.vmem %s162_s7, 32  ;;  %p14138_p4 = scmp.lt.s32.totalorder %s162_s7, %s162_s7 }
 0x136   :  { %p14134_p3 = scmp.ne.s32.totalorder %s162_s7, %s14133_s13  ;;  %p14139_p5 = scmp.lt.s32.totalorder %s14133_s13, %s14133_s13 }
 0x138   :  { %p14140_p6 = por %p14139_p5, %p14138_p4 }
 0x13a   :  { %p14141_p7 = pnand %p14140_p6, %p14134_p3 }
 0x13c   :  { %14144 = shalt.err (!%p14141_p7)
}
 0x13d   :  { %s18415_s11 = sld [smem:[#allocation55_spill]]  ;;  %s14421_s14 = smov [#allocation16]  }
 0x13e   :  { %164 = dma.hbm_to_vmem [thread:$0]  %s18414_s10, 32, %s162_s7, [#allocation12]  }
 0x13f   :  { %s183_s29 = sshll.u32 %s14421_s14, 4  ;;  %s14422_s15 = smov [#allocation19]   ;;  %s184_s29 = int_to_ptr.vmem [resolvable:$true] %s183_s29 }
 0x140   :  { %s205_s16 = sshll.u32 %s14422_s15, 4  ;;  %s206_s16 = int_to_ptr.vmem [resolvable:$true] %s205_s16 }
 0x143   :  { %s14145_s24 = scalar_lea.hbm %s18415_s11, 16 }
 0x144   :  { %p14146_p8 = scmp.ne.s32.totalorder %s18415_s11, %s14145_s24  ;;  %p14149_p9 = scmp.lt.u32.totalorder %s14145_s24, %s18415_s11 }
 0x146   :  { %p14151_p10 = pnand %p14149_p9, %p14146_p8 }
 0x148   :  { %14154 = shalt.err (!%p14151_p10)
}
 0x149   :  { %s14155_s18 = scalar_lea.vmem %s184_s29, 16  ;;  %s14159_s9 = scalar_lea.vmem %s184_s29, 32 }
 0x14a   :  { %p14156_p11 = scmp.ne.s32.totalorder %s184_s29, %s14155_s18  ;;  %p14160_p12 = scmp.lt.s32.totalorder %s184_s29, %s184_s29 }
 0x14b   :  { %p14161_p13 = scmp.lt.s32.totalorder %s14159_s9, %s14155_s18 }
 0x14d   :  { %p14162_p0 = por %p14161_p13, %p14160_p12 }
 0x14f   :  { %p14163_p1 = pnand %p14162_p0, %p14156_p11 }
 0x151   :  { %14166 = shalt.err (!%p14163_p1)
}
 0x152   :  { %s18416_s4 = sld [smem:[#allocation57_spill]] }
 0x153   :  { %186 = dma.hbm_to_vmem [thread:$0]  %s18415_s11, 16, %s184_s29, [#allocation15]  }
 0x158   :  { %s14167_s22 = scalar_lea.hbm %s18416_s4, 16 }
 0x159   :  { %p14168_p2 = scmp.ne.s32.totalorder %s18416_s4, %s14167_s22  ;;  %p14171_p3 = scmp.lt.u32.totalorder %s14167_s22, %s18416_s4 }
 0x15b   :  { %p14173_p4 = pnand %p14171_p3, %p14168_p2 }
 0x15d   :  { %14176 = shalt.err (!%p14173_p4)
}
 0x15e   :  { %s14177_s30 = scalar_lea.vmem %s206_s16, 16  ;;  %s14181_s23 = scalar_lea.vmem %s206_s16, 32 }
 0x15f   :  { %p14178_p5 = scmp.ne.s32.totalorder %s206_s16, %s14177_s30  ;;  %p14182_p6 = scmp.lt.s32.totalorder %s206_s16, %s206_s16 }
 0x160   :  { %p14183_p7 = scmp.lt.s32.totalorder %s14181_s23, %s14177_s30 }
 0x162   :  { %p14184_p8 = por %p14183_p7, %p14182_p6 }
 0x164   :  { %p14185_p9 = pnand %p14184_p8, %p14178_p5 }
 0x166   :  { %14188 = shalt.err (!%p14185_p9)
}
 0x167   :  { %s18417_s21 = sld [smem:[#allocation58_spill]]  ;;  %s14423_s6 = smov [#allocation22]  }
 0x168   :  { %208 = dma.hbm_to_vmem [thread:$0]  %s18416_s4, 16, %s206_s16, [#allocation18]  }
 0x169   :  { %s224_s12 = sshll.u32 %s14423_s6, 4  ;;  %s225_s12 = int_to_ptr.vmem [resolvable:$true] %s224_s12 }
 0x16d   :  { %s14189_s0 = scalar_lea.hbm %s18417_s21, 4096 }
 0x16e   :  { %p14190_p10 = scmp.ne.s32.totalorder %s18417_s21, %s14189_s0  ;;  %p14193_p11 = scmp.lt.u32.totalorder %s14189_s0, %s18417_s21 }
 0x170   :  { %p14195_p12 = pnand %p14193_p11, %p14190_p10 }
 0x172   :  { %14198 = shalt.err (!%p14195_p12)
}
 0x173   :  { %s14199_s5 = scalar_lea.vmem %s225_s12, 4096  ;;  %p14204_p0 = scmp.lt.s32.totalorder %s225_s12, %s225_s12 }
 0x174   :  { %p14200_p13 = scmp.ne.s32.totalorder %s225_s12, %s14199_s5  ;;  %p14205_p1 = scmp.lt.s32.totalorder %s14199_s5, %s14199_s5 }
 0x176   :  { %p14206_p2 = por %p14205_p1, %p14204_p0 }
 0x178   :  { %p14207_p3 = pnand %p14206_p2, %p14200_p13 }
 0x17a   :  { %14210 = shalt.err (!%p14207_p3)
}
 0x17b   :  { %s14424_s26 = smov 256   ;;  %s18418_s2 = sld [smem:[#allocation61_spill]] }
 0x17c   :  { %s14425_s7 = smov 16   ;;  %s14426_s27 = smov [#allocation25]  }
 0x17d   :  { %230 = dma.hbm_to_vmem [thread:$0]  %s18417_s21, 4096, %s225_s12, [#allocation21], %s14424_s26, %s14424_s26, %s14425_s7  }
 0x17e   :  { %s251_s3 = sshll.u32 %s14426_s27, 4  ;;  %s14427_s10 = smov [#allocation28]   ;;  %s252_s3 = int_to_ptr.vmem [resolvable:$true] %s251_s3 }
 0x17f   :  { %s270_s17 = sshll.u32 %s14427_s10, 4  ;;  %s14704_s17 = int_to_ptr.vmem [resolvable:$true] %s270_s17 }
 0x181   :  { %s14211_s13 = scalar_lea.hbm %s18418_s2, 32 }
 0x182   :  { %p14212_p4 = scmp.ne.s32.totalorder %s18418_s2, %s14211_s13  ;;  %p14215_p5 = scmp.lt.u32.totalorder %s14211_s13, %s18418_s2 }
 0x184   :  { %p14217_p6 = pnand %p14215_p5, %p14212_p4 }
 0x186   :  { %14220 = shalt.err (!%p14217_p6)
}
 0x187   :  { %s14221_s11 = scalar_lea.vmem %s252_s3, 32  ;;  %p14226_p8 = scmp.lt.s32.totalorder %s252_s3, %s252_s3 }
 0x188   :  { %p14222_p7 = scmp.ne.s32.totalorder %s252_s3, %s14221_s11  ;;  %p14227_p9 = scmp.lt.s32.totalorder %s14221_s11, %s14221_s11 }
 0x18a   :  { %p14228_p10 = por %p14227_p9, %p14226_p8 }
 0x18c   :  { %p14229_p11 = pnand %p14228_p10, %p14222_p7 }
 0x18e   :  { %14232 = shalt.err (!%p14229_p11)
}
 0x18f   :  { %s18419_s14 = sld [smem:[#allocation62_spill]] }
 0x190   :  { %254 = dma.hbm_to_vmem [thread:$0]  %s18418_s2, 32, %s252_s3, [#allocation24]  }
 0x195   :  { %s14233_s29 = scalar_lea.hbm %s18419_s14, 8192 }
 0x196   :  { %p14234_p12 = scmp.ne.s32.totalorder %s18419_s14, %s14233_s29  ;;  %p14237_p13 = scmp.lt.u32.totalorder %s14233_s29, %s18419_s14 }
 0x198   :  { %p14239_p0 = pnand %p14237_p13, %p14234_p12 }
 0x19a   :  { %14242 = shalt.err (!%p14239_p0)
}
 0x19b   :  { %s14243_s15 = scalar_lea.vmem %s14704_s17, 8192  ;;  %p14248_p2 = scmp.lt.s32.totalorder %s14704_s17, %s14704_s17 }
 0x19c   :  { %p14244_p1 = scmp.ne.s32.totalorder %s14704_s17, %s14243_s15  ;;  %p14249_p3 = scmp.lt.s32.totalorder %s14243_s15, %s14243_s15 }
 0x19e   :  { %p14250_p4 = por %p14249_p3, %p14248_p2 }
 0x1a0   :  { %p14251_p5 = pnand %p14250_p4, %p14244_p1 }
 0x1a2   :  { %14254 = shalt.err (!%p14251_p5)
}
 0x1a3   :  { %s18420_s16 = sld [smem:[#allocation64_spill]]  ;;  %s14428_s24 = smov [#allocation31]  }
 0x1a4   :  { %276 = dma.hbm_to_vmem [thread:$0]  %s18419_s14, 8192, %s14704_s17, [#allocation27], %s14424_s26, %s14424_s26, %s14425_s7  }
 0x1a5   :  { %s295_s18 = sshll.u32 %s14428_s24, 4  ;;  %s14429_s9 = smov [#allocation34]   ;;  %s296_s18 = int_to_ptr.vmem [resolvable:$true] %s295_s18 }
 0x1a6   :  { %s315_s4 = sshll.u32 %s14429_s9, 4  ;;  %s316_s4 = int_to_ptr.vmem [resolvable:$true] %s315_s4 }
 0x1a9   :  { %s14255_s22 = scalar_lea.hbm %s18420_s16, 128 }
 0x1aa   :  { %p14256_p6 = scmp.ne.s32.totalorder %s18420_s16, %s14255_s22  ;;  %p14259_p7 = scmp.lt.u32.totalorder %s14255_s22, %s18420_s16 }
 0x1ac   :  { %p14261_p8 = pnand %p14259_p7, %p14256_p6 }
 0x1ae   :  { %14264 = shalt.err (!%p14261_p8)
}
 0x1af   :  { %s14265_s30 = scalar_lea.vmem %s296_s18, 128  ;;  %p14270_p10 = scmp.lt.s32.totalorder %s296_s18, %s296_s18 }
 0x1b0   :  { %p14266_p9 = scmp.ne.s32.totalorder %s296_s18, %s14265_s30  ;;  %p14271_p11 = scmp.lt.s32.totalorder %s14265_s30, %s14265_s30 }
 0x1b2   :  { %p14272_p12 = por %p14271_p11, %p14270_p10 }
 0x1b4   :  { %p14273_p13 = pnand %p14272_p12, %p14266_p9 }
 0x1b6   :  { %14276 = shalt.err (!%p14273_p13)
}
 0x1b7   :  { %s18421_s23 = sld [smem:[#allocation65_spill]] }
 0x1b8   :  { %298 = dma.hbm_to_vmem [thread:$0]  %s18420_s16, 128, %s296_s18, [#allocation30]  }
 0x1bd   :  { %s14277_s21 = scalar_lea.hbm %s18421_s23, 32 }
 0x1be   :  { %p14278_p0 = scmp.ne.s32.totalorder %s18421_s23, %s14277_s21  ;;  %p14281_p1 = scmp.lt.u32.totalorder %s14277_s21, %s18421_s23 }
 0x1c0   :  { %p14283_p2 = pnand %p14281_p1, %p14278_p0 }
 0x1c2   :  { %14286 = shalt.err (!%p14283_p2)
}
 0x1c3   :  { %s14287_s6 = scalar_lea.vmem %s316_s4, 32  ;;  %p14292_p4 = scmp.lt.s32.totalorder %s316_s4, %s316_s4 }
 0x1c4   :  { %p14288_p3 = scmp.ne.s32.totalorder %s316_s4, %s14287_s6  ;;  %p14293_p5 = scmp.lt.s32.totalorder %s14287_s6, %s14287_s6 }
 0x1c6   :  { %p14294_p6 = por %p14293_p5, %p14292_p4 }
 0x1c8   :  { %p14295_p7 = pnand %p14294_p6, %p14288_p3 }
 0x1ca   :  { %14298 = shalt.err (!%p14295_p7)
}
 0x1cb   :  { %318 = dma.hbm_to_vmem [thread:$0]  %s18421_s23, 32, %s316_s4, [#allocation33]  }
 0x1cc   :  { %s14430_s12 = smov [#allocation37]   ;;  %s14299_s5 = scalar_lea.hbm %s14611_s19, 16384 }
 0x1cd   :  { %s344_s0 = sshll.u32 %s14430_s12, 4  ;;  %p14300_p8 = scmp.ne.s32.totalorder %s14611_s19, %s14299_s5  ;;  %s345_s0 = int_to_ptr.vmem [resolvable:$true] %s344_s0 }
 0x1ce   :  { %p14303_p9 = scmp.lt.u32.totalorder %s14299_s5, %s14611_s19 }
 0x1d0   :  { %p14305_p10 = pnand %p14303_p9, %p14300_p8 }
 0x1d2   :  { %14308 = shalt.err (!%p14305_p10)
}
 0x1d3   :  { %s14309_s2 = scalar_lea.vmem %s345_s0, 16384  ;;  %p14314_p12 = scmp.lt.s32.totalorder %s345_s0, %s345_s0 }
 0x1d4   :  { %p14310_p11 = scmp.ne.s32.totalorder %s345_s0, %s14309_s2  ;;  %p14315_p13 = scmp.lt.s32.totalorder %s14309_s2, %s14309_s2 }
 0x1d6   :  { %p14316_p0 = por %p14315_p13, %p14314_p12 }
 0x1d8   :  { %p14317_p1 = pnand %p14316_p0, %p14310_p11 }
 0x1da   :  { %14320 = shalt.err (!%p14317_p1)
}
 0x1db   :  { %350 = dma.hbm_to_vmem [thread:$0]  %s14611_s19, 16384, %s345_s0, [#allocation36], %s14424_s26, %s14424_s26, %s14425_s7  }
 0x1dc   :  { %14343 = dma.done.wait [#allocation3], 32  }
 0x1dd   :  { %14344 = vsyncadd [#allocation3], 4294967264 }
 0x1de   :  { %14345 = dma.done.wait [#allocation6], 2064  }
 0x1df   :  { %14346 = vsyncadd [#allocation6], 4294965232 }
 0x1e0   :  { %14347 = dma.done.wait [#allocation9], 48  }
 0x1e1   :  { %14348 = vsyncadd [#allocation9], 4294967248 }
 0x1e2   :  { %14349 = dma.done.wait [#allocation12], 64  }
 0x1e3   :  { %14350 = vsyncadd [#allocation12], 4294967232 }
 0x1e4   :  { %14351 = dma.done.wait [#allocation15], 2064  }
 0x1e5   :  { %14352 = vsyncadd [#allocation15], 4294965232 }
 0x1e6   :  { %14353 = dma.done.wait [#allocation18], 144  }
 0x1e7   :  { %14354 = vsyncadd [#allocation18], 4294967152 }
 0x1e8   :  { %14355 = dma.done.wait [#allocation21], 4112  }
 0x1e9   :  { %14356 = vsyncadd [#allocation21], 4294963184 }
 0x1ea   :  { %14357 = dma.done.wait [#allocation24], 64  }
 0x1eb   :  { %14358 = vsyncadd [#allocation24], 4294967232 }
 0x1ec   :  { %14359 = dma.done.wait [#allocation27], 8224  }
 0x1ed   :  { %14360 = vsyncadd [#allocation27], 4294959072 }
 0x1ee   :  { %14361 = dma.done.wait [#allocation30], 160  }
 0x1ef   :  { %14362 = vsyncadd [#allocation30], 4294967136 }
 0x1f0   :  { %14363 = dma.done.wait [#allocation33], 64  }
 0x1f1   :  { %14364 = vsyncadd [#allocation33], 4294967232 }
 0x1f2   :  { %14365 = dma.done.wait [#allocation36], 16640  }
 0x1f3   :  { %14366 = vsyncadd [#allocation36], 4294950656  ;;  %v14431_v0 = vmov 0.0|0.0   ;;  %vm14432_vm0 = vmmov 0   ;;  %v18320_v1 = vmov 0.0   ;;  %v423_v2 = vld [vmem:[#allocation5] sm:$0xff] }
 0x1f4   :  { %12921 = vmatprep.subr.bf16.mxu0 %v14431_v0  ;;  %12803 = vmatprep.mubr.msk.f32.mxu0 %vm14432_vm0, %v18320_v1  ;;  %v424_v3 = vld [vmem:[#allocation5 + $0x8] sm:$0xff]  ;;  %v425_v4 = vld [vmem:[#allocation5 + $0x10] sm:$0xff]  ;;  %v426_v6 = vld [vmem:[#allocation5 + $0x18] sm:$0xff]  ;;  %s18422_s19 = sld [smem:[#allocation52_spill]]  ;;  %s18423_s26 = sld [smem:[#allocation53_spill]]  ;;  %vm518_vm1 = vcmask 1041408  }
 0x1f5   :  { %658 = vmatprep.mubr.f32.mxu1 %v18320_v1  ;;  %v12922_v5 = vpack.c.bf16 %v424_v3, %v423_v2  ;;  %v12925_v7 = vpack.c.bf16 %v426_v6, %v425_v4  ;;  %v427_v8 = vld [vmem:[#allocation5 + $0x20] sm:$0xff]  ;;  %v428_v9 = vld [vmem:[#allocation5 + $0x28] sm:$0xff]  ;;  %v429_v11 = vld [vmem:[#allocation5 + $0x30] sm:$0xff]  ;;  %s14435_s7 = smov 64   ;;  %s18426_s27 = sld [smem:[#allocation56_spill]]  ;;  %vm798_vm5 = vcmask 1040384  }
 0x1f6   :  { %v12928_v10 = vpack.c.bf16 %v428_v9, %v427_v8  ;;  %v430_v12 = vld [vmem:[#allocation5 + $0x38] sm:$0xff]  ;;  %v431_v14 = vld [vmem:[#allocation5 + $0x40] sm:$0xff]  ;;  %v432_v15 = vld [vmem:[#allocation5 + $0x48] sm:$0xff]  ;;  %vm803_vm6 = vcmask 1042432   ;;  %vm822_vm7 = vcmask 523264   ;;  %vm1016_vm8 = vcmask 64512  }
 0x1f7   :  { %12923 = vmatpush3.bf16.msra.mxu0 %v12922_v5  ;;  %v12931_v13 = vpack.c.bf16 %v430_v12, %v429_v11  ;;  %v12934_v16 = vpack.c.bf16 %v432_v15, %v431_v14  ;;  %v433_v17 = vld [vmem:[#allocation5 + $0x50] sm:$0xff]  ;;  %v434_v18 = vld [vmem:[#allocation5 + $0x58] sm:$0xff]  ;;  %v435_v20 = vld [vmem:[#allocation5 + $0x60] sm:$0xff]  ;;  %s18427_s3 = sld [smem:[#allocation59_spill]]  ;;  %vm1435_vm10 = vcmask 1046528   ;;  %s18429_s10 = sld [smem:[#allocation60_spill]] }
 0x1f8   :  { %12924 = vmatprep.subr.bf16.mxu0 %v14431_v0  ;;  %v12937_v19 = vpack.c.bf16 %v434_v18, %v433_v17  ;;  %v436_v21 = vld [vmem:[#allocation5 + $0x68] sm:$0xff]  ;;  %v437_v23 = vld [vmem:[#allocation5 + $0x70] sm:$0xff]  ;;  %v438_v24 = vld [vmem:[#allocation5 + $0x78] sm:$0xff]  ;;  %s18430_s17 = sld [smem:[#allocation63_spill]]  ;;  %vm2709_vm15 = vcmask 1043456   ;;  %s18431_s13 = sld [smem:[#allocation66_spill]] }
 0x1f9   :  { %v12940_v22 = vpack.c.bf16 %v436_v21, %v435_v20  ;;  %v12943_v25 = vpack.c.bf16 %v438_v24, %v437_v23  ;;  %v422_v26 = vld [vmem:[#allocation2] sm:$0x3]  ;;  %s18439_s11 = sld [smem:[#allocation68_spill]]  ;;  %s18440_s14 = sld [smem:[#allocation67_spill]] }
 0x1fa   :  { %v12382_v27 = vld [vmem:[%s18422_s19] ss:$0 sm:$0xff]  ;;  %v551_v32 = vld [vmem:[%s18423_s26 + $0x8] sm:$0xff]  ;;  %v553_v33 = vld [vmem:[%s18423_s26 + $0x18] sm:$0xff]  ;;  %s18506_s29 = sld [smem:[#allocation69_spill]] }
 0x1fb   :  { %12926 = vmatpush3.bf16.msra.mxu0 %v12925_v7  ;;  %v550_v34 = vld [vmem:[%s18423_s26] sm:$0xff]  ;;  %v12945_v35 = vpack.c.bf16 %v553_v33, %v551_v32  ;;  %v552_v36 = vld [vmem:[%s18423_s26 + $0x10] sm:$0xff]  ;;  %v555_v37 = vld [vmem:[%s18423_s26 + $0x28] sm:$0xff] }
 0x1fc   :  { %12927 = vmatprep.subr.bf16.mxu0 %v14431_v0  ;;  %v557_v38 = vld [vmem:[%s18423_s26 + $0x38] sm:$0xff]  ;;  %v12947_v39 = vpack.c.bf16 %v552_v36, %v550_v34  ;;  %v554_v41 = vld [vmem:[%s18423_s26 + $0x20] sm:$0xff]  ;;  %v556_v42 = vld [vmem:[%s18423_s26 + $0x30] sm:$0xff]  ;;  %v584_v34 = vlaneseq }
 0x1fd   :  { %v12949_v40 = vpack.c.bf16 %v557_v38, %v555_v37  ;;  %12946 = vmatprep.subr.bf16.mxu1 %v12945_v35  ;;  %v12951_v43 = vpack.c.bf16 %v556_v42, %v554_v41  ;;  %v559_v49 = vld [vmem:[%s18423_s26 + $0x48] sm:$0xff]  ;;  %v561_v50 = vld [vmem:[%s18423_s26 + $0x58] sm:$0xff]  ;;  %v558_v52 = vld [vmem:[%s18423_s26 + $0x40] sm:$0xff] }
 0x1fe   :  { %12948 = vmatpush1.bf16.msra.mxu1 %v12947_v39  ;;  %v12953_v51 = vpack.c.bf16 %v561_v50, %v559_v49  ;;  %v560_v53 = vld [vmem:[%s18423_s26 + $0x50] sm:$0xff]  ;;  %v563_v55 = vld [vmem:[%s18423_s26 + $0x68] sm:$0xff]  ;;  %v565_v56 = vld [vmem:[%s18423_s26 + $0x78] sm:$0xff]  ;;  %v14789_v35 = vshrl.u32 %v584_v34, 7 }
 0x1ff   :  { %12929 = vmatpush3.bf16.msra.mxu0 %v12928_v10  ;;  %12950 = vmatprep.subr.bf16.mxu1 %v12949_v40  ;;  %v12955_v54 = vpack.c.bf16 %v560_v53, %v558_v52  ;;  %v12957_v57 = vpack.c.bf16 %v565_v56, %v563_v55  ;;  %v562_v58 = vld [vmem:[%s18423_s26 + $0x60] sm:$0xff]  ;;  %v564_v59 = vld [vmem:[%s18423_s26 + $0x70] sm:$0xff]  ;;  %v567_v61 = vld [vmem:[%s18423_s26 + $0x88] sm:$0xff] }
 0x200   :  { %12930 = vmatprep.subr.bf16.mxu0 %v14431_v0  ;;  %v12959_v60 = vpack.c.bf16 %v564_v59, %v562_v58  ;;  %v569_v62 = vld [vmem:[%s18423_s26 + $0x98] sm:$0xff]  ;;  %v566_v63 = vld [vmem:[%s18423_s26 + $0x80] sm:$0xff]  ;;  %v568_v3 = vld [vmem:[%s18423_s26 + $0x90] sm:$0xff]  ;;  %v14792_v36 = vsub.s32 0, %v14789_v35  ;;  %v14795_v38 = vsub.s32 1, %v14789_v35 }
 0x201   :  { %v12961_v2 = vpack.c.bf16 %v569_v62, %v567_v61  ;;  %v571_v4 = vld [vmem:[%s18423_s26 + $0xa8] sm:$0xff]  ;;  %v573_v5 = vld [vmem:[%s18423_s26 + $0xb8] sm:$0xff]  ;;  %v12963_v6 = vpack.c.bf16 %v568_v3, %v566_v63  ;;  %v570_v8 = vld [vmem:[%s18423_s26 + $0xa0] sm:$0xff]  ;;  %v14434_v61 = vmov 1966171168  }
 0x202   :  { %12952 = vmatpush1.bf16.msra.mxu1 %v12951_v43  ;;  %v12965_v7 = vpack.c.bf16 %v573_v5, %v571_v4  ;;  %v572_v9 = vld [vmem:[%s18423_s26 + $0xb0] sm:$0xff]  ;;  %v575_v10 = vld [vmem:[%s18423_s26 + $0xc8] sm:$0xff]  ;;  %v577_v11 = vld [vmem:[%s18423_s26 + $0xd8] sm:$0xff]  ;;  %18424 = vst [vmem:[#allocation70_spill] sm:$0xff] %v14795_v38  ;;  %v722_v62 = vunpack.c.l.s4 %v14434_v61 }
 0x203   :  { %12932 = vmatpush3.bf16.msra.mxu0 %v12931_v13  ;;  %12954 = vmatprep.subr.bf16.mxu1 %v12953_v51  ;;  %v12967_v12 = vpack.c.bf16 %v572_v9, %v570_v8  ;;  %v12969_v13 = vpack.c.bf16 %v577_v11, %v575_v10  ;;  %v574_v14 = vld [vmem:[%s18423_s26 + $0xc0] sm:$0xff]  ;;  %v576_v15 = vld [vmem:[%s18423_s26 + $0xd0] sm:$0xff]  ;;  %v581_v17 = vld [vmem:[%s18423_s26 + $0xf8] sm:$0xff] }
 0x204   :  { %12933 = vmatprep.subr.bf16.mxu0 %v14431_v0  ;;  %v12971_v18 = vpack.c.bf16 %v576_v15, %v574_v14  ;;  %v578_v20 = vld [vmem:[%s18423_s26 + $0xe0] sm:$0xff]  ;;  %v580_v21 = vld [vmem:[%s18423_s26 + $0xf0] sm:$0xff]  ;;  %v666_v63 = vld [vmem:[#allocation13] sm:$0x3]  ;;  %v723_v9 = vunpack.c.0.s8 %v722_v62 }
 0x205   :  { %v582_v37 = vld [vmem:[#allocation10] sm:$0x3]  ;;  %v705_v8 = vrot.slane %v666_v63, %v14792_v36 }
 0x206   :  { %12956 = vmatpush1.bf16.msra.mxu1 %v12955_v54  ;;  %v587_v39 = vrot.slane %v582_v37, %v14792_v36  ;;  %v591_v40 = vrot.slane %v582_v37, %v14795_v38  ;;  %v14808_v14 = vsub.s32 %v723_v9, %v14789_v35 }
 0x207   :  { %12935 = vmatpush3.bf16.msra.mxu0 %v12934_v16  ;;  %12958 = vmatprep.subr.bf16.mxu1 %v12957_v57  ;;  %v579_v16 = vld [vmem:[%s18423_s26 + $0xe8] sm:$0xff] }
 0x208   :  { %12936 = vmatprep.subr.bf16.mxu0 %v14431_v0  ;;  %18425 = vst [vmem:[#allocation71_spill] sm:$0xff] %v14808_v14 }
 0x20a   :  { %12960 = vmatpush1.bf16.msra.mxu1 %v12959_v60  ;;  %v665_v60 = vld [vmem:[#allocation11] sm:$0x3] }
 0x20b   :  { %12938 = vmatpush3.bf16.msra.mxu0 %v12937_v19  ;;  %12962 = vmatprep.subr.bf16.mxu1 %v12961_v2  ;;  %v12973_v19 = vpack.c.bf16 %v581_v17, %v579_v16  ;;  %v692_v2 = vrot.slane %v665_v60, %v14792_v36  ;;  %v696_v3 = vrot.slane %v665_v60, %v14795_v38 }
 0x20c   :  { %12939 = vmatprep.subr.bf16.mxu0 %v14431_v0 }
 0x20e   :  { %12964 = vmatpush1.bf16.msra.mxu1 %v12963_v6 }
 0x20f   :  { %12941 = vmatpush3.bf16.msra.mxu0 %v12940_v22  ;;  %12966 = vmatprep.subr.bf16.mxu1 %v12965_v7  ;;  %v12975_v22 = vpack.c.bf16 %v580_v21, %v578_v20  ;;  %v709_v7 = vrot.slane %v666_v63, %v14795_v38  ;;  %v928_v63 = vld [vmem:[%s18426_s27] sm:$0xff] }
 0x210   :  { %12942 = vmatprep.subr.bf16.mxu0 %v14431_v0 }
 0x212   :  { %12968 = vmatpush1.bf16.msra.mxu1 %v12967_v12 }
 0x213   :  { %12944 = vmatpush3.bf16.msra.mxu0 %v12943_v25  ;;  %12970 = vmatprep.subr.bf16.mxu1 %v12969_v13 }
 0x214   :  { %12977 = vmatprep.subr.bf16.mxu0 %v14431_v0 }
 0x216   :  { %12804 = vmatmul.mubr.f32.vlgmr.msra.gmra.mrb[0].mxu0 %v422_v26  ;;  %12972 = vmatpush1.bf16.msra.mxu1 %v12971_v18 }
 0x217   :  { %12838 = vmatprep.mubr.msk.f32.mxu0 %vm14432_vm0, %v18320_v1  ;;  %12974 = vmatprep.subr.bf16.mxu1 %v12973_v19 }
 0x21a   :  { %12976 = vmatpush1.bf16.msra.mxu1 %v12975_v22 }
 0x21b   :  { %13001 = vmatprep.subr.bf16.mxu1 %v14431_v0 }
 0x2e9   :  { %v512_v28 = vpop.f32.mrb[0].mxu0 }
 0x2ea   :  { %v513_v29 = vadd.f32 %v12382_v27, %v512_v28  ;;  %v12805_v30 = vpop.f32.mrb[1].mxu0  ;;  %v12383_v27 = vld [vmem:[#allocation7] ss:$0 sm:$0xff] }
 0x2ec   :  { %v519_v31 = vsel %vm518_vm1, %v513_v29, 0.0 }
 0x2ed   :  { %520 = vadd.xlane.f32.xlu0 %v519_v31 }
 0x37a   :  { %v521_v44 = vpop.xlane.xlu0 %520 }
 0x37b   :  { %v523_v45 = vmul.f32 0.0078125, %v521_v44 }
 0x37d   :  { %v524_v46 = vsub.f32 %v513_v29, %v523_v45  ;;  %v12384_v29 = vld [vmem:[#allocation8] ss:$0 sm:$0xff] }
 0x37f   :  { %v525_v47 = vmul.f32 %v524_v46, %v524_v46 }
 0x381   :  { %v526_v48 = vsel %vm518_vm1, %v525_v47, 0.0 }
 0x382   :  { %527 = vadd.xlane.f32.xlu0 %v526_v48 }
 0x40f   :  { %v528_v23 = vpop.xlane.xlu0 %527 }
 0x410   :  { %v529_v24 = vmul.f32 0.0078125, %v528_v23 }
 0x412   :  { %v530_v25 = vadd.f32 1e-05, %v529_v24 }
 0x414   :  { %13793 = vrsqrt.f32 %v530_v25 }
 0x41e   :  { %v13794_v26 = vpop.eup %13793 }
 0x41f   :  { %v532_v28 = vmul.f32 %v13794_v26, %v524_v46 }
 0x421   :  { %v539_v30 = vmul.f32 %v12383_v27, %v532_v28  ;;  %v825_v28 = vld [vmem:[#allocation14] sm:$0xff] }
 0x423   :  { %v546_v31 = vadd.f32 %v12384_v29, %v539_v30  ;;  %v826_v29 = vld [vmem:[#allocation14 + $0x8] sm:$0xff]  ;;  %v827_v30 = vld [vmem:[#allocation14 + $0x10] sm:$0xff] }
 0x425   :  { %vm547_vm2 = vcmp.ge.f32.partialorder %v546_v31, 0.0  ;;  %v548_v32 = vmul.f32 0.01, %v546_v31 }
 0x427   :  { %v549_v33 = vsel %vm547_vm2, %v546_v31, %v548_v32  ;;  %v12978_v31 = vpack.c.bf16 %v826_v29, %v825_v28  ;;  %v828_v32 = vld [vmem:[#allocation14 + $0x18] sm:$0xff] }
 0x428   :  { %659 = vmatmul.mubr.f32.vlgmr.msra.gmra.mrb[0].mxu1 %v549_v33  ;;  %v12981_v37 = vpack.c.bf16 %v828_v32, %v827_v30  ;;  %v936_v28 = vld [vmem:[%s18426_s27 + $0x40] sm:$0xff]  ;;  %v937_v29 = vld [vmem:[%s18426_s27 + $0x48] sm:$0xff]  ;;  %v939_v32 = vld [vmem:[%s18426_s27 + $0x58] sm:$0xff] }
 0x429   :  { %12873 = vmatprep.mubr.msk.f32.mxu1 %vm14432_vm0, %v18320_v1  ;;  %12979 = vmatpush3.bf16.msra.mxu0 %v12978_v31  ;;  %v13014_v30 = vpack.c.bf16 %v937_v29, %v936_v28  ;;  %v938_v31 = vld [vmem:[%s18426_s27 + $0x50] sm:$0xff] }
 0x42a   :  { %12980 = vmatprep.subr.bf16.mxu0 %v14431_v0 }
 0x42d   :  { %12982 = vmatpush3.bf16.msra.mxu0 %v12981_v37  ;;  %v941_v37 = vld [vmem:[%s18426_s27 + $0x68] sm:$0xff] }
 0x42e   :  { %12983 = vmatprep.subr.bf16.mxu0 %v14431_v0 }
 0x4fb   :  { %v660_v41 = vpop.f32.mrb[0].mxu1 }
 0x4fc   :  { %v661_v42 = vadd.f32 %v660_v41, %v587_v39  ;;  %v662_v43 = vpop.f32.mrb[1].mxu1  ;;  %v829_v39 = vld [vmem:[#allocation14 + $0x20] sm:$0xff] }
 0x4fd   :  { %v663_v44 = vadd.f32 %v662_v43, %v591_v40  ;;  %v830_v40 = vld [vmem:[#allocation14 + $0x28] sm:$0xff]  ;;  %v831_v43 = vld [vmem:[#allocation14 + $0x30] sm:$0xff] }
 0x4fe   :  { %v667_v45 = vsel %vm518_vm1, %v661_v42, 0.0 }
 0x4ff   :  { %v668_v46 = vsel %vm518_vm1, %v663_v44, 0.0 }
 0x500   :  { %v669_v47 = vadd.f32 %v668_v46, %v667_v45  ;;  %v833_v46 = vld [vmem:[#allocation14 + $0x40] sm:$0xff] }
 0x502   :  { %670 = vadd.xlane.f32.xlu1 %v669_v47  ;;  %v834_v47 = vld [vmem:[#allocation14 + $0x48] sm:$0xff] }
 0x58f   :  { %v671_v48 = vpop.xlane.xlu1 %670 }
 0x590   :  { %v673_v49 = vmul.f32 0.00390625, %v671_v48  ;;  %v12990_v48 = vpack.c.bf16 %v834_v47, %v833_v46 }
 0x592   :  { %v674_v50 = vsub.f32 %v661_v42, %v673_v49  ;;  %v675_v51 = vsub.f32 %v663_v44, %v673_v49  ;;  %v12984_v42 = vpack.c.bf16 %v830_v40, %v829_v39  ;;  %v832_v44 = vld [vmem:[#allocation14 + $0x38] sm:$0xff]  ;;  %v835_v49 = vld [vmem:[#allocation14 + $0x50] sm:$0xff]  ;;  %v942_v40 = vld [vmem:[%s18426_s27 + $0x70] sm:$0xff] }
 0x593   :  { %v12987_v45 = vpack.c.bf16 %v832_v44, %v831_v43  ;;  %v1015_v43 = vld [vmem:[#allocation17] sm:$0xff]  ;;  %v12385_v44 = vld [vmem:[#allocation16] ss:$0 sm:$0xff] }
 0x594   :  { %v676_v52 = vmul.f32 %v674_v50, %v674_v50  ;;  %v677_v53 = vmul.f32 %v675_v51, %v675_v51  ;;  %12985 = vmatpush3.bf16.msra.mxu0 %v12984_v42 }
 0x595   :  { %12986 = vmatprep.subr.bf16.mxu0 %v14431_v0 }
 0x596   :  { %v678_v54 = vsel %vm518_vm1, %v676_v52, 0.0  ;;  %v679_v55 = vsel %vm518_vm1, %v677_v53, 0.0  ;;  %v837_v52 = vld [vmem:[#allocation14 + $0x60] sm:$0xff]  ;;  %v838_v53 = vld [vmem:[#allocation14 + $0x68] sm:$0xff] }
 0x597   :  { %v680_v56 = vadd.f32 %v679_v55, %v678_v54  ;;  %v12996_v54 = vpack.c.bf16 %v838_v53, %v837_v52  ;;  %v839_v55 = vld [vmem:[#allocation14 + $0x70] sm:$0xff] }
 0x598   :  { %12988 = vmatpush3.bf16.msra.mxu0 %v12987_v45 }
 0x599   :  { %681 = vadd.xlane.f32.xlu1 %v680_v56  ;;  %12989 = vmatprep.subr.bf16.mxu0 %v14431_v0  ;;  %v840_v56 = vld [vmem:[#allocation14 + $0x78] sm:$0xff] }
 0x59c   :  { %12991 = vmatpush3.bf16.msra.mxu0 %v12990_v48 }
 0x59d   :  { %12992 = vmatprep.subr.bf16.mxu0 %v14431_v0 }
 0x626   :  { %v682_v57 = vpop.xlane.xlu1 %681 }
 0x627   :  { %v683_v58 = vmul.f32 0.00390625, %v682_v57  ;;  %v12999_v57 = vpack.c.bf16 %v840_v56, %v839_v55 }
 0x629   :  { %v684_v59 = vadd.f32 1e-05, %v683_v58 }
 0x62b   :  { %13795 = vrsqrt.f32 %v684_v59 }
 0x635   :  { %v13796_v4 = vpop.eup %13795 }
 0x636   :  { %v686_v5 = vmul.f32 %v13796_v4, %v674_v50  ;;  %v687_v6 = vmul.f32 %v13796_v4, %v675_v51  ;;  %v836_v50 = vld [vmem:[#allocation14 + $0x58] sm:$0xff] }
 0x637   :  { %v12993_v51 = vpack.c.bf16 %v836_v50, %v835_v49 }
 0x638   :  { %v699_v10 = vmul.f32 %v692_v2, %v686_v5  ;;  %v700_v11 = vmul.f32 %v696_v3, %v687_v6  ;;  %v929_v2 = vld [vmem:[%s18426_s27 + $0x8] sm:$0xff]  ;;  %v930_v3 = vld [vmem:[%s18426_s27 + $0x10] sm:$0xff] }
 0x639   :  { %12994 = vmatpush3.bf16.msra.mxu0 %v12993_v51  ;;  %v14841_v6 = vpack.c.bf16 %v929_v2, %v928_v63 }
 0x63a   :  { %v713_v12 = vadd.f32 %v709_v7, %v700_v11  ;;  %v712_v13 = vadd.f32 %v705_v8, %v699_v10  ;;  %12995 = vmatprep.subr.bf16.mxu0 %v14431_v0  ;;  %v931_v7 = vld [vmem:[%s18426_s27 + $0x18] sm:$0xff]  ;;  %v932_v11 = vld [vmem:[%s18426_s27 + $0x20] sm:$0xff] }
 0x63b   :  { %13003 = vmatpush3.bf16.msra.mxu1 %v14841_v6  ;;  %v14848_v10 = vpack.c.bf16 %v931_v7, %v930_v3 }
 0x63c   :  { %vm715_vm3 = vcmp.ge.f32.partialorder %v713_v12, 0.0  ;;  %v717_v15 = vmul.f32 0.01, %v713_v12  ;;  %vm714_vm4 = vcmp.ge.f32.partialorder %v712_v13, 0.0  ;;  %v716_v16 = vmul.f32 0.01, %v712_v13  ;;  %13004 = vmatprep.subr.bf16.mxu1 %v14431_v0 }
 0x63d   :  { %12997 = vmatpush3.bf16.msra.mxu0 %v12996_v54 }
 0x63e   :  { %v719_v17 = vsel %vm715_vm3, %v713_v12, %v717_v15  ;;  %v718_v18 = vsel %vm714_vm4, %v712_v13, %v716_v16  ;;  %12998 = vmatprep.subr.bf16.mxu0 %v14431_v0  ;;  %v933_v12 = vld [vmem:[%s18426_s27 + $0x28] sm:$0xff] }
 0x63f   :  { %v752_v19 = vrot.slane %v719_v17, %v14808_v14  ;;  %v727_v20 = vrot.slane %v718_v18, %v14808_v14  ;;  %13006 = vmatpush3.bf16.msra.mxu1 %v14848_v10  ;;  %v14857_v18 = vpack.c.bf16 %v933_v12, %v932_v11  ;;  %v1173_v11 = vld [vmem:[#allocation19] sm:$0x1] }
 0x640   :  { %13007 = vmatprep.subr.bf16.mxu1 %v14431_v0 }
 0x641   :  { %v760_v21 = vrot.slane %v752_v19, %v14808_v14  ;;  %v735_v22 = vrot.slane %v727_v20, %v14808_v14  ;;  %v728_v23 = vcombine.high %v727_v20, %v727_v20  ;;  %v753_v27 = vcombine.high %v752_v19, %v752_v19  ;;  %13000 = vmatpush3.bf16.msra.mxu0 %v12999_v57  ;;  %v934_v19 = vld [vmem:[%s18426_s27 + $0x30] sm:$0xff]  ;;  %v935_v20 = vld [vmem:[%s18426_s27 + $0x38] sm:$0xff] }
 0x642   :  { %12916 = vmatprep.subr.mxu0 %v18320_v1 }
 0x643   :  { %v785_v24 = vrot.slane %v760_v21, %v14792_v36  ;;  %v771_v25 = vrot.slane %v735_v22, %v14792_v36  ;;  %v14817_v26 = vrot.slane %v728_v23, %v14808_v14  ;;  %v767_v34 = vrot.slane %v753_v27, %v14808_v14  ;;  %13009 = vmatpush3.bf16.msra.mxu1 %v14857_v18 }
 0x644   :  { %13010 = vmatprep.subr.bf16.mxu1 %v14431_v0 }
 0x645   :  { %792 = vrot.lane.b32.xlu1 %v785_v24, %s14435_s7  ;;  %776 = vrot.lane.b32.xlu0 %v771_v25, %s14435_s7  ;;  %v775_v33 = vrot.slane %v14817_v26, %v14792_v36  ;;  %v789_v41 = vrot.slane %v767_v34, %v14792_v36  ;;  %v940_v34 = vld [vmem:[%s18426_s27 + $0x60] sm:$0xff] }
 0x646   :  { %v13020_v39 = vpack.c.bf16 %v941_v37, %v940_v34 }
 0x649   :  { %778 = vrot.lane.b32.xlu1 %v775_v33, %s14435_s7  ;;  %v13017_v33 = vpack.c.bf16 %v939_v32, %v938_v31 }
 0x64d   :  { %794 = vrot.lane.b32.xlu1 %v789_v41, %s14435_s7 }
 0x6b7   :  { %v793_v58 = vpop.permute.xlu1 %792  ;;  %v777_v59 = vpop.permute.xlu0 %776 }
 0x6b8   :  { %v799_v60 = vsel %vm798_vm5, %v735_v22, %v777_v59  ;;  %v13011_v22 = vpack.c.bf16 %v935_v20, %v934_v19 }
 0x6b9   :  { %v801_v61 = vsel %vm518_vm1, %v799_v60, %v785_v24 }
 0x6ba   :  { %v804_v62 = vsel %vm803_vm6, %v801_v61, %v793_v58  ;;  %13012 = vmatpush3.bf16.msra.mxu1 %v13011_v22 }
 0x6bb   :  { %v779_v4 = vpop.permute.xlu1 %778  ;;  %v808_v5 = vrot.slane %v804_v62, 1  ;;  %13013 = vmatprep.subr.bf16.mxu1 %v14431_v0 }
 0x6bc   :  { %v800_v8 = vsel %vm798_vm5, %v14817_v26, %v779_v4 }
 0x6bd   :  { %v812_v9 = vsel %vm803_vm6, %v808_v5, 0.0  ;;  %v802_v13 = vsel %vm518_vm1, %v800_v8, %v789_v41  ;;  %v943_v41 = vld [vmem:[%s18426_s27 + $0x78] sm:$0xff] }
 0x6be   :  { %816 = vrot.lane.b32.xlu0 %v812_v9, %s14435_s7  ;;  %13015 = vmatpush3.bf16.msra.mxu1 %v13014_v30  ;;  %v13023_v42 = vpack.c.bf16 %v943_v41, %v942_v40 }
 0x6bf   :  { %v795_v15 = vpop.permute.xlu1 %794  ;;  %13016 = vmatprep.subr.bf16.mxu1 %v14431_v0 }
 0x6c0   :  { %v805_v16 = vsel %vm803_vm6, %v802_v13, %v795_v15 }
 0x6c1   :  { %v809_v17 = vrot.slane %v805_v16, 1 }
 0x6c2   :  { %13018 = vmatpush3.bf16.msra.mxu1 %v13017_v33 }
 0x6c3   :  { %v813_v21 = vsel %vm803_vm6, %v809_v17, 0.0  ;;  %13019 = vmatprep.subr.bf16.mxu1 %v14431_v0 }
 0x6c4   :  { %818 = vrot.lane.b32.xlu1 %v813_v21, %s14435_s7 }
 0x6c6   :  { %13021 = vmatpush3.bf16.msra.mxu1 %v13020_v39 }
 0x6c7   :  { %13022 = vmatprep.subr.bf16.mxu1 %v14431_v0 }
 0x6ca   :  { %13024 = vmatpush3.bf16.msra.mxu1 %v13023_v42 }
 0x6cb   :  { %12876 = vmatprep.subr.mxu1 %v18320_v1 }
 0x730   :  { %v817_v23 = vpop.permute.xlu0 %816 }
 0x731   :  { %v823_v25 = vsel %vm822_vm7, %v804_v62, %v817_v23 }
 0x736   :  { %v819_v24 = vpop.permute.xlu1 %818 }
 0x737   :  { %v824_v26 = vsel %vm822_vm7, %v805_v16, %v819_v24  ;;  %v12388_v16 = vld [vmem:[#allocation20] ss:$0 sm:$0xff] }
 0x738   :  { %v850_v27 = vcombine.low %v823_v25, %v824_v26 }
 0x73a   :  { %12839 = vmatmul.mubr.f32.vlgmr.msra.gmra.mrb[2].mxu0 %v850_v27 }
 0x73b   :  { %12918 = vmatprep.mubr.msk.f32.mxu0 %vm14432_vm0, %v18320_v1  ;;  %12917 = vmatpush3.msra.mxu0 %v1015_v43 }
 0x80d   :  { %v918_v45 = vpop.f32.mrb[2].mxu0 }
 0x80e   :  { %v919_v46 = vadd.f32 %v12385_v44, %v918_v45  ;;  %v12840_v47 = vpop.f32.mrb[3].mxu0  ;;  %v1451_v44 = vld [vmem:[#allocation22 + $0x8] sm:$0xff]  ;;  %v1453_v45 = vld [vmem:[#allocation22 + $0x18] sm:$0xff] }
 0x810   :  { %v922_v48 = vrot.slane %v919_v46, 4 }
 0x812   :  { %v923_v49 = vadd.f32 %v922_v48, %v919_v46  ;;  %v13049_v48 = vpack.c.bf16 %v1453_v45, %v1451_v44 }
 0x814   :  { %v924_v50 = vrot.slane %v923_v49, 2  ;;  %13050 = vmatprep.subr.bf16.mxu0 %v13049_v48 }
 0x816   :  { %v925_v51 = vadd.f32 %v924_v50, %v923_v49  ;;  %v1452_v49 = vld [vmem:[#allocation22 + $0x10] sm:$0xff]  ;;  %v1455_v50 = vld [vmem:[#allocation22 + $0x28] sm:$0xff] }
 0x818   :  { %v926_v52 = vrot.slane %v925_v51, 1 }
 0x81a   :  { %v927_v53 = vadd.f32 %v926_v52, %v925_v51  ;;  %v1457_v51 = vld [vmem:[#allocation22 + $0x38] sm:$0xff] }
 0x81c   :  { %12874 = vmatmul.mubr.f32.vlgmr.msra.gmra.mrb[2].mxu1 %v927_v53  ;;  %v13053_v53 = vpack.c.bf16 %v1457_v51, %v1455_v50 }
 0x81d   :  { %12877 = vmatpush3.msra.mxu1 %v1015_v43  ;;  %12878 = vmatprep.mubr.msk.f32.mxu1 %vm14432_vm0, %v18320_v1 }
 0x81e   :  { %13025 = vmatprep.subr.bf16.mxu1 %v14431_v0 }
 0x8ef   :  { %v1010_v54 = vpop.f32.mrb[2].mxu1 }
 0x8f0   :  { %v1014_v55 = vmul.f32 0.0078125, %v1010_v54  ;;  %v12875_v56 = vpop.f32.mrb[3].mxu1  ;;  %v1454_v54 = vld [vmem:[#allocation22 + $0x20] sm:$0xff] }
 0x8f1   :  { %v1459_v56 = vld [vmem:[#allocation22 + $0x48] sm:$0xff] }
 0x8f2   :  { %12879 = vmatmul.mubr.msk.f32.vlgmr.msra.gmra.mrb[4].mxu1 %vm1016_vm8, %v1014_v55  ;;  %v1456_v55 = vld [vmem:[#allocation22 + $0x30] sm:$0xff] }
 0x8f3   :  { %13027 = vmatpush3.bf16.msra.mxu1 %v14841_v6  ;;  %12913 = vmatprep.mubr.msk.f32.mxu1 %vm14432_vm0, %v18320_v1  ;;  %vm2705_vm0 = vcmask 31744  }
 0x8f4   :  { %13028 = vmatprep.subr.bf16.mxu1 %v14431_v0 }
 0x8f7   :  { %13030 = vmatpush3.bf16.msra.mxu1 %v14848_v10 }
 0x8f8   :  { %13031 = vmatprep.subr.bf16.mxu1 %v14431_v0 }
 0x8fb   :  { %13033 = vmatpush3.bf16.msra.mxu1 %v14857_v18 }
 0x8fc   :  { %13034 = vmatprep.subr.bf16.mxu1 %v14431_v0 }
 0x8ff   :  { %13036 = vmatpush3.bf16.msra.mxu1 %v13011_v22 }
 0x900   :  { %13037 = vmatprep.subr.bf16.mxu1 %v14431_v0 }
 0x903   :  { %13039 = vmatpush3.bf16.msra.mxu1 %v13014_v30 }
 0x904   :  { %13040 = vmatprep.subr.bf16.mxu1 %v14431_v0 }
 0x907   :  { %13042 = vmatpush3.bf16.msra.mxu1 %v13017_v33 }
 0x908   :  { %13043 = vmatprep.subr.bf16.mxu1 %v14431_v0 }
 0x90b   :  { %13045 = vmatpush3.bf16.msra.mxu1 %v13020_v39 }
 0x90c   :  { %13046 = vmatprep.subr.bf16.mxu1 %v14431_v0 }
 0x90f   :  { %13048 = vmatpush3.bf16.msra.mxu1 %v13023_v42 }
 0x9c5   :  { %v1086_v57 = vpop.f32.mrb[4].mxu1 }
 0x9c6   :  { %v1093_v58 = vrot.slane %v1086_v57, %v14792_v36  ;;  %v12880_v59 = vpop.f32.mrb[5].mxu1  ;;  %v1461_v57 = vld [vmem:[#allocation22 + $0x58] sm:$0xff] }
 0x9c7   :  { %v13057_v59 = vpack.c.bf16 %v1461_v57, %v1459_v56 }
 0x9c8   :  { %v1094_v60 = vsub.f32 %v919_v46, %v1093_v58  ;;  %v1450_v46 = vld [vmem:[#allocation22] sm:$0xff]  ;;  %v13055_v58 = vpack.c.bf16 %v1456_v55, %v1454_v54 }
 0x9c9   :  { %v13051_v52 = vpack.c.bf16 %v1452_v49, %v1450_v46 }
 0x9ca   :  { %v1095_v61 = vmul.f32 %v1094_v60, %v1094_v60 }
 0x9cc   :  { %v1096_v62 = vrot.slane %v1095_v61, 4 }
 0x9ce   :  { %v1097_v63 = vadd.f32 %v1096_v62, %v1095_v61  ;;  %v1460_v61 = vld [vmem:[#allocation22 + $0x50] sm:$0xff]  ;;  %v1463_v62 = vld [vmem:[#allocation22 + $0x68] sm:$0xff] }
 0x9d0   :  { %v1098_v2 = vrot.slane %v1097_v63, 2 }
 0x9d2   :  { %v1099_v3 = vadd.f32 %v1098_v2, %v1097_v63  ;;  %v1465_v63 = vld [vmem:[#allocation22 + $0x78] sm:$0xff] }
 0x9d4   :  { %v1100_v4 = vrot.slane %v1099_v3, 1 }
 0x9d6   :  { %v1101_v5 = vadd.f32 %v1100_v4, %v1099_v3  ;;  %v13061_v3 = vpack.c.bf16 %v1465_v63, %v1463_v62  ;;  %v1462_v4 = vld [vmem:[#allocation22 + $0x60] sm:$0xff] }
 0x9d7   :  { %v1585_v62 = vld [vmem:[%s18427_s3] sm:$0xff] }
 0x9d8   :  { %12914 = vmatmul.mubr.f32.vlgmr.msra.gmra.mrb[6].mxu1 %v1101_v5  ;;  %v1464_v5 = vld [vmem:[#allocation22 + $0x70] sm:$0xff] }
 0xaab   :  { %v1168_v6 = vpop.f32.mrb[6].mxu1 }
 0xaac   :  { %v1172_v7 = vmul.f32 0.0078125, %v1168_v6  ;;  %v12915_v8 = vpop.f32.mrb[7].mxu1  ;;  %v1467_v6 = vld [vmem:[#allocation22 + $0x88] sm:$0xff] }
 0xaad   :  { %v13063_v8 = vpack.c.bf16 %v1464_v5, %v1462_v4  ;;  %v1586_v5 = vld [vmem:[%s18427_s3 + $0x8] sm:$0xff] }
 0xaae   :  { %12919 = vmatmul.mubr.msk.f32.vlgmr.msra.gmra.mrb[4].mxu0 %vm1016_vm8, %v1172_v7  ;;  %v1469_v7 = vld [vmem:[#allocation22 + $0x98] sm:$0xff] }
 0xaaf   :  { %1558 = vmatprep.mubr.f32.mxu0 %v18320_v1  ;;  %13052 = vmatpush1.bf16.msra.mxu0 %v13051_v52 }
 0xab0   :  { %13054 = vmatprep.subr.bf16.mxu0 %v13053_v53 }
 0xab3   :  { %13056 = vmatpush1.bf16.msra.mxu0 %v13055_v58 }
 0xab4   :  { %13058 = vmatprep.subr.bf16.mxu0 %v13057_v59 }
 0xb81   :  { %v1243_v0 = vpop.f32.mrb[4].mxu0 }
 0xb82   :  { %v1244_v9 = vadd.f32 1e-05, %v1243_v0  ;;  %v12920_v10 = vpop.f32.mrb[5].mxu0  ;;  %v13065_v0 = vpack.c.bf16 %v1469_v7, %v1467_v6  ;;  %v1603_v6 = vld [vmem:[%s18427_s3 + $0x90] sm:$0xff]  ;;  %v1604_v7 = vld [vmem:[%s18427_s3 + $0x98] sm:$0xff] }
 0xb83   :  { %v1468_v10 = vld [vmem:[#allocation22 + $0x90] sm:$0xff] }
 0xb84   :  { %13797 = vrsqrt.f32 %v1244_v9  ;;  %v1466_v9 = vld [vmem:[#allocation22 + $0x80] sm:$0xff] }
 0xb8e   :  { %v13798_v12 = vpop.eup %13797 }
 0xb8f   :  { %v1248_v13 = vmul.f32 %v13798_v12, %v1173_v11  ;;  %v1471_v11 = vld [vmem:[#allocation22 + $0xa8] sm:$0xff]  ;;  %v1473_v12 = vld [vmem:[#allocation22 + $0xb8] sm:$0xff] }
 0xb91   :  { %v1253_v15 = vrot.slane %v1248_v13, %v14792_v36  ;;  %v13067_v13 = vpack.c.bf16 %v1468_v10, %v1466_v9 }
 0xb93   :  { %v1255_v17 = vmul.f32 %v1253_v15, %v1094_v60  ;;  %v1458_v60 = vld [vmem:[#allocation22 + $0x40] sm:$0xff]  ;;  %v13069_v15 = vpack.c.bf16 %v1473_v12, %v1471_v11 }
 0xb94   :  { %v13059_v2 = vpack.c.bf16 %v1460_v61, %v1458_v60  ;;  %v1602_v61 = vld [vmem:[%s18427_s3 + $0x88] sm:$0xff] }
 0xb95   :  { %v1263_v18 = vadd.f32 %v12388_v16, %v1255_v17  ;;  %v1470_v16 = vld [vmem:[#allocation22 + $0xa0] sm:$0xff]  ;;  %v1472_v17 = vld [vmem:[#allocation22 + $0xb0] sm:$0xff] }
 0xb96   :  { %13060 = vmatpush1.bf16.msra.mxu0 %v13059_v2 }
 0xb97   :  { %vm1264_vm9 = vcmp.ge.f32.partialorder %v1263_v18, 0.0  ;;  %v1265_v19 = vmul.f32 0.01, %v1263_v18  ;;  %13062 = vmatprep.subr.bf16.mxu0 %v13061_v3 }
 0xb99   :  { %v1266_v20 = vsel %vm1264_vm9, %v1263_v18, %v1265_v19  ;;  %v1475_v18 = vld [vmem:[#allocation22 + $0xc8] sm:$0xff]  ;;  %v1477_v19 = vld [vmem:[#allocation22 + $0xd8] sm:$0xff] }
 0xb9a   :  { %v1275_v21 = vrot.slane %v1266_v20, %v14808_v14  ;;  %v1268_v22 = vcombine.high %v1266_v20, %v1266_v20  ;;  %13064 = vmatpush1.bf16.msra.mxu0 %v13063_v8  ;;  %v13071_v20 = vpack.c.bf16 %v1472_v17, %v1470_v16 }
 0xb9b   :  { %13066 = vmatprep.subr.bf16.mxu0 %v13065_v0  ;;  %v14986_v0 = vpack.c.bf16 %v1586_v5, %v1585_v62  ;;  %v1599_v62 = vld [vmem:[%s18427_s3 + $0x70] sm:$0xff]  ;;  %v1689_v5 = vld [vmem:[%s18429_s10 + $0x8] sm:$0xff] }
 0xb9c   :  { %v14905_v23 = vrot.slane %v1275_v21, %v14808_v14  ;;  %v1276_v24 = vcombine.high %v1275_v21, %v1275_v21  ;;  %v1299_v25 = vrot.slane %v1268_v22, %v14808_v14  ;;  %v13073_v21 = vpack.c.bf16 %v1477_v19, %v1475_v18  ;;  %v1474_v22 = vld [vmem:[#allocation22 + $0xc0] sm:$0xff]  ;;  %v1587_v19 = vld [vmem:[%s18427_s3 + $0x10] sm:$0xff] }
 0xb9e   :  { %v1328_v26 = vrot.slane %v14905_v23, %v14792_v36  ;;  %v14911_v27 = vrot.slane %v1276_v24, %v14808_v14  ;;  %v14915_v28 = vcombine.high %v14905_v23, %v14905_v23  ;;  %v1300_v31 = vcombine.high %v1299_v25, %v1299_v25  ;;  %13068 = vmatpush1.bf16.msra.mxu0 %v13067_v13  ;;  %v1476_v24 = vld [vmem:[#allocation22 + $0xd0] sm:$0xff] }
 0xb9f   :  { %v14928_v33 = vrot.slane %v1299_v25, %v14808_v14  ;;  %13070 = vmatprep.subr.bf16.mxu0 %v13069_v15  ;;  %v1479_v25 = vld [vmem:[#allocation22 + $0xe8] sm:$0xff] }
 0xba0   :  { %1357 = vrot.lane.b32.xlu0 %v1328_v26, %s14435_s7  ;;  %v1332_v29 = vrot.slane %v14911_v27, %v14792_v36  ;;  %v14922_v30 = vcombine.high %v14911_v27, %v14911_v27  ;;  %v1336_v32 = vrot.slane %v14915_v28, %v14792_v36  ;;  %v14934_v37 = vrot.slane %v1300_v31, %v14808_v14  ;;  %v1481_v26 = vld [vmem:[#allocation22 + $0xf8] sm:$0xff] }
 0xba1   :  { %v1344_v39 = vrot.slane %v14928_v33, %v14792_v36  ;;  %v14941_v40 = vcombine.high %v14928_v33, %v14928_v33  ;;  %v13077_v31 = vpack.c.bf16 %v1481_v26, %v1479_v25  ;;  %v1589_v26 = vld [vmem:[%s18427_s3 + $0x20] sm:$0xff] }
 0xba2   :  { %1359 = vrot.lane.b32.xlu1 %v1332_v29, %s14435_s7  ;;  %v1340_v34 = vrot.slane %v14922_v30, %v14792_v36  ;;  %v1348_v41 = vrot.slane %v14934_v37, %v14792_v36  ;;  %v14948_v42 = vcombine.high %v14934_v37, %v14934_v37  ;;  %13072 = vmatpush1.bf16.msra.mxu0 %v13071_v20  ;;  %v1588_v20 = vld [vmem:[%s18427_s3 + $0x18] sm:$0xff] }
 0xba3   :  { %v1352_v43 = vrot.slane %v14941_v40, %v14792_v36  ;;  %v13075_v29 = vpack.c.bf16 %v1476_v24, %v1474_v22  ;;  %13074 = vmatprep.subr.bf16.mxu0 %v13073_v21  ;;  %v15005_v21 = vpack.c.bf16 %v1588_v20, %v1587_v19  ;;  %v1605_v22 = vld [vmem:[%s18427_s3 + $0xa0] sm:$0xff]  ;;  %v1606_v24 = vld [vmem:[%s18427_s3 + $0xa8] sm:$0xff] }
 0xba4   :  { %1361 = vrot.lane.b32.xlu0 %v1336_v32, %s14435_s7  ;;  %v1356_v47 = vrot.slane %v14948_v42, %v14792_v36  ;;  %v1478_v32 = vld [vmem:[#allocation22 + $0xe0] sm:$0xff]  ;;  %v15010_v25 = vpack.c.bf16 %v1606_v24, %v1605_v22 }
 0xba6   :  { %1363 = vrot.lane.b32.xlu1 %v1340_v34, %s14435_s7  ;;  %v1480_v34 = vld [vmem:[#allocation22 + $0xf0] sm:$0xff]  ;;  %13076 = vmatpush1.bf16.msra.mxu0 %v13075_v29 }
 0xba7   :  { %13078 = vmatprep.subr.bf16.mxu0 %v13077_v31  ;;  %v1590_v29 = vld [vmem:[%s18427_s3 + $0x28] sm:$0xff]  ;;  %v1607_v31 = vld [vmem:[%s18427_s3 + $0xb0] sm:$0xff] }
 0xba8   :  { %1365 = vrot.lane.b32.xlu0 %v1344_v39, %s14435_s7  ;;  %v13079_v39 = vpack.c.bf16 %v1480_v34, %v1478_v32  ;;  %v15015_v32 = vpack.c.bf16 %v1590_v29, %v1589_v26  ;;  %v1608_v34 = vld [vmem:[%s18427_s3 + $0xb8] sm:$0xff] }
 0xbaa   :  { %1367 = vrot.lane.b32.xlu1 %v1348_v41, %s14435_s7  ;;  %13080 = vmatpush1.bf16.msra.mxu0 %v13079_v39  ;;  %v14436_v41 = vmov 1983009808   ;;  %v15019_v39 = vpack.c.bf16 %v1608_v34, %v1607_v31 }
 0xbab   :  { %1693 = vmatprep.subr.mxu0 %v1689_v5 }
 0xbac   :  { %1369 = vrot.lane.b32.xlu0 %v1352_v43, %s14435_s7  ;;  %v1400_v43 = vunpack.c.l.s4 %v14436_v41  ;;  %v1591_v41 = vld [vmem:[%s18427_s3 + $0x30] sm:$0xff] }
 0xbae   :  { %1371 = vrot.lane.b32.xlu1 %v1356_v47, %s14435_s7  ;;  %v1401_v45 = vunpack.c.0.s8 %v1400_v43  ;;  %v1592_v43 = vld [vmem:[%s18427_s3 + $0x38] sm:$0xff] }
 0xbb0   :  { %v14962_v50 = vsub.s32 %v1401_v45, %v14789_v35  ;;  %v1609_v45 = vld [vmem:[%s18427_s3 + $0xc0] sm:$0xff] }
 0xbb2   :  { %18428 = vst [vmem:[#allocation72_spill] sm:$0xff] %v14962_v50 }
 0xc12   :  { %v1358_v44 = vpop.permute.xlu0 %1357 }
 0xc13   :  { %v1381_v49 = vsel %vm798_vm5, %v14905_v23, %v1358_v44  ;;  %v15025_v44 = vpack.c.bf16 %v1592_v43, %v1591_v41 }
 0xc14   :  { %v1360_v46 = vpop.permute.xlu1 %1359 }
 0xc15   :  { %v1382_v47 = vsel %vm798_vm5, %v14911_v27, %v1360_v46  ;;  %v1610_v46 = vld [vmem:[%s18427_s3 + $0xc8] sm:$0xff] }
 0xc16   :  { %v1362_v48 = vpop.permute.xlu0 %1361  ;;  %v1397_v51 = vcombine.low %v1381_v49, %v1382_v47  ;;  %v15030_v47 = vpack.c.bf16 %v1610_v46, %v1609_v45  ;;  %v1594_v49 = vld [vmem:[%s18427_s3 + $0x48] sm:$0xff] }
 0xc17   :  { %v1383_v53 = vsel %vm798_vm5, %v14915_v28, %v1362_v48  ;;  %v1593_v48 = vld [vmem:[%s18427_s3 + $0x40] sm:$0xff] }
 0xc18   :  { %v1364_v52 = vpop.permute.xlu1 %1363  ;;  %v1405_v56 = vrot.slane %v1397_v51, %v14962_v50  ;;  %v15034_v51 = vpack.c.bf16 %v1594_v49, %v1593_v48 }
 0xc19   :  { %v1384_v54 = vsel %vm798_vm5, %v14922_v30, %v1364_v52  ;;  %v1601_v30 = vld [vmem:[%s18427_s3 + $0x80] sm:$0xff]  ;;  %v1611_v52 = vld [vmem:[%s18427_s3 + $0xd0] sm:$0xff] }
 0xc1a   :  { %v1398_v55 = vcombine.low %v1383_v53, %v1384_v54  ;;  %v1366_v27 = vpop.permute.xlu0 %1365  ;;  %v14977_v4 = vpack.c.bf16 %v1602_v61, %v1601_v30  ;;  %v1612_v53 = vld [vmem:[%s18427_s3 + $0xd8] sm:$0xff]  ;;  %v1615_v30 = vld [vmem:[%s18427_s3 + $0xf0] sm:$0xff] }
 0xc1b   :  { %v1385_v28 = vsel %vm798_vm5, %v14928_v33, %v1366_v27  ;;  %v14988_v33 = vpack.c.bf16 %v1604_v7, %v1603_v6  ;;  %v15040_v54 = vpack.c.bf16 %v1612_v53, %v1611_v52  ;;  %v1596_v27 = vld [vmem:[%s18427_s3 + $0x58] sm:$0xff]  ;;  %v1688_v6 = vld [vmem:[%s18429_s10] sm:$0xff] }
 0xc1c   :  { %v1412_v23 = vrot.slane %v1398_v55, %v14962_v50  ;;  %v1368_v57 = vpop.permute.xlu1 %1367  ;;  %13082 = vmatprep.subr.bf16.mxu1 %v14977_v4  ;;  %v1595_v55 = vld [vmem:[%s18427_s3 + $0x50] sm:$0xff]  ;;  %v1616_v61 = vld [vmem:[%s18427_s3 + $0xf8] sm:$0xff] }
 0xc1d   :  { %v1386_v58 = vsel %vm798_vm5, %v14934_v37, %v1368_v57  ;;  %13084 = vmatpush3.bf16.msra.mxu1 %v14986_v0  ;;  %v1614_v57 = vld [vmem:[%s18427_s3 + $0xe8] sm:$0xff] }
 0xc1e   :  { %v1370_v59 = vpop.permute.xlu0 %1369  ;;  %v1413_v60 = vcombine.low %v1405_v56, %v1412_v23  ;;  %v1414_v63 = vcombine.low %v1385_v28, %v1386_v58  ;;  %13086 = vmatprep.subr.bf16.mxu1 %v14988_v33  ;;  %v15044_v56 = vpack.c.bf16 %v1596_v27, %v1595_v55  ;;  %v1613_v23 = vld [vmem:[%s18427_s3 + $0xe0] sm:$0xff] }
 0xc1f   :  { %v1387_v37 = vsel %vm798_vm5, %v14941_v40, %v1370_v59  ;;  %v15050_v58 = vpack.c.bf16 %v1614_v57, %v1613_v23  ;;  %v1597_v59 = vld [vmem:[%s18427_s3 + $0x60] sm:$0xff] }
 0xc20   :  { %v1372_v2 = vpop.permute.xlu1 %1371  ;;  %v1431_v3 = vrot.slane %v1413_v60, 1  ;;  %v1422_v11 = vrot.slane %v1414_v63, %v14962_v50  ;;  %v13109_v63 = vpack.c.bf16 %v1616_v61, %v1615_v30 }
 0xc21   :  { %v1388_v8 = vsel %vm798_vm5, %v14948_v42, %v1372_v2  ;;  %13088 = vmatpush3.bf16.msra.mxu1 %v15005_v21  ;;  %v1600_v2 = vld [vmem:[%s18427_s3 + $0x78] sm:$0xff] }
 0xc22   :  { %v1415_v9 = vcombine.low %v1387_v37, %v1388_v8  ;;  %v1436_v10 = vsel %vm1435_vm10, %v1431_v3, 0.0  ;;  %13090 = vmatprep.subr.bf16.mxu1 %v15010_v25  ;;  %v13111_v3 = vpack.c.bf16 %v1600_v2, %v1599_v62  ;;  %v1482_v8 = vld [vmem:[#allocation23] sm:$0x3] }
 0xc23   :  { %1442 = vrot.lane.b32.xlu0 %v1436_v10, %s14435_s7  ;;  %v1491_v10 = vrot.slane %v1482_v8, %v14795_v38 }
 0xc24   :  { %v1429_v40 = vrot.slane %v1415_v9, %v14962_v50  ;;  %v1487_v9 = vrot.slane %v1482_v8, %v14792_v36  ;;  %v2418_v8 = vld [vmem:[#allocation28 + $0x10] sm:$0xff] }
 0xc25   :  { %13092 = vmatpush3.bf16.msra.mxu1 %v15015_v32 }
 0xc26   :  { %v1430_v42 = vcombine.low %v1422_v11, %v1429_v40  ;;  %13094 = vmatprep.subr.bf16.mxu1 %v15019_v39 }
 0xc28   :  { %v1432_v12 = vrot.slane %v1430_v42, 1 }
 0xc29   :  { %13096 = vmatpush3.bf16.msra.mxu1 %v15025_v44 }
 0xc2a   :  { %v1437_v13 = vsel %vm1435_vm10, %v1432_v12, 0.0  ;;  %13098 = vmatprep.subr.bf16.mxu1 %v15030_v47 }
 0xc2b   :  { %1444 = vrot.lane.b32.xlu1 %v1437_v13, %s14435_s7 }
 0xc2d   :  { %13100 = vmatpush3.bf16.msra.mxu1 %v15034_v51 }
 0xc2e   :  { %13102 = vmatprep.subr.bf16.mxu1 %v15040_v54 }
 0xc31   :  { %13104 = vmatpush3.bf16.msra.mxu1 %v15044_v56 }
 0xc32   :  { %13106 = vmatprep.subr.bf16.mxu1 %v15050_v58 }
 0xc95   :  { %v1443_v15 = vpop.permute.xlu0 %1442 }
 0xc96   :  { %v1448_v16 = vsel %vm822_vm7, %v1413_v60, %v1443_v15  ;;  %v1598_v60 = vld [vmem:[%s18427_s3 + $0x68] sm:$0xff] }
 0xc97   :  { %1559 = vmatmul.mubr.f32.vlgmr.msra.gmra.mrb[6].mxu0 %v1448_v16  ;;  %v13107_v28 = vpack.c.bf16 %v1598_v60, %v1597_v59 }
 0xc98   :  { %1564 = vmatprep.mubr.f32.mxu0 %v18320_v1  ;;  %1694 = vmatpush1.msra.mxu0 %v1688_v6 }
 0xc99   :  { %13108 = vmatpush3.bf16.msra.mxu1 %v13107_v28  ;;  %13114 = vmatprep.subr.bf16.mxu0 %v14977_v4 }
 0xc9a   :  { %13110 = vmatprep.subr.bf16.mxu1 %v13109_v63 }
 0xc9d   :  { %v1445_v17 = vpop.permute.xlu1 %1444  ;;  %13112 = vmatpush3.bf16.msra.mxu1 %v13111_v3 }
 0xc9e   :  { %v1449_v18 = vsel %vm822_vm7, %v1430_v42, %v1445_v17  ;;  %1869 = vmatprep.subr.mxu1 %v1689_v5  ;;  %v2419_v5 = vld [vmem:[#allocation28 + $0x18] sm:$0xff] }
 0xc9f   :  { %1565 = vmatmul.mubr.f32.gmra.mrb[8].mxu0 %v1449_v18 }
 0xca0   :  { %1757 = vmatprep.mubr.f32.mxu0 %v18320_v1 }
 0xd6a   :  { %v1560_v7 = vpop.f32.mrb[6].mxu0 }
 0xd6b   :  { %v1562_v37 = vpop.f32.mrb[7].mxu0  ;;  %v1561_v40 = vadd.f32 %v1560_v7, %v1487_v9 }
 0xd6c   :  { %v1563_v13 = vadd.f32 %v1562_v37, %v1491_v10  ;;  %v2416_v37 = vld [vmem:[#allocation28] sm:$0xff] }
 0xd72   :  { %v1566_v11 = vpop.f32.mrb[8].mxu0 }
 0xd73   :  { %v1567_v42 = vadd.f32 %v1566_v11, %v1487_v9  ;;  %v1568_v12 = vpop.f32.mrb[9].mxu0  ;;  %v2423_v11 = vld [vmem:[#allocation28 + $0x38] sm:$0xff] }
 0xd74   :  { %v1569_v15 = vadd.f32 %v1568_v12, %v1491_v10  ;;  %v2421_v10 = vld [vmem:[#allocation28 + $0x28] sm:$0xff] }
 0xd75   :  { %v1571_v16 = vadd.f32 %v1567_v42, %v1561_v40 }
 0xd76   :  { %v1578_v17 = vadd.f32 %v1569_v15, %v1563_v13 }
 0xd77   :  { %v1572_v18 = vrot.slane %v1571_v16, 4 }
 0xd78   :  { %v1579_v19 = vrot.slane %v1578_v17, 4 }
 0xd79   :  { %v1573_v20 = vadd.f32 %v1572_v18, %v1571_v16  ;;  %v2422_v16 = vld [vmem:[#allocation28 + $0x30] sm:$0xff]  ;;  %v2427_v18 = vld [vmem:[#allocation28 + $0x58] sm:$0xff] }
 0xd7a   :  { %v1580_v22 = vadd.f32 %v1579_v19, %v1578_v17  ;;  %v2425_v17 = vld [vmem:[#allocation28 + $0x48] sm:$0xff] }
 0xd7b   :  { %v1574_v4 = vrot.slane %v1573_v20, 2 }
 0xd7c   :  { %v1581_v24 = vrot.slane %v1580_v22, 2 }
 0xd7d   :  { %v1575_v26 = vadd.f32 %v1574_v4, %v1573_v20  ;;  %v13153_v20 = vpack.c.bf16 %v2427_v18, %v2425_v17  ;;  %v2426_v4 = vld [vmem:[#allocation28 + $0x50] sm:$0xff]  ;;  %v2461_v17 = vld [vmem:[#allocation28 + $0x168] sm:$0xff]  ;;  %v2463_v18 = vld [vmem:[#allocation28 + $0x178] sm:$0xff] }
 0xd7e   :  { %v1582_v29 = vadd.f32 %v1581_v24, %v1580_v22  ;;  %v2424_v22 = vld [vmem:[#allocation28 + $0x40] sm:$0xff] }
 0xd7f   :  { %v1576_v31 = vrot.slane %v1575_v26, 1  ;;  %v13155_v24 = vpack.c.bf16 %v2426_v4, %v2424_v22  ;;  %v2460_v22 = vld [vmem:[#allocation28 + $0x160] sm:$0xff]  ;;  %v2462_v4 = vld [vmem:[#allocation28 + $0x170] sm:$0xff] }
 0xd80   :  { %v1583_v34 = vrot.slane %v1582_v29, 1 }
 0xd81   :  { %v1577_v43 = vadd.f32 %v1576_v31, %v1575_v26  ;;  %v2429_v26 = vld [vmem:[#allocation28 + $0x68] sm:$0xff] }
 0xd82   :  { %v1584_v41 = vadd.f32 %v1583_v34, %v1582_v29  ;;  %v2431_v29 = vld [vmem:[#allocation28 + $0x78] sm:$0xff]  ;;  %v2428_v34 = vld [vmem:[#allocation28 + $0x60] sm:$0xff] }
 0xd83   :  { %v13157_v31 = vpack.c.bf16 %v2431_v29, %v2429_v26  ;;  %v2467_v26 = vld [vmem:[#allocation28 + $0x198] sm:$0xff]  ;;  %v13191_v29 = vpack.c.bf16 %v2462_v4, %v2460_v22 }
 0xd84   :  { %1681 = vmatprep.mubr.f32.mxu1 %v1584_v41  ;;  %v2430_v41 = vld [vmem:[#allocation28 + $0x70] sm:$0xff] }
 0xd85   :  { %1682 = vmatmul.mubr.f32.vlgmr.msra.gmra.mrb[8].mxu1 %v1577_v43  ;;  %v13159_v43 = vpack.c.bf16 %v2430_v41, %v2428_v34  ;;  %v2464_v34 = vld [vmem:[#allocation28 + $0x180] sm:$0xff]  ;;  %v2466_v41 = vld [vmem:[#allocation28 + $0x190] sm:$0xff] }
 0xd86   :  { %1870 = vmatpush1.msra.mxu1 %v1688_v6  ;;  %1933 = vmatprep.mubr.f32.mxu1 %v18320_v1 }
 0xe58   :  { %v12523_v45 = vpop.f32.mrb[8].mxu1 }
 0xe59   :  { %v12524_v46 = vpop.f32.mrb[9].mxu1 }
 0xe5a   :  { %v12525_v48 = vadd.f32 %v12524_v46, %v12523_v45  ;;  %v2433_v45 = vld [vmem:[#allocation28 + $0x88] sm:$0xff]  ;;  %v2435_v46 = vld [vmem:[#allocation28 + $0x98] sm:$0xff] }
 0xe5c   :  { %v1687_v49 = vmul.f32 0.001953125, %v12525_v48  ;;  %v13161_v48 = vpack.c.bf16 %v2435_v46, %v2433_v45  ;;  %v2471_v45 = vld [vmem:[#allocation28 + $0x1b8] sm:$0xff]  ;;  %v13195_v46 = vpack.c.bf16 %v2466_v41, %v2464_v34 }
 0xe5e   :  { %12389 = vmatmul.mubr.msk.f32.vlgmr.msra.gmra.mrb[10].mxu0 %vm1016_vm8, %v1687_v49  ;;  %v2432_v49 = vld [vmem:[#allocation28 + $0x80] sm:$0xff] }
 0xe5f   :  { %13116 = vmatpush3.bf16.msra.mxu0 %v14986_v0 }
 0xe60   :  { %13118 = vmatprep.subr.bf16.mxu0 %v14988_v33 }
 0xe63   :  { %13120 = vmatpush3.bf16.msra.mxu0 %v15005_v21 }
 0xe64   :  { %13122 = vmatprep.subr.bf16.mxu0 %v15010_v25 }
 0xe67   :  { %13124 = vmatpush3.bf16.msra.mxu0 %v15015_v32 }
 0xe68   :  { %13126 = vmatprep.subr.bf16.mxu0 %v15019_v39 }
 0xe6b   :  { %13128 = vmatpush3.bf16.msra.mxu0 %v15025_v44 }
 0xe6c   :  { %13130 = vmatprep.subr.bf16.mxu0 %v15030_v47 }
 0xe6f   :  { %13132 = vmatpush3.bf16.msra.mxu0 %v15034_v51 }
 0xe70   :  { %13134 = vmatprep.subr.bf16.mxu0 %v15040_v54 }
 0xe73   :  { %13136 = vmatpush3.bf16.msra.mxu0 %v15044_v56 }
 0xe74   :  { %13138 = vmatprep.subr.bf16.mxu0 %v15050_v58 }
 0xe77   :  { %13140 = vmatpush3.bf16.msra.mxu0 %v13107_v28 }
 0xe78   :  { %13142 = vmatprep.subr.bf16.mxu0 %v13109_v63 }
 0xe7b   :  { %13144 = vmatpush3.bf16.msra.mxu0 %v13111_v3  ;;  %v2417_v3 = vld [vmem:[#allocation28 + $0x8] sm:$0xff] }
 0xe7c   :  { %v13145_v6 = vpack.c.bf16 %v2419_v5, %v2417_v3  ;;  %v2448_v5 = vld [vmem:[#allocation28 + $0x100] sm:$0xff] }
 0xe7e   :  { %13146 = vmatprep.subr.bf16.mxu1 %v13145_v6  ;;  %v2450_v6 = vld [vmem:[#allocation28 + $0x110] sm:$0xff] }
 0xf31   :  { %v1759_v0 = vpop.f32.mrb[10].mxu0 }
 0xf32   :  { %v1767_v33 = vrot.slane %v1759_v0, %v14792_v36  ;;  %v1761_v21 = vpop.f32.mrb[11].mxu0  ;;  %v2434_v0 = vld [vmem:[#allocation28 + $0x90] sm:$0xff] }
 0xf33   :  { %v1771_v25 = vrot.slane %v1761_v21, %v14792_v36  ;;  %v2437_v21 = vld [vmem:[#allocation28 + $0xa8] sm:$0xff] }
 0xf34   :  { %v15080_v32 = vsub.f32 %v1561_v40, %v1767_v33  ;;  %v15082_v39 = vsub.f32 %v1567_v42, %v1767_v33  ;;  %v13147_v42 = vpack.c.bf16 %v2418_v8, %v2416_v37  ;;  %v13163_v33 = vpack.c.bf16 %v2434_v0, %v2432_v49  ;;  %v2453_v37 = vld [vmem:[#allocation28 + $0x128] sm:$0xff]  ;;  %v2455_v8 = vld [vmem:[#allocation28 + $0x138] sm:$0xff]  ;;  %v2468_v49 = vld [vmem:[#allocation28 + $0x1a0] sm:$0xff] }
 0xf35   :  { %v15084_v44 = vsub.f32 %v1563_v13, %v1771_v25  ;;  %v15086_v47 = vsub.f32 %v1569_v15, %v1771_v25  ;;  %v13149_v13 = vpack.c.bf16 %v2423_v11, %v2421_v10  ;;  %v2420_v15 = vld [vmem:[#allocation28 + $0x20] sm:$0xff]  ;;  %v2439_v25 = vld [vmem:[#allocation28 + $0xb8] sm:$0xff]  ;;  %v2454_v11 = vld [vmem:[#allocation28 + $0x130] sm:$0xff] }
 0xf36   :  { %v1776_v51 = vmul.f32 %v15080_v32, %v15080_v32  ;;  %v1778_v52 = vmul.f32 %v15082_v39, %v15082_v39  ;;  %v13151_v19 = vpack.c.bf16 %v2422_v16, %v2420_v15  ;;  %v2452_v10 = vld [vmem:[#allocation28 + $0x120] sm:$0xff]  ;;  %v2458_v16 = vld [vmem:[#allocation28 + $0x150] sm:$0xff] }
 0xf37   :  { %v1777_v53 = vmul.f32 %v15084_v44, %v15084_v44  ;;  %v1779_v54 = vmul.f32 %v15086_v47, %v15086_v47  ;;  %v2470_v0 = vld [vmem:[#allocation28 + $0x1b0] sm:$0xff] }
 0xf38   :  { %v1780_v55 = vadd.f32 %v1778_v52, %v1776_v51  ;;  %v13165_v51 = vpack.c.bf16 %v2439_v25, %v2437_v21  ;;  %v2436_v52 = vld [vmem:[#allocation28 + $0xa0] sm:$0xff]  ;;  %v2475_v21 = vld [vmem:[#allocation28 + $0x1d8] sm:$0xff]  ;;  %v13199_v25 = vpack.c.bf16 %v2470_v0, %v2468_v49 }
 0xf39   :  { %v1787_v27 = vadd.f32 %v1779_v54, %v1777_v53  ;;  %v2438_v53 = vld [vmem:[#allocation28 + $0xb0] sm:$0xff] }
 0xf3a   :  { %v1781_v56 = vrot.slane %v1780_v55, 4  ;;  %v13167_v54 = vpack.c.bf16 %v2438_v53, %v2436_v52  ;;  %v2472_v52 = vld [vmem:[#allocation28 + $0x1c0] sm:$0xff]  ;;  %v2474_v53 = vld [vmem:[#allocation28 + $0x1d0] sm:$0xff] }
 0xf3b   :  { %v1788_v23 = vrot.slane %v1787_v27, 4 }
 0xf3c   :  { %v1782_v57 = vadd.f32 %v1781_v56, %v1780_v55  ;;  %v2441_v55 = vld [vmem:[#allocation28 + $0xc8] sm:$0xff] }
 0xf3d   :  { %v1789_v58 = vadd.f32 %v1788_v23, %v1787_v27  ;;  %v2443_v27 = vld [vmem:[#allocation28 + $0xd8] sm:$0xff]  ;;  %v2440_v23 = vld [vmem:[#allocation28 + $0xc0] sm:$0xff] }
 0xf3e   :  { %v1783_v59 = vrot.slane %v1782_v57, 2  ;;  %v13169_v56 = vpack.c.bf16 %v2443_v27, %v2441_v55  ;;  %v2479_v55 = vld [vmem:[#allocation28 + $0x1f8] sm:$0xff]  ;;  %v13203_v27 = vpack.c.bf16 %v2474_v53, %v2472_v52 }
 0xf3f   :  { %v1790_v60 = vrot.slane %v1789_v58, 2 }
 0xf40   :  { %v1784_v28 = vadd.f32 %v1783_v59, %v1782_v57  ;;  %v2442_v57 = vld [vmem:[#allocation28 + $0xd0] sm:$0xff]  ;;  %v2445_v59 = vld [vmem:[#allocation28 + $0xe8] sm:$0xff] }
 0xf41   :  { %v1791_v30 = vadd.f32 %v1790_v60, %v1789_v58  ;;  %v13171_v58 = vpack.c.bf16 %v2442_v57, %v2440_v23  ;;  %v2447_v60 = vld [vmem:[#allocation28 + $0xf8] sm:$0xff]  ;;  %v2476_v23 = vld [vmem:[#allocation28 + $0x1e0] sm:$0xff]  ;;  %v2478_v57 = vld [vmem:[#allocation28 + $0x1f0] sm:$0xff] }
 0xf42   :  { %v1785_v61 = vrot.slane %v1784_v28, 1 }
 0xf43   :  { %v1792_v62 = vrot.slane %v1791_v30, 1 }
 0xf44   :  { %v1786_v2 = vadd.f32 %v1785_v61, %v1784_v28  ;;  %v13173_v28 = vpack.c.bf16 %v2447_v60, %v2445_v59  ;;  %v2446_v61 = vld [vmem:[#allocation28 + $0xf0] sm:$0xff]  ;;  %v2615_v59 = vld [vmem:[%s18430_s17 + $0x80] sm:$0xff]  ;;  %v2616_v60 = vld [vmem:[%s18430_s17 + $0x88] sm:$0xff] }
 0xf45   :  { %v1793_v63 = vadd.f32 %v1792_v62, %v1791_v30  ;;  %v2444_v30 = vld [vmem:[#allocation28 + $0xe0] sm:$0xff] }
 0xf46   :  { %v13175_v62 = vpack.c.bf16 %v2446_v61, %v2444_v30 }
 0xf47   :  { %1858 = vmatprep.mubr.f32.mxu0 %v1793_v63  ;;  %v2449_v63 = vld [vmem:[#allocation28 + $0x108] sm:$0xff] }
 0xf48   :  { %1859 = vmatmul.mubr.f32.vlgmr.msra.gmra.mrb[12].mxu0 %v1786_v2  ;;  %v2451_v2 = vld [vmem:[#allocation28 + $0x118] sm:$0xff] }
 0xf49   :  { %2778 = vmatprep.mubr.f32.mxu0 %v18320_v1  ;;  %v13177_v3 = vpack.c.bf16 %v2451_v2, %v2449_v63 }
0x101b   :  { %v12558_v7 = vpop.f32.mrb[12].mxu0 }
0x101c   :  { %v12559_v9 = vpop.f32.mrb[13].mxu0 }
0x101d   :  { %v12560_v40 = vadd.f32 %v12559_v9, %v12558_v7  ;;  %v13179_v7 = vpack.c.bf16 %v2450_v6, %v2448_v5  ;;  %v13181_v9 = vpack.c.bf16 %v2455_v8, %v2453_v37  ;;  %v1976_v8 = vld [vmem:[#allocation26] sm:$0x3] }
0x101f   :  { %v1864_v12 = vmul.f32 0.001953125, %v12560_v40  ;;  %v13183_v40 = vpack.c.bf16 %v2454_v11, %v2452_v10 }
0x1021   :  { %12390 = vmatmul.mubr.msk.f32.vlgmr.msra.gmra.mrb[10].mxu1 %vm1016_vm8, %v1864_v12  ;;  %v2459_v12 = vld [vmem:[#allocation28 + $0x158] sm:$0xff] }
0x1022   :  { %13148 = vmatpush1.bf16.msra.mxu1 %v13147_v42  ;;  %v2457_v42 = vld [vmem:[#allocation28 + $0x148] sm:$0xff] }
0x1023   :  { %13150 = vmatprep.subr.bf16.mxu1 %v13149_v13  ;;  %v2456_v13 = vld [vmem:[#allocation28 + $0x140] sm:$0xff]  ;;  %v13185_v15 = vpack.c.bf16 %v2459_v12, %v2457_v42  ;;  %v1985_v42 = vrot.slane %v1976_v8, %v14795_v38 }
0x1026   :  { %13152 = vmatpush1.bf16.msra.mxu1 %v13151_v19  ;;  %v13187_v19 = vpack.c.bf16 %v2458_v16, %v2456_v13 }
0x1027   :  { %13154 = vmatprep.subr.bf16.mxu1 %v13153_v20  ;;  %v13189_v20 = vpack.c.bf16 %v2463_v18, %v2461_v17 }
0x102a   :  { %13156 = vmatpush1.bf16.msra.mxu1 %v13155_v24  ;;  %v2465_v24 = vld [vmem:[#allocation28 + $0x188] sm:$0xff] }
0x102b   :  { %13158 = vmatprep.subr.bf16.mxu1 %v13157_v31  ;;  %v13193_v31 = vpack.c.bf16 %v2467_v26, %v2465_v24 }
0x102e   :  { %13160 = vmatpush1.bf16.msra.mxu1 %v13159_v43  ;;  %v2469_v43 = vld [vmem:[#allocation28 + $0x1a8] sm:$0xff] }
0x102f   :  { %13162 = vmatprep.subr.bf16.mxu1 %v13161_v48  ;;  %v13197_v48 = vpack.c.bf16 %v2471_v45, %v2469_v43 }
0x1032   :  { %13164 = vmatpush1.bf16.msra.mxu1 %v13163_v33  ;;  %v2473_v33 = vld [vmem:[#allocation28 + $0x1c8] sm:$0xff] }
0x1033   :  { %13166 = vmatprep.subr.bf16.mxu1 %v13165_v51  ;;  %v13201_v51 = vpack.c.bf16 %v2475_v21, %v2473_v33 }
0x1036   :  { %13168 = vmatpush1.bf16.msra.mxu1 %v13167_v54  ;;  %v2477_v54 = vld [vmem:[#allocation28 + $0x1e8] sm:$0xff] }
0x1037   :  { %13170 = vmatprep.subr.bf16.mxu1 %v13169_v56  ;;  %v13205_v56 = vpack.c.bf16 %v2479_v55, %v2477_v54 }
0x103a   :  { %13172 = vmatpush1.bf16.msra.mxu1 %v13171_v58  ;;  %v13207_v58 = vpack.c.bf16 %v2478_v57, %v2476_v23 }
0x103b   :  { %13174 = vmatprep.subr.bf16.mxu1 %v13173_v28  ;;  %v15100_v28 = vpack.c.bf16 %v2616_v60, %v2615_v59 }
0x103e   :  { %13176 = vmatpush1.bf16.msra.mxu1 %v13175_v62 }
0x103f   :  { %13178 = vmatprep.subr.bf16.mxu1 %v13177_v3 }
0x1042   :  { %13180 = vmatpush1.bf16.msra.mxu1 %v13179_v7  ;;  %v1865_v7 = vld [vmem:[#allocation25] sm:$0x3] }
0x1043   :  { %13182 = vmatprep.subr.bf16.mxu1 %v13181_v9 }
0x1046   :  { %13184 = vmatpush1.bf16.msra.mxu1 %v13183_v40  ;;  %v1981_v40 = vrot.slane %v1976_v8, %v14792_v36 }
0x1047   :  { %13186 = vmatprep.subr.bf16.mxu1 %v13185_v15 }
0x104a   :  { %13188 = vmatpush1.bf16.msra.mxu1 %v13187_v19 }
0x104b   :  { %13190 = vmatprep.subr.bf16.mxu1 %v13189_v20 }
0x104e   :  { %13192 = vmatpush1.bf16.msra.mxu1 %v13191_v29 }
0x104f   :  { %13194 = vmatprep.subr.bf16.mxu1 %v13193_v31 }
0x1052   :  { %13196 = vmatpush1.bf16.msra.mxu1 %v13195_v46 }
0x1053   :  { %13198 = vmatprep.subr.bf16.mxu1 %v13197_v48 }
0x1056   :  { %13200 = vmatpush1.bf16.msra.mxu1 %v13199_v25 }
0x1057   :  { %13202 = vmatprep.subr.bf16.mxu1 %v13201_v51 }
0x105a   :  { %13204 = vmatpush1.bf16.msra.mxu1 %v13203_v27 }
0x105b   :  { %13206 = vmatprep.subr.bf16.mxu1 %v13205_v56 }
0x105e   :  { %13208 = vmatpush1.bf16.msra.mxu1 %v13207_v58 }
0x105f   :  { %13210 = vmatprep.subr.bf16.mxu1 %v15100_v28 }
0x10f4   :  { %v1935_v30 = vpop.f32.mrb[10].mxu1 }
0x10f5   :  { %v1936_v61 = vadd.f32 1e-05, %v1935_v30  ;;  %v1937_v62 = vpop.f32.mrb[11].mxu1 }
0x10f6   :  { %v1938_v63 = vadd.f32 1e-05, %v1937_v62 }
0x10f7   :  { %13799 = vrsqrt.f32 %v1936_v61 }
0x10f8   :  { %13801 = vrsqrt.f32 %v1938_v63 }
0x1101   :  { %v13800_v2 = vpop.eup %13799 }
0x1102   :  { %v13802_v3 = vpop.eup %13801 }
0x1103   :  { %v1944_v5 = vcombine.low %v13800_v2, %v13802_v3 }
0x1105   :  { %v1951_v6 = vrot.slane %v1944_v5, %v14808_v14 }
0x1107   :  { %v1958_v37 = vrot.slane %v1951_v6, %v14808_v14 }
0x1109   :  { %v1960_v9 = vmul.f32 %v1958_v37, %v1865_v7 }
0x110b   :  { %v1965_v10 = vrot.slane %v1960_v9, %v14792_v36  ;;  %v1969_v11 = vrot.slane %v1960_v9, %v14795_v38 }
0x110d   :  { %v1972_v12 = vmul.f32 %v1965_v10, %v15080_v32  ;;  %v1973_v13 = vmul.f32 %v1969_v11, %v15084_v44  ;;  %v1974_v15 = vmul.f32 %v1965_v10, %v15082_v39  ;;  %v1975_v16 = vmul.f32 %v1969_v11, %v15086_v47 }
0x110f   :  { %v1988_v17 = vadd.f32 %v1981_v40, %v1972_v12  ;;  %v1989_v18 = vadd.f32 %v1985_v42, %v1973_v13  ;;  %v1990_v19 = vadd.f32 %v1981_v40, %v1974_v15  ;;  %v1991_v4 = vadd.f32 %v1985_v42, %v1975_v16 }
0x1111   :  { %vm1992_vm11 = vcmp.ge.f32.partialorder %v1988_v17, 0.0  ;;  %vm1993_vm12 = vcmp.ge.f32.partialorder %v1989_v18, 0.0  ;;  %v1996_v20 = vmul.f32 0.01, %v1988_v17  ;;  %v1997_v22 = vmul.f32 0.01, %v1989_v18 }
0x1112   :  { %vm1994_vm13 = vcmp.ge.f32.partialorder %v1990_v19, 0.0  ;;  %v1998_v24 = vmul.f32 0.01, %v1990_v19  ;;  %vm1995_vm14 = vcmp.ge.f32.partialorder %v1991_v4, 0.0  ;;  %v1999_v49 = vmul.f32 0.01, %v1991_v4 }
0x1113   :  { %v2000_v26 = vsel %vm1992_vm11, %v1988_v17, %v1996_v20  ;;  %v2001_v29 = vsel %vm1993_vm12, %v1989_v18, %v1997_v22 }
0x1114   :  { %v2006_v31 = vcombine.high %v2000_v26, %v2000_v26  ;;  %v2013_v32 = vrot.slane %v2000_v26, %v14808_v14  ;;  %v2122_v44 = vcombine.high %v2001_v29, %v2001_v29  ;;  %v2129_v39 = vrot.slane %v2001_v29, %v14808_v14 }
0x1115   :  { %v2002_v34 = vsel %vm1994_vm13, %v1990_v19, %v1998_v24  ;;  %v2003_v19 = vsel %vm1995_vm14, %v1991_v4, %v1999_v49 }
0x1116   :  { %v2020_v47 = vrot.slane %v2006_v31, %v14808_v14  ;;  %v2021_v41 = vcombine.high %v2013_v32, %v2013_v32  ;;  %v2029_v43 = vrot.slane %v2013_v32, %v14808_v14  ;;  %v2136_v45 = vrot.slane %v2122_v44, %v14808_v14 }
0x1117   :  { %v2137_v46 = vcombine.high %v2129_v39, %v2129_v39  ;;  %v2145_v48 = vrot.slane %v2129_v39, %v14808_v14  ;;  %v2055_v0 = vcombine.high %v2002_v34, %v2002_v34  ;;  %v2062_v51 = vrot.slane %v2002_v34, %v14808_v14 }
0x1118   :  { %v2022_v33 = vcombine.high %v2020_v47, %v2020_v47  ;;  %v2036_v21 = vrot.slane %v2020_v47, %v14808_v14  ;;  %v2043_v25 = vrot.slane %v2021_v41, %v14808_v14  ;;  %v2138_v52 = vcombine.high %v2136_v45, %v2136_v45 }
0x1119   :  { %v2152_v53 = vrot.slane %v2136_v45, %v14808_v14  ;;  %v2159_v54 = vrot.slane %v2137_v46, %v14808_v14  ;;  %v2167_v55 = vcombine.high %v2145_v48, %v2145_v48  ;;  %v2051_v56 = vcombine.high %v2029_v43, %v2029_v43 }
0x111a   :  { %v2050_v27 = vrot.slane %v2022_v33, %v14808_v14  ;;  %v2052_v23 = vcombine.high %v2036_v21, %v2036_v21  ;;  %v2223_v57 = vrot.slane %v2145_v48, %v14792_v36  ;;  %v2166_v58 = vrot.slane %v2138_v52, %v14808_v14 }
0x111b   :  { %v2168_v59 = vcombine.high %v2152_v53, %v2152_v53  ;;  %v2169_v60 = vcombine.high %v2159_v54, %v2159_v54  ;;  %v2227_v30 = vrot.slane %v2159_v54, %v14792_v36  ;;  %v2053_v61 = vcombine.high %v2043_v25, %v2043_v25 }
0x111c   :  { %v2054_v62 = vcombine.high %v2050_v27, %v2050_v27  ;;  %v2231_v63 = vrot.slane %v2167_v55, %v14792_v36  ;;  %v2239_v2 = vrot.slane %v2152_v53, %v14792_v36  ;;  %v2170_v3 = vcombine.high %v2166_v58, %v2166_v58 }
0x111d   :  { %v2235_v5 = vrot.slane %v2169_v60, %v14792_v36  ;;  %v2243_v6 = vrot.slane %v2166_v58, %v14792_v36  ;;  %v2247_v7 = vrot.slane %v2168_v59, %v14792_v36  ;;  %v2300_v37 = vsel %vm798_vm5, %v2029_v43, %v2223_v57 }
0x111e   :  { %v2301_v8 = vsel %vm798_vm5, %v2043_v25, %v2227_v30  ;;  %v2302_v9 = vsel %vm798_vm5, %v2051_v56, %v2231_v63  ;;  %v2304_v10 = vsel %vm798_vm5, %v2036_v21, %v2239_v2  ;;  %v2251_v11 = vrot.slane %v2170_v3, %v14792_v36 }
0x111f   :  { %v2303_v40 = vsel %vm798_vm5, %v2053_v61, %v2235_v5  ;;  %v2305_v42 = vsel %vm798_vm5, %v2050_v27, %v2243_v6  ;;  %v2069_v12 = vrot.slane %v2055_v0, %v14808_v14  ;;  %v2332_v13 = vcombine.low %v2300_v37, %v2301_v8 }
0x1120   :  { %v2333_v15 = vcombine.low %v2302_v9, %v2303_v40  ;;  %v2349_v16 = vcombine.low %v2304_v10, %v2305_v42  ;;  %v2306_v17 = vsel %vm798_vm5, %v2052_v23, %v2247_v7  ;;  %v2307_v18 = vsel %vm798_vm5, %v2054_v62, %v2251_v11 }
0x1121   :  { %v2340_v20 = vrot.slane %v2332_v13, %v14962_v50  ;;  %v2350_v24 = vcombine.low %v2306_v17, %v2307_v18  ;;  %v2070_v29 = vcombine.high %v2062_v51, %v2062_v51  ;;  %v2071_v31 = vcombine.high %v2069_v12, %v2069_v12 }
0x1122   :  { %v2347_v22 = vrot.slane %v2333_v15, %v14962_v50  ;;  %v2357_v26 = vrot.slane %v2349_v16, %v14962_v50  ;;  %v2171_v39 = vcombine.high %v2003_v19, %v2003_v19  ;;  %v2178_v34 = vrot.slane %v2003_v19, %v14808_v14 }
0x1123   :  { %v2364_v44 = vrot.slane %v2350_v24, %v14962_v50  ;;  %v2078_v47 = vrot.slane %v2062_v51, %v14808_v14  ;;  %v2085_v41 = vrot.slane %v2069_v12, %v14808_v14  ;;  %v2092_v48 = vrot.slane %v2070_v29, %v14808_v14 }
0x1124   :  { %v2348_v32 = vcombine.low %v2340_v20, %v2347_v22  ;;  %v2185_v43 = vrot.slane %v2171_v39, %v14808_v14  ;;  %v2186_v45 = vcombine.high %v2178_v34, %v2178_v34  ;;  %v2099_v49 = vrot.slane %v2071_v31, %v14808_v14  ;;  %v2599_v31 = vld [vmem:[%s18430_s17] sm:$0xff]  ;;  %v2617_v39 = vld [vmem:[%s18430_s17 + $0x90] sm:$0xff] }
0x1125   :  { %v2365_v4 = vcombine.low %v2357_v26, %v2364_v44  ;;  %v2194_v0 = vrot.slane %v2178_v34, %v14808_v14  ;;  %v2100_v51 = vcombine.high %v2078_v47, %v2078_v47  ;;  %v2101_v53 = vcombine.high %v2085_v41, %v2085_v41  ;;  %v2618_v34 = vld [vmem:[%s18430_s17 + $0x98] sm:$0xff] }
0x1126   :  { %v2400_v46 = vrot.slane %v2348_v32, 1  ;;  %v2187_v21 = vcombine.high %v2185_v43, %v2185_v43  ;;  %v2201_v25 = vrot.slane %v2185_v43, %v14808_v14  ;;  %v2208_v52 = vrot.slane %v2186_v45, %v14808_v14  ;;  %v2619_v45 = vld [vmem:[%s18430_s17 + $0xa0] sm:$0xff] }
0x1127   :  { %v2401_v33 = vrot.slane %v2365_v4, 1  ;;  %v2216_v54 = vcombine.high %v2194_v0, %v2194_v0  ;;  %v2255_v55 = vrot.slane %v2194_v0, %v14792_v36  ;;  %v2102_v58 = vcombine.high %v2092_v48, %v2092_v48  ;;  %v2604_v0 = vld [vmem:[%s18430_s17 + $0x28] sm:$0xff] }
0x1128   :  { %v2215_v56 = vrot.slane %v2187_v21, %v14808_v14  ;;  %v2217_v23 = vcombine.high %v2201_v25, %v2201_v25  ;;  %v2218_v57 = vcombine.high %v2208_v52, %v2208_v52  ;;  %v2259_v59 = vrot.slane %v2208_v52, %v14792_v36  ;;  %v2621_v21 = vld [vmem:[%s18430_s17 + $0xb0] sm:$0xff] }
0x1129   :  { %v2402_v27 = vsel %vm1435_vm10, %v2400_v46, %v2401_v33  ;;  %v2263_v60 = vrot.slane %v2216_v54, %v14792_v36  ;;  %v2271_v30 = vrot.slane %v2201_v25, %v14792_v36  ;;  %v2103_v3 = vcombine.high %v2099_v49, %v2099_v49  ;;  %v2620_v46 = vld [vmem:[%s18430_s17 + $0xa8] sm:$0xff]  ;;  %v2622_v25 = vld [vmem:[%s18430_s17 + $0xb8] sm:$0xff] }
0x112a   :  { %2556 = vmatprep.mubr.f32.mxu1 %v2402_v27  ;;  %v2219_v61 = vcombine.high %v2215_v56, %v2215_v56  ;;  %v2267_v62 = vrot.slane %v2218_v57, %v14792_v36  ;;  %v2275_v63 = vrot.slane %v2215_v56, %v14792_v36  ;;  %v2279_v2 = vrot.slane %v2217_v23, %v14792_v36  ;;  %v2624_v27 = vld [vmem:[%s18430_s17 + $0xc8] sm:$0xff]  ;;  %v2607_v23 = vld [vmem:[%s18430_s17 + $0x40] sm:$0xff] }
0x112b   :  { %2557 = vmatmul.mubr.f32.vlgmr.msra.gmra.mrb[12].mxu1 %v2348_v32  ;;  %v2308_v5 = vsel %vm798_vm5, %v2078_v47, %v2255_v55  ;;  %v2309_v6 = vsel %vm798_vm5, %v2092_v48, %v2259_v59  ;;  %v2310_v7 = vsel %vm798_vm5, %v2100_v51, %v2263_v60  ;;  %v2312_v9 = vsel %vm798_vm5, %v2085_v41, %v2271_v30  ;;  %v2600_v32 = vld [vmem:[%s18430_s17 + $0x8] sm:$0xff]  ;;  %v2601_v41 = vld [vmem:[%s18430_s17 + $0x10] sm:$0xff]  ;;  %v2623_v55 = vld [vmem:[%s18430_s17 + $0xc0] sm:$0xff] }
0x112c   :  { %12391 = vmatprep.mubr.msk.f32.mxu1 %vm1435_vm10, %v2401_v33  ;;  %v2283_v37 = vrot.slane %v2219_v61, %v14792_v36  ;;  %v2311_v8 = vsel %vm798_vm5, %v2102_v58, %v2267_v62  ;;  %v2313_v10 = vsel %vm798_vm5, %v2099_v49, %v2275_v63  ;;  %v2366_v11 = vcombine.low %v2308_v5, %v2309_v6  ;;  %v2603_v49 = vld [vmem:[%s18430_s17 + $0x20] sm:$0xff]  ;;  %v2605_v51 = vld [vmem:[%s18430_s17 + $0x30] sm:$0xff]  ;;  %v2608_v57 = vld [vmem:[%s18430_s17 + $0x48] sm:$0xff] }
0x112d   :  { %v2367_v40 = vcombine.low %v2310_v7, %v2311_v8  ;;  %v2383_v42 = vcombine.low %v2312_v9, %v2313_v10  ;;  %v2314_v12 = vsel %vm798_vm5, %v2101_v53, %v2279_v2  ;;  %v15184_v44 = vpack.c.bf16 %v2600_v32, %v2599_v31  ;;  %v2606_v53 = vld [vmem:[%s18430_s17 + $0x38] sm:$0xff]  ;;  %v2625_v59 = vld [vmem:[%s18430_s17 + $0xd0] sm:$0xff]  ;;  %v2627_v63 = vld [vmem:[%s18430_s17 + $0xe0] sm:$0xff] }
0x112e   :  { %v2315_v13 = vsel %vm798_vm5, %v2103_v3, %v2283_v37  ;;  %v2374_v15 = vrot.slane %v2366_v11, %v14962_v50  ;;  %v15188_v47 = vpack.c.bf16 %v2618_v34, %v2617_v39  ;;  %v15198_v48 = vpack.c.bf16 %v2620_v46, %v2619_v45  ;;  %v2626_v60 = vld [vmem:[%s18430_s17 + $0xd8] sm:$0xff]  ;;  %v2609_v61 = vld [vmem:[%s18430_s17 + $0x50] sm:$0xff]  ;;  %v2628_v3 = vld [vmem:[%s18430_s17 + $0xe8] sm:$0xff] }
0x112f   :  { %2563 = vmatmul.mubr.f32.gmra.mrb[14].mxu1 %v2365_v4  ;;  %v2381_v16 = vrot.slane %v2367_v40, %v14962_v50  ;;  %v2384_v17 = vcombine.low %v2314_v12, %v2315_v13  ;;  %v2391_v19 = vrot.slane %v2383_v42, %v14962_v50  ;;  %v2602_v4 = vld [vmem:[%s18430_s17 + $0x18] sm:$0xff]  ;;  %v15204_v33 = vpack.c.bf16 %v2604_v0, %v2603_v49  ;;  %v2611_v5 = vld [vmem:[%s18430_s17 + $0x60] sm:$0xff]  ;;  %v2612_v6 = vld [vmem:[%s18430_s17 + $0x68] sm:$0xff] }
0x1130   :  { %13212 = vmatpush3.bf16.msra.mxu1 %v15184_v44  ;;  %v15194_v43 = vpack.c.bf16 %v2602_v4, %v2601_v41  ;;  %v15208_v52 = vpack.c.bf16 %v2622_v25, %v2621_v21  ;;  %v15214_v54 = vpack.c.bf16 %v2606_v53, %v2605_v51  ;;  %v15219_v56 = vpack.c.bf16 %v2624_v27, %v2623_v55  ;;  %v2610_v62 = vld [vmem:[%s18430_s17 + $0x58] sm:$0xff]  ;;  %v2629_v37 = vld [vmem:[%s18430_s17 + $0xf0] sm:$0xff] }
0x1131   :  { %v2382_v18 = vcombine.low %v2374_v15, %v2381_v16  ;;  %v2398_v20 = vrot.slane %v2384_v17, %v14962_v50  ;;  %13214 = vmatprep.subr.bf16.mxu1 %v15188_v47  ;;  %v15223_v58 = vpack.c.bf16 %v2608_v57, %v2607_v23  ;;  %v15229_v30 = vpack.c.bf16 %v2626_v60, %v2625_v59  ;;  %v2630_v8 = vld [vmem:[%s18430_s17 + $0xf8] sm:$0xff]  ;;  %v2613_v11 = vld [vmem:[%s18430_s17 + $0x70] sm:$0xff]  ;;  %v2480_v17 = vld [vmem:[#allocation29] sm:$0x3] }
0x1132   :  { %v15234_v2 = vpack.c.bf16 %v2610_v62, %v2609_v61  ;;  %v15240_v7 = vpack.c.bf16 %v2628_v3, %v2627_v63  ;;  %v15245_v9 = vpack.c.bf16 %v2612_v6, %v2611_v5  ;;  %v15248_v10 = vpack.c.bf16 %v2630_v8, %v2629_v37  ;;  %v2614_v40 = vld [vmem:[%s18430_s17 + $0x78] sm:$0xff]  ;;  %v2702_v6 = vld [vmem:[#allocation31] sm:$0xff] }
0x1133   :  { %v2399_v22 = vcombine.low %v2391_v19, %v2398_v20  ;;  %v2403_v24 = vrot.slane %v2382_v18, 1  ;;  %v15253_v42 = vpack.c.bf16 %v2614_v40, %v2613_v11  ;;  %v2489_v19 = vrot.slane %v2480_v17, %v14795_v38 }
0x1134   :  { %13216 = vmatpush3.bf16.msra.mxu1 %v15194_v43  ;;  %v2704_v37 = vcombine.high %v2702_v6, %v2702_v6 }
0x1135   :  { %v2404_v26 = vrot.slane %v2399_v22, 1  ;;  %13218 = vmatprep.subr.bf16.mxu1 %v15198_v48 }
0x1136   :  { %12393 = vmatprep.subr.msk.mxu0 %vm2709_vm15, %v2704_v37 }
0x1137   :  { %v2405_v29 = vsel %vm1435_vm10, %v2403_v24, %v2404_v26  ;;  %12394 = vmatpush1.msk.msra.mxu0 %vm2709_vm15, %v2702_v6 }
0x1138   :  { %2568 = vmatprep.mubr.f32.mxu1 %v2405_v29  ;;  %13220 = vmatpush3.bf16.msra.mxu1 %v15204_v33 }
0x1139   :  { %2569 = vmatmul.mubr.f32.gmra.mrb[16].mxu1 %v2382_v18  ;;  %13222 = vmatprep.subr.bf16.mxu1 %v15208_v52  ;;  %v2485_v18 = vrot.slane %v2480_v17, %v14792_v36 }
0x113a   :  { %12392 = vmatprep.mubr.msk.f32.mxu1 %vm1435_vm10, %v2404_v26  ;;  %13242 = vmatprep.subr.bf16.mxu0 %v15100_v28 }
0x113c   :  { %13224 = vmatpush3.bf16.msra.mxu1 %v15214_v54 }
0x113d   :  { %2575 = vmatmul.mubr.f32.gmra.mrb[18].mxu1 %v2399_v22  ;;  %13226 = vmatprep.subr.bf16.mxu1 %v15219_v56 }
0x1140   :  { %13228 = vmatpush3.bf16.msra.mxu1 %v15223_v58 }
0x1141   :  { %13230 = vmatprep.subr.bf16.mxu1 %v15229_v30 }
0x1144   :  { %13232 = vmatpush3.bf16.msra.mxu1 %v15234_v2 }
0x1145   :  { %13234 = vmatprep.subr.bf16.mxu1 %v15240_v7 }
0x1148   :  { %13236 = vmatpush3.bf16.msra.mxu1 %v15245_v9 }
0x1149   :  { %13238 = vmatprep.subr.bf16.mxu1 %v15248_v10 }
0x114c   :  { %13240 = vmatpush3.bf16.msra.mxu1 %v15253_v42 }
0x114d   :  { %12396 = vmatprep.subr.msk.mxu1 %vm2709_vm15, %v2704_v37  ;;  %v3898_v37 = vld [vmem:[%s18431_s13 + $0x88] sm:$0xff] }
0x11fe   :  { %v2558_v12 = vpop.f32.mrb[12].mxu1 }
0x11ff   :  { %v2560_v13 = vpop.f32.mrb[13].mxu1  ;;  %v15263_v26 = vadd.f32 %v2558_v12, %v2485_v18 }
0x1200   :  { %v15267_v32 = vadd.f32 %v2560_v13, %v2489_v19 }
0x1202   :  { %v2564_v15 = vpop.f32.mrb[14].mxu1 }
0x1203   :  { %v2566_v16 = vpop.f32.mrb[15].mxu1  ;;  %v15259_v20 = vadd.f32 %v2564_v15, %v2485_v18 }
0x1204   :  { %v15261_v22 = vadd.f32 %v2566_v16, %v2489_v19 }
0x1205   :  { %v2581_v34 = vadd.f32 %v15259_v20, %v15263_v26 }
0x1206   :  { %v2590_v41 = vadd.f32 %v15261_v22, %v15267_v32 }
0x120c   :  { %v2570_v24 = vpop.f32.mrb[16].mxu1 }
0x120d   :  { %v15265_v29 = vadd.f32 %v2570_v24, %v2485_v18  ;;  %v2572_v31 = vpop.f32.mrb[17].mxu1 }
0x120e   :  { %v15269_v39 = vadd.f32 %v2572_v31, %v2489_v19 }
0x120f   :  { %v2582_v45 = vadd.f32 %v2581_v34, %v15265_v29 }
0x1210   :  { %v2576_v4 = vpop.f32.mrb[18].mxu1  ;;  %v2591_v0 = vadd.f32 %v2590_v41, %v15269_v39 }
0x1211   :  { %v2577_v46 = vadd.f32 %v2576_v4, %v2485_v18  ;;  %v2578_v49 = vpop.f32.mrb[19].mxu1 }
0x1212   :  { %v2579_v21 = vadd.f32 %v2578_v49, %v2489_v19 }
0x1213   :  { %v2583_v25 = vadd.f32 %v2582_v45, %v2577_v46 }
0x1214   :  { %v2592_v51 = vadd.f32 %v2591_v0, %v2579_v21 }
0x1215   :  { %v2584_v53 = vrot.slane %v2583_v25, 4 }
0x1216   :  { %v2593_v55 = vrot.slane %v2592_v51, 4 }
0x1217   :  { %v2585_v27 = vadd.f32 %v2584_v53, %v2583_v25  ;;  %v3882_v25 = vld [vmem:[%s18431_s13 + $0x8] sm:$0xff] }
0x1218   :  { %v2594_v23 = vadd.f32 %v2593_v55, %v2592_v51  ;;  %v3886_v51 = vld [vmem:[%s18431_s13 + $0x28] sm:$0xff] }
0x1219   :  { %v2586_v57 = vrot.slane %v2585_v27, 2  ;;  %v13273_v53 = vpack.c.bf16 %v3886_v51, %v3882_v25  ;;  %v3941_v25 = vld [vmem:[%s18431_s13 + $0x1e0] sm:$0xff]  ;;  %v3946_v51 = vld [vmem:[%s18431_s13 + $0x208] sm:$0xff] }
0x121a   :  { %v2595_v59 = vrot.slane %v2594_v23, 2 }
0x121b   :  { %v2587_v60 = vadd.f32 %v2586_v57, %v2585_v27  ;;  %v3881_v27 = vld [vmem:[%s18431_s13] sm:$0xff] }
0x121c   :  { %v2596_v61 = vadd.f32 %v2595_v59, %v2594_v23  ;;  %v3885_v23 = vld [vmem:[%s18431_s13 + $0x20] sm:$0xff]  ;;  %v3890_v59 = vld [vmem:[%s18431_s13 + $0x48] sm:$0xff] }
0x121d   :  { %v2588_v62 = vrot.slane %v2587_v60, 1 }
0x121e   :  { %v2597_v63 = vrot.slane %v2596_v61, 1 }
0x121f   :  { %v2589_v5 = vadd.f32 %v2588_v62, %v2587_v60  ;;  %v3894_v60 = vld [vmem:[%s18431_s13 + $0x68] sm:$0xff]  ;;  %v13275_v62 = vpack.c.bf16 %v3885_v23, %v3881_v27  ;;  %v3945_v27 = vld [vmem:[%s18431_s13 + $0x200] sm:$0xff] }
0x1220   :  { %v2598_v3 = vadd.f32 %v2597_v63, %v2596_v61  ;;  %v3949_v23 = vld [vmem:[%s18431_s13 + $0x220] sm:$0xff] }
0x1222   :  { %2695 = vmatprep.mubr.f32.mxu1 %v2598_v3  ;;  %v13277_v3 = vpack.c.bf16 %v3894_v60, %v3890_v59  ;;  %v3954_v59 = vld [vmem:[%s18431_s13 + $0x248] sm:$0xff] }
0x1223   :  { %2696 = vmatmul.mubr.f32.vlgmr.msra.gmra.mrb[20].mxu1 %v2589_v5  ;;  %v3889_v5 = vld [vmem:[%s18431_s13 + $0x40] sm:$0xff]  ;;  %v3958_v60 = vld [vmem:[%s18431_s13 + $0x268] sm:$0xff] }
0x1224   :  { %2966 = vmatprep.mubr.f32.mxu1 %v18320_v1  ;;  %12397 = vmatpush1.msk.msra.mxu1 %vm2709_vm15, %v2702_v6  ;;  %v3893_v6 = vld [vmem:[%s18431_s13 + $0x60] sm:$0xff] }
0x1225   :  { %13274 = vmatprep.subr.bf16.mxu1 %v13273_v53 }
0x12f6   :  { %v12593_v8 = vpop.f32.mrb[20].mxu1 }
0x12f7   :  { %v12594_v11 = vpop.f32.mrb[21].mxu1 }
0x12f8   :  { %v12595_v40 = vadd.f32 %v12594_v11, %v12593_v8  ;;  %v3902_v8 = vld [vmem:[%s18431_s13 + $0xa8] sm:$0xff]  ;;  %v13279_v11 = vpack.c.bf16 %v3893_v6, %v3889_v5 }
0x12f9   :  { %v3962_v5 = vld [vmem:[%s18431_s13 + $0x288] sm:$0xff] }
0x12fa   :  { %v2701_v12 = vmul.f32 0.00048828125, %v12595_v40  ;;  %v13281_v40 = vpack.c.bf16 %v3902_v8, %v3898_v37  ;;  %v3966_v6 = vld [vmem:[%s18431_s13 + $0x2a8] sm:$0xff] }
0x12fb   :  { %v13313_v8 = vpack.c.bf16 %v3966_v6, %v3962_v5  ;;  %v15408_v5 = vld [vmem:[%s18431_s13 + $0x10] sm:$0xff] }
0x12fc   :  { %12395 = vmatmul.mubr.msk.f32.vlgmr.msra.gmra.mrb[14].mxu0 %vm2705_vm0, %v2701_v12  ;;  %v3897_v12 = vld [vmem:[%s18431_s13 + $0x80] sm:$0xff]  ;;  %v15411_v6 = vld [vmem:[%s18431_s13 + $0x30] sm:$0xff] }
0x12fd   :  { %13244 = vmatpush3.bf16.msra.mxu0 %v15184_v44 }
0x12fe   :  { %13246 = vmatprep.subr.bf16.mxu0 %v15188_v47 }
0x1301   :  { %13248 = vmatpush3.bf16.msra.mxu0 %v15194_v43 }
0x1302   :  { %13250 = vmatprep.subr.bf16.mxu0 %v15198_v48 }
0x1305   :  { %13252 = vmatpush3.bf16.msra.mxu0 %v15204_v33 }
0x1306   :  { %13254 = vmatprep.subr.bf16.mxu0 %v15208_v52 }
0x1309   :  { %13256 = vmatpush3.bf16.msra.mxu0 %v15214_v54 }
0x130a   :  { %13258 = vmatprep.subr.bf16.mxu0 %v15219_v56 }
0x130d   :  { %13260 = vmatpush3.bf16.msra.mxu0 %v15223_v58 }
0x130e   :  { %13262 = vmatprep.subr.bf16.mxu0 %v15229_v30 }
0x1311   :  { %13264 = vmatpush3.bf16.msra.mxu0 %v15234_v2 }
0x1312   :  { %13266 = vmatprep.subr.bf16.mxu0 %v15240_v7 }
0x1315   :  { %13268 = vmatpush3.bf16.msra.mxu0 %v15245_v9 }
0x1316   :  { %13270 = vmatprep.subr.bf16.mxu0 %v15248_v10 }
0x1319   :  { %13272 = vmatpush3.bf16.msra.mxu0 %v15253_v42 }
0x13cf   :  { %v2780_v28 = vpop.f32.mrb[14].mxu0 }
0x13d0   :  { %v2788_v44 = vrot.slane %v2780_v28, %v14792_v36  ;;  %v2782_v47 = vpop.f32.mrb[15].mxu0  ;;  %v3901_v28 = vld [vmem:[%s18431_s13 + $0xa0] sm:$0xff] }
0x13d1   :  { %v2792_v43 = vrot.slane %v2782_v47, %v14792_v36  ;;  %v3906_v47 = vld [vmem:[%s18431_s13 + $0xc8] sm:$0xff] }
0x13d2   :  { %v15302_v48 = vsub.f32 %v15263_v26, %v2788_v44  ;;  %v15305_v33 = vsub.f32 %v15259_v20, %v2788_v44  ;;  %v15308_v52 = vsub.f32 %v15265_v29, %v2788_v44  ;;  %v15319_v30 = vsub.f32 %v2577_v46, %v2788_v44 }
0x13d3   :  { %v15311_v54 = vsub.f32 %v15267_v32, %v2792_v43  ;;  %v15314_v56 = vsub.f32 %v15261_v22, %v2792_v43  ;;  %v15317_v58 = vsub.f32 %v15269_v39, %v2792_v43  ;;  %v15325_v9 = vsub.f32 %v2579_v21, %v2792_v43  ;;  %v3910_v43 = vld [vmem:[%s18431_s13 + $0xe8] sm:$0xff] }
0x13d4   :  { %v2801_v2 = vmul.f32 %v15302_v48, %v15302_v48  ;;  %v2803_v7 = vmul.f32 %v15305_v33, %v15305_v33  ;;  %v2805_v13 = vmul.f32 %v15308_v52, %v15308_v52  ;;  %v2807_v18 = vmul.f32 %v15319_v30, %v15319_v30 }
0x13d5   :  { %v2802_v10 = vmul.f32 %v15311_v54, %v15311_v54  ;;  %v2804_v42 = vmul.f32 %v15314_v56, %v15314_v56  ;;  %v2806_v16 = vmul.f32 %v15317_v58, %v15317_v58  ;;  %v2808_v20 = vmul.f32 %v15325_v9, %v15325_v9 }
0x13d6   :  { %v2809_v15 = vadd.f32 %v2803_v7, %v2801_v2  ;;  %v13283_v44 = vpack.c.bf16 %v3901_v28, %v3897_v12  ;;  %v13285_v2 = vpack.c.bf16 %v3910_v43, %v3906_v47  ;;  %v3905_v7 = vld [vmem:[%s18431_s13 + $0xc0] sm:$0xff]  ;;  %v3970_v12 = vld [vmem:[%s18431_s13 + $0x2c8] sm:$0xff] }
0x13d7   :  { %v2818_v17 = vadd.f32 %v2804_v42, %v2802_v10  ;;  %v3909_v10 = vld [vmem:[%s18431_s13 + $0xe0] sm:$0xff]  ;;  %v3974_v28 = vld [vmem:[%s18431_s13 + $0x2e8] sm:$0xff] }
0x13d8   :  { %v2810_v19 = vadd.f32 %v2809_v15, %v2805_v13  ;;  %v13287_v42 = vpack.c.bf16 %v3909_v10, %v3905_v7  ;;  %v3914_v13 = vld [vmem:[%s18431_s13 + $0x108] sm:$0xff]  ;;  %v13317_v47 = vpack.c.bf16 %v3974_v28, %v3970_v12  ;;  %v3969_v43 = vld [vmem:[%s18431_s13 + $0x2c0] sm:$0xff]  ;;  %v15426_v12 = vld [vmem:[%s18431_s13 + $0x98] sm:$0xff] }
0x13d9   :  { %v2819_v22 = vadd.f32 %v2818_v17, %v2806_v16  ;;  %v3918_v15 = vld [vmem:[%s18431_s13 + $0x128] sm:$0xff]  ;;  %v3913_v17 = vld [vmem:[%s18431_s13 + $0x100] sm:$0xff] }
0x13da   :  { %v2811_v24 = vadd.f32 %v2810_v19, %v2807_v18  ;;  %v13289_v16 = vpack.c.bf16 %v3918_v15, %v3914_v13  ;;  %v3917_v18 = vld [vmem:[%s18431_s13 + $0x120] sm:$0xff]  ;;  %v3978_v7 = vld [vmem:[%s18431_s13 + $0x308] sm:$0xff] }
0x13db   :  { %v2820_v26 = vadd.f32 %v2819_v22, %v2808_v20  ;;  %v13291_v19 = vpack.c.bf16 %v3917_v18, %v3913_v17  ;;  %v3922_v20 = vld [vmem:[%s18431_s13 + $0x148] sm:$0xff]  ;;  %v3977_v15 = vld [vmem:[%s18431_s13 + $0x300] sm:$0xff] }
0x13dc   :  { %v2812_v29 = vrot.slane %v2811_v24, 4  ;;  %v3926_v22 = vld [vmem:[%s18431_s13 + $0x168] sm:$0xff] }
0x13dd   :  { %v2821_v31 = vrot.slane %v2820_v26, 4  ;;  %v3982_v10 = vld [vmem:[%s18431_s13 + $0x328] sm:$0xff] }
0x13de   :  { %v2813_v32 = vadd.f32 %v2812_v29, %v2811_v24  ;;  %v13293_v24 = vpack.c.bf16 %v3926_v22, %v3922_v20  ;;  %v3925_v29 = vld [vmem:[%s18431_s13 + $0x160] sm:$0xff]  ;;  %v13321_v13 = vpack.c.bf16 %v3982_v10, %v3978_v7  ;;  %v3986_v17 = vld [vmem:[%s18431_s13 + $0x348] sm:$0xff]  ;;  %v15442_v7 = vld [vmem:[%s18431_s13 + $0xf8] sm:$0xff] }
0x13df   :  { %v2822_v39 = vadd.f32 %v2821_v31, %v2820_v26  ;;  %v3921_v26 = vld [vmem:[%s18431_s13 + $0x140] sm:$0xff]  ;;  %v3990_v18 = vld [vmem:[%s18431_s13 + $0x368] sm:$0xff]  ;;  %v15445_v10 = vld [vmem:[%s18431_s13 + $0xd0] sm:$0xff] }
0x13e0   :  { %v2814_v34 = vrot.slane %v2813_v32, 2  ;;  %v13295_v31 = vpack.c.bf16 %v3925_v29, %v3921_v26  ;;  %v13325_v20 = vpack.c.bf16 %v3990_v18, %v3986_v17  ;;  %v3985_v22 = vld [vmem:[%s18431_s13 + $0x340] sm:$0xff]  ;;  %v3994_v26 = vld [vmem:[%s18431_s13 + $0x388] sm:$0xff] }
0x13e1   :  { %v2823_v41 = vrot.slane %v2822_v39, 2  ;;  %v3998_v29 = vld [vmem:[%s18431_s13 + $0x3a8] sm:$0xff] }
0x13e2   :  { %v2815_v4 = vadd.f32 %v2814_v34, %v2813_v32  ;;  %v3930_v32 = vld [vmem:[%s18431_s13 + $0x188] sm:$0xff] }
0x13e3   :  { %v2824_v45 = vadd.f32 %v2823_v41, %v2822_v39  ;;  %v3934_v39 = vld [vmem:[%s18431_s13 + $0x1a8] sm:$0xff]  ;;  %v3929_v41 = vld [vmem:[%s18431_s13 + $0x180] sm:$0xff] }
0x13e4   :  { %v2816_v46 = vrot.slane %v2815_v4, 1  ;;  %v13297_v34 = vpack.c.bf16 %v3934_v39, %v3930_v32  ;;  %v13329_v32 = vpack.c.bf16 %v3998_v29, %v3994_v26  ;;  %v3993_v39 = vld [vmem:[%s18431_s13 + $0x380] sm:$0xff] }
0x13e5   :  { %v2825_v49 = vrot.slane %v2824_v45, 1 }
0x13e6   :  { %v2817_v21 = vadd.f32 %v2816_v46, %v2815_v4  ;;  %v3933_v4 = vld [vmem:[%s18431_s13 + $0x1a0] sm:$0xff]  ;;  %v3938_v46 = vld [vmem:[%s18431_s13 + $0x1c8] sm:$0xff] }
0x13e7   :  { %v2826_v0 = vadd.f32 %v2825_v49, %v2824_v45  ;;  %v13299_v45 = vpack.c.bf16 %v3933_v4, %v3929_v41  ;;  %v3942_v49 = vld [vmem:[%s18431_s13 + $0x1e8] sm:$0xff] }
0x13e8   :  { %v4002_v41 = vld [vmem:[%s18431_s13 + $0x3c8] sm:$0xff] }
0x13e9   :  { %2891 = vmatprep.mubr.f32.mxu0 %v2826_v0  ;;  %v13301_v0 = vpack.c.bf16 %v3942_v49, %v3938_v46  ;;  %v4006_v4 = vld [vmem:[%s18431_s13 + $0x3e8] sm:$0xff]  ;;  %v4001_v49 = vld [vmem:[%s18431_s13 + $0x3c0] sm:$0xff] }
0x13ea   :  { %2892 = vmatmul.mubr.f32.vlgmr.msra.gmra.mrb[16].mxu0 %v2817_v21  ;;  %v3937_v21 = vld [vmem:[%s18431_s13 + $0x1c0] sm:$0xff]  ;;  %v13333_v46 = vpack.c.bf16 %v4006_v4, %v4002_v41  ;;  %v15477_v41 = vld [vmem:[%s18431_s13 + $0x110] sm:$0xff] }
0x13eb   :  { %v13303_v53 = vpack.c.bf16 %v3941_v25, %v3937_v21  ;;  %v3884_v21 = vld [vmem:[%s18431_s13 + $0x18] sm:$0xff] }
0x13ec   :  { %v3888_v25 = vld [vmem:[%s18431_s13 + $0x38] sm:$0xff] }
0x14bd   :  { %v12628_v55 = vpop.f32.mrb[16].mxu0 }
0x14be   :  { %v12629_v57 = vpop.f32.mrb[17].mxu0 }
0x14bf   :  { %v12630_v61 = vadd.f32 %v12629_v57, %v12628_v55  ;;  %v3950_v55 = vld [vmem:[%s18431_s13 + $0x228] sm:$0xff] }
0x14c0   :  { %v13305_v57 = vpack.c.bf16 %v3950_v55, %v3946_v51 }
0x14c1   :  { %v2897_v63 = vmul.f32 0.00048828125, %v12630_v61  ;;  %v13307_v61 = vpack.c.bf16 %v3949_v23, %v3945_v27 }
0x14c3   :  { %12398 = vmatmul.mubr.msk.f32.vlgmr.msra.gmra.mrb[22].mxu1 %vm2705_vm0, %v2897_v63  ;;  %v3953_v63 = vld [vmem:[%s18431_s13 + $0x240] sm:$0xff] }
0x14c4   :  { %13276 = vmatpush1.bf16.msra.mxu1 %v13275_v62  ;;  %v13309_v62 = vpack.c.bf16 %v3958_v60, %v3954_v59 }
0x14c5   :  { %13278 = vmatprep.subr.bf16.mxu1 %v13277_v3  ;;  %v3957_v3 = vld [vmem:[%s18431_s13 + $0x260] sm:$0xff] }
0x14c6   :  { %v13311_v37 = vpack.c.bf16 %v3957_v3, %v3953_v63  ;;  %v3013_v3 = vld [vmem:[#allocation34] sm:$0x3] }
0x14c7   :  { %v3018_v17 = vrot.slane %v3013_v3, %v14792_v36  ;;  %v3022_v18 = vrot.slane %v3013_v3, %v14795_v38 }
0x14c8   :  { %13280 = vmatpush1.bf16.msra.mxu1 %v13279_v11  ;;  %v3961_v11 = vld [vmem:[%s18431_s13 + $0x280] sm:$0xff] }
0x14c9   :  { %13282 = vmatprep.subr.bf16.mxu1 %v13281_v40  ;;  %v3965_v40 = vld [vmem:[%s18431_s13 + $0x2a0] sm:$0xff] }
0x14cc   :  { %13284 = vmatpush1.bf16.msra.mxu1 %v13283_v44  ;;  %v13315_v44 = vpack.c.bf16 %v3965_v40, %v3961_v11  ;;  %v15420_v11 = vld [vmem:[%s18431_s13 + $0x50] sm:$0xff] }
0x14cd   :  { %13286 = vmatprep.subr.bf16.mxu1 %v13285_v2  ;;  %v3973_v2 = vld [vmem:[%s18431_s13 + $0x2e0] sm:$0xff]  ;;  %v15423_v40 = vld [vmem:[%s18431_s13 + $0x70] sm:$0xff] }
0x14ce   :  { %v13343_v26 = vpack.c.bf16 %v15423_v40, %v15420_v11 }
0x14d0   :  { %13288 = vmatpush1.bf16.msra.mxu1 %v13287_v42  ;;  %v13319_v42 = vpack.c.bf16 %v3973_v2, %v3969_v43  ;;  %v15436_v43 = vld [vmem:[%s18431_s13 + $0xb0] sm:$0xff]  ;;  %v15439_v2 = vld [vmem:[%s18431_s13 + $0xd8] sm:$0xff] }
0x14d1   :  { %13290 = vmatprep.subr.bf16.mxu1 %v13289_v16  ;;  %v3981_v16 = vld [vmem:[%s18431_s13 + $0x320] sm:$0xff] }
0x14d4   :  { %13292 = vmatpush1.bf16.msra.mxu1 %v13291_v19  ;;  %v13323_v19 = vpack.c.bf16 %v3981_v16, %v3977_v15  ;;  %v15451_v15 = vld [vmem:[%s18431_s13 + $0x118] sm:$0xff] }
0x14d5   :  { %13294 = vmatprep.subr.bf16.mxu1 %v13293_v24  ;;  %v3989_v24 = vld [vmem:[%s18431_s13 + $0x360] sm:$0xff]  ;;  %v15454_v16 = vld [vmem:[%s18431_s13 + $0x138] sm:$0xff] }
0x14d8   :  { %13296 = vmatpush1.bf16.msra.mxu1 %v13295_v31  ;;  %v13327_v31 = vpack.c.bf16 %v3989_v24, %v3985_v22 }
0x14d9   :  { %13298 = vmatprep.subr.bf16.mxu1 %v13297_v34  ;;  %v3997_v34 = vld [vmem:[%s18431_s13 + $0x3a0] sm:$0xff] }
0x14dc   :  { %13300 = vmatpush1.bf16.msra.mxu1 %v13299_v45  ;;  %v13331_v45 = vpack.c.bf16 %v3997_v34, %v3993_v39 }
0x14dd   :  { %13302 = vmatprep.subr.bf16.mxu1 %v13301_v0  ;;  %v4005_v0 = vld [vmem:[%s18431_s13 + $0x3e0] sm:$0xff] }
0x14de   :  { %v13335_v51 = vpack.c.bf16 %v4005_v0, %v4001_v49  ;;  %v15484_v0 = vld [vmem:[%s18431_s13 + $0x130] sm:$0xff] }
0x14e0   :  { %13304 = vmatpush1.bf16.msra.mxu1 %v13303_v53  ;;  %v13337_v53 = vpack.c.bf16 %v3888_v25, %v3884_v21  ;;  %v15487_v21 = vld [vmem:[%s18431_s13 + $0x158] sm:$0xff] }
0x14e1   :  { %13306 = vmatprep.subr.bf16.mxu1 %v13305_v57  ;;  %v15490_v25 = vld [vmem:[%s18431_s13 + $0x178] sm:$0xff] }
0x14e4   :  { %13308 = vmatpush1.bf16.msra.mxu1 %v13307_v61 }
0x14e5   :  { %13310 = vmatprep.subr.bf16.mxu1 %v13309_v62  ;;  %v2898_v62 = vld [vmem:[#allocation32] sm:$0x3] }
0x14e8   :  { %13312 = vmatpush1.bf16.msra.mxu1 %v13311_v37  ;;  %v15414_v37 = vld [vmem:[%s18431_s13 + $0x58] sm:$0xff] }
0x14e9   :  { %13314 = vmatprep.subr.bf16.mxu1 %v13313_v8  ;;  %v15417_v8 = vld [vmem:[%s18431_s13 + $0x78] sm:$0xff] }
0x14ec   :  { %13316 = vmatpush1.bf16.msra.mxu1 %v13315_v44  ;;  %v15430_v44 = vld [vmem:[%s18431_s13 + $0xb8] sm:$0xff] }
0x14ed   :  { %13318 = vmatprep.subr.bf16.mxu1 %v13317_v47  ;;  %v15433_v47 = vld [vmem:[%s18431_s13 + $0x90] sm:$0xff] }
0x14f0   :  { %13320 = vmatpush1.bf16.msra.mxu1 %v13319_v42 }
0x14f1   :  { %13322 = vmatprep.subr.bf16.mxu1 %v13321_v13  ;;  %v15448_v13 = vld [vmem:[%s18431_s13 + $0xf0] sm:$0xff] }
0x14f4   :  { %13324 = vmatpush1.bf16.msra.mxu1 %v13323_v19  ;;  %v13339_v19 = vpack.c.bf16 %v15411_v6, %v15408_v5 }
0x14f5   :  { %13326 = vmatprep.subr.bf16.mxu1 %v13325_v20  ;;  %v13341_v20 = vpack.c.bf16 %v15417_v8, %v15414_v37 }
0x14f8   :  { %13328 = vmatpush1.bf16.msra.mxu1 %v13327_v31 }
0x14f9   :  { %13330 = vmatprep.subr.bf16.mxu1 %v13329_v32 }
0x14fc   :  { %13332 = vmatpush1.bf16.msra.mxu1 %v13331_v45 }
0x14fd   :  { %13334 = vmatprep.subr.bf16.mxu1 %v13333_v46 }
0x1500   :  { %13336 = vmatpush1.bf16.msra.mxu1 %v13335_v51 }
0x1501   :  { %13338 = vmatprep.subr.bf16.mxu1 %v13337_v53 }
0x1596   :  { %v2968_v55 = vpop.f32.mrb[22].mxu1 }
0x1597   :  { %v2969_v27 = vadd.f32 1e-05, %v2968_v55  ;;  %v2970_v23 = vpop.f32.mrb[23].mxu1 }
0x1598   :  { %v2971_v57 = vadd.f32 1e-05, %v2970_v23 }
0x1599   :  { %13803 = vrsqrt.f32 %v2969_v27 }
0x159a   :  { %13805 = vrsqrt.f32 %v2971_v57 }
0x15a3   :  { %v13804_v59 = vpop.eup %13803 }
0x15a4   :  { %v13806_v60 = vpop.eup %13805 }
0x15a5   :  { %v2977_v61 = vcombine.low %v13804_v59, %v13806_v60 }
0x15a7   :  { %v2984_v63 = vrot.slane %v2977_v61, %v14808_v14 }
0x15a9   :  { %v2991_v28 = vrot.slane %v2984_v63, %v14808_v14 }
0x15ab   :  { %v2993_v42 = vmul.f32 %v2991_v28, %v2898_v62 }
0x15ad   :  { %v2998_v22 = vrot.slane %v2993_v42, %v14792_v36  ;;  %v3002_v24 = vrot.slane %v2993_v42, %v14795_v38 }
0x15af   :  { %v3005_v4 = vmul.f32 %v2998_v22, %v15302_v48  ;;  %v3006_v45 = vmul.f32 %v3002_v24, %v15311_v54  ;;  %v3007_v46 = vmul.f32 %v2998_v22, %v15305_v33  ;;  %v3008_v49 = vmul.f32 %v3002_v24, %v15314_v56 }
0x15b0   :  { %v3009_v51 = vmul.f32 %v2998_v22, %v15308_v52  ;;  %v3010_v53 = vmul.f32 %v3002_v24, %v15317_v58  ;;  %v3011_v55 = vmul.f32 %v2998_v22, %v15319_v30  ;;  %v3012_v48 = vmul.f32 %v3002_v24, %v15325_v9 }
0x15b1   :  { %v3025_v27 = vadd.f32 %v3018_v17, %v3005_v4  ;;  %v3026_v54 = vadd.f32 %v3022_v18, %v3006_v45  ;;  %v3027_v23 = vadd.f32 %v3018_v17, %v3007_v46  ;;  %v3028_v33 = vadd.f32 %v3022_v18, %v3008_v49 }
0x15b2   :  { %v15496_v57 = vadd.f32 %v3018_v17, %v3009_v51  ;;  %v15498_v56 = vadd.f32 %v3022_v18, %v3010_v53  ;;  %v15504_v63 = vadd.f32 %v3018_v17, %v3011_v55  ;;  %v15506_v3 = vadd.f32 %v3022_v18, %v3012_v48 }
0x15b3   :  { %vm3033_vm1 = vcmp.ge.f32.partialorder %v3025_v27, 0.0  ;;  %vm3034_vm2 = vcmp.ge.f32.partialorder %v3026_v54, 0.0  ;;  %v3041_v58 = vmul.f32 0.01, %v3025_v27  ;;  %v3042_v30 = vmul.f32 0.01, %v3026_v54 }
0x15b4   :  { %vm3035_vm3 = vcmp.ge.f32.partialorder %v3027_v23, 0.0  ;;  %vm3036_vm4 = vcmp.ge.f32.partialorder %v3028_v33, 0.0  ;;  %v3043_v9 = vmul.f32 0.01, %v3027_v23  ;;  %v3044_v60 = vmul.f32 0.01, %v3028_v33 }
0x15b5   :  { %v3049_v61 = vsel %vm3033_vm1, %v3025_v27, %v3041_v58  ;;  %v3050_v62 = vsel %vm3034_vm2, %v3026_v54, %v3042_v30  ;;  %v15515_v46 = vmul.f32 0.01, %v15496_v57  ;;  %v15518_v49 = vmul.f32 0.01, %v15498_v56 }
0x15b6   :  { %v3061_v28 = vcombine.high %v3049_v61, %v3049_v61  ;;  %v3068_v42 = vrot.slane %v3049_v61, %v14808_v14  ;;  %v3293_v22 = vcombine.high %v3050_v62, %v3050_v62  ;;  %v3300_v24 = vrot.slane %v3050_v62, %v14808_v14 }
0x15b7   :  { %v15510_v4 = vsel %vm3035_vm3, %v3027_v23, %v3043_v9  ;;  %v15512_v45 = vsel %vm3036_vm4, %v3028_v33, %v3044_v60  ;;  %vm3037_vm6 = vcmp.ge.f32.partialorder %v15496_v57, 0.0  ;;  %vm3038_vm7 = vcmp.ge.f32.partialorder %v15498_v56, 0.0 }
0x15b8   :  { %v3075_v17 = vrot.slane %v3061_v28, %v14808_v14  ;;  %v3076_v18 = vcombine.high %v3068_v42, %v3068_v42  ;;  %v3084_v51 = vrot.slane %v3068_v42, %v14808_v14  ;;  %v3307_v53 = vrot.slane %v3293_v22, %v14808_v14 }
0x15b9   :  { %v3308_v55 = vcombine.high %v3300_v24, %v3300_v24  ;;  %v3316_v48 = vrot.slane %v3300_v24, %v14808_v14  ;;  %v3117_v27 = vrot.slane %v15510_v4, %v14808_v14  ;;  %v3349_v54 = vrot.slane %v15512_v45, %v14808_v14 }
0x15ba   :  { %v3077_v23 = vcombine.high %v3075_v17, %v3075_v17  ;;  %v3091_v33 = vrot.slane %v3075_v17, %v14808_v14  ;;  %v3098_v58 = vrot.slane %v3076_v18, %v14808_v14  ;;  %v3106_v30 = vcombine.high %v3084_v51, %v3084_v51 }
0x15bb   :  { %v3309_v9 = vcombine.high %v3307_v53, %v3307_v53  ;;  %v3323_v60 = vrot.slane %v3307_v53, %v14808_v14  ;;  %v3330_v61 = vrot.slane %v3308_v55, %v14808_v14  ;;  %v3338_v62 = vcombine.high %v3316_v48, %v3316_v48 }
0x15bc   :  { %v3105_v28 = vrot.slane %v3077_v23, %v14808_v14  ;;  %v3107_v42 = vcombine.high %v3091_v33, %v3091_v33  ;;  %v3108_v22 = vcombine.high %v3098_v58, %v3098_v58  ;;  %v3492_v24 = vrot.slane %v3316_v48, %v14792_v36 }
0x15bd   :  { %v3337_v1 = vrot.slane %v3309_v9, %v14808_v14  ;;  %v3339_v52 = vcombine.high %v3323_v60, %v3323_v60  ;;  %v3340_v59 = vcombine.high %v3330_v61, %v3330_v61  ;;  %v3496_v17 = vrot.slane %v3330_v61, %v14792_v36 }
0x15be   :  { %v3109_v18 = vcombine.high %v3105_v28, %v3105_v28  ;;  %v3500_v34 = vrot.slane %v3338_v62, %v14792_v36  ;;  %v3508_v53 = vrot.slane %v3323_v60, %v14792_v36  ;;  %v3649_v55 = vsel %vm798_vm5, %v3084_v51, %v3492_v24 }
0x15bf   :  { %v3341_v39 = vcombine.high %v3337_v1, %v3337_v1  ;;  %v3504_v23 = vrot.slane %v3340_v59, %v14792_v36  ;;  %v3512_v32 = vrot.slane %v3337_v1, %v14792_v36  ;;  %v3516_v48 = vrot.slane %v3339_v52, %v14792_v36 }
0x15c0   :  { %v3650_v9 = vsel %vm798_vm5, %v3098_v58, %v3496_v17  ;;  %v3651_v31 = vsel %vm798_vm5, %v3106_v30, %v3500_v34  ;;  %v3653_v61 = vsel %vm798_vm5, %v3091_v33, %v3508_v53  ;;  %v3125_v29 = vcombine.high %v3117_v27, %v3117_v27 }
0x15c1   :  { %v3520_v60 = vrot.slane %v3341_v39, %v14792_v36  ;;  %v3652_v51 = vsel %vm798_vm5, %v3108_v22, %v3504_v23  ;;  %v3654_v62 = vsel %vm798_vm5, %v3105_v28, %v3512_v32  ;;  %v3655_v59 = vsel %vm798_vm5, %v3107_v42, %v3516_v48 }
0x15c2   :  { %v3713_v1 = vcombine.low %v3649_v55, %v3650_v9  ;;  %v3714_v24 = vcombine.low %v3651_v31, %v3652_v51  ;;  %v3730_v52 = vcombine.low %v3653_v61, %v3654_v62  ;;  %v3133_v58 = vrot.slane %v3117_v27, %v14808_v14 }
0x15c3   :  { %v3656_v34 = vsel %vm798_vm5, %v3109_v18, %v3520_v60  ;;  %v3147_v33 = vrot.slane %v3125_v29, %v14808_v14  ;;  %v3357_v30 = vcombine.high %v3349_v54, %v3349_v54  ;;  %v3365_v17 = vrot.slane %v3349_v54, %v14808_v14 }
0x15c4   :  { %v3721_v39 = vrot.slane %v3713_v1, %v14962_v50  ;;  %v3728_v32 = vrot.slane %v3714_v24, %v14962_v50  ;;  %v3731_v28 = vcombine.low %v3655_v59, %v3656_v34  ;;  %v3738_v42 = vrot.slane %v3730_v52, %v14962_v50 }
0x15c5   :  { %v3155_v31 = vcombine.high %v3133_v58, %v3133_v58  ;;  %v3157_v22 = vcombine.high %v3147_v33, %v3147_v33  ;;  %v3379_v27 = vrot.slane %v3357_v30, %v14808_v14  ;;  %v3387_v53 = vcombine.high %v3365_v17, %v3365_v17 }
0x15c6   :  { %v15559_v18 = vcombine.low %v3721_v39, %v3728_v32  ;;  %v3745_v29 = vrot.slane %v3731_v28, %v14962_v50  ;;  %v3524_v54 = vrot.slane %v3365_v17, %v14792_v36  ;;  %v3110_v55 = vcombine.high %v15510_v4, %v15510_v4 }
0x15c7   :  { %v3389_v23 = vcombine.high %v3379_v27, %v3379_v27  ;;  %v3528_v48 = vrot.slane %v3379_v27, %v14792_v36  ;;  %v3532_v9 = vrot.slane %v3387_v53, %v14792_v36  ;;  %v3342_v61 = vcombine.high %v15512_v45, %v15512_v45 }
0x15c8   :  { %v15569_v60 = vcombine.low %v3738_v42, %v3745_v29  ;;  %v3849_v51 = vrot.slane %v15559_v18, 1  ;;  %v3657_v62 = vsel %vm798_vm5, %v3133_v58, %v3524_v54  ;;  %v3124_v59 = vrot.slane %v3110_v55, %v14808_v14 }
0x15c9   :  { %v3536_v1 = vrot.slane %v3389_v23, %v14792_v36  ;;  %v3658_v4 = vsel %vm798_vm5, %v3147_v33, %v3528_v48  ;;  %v3659_v24 = vsel %vm798_vm5, %v3155_v31, %v3532_v9  ;;  %v3356_v52 = vrot.slane %v3342_v61, %v14808_v14 }
0x15ca   :  { %v3850_v34 = vrot.slane %v15569_v60, 1  ;;  %v3747_v30 = vcombine.low %v3657_v62, %v3658_v4  ;;  %v3126_v45 = vcombine.high %v3124_v59, %v3124_v59  ;;  %v3140_v17 = vrot.slane %v3124_v59, %v14808_v14 }
0x15cb   :  { %v3660_v39 = vsel %vm798_vm5, %v3157_v22, %v3536_v1  ;;  %v3358_v32 = vcombine.high %v3356_v52, %v3356_v52  ;;  %v3372_v58 = vrot.slane %v3356_v52, %v14808_v14  ;;  %v3053_v33 = vsel %vm3037_vm6, %v15496_v57, %v15515_v46 }
0x15cc   :  { %v15587_v28 = vsel %vm1435_vm10, %v3849_v51, %v3850_v34  ;;  %v3748_v42 = vcombine.low %v3659_v24, %v3660_v39  ;;  %v3755_v31 = vrot.slane %v3747_v30, %v14962_v50  ;;  %v3154_v27 = vrot.slane %v3126_v45, %v14808_v14 }
0x15cd   :  { %4095 = vmatprep.mubr.f32.mxu1 %v15587_v28  ;;  %v3156_v53 = vcombine.high %v3140_v17, %v3140_v17  ;;  %v3386_v22 = vrot.slane %v3358_v32, %v14808_v14  ;;  %v3388_v29 = vcombine.high %v3372_v58, %v3372_v58  ;;  %v3540_v54 = vrot.slane %v3372_v58, %v14792_v36 }
0x15ce   :  { %4096 = vmatmul.mubr.f32.vlgmr.msra.gmra.mrb[24].mxu1 %v15559_v18  ;;  %v3762_v57 = vrot.slane %v3748_v42, %v14962_v50  ;;  %v3158_v46 = vcombine.high %v3154_v27, %v3154_v27  ;;  %v3054_v55 = vsel %vm3038_vm7, %v15498_v56, %v15518_v49  ;;  %v3159_v23 = vcombine.high %v3053_v33, %v3053_v33 }
0x15cf   :  { %13340 = vmatpush1.bf16.msra.mxu1 %v13339_v19  ;;  %v3390_v48 = vcombine.high %v3386_v22, %v3386_v22  ;;  %v3544_v9 = vrot.slane %v3386_v22, %v14792_v36  ;;  %v3548_v61 = vrot.slane %v3388_v29, %v14792_v36  ;;  %v3661_v51 = vsel %vm798_vm5, %v3140_v17, %v3540_v54 }
0x15d0   :  { %v15606_v62 = vcombine.low %v3755_v31, %v3762_v57  ;;  %13342 = vmatprep.subr.bf16.mxu1 %v13341_v20  ;;  %v3166_v56 = vrot.slane %v3053_v33, %v14808_v14  ;;  %v3173_v49 = vrot.slane %v3159_v23, %v14808_v14  ;;  %v3391_v59 = vcombine.high %v3054_v55, %v3054_v55 }
0x15d1   :  { %v3552_v5 = vrot.slane %v3390_v48, %v14792_v36  ;;  %v3662_v6 = vsel %vm798_vm5, %v3154_v27, %v3544_v9  ;;  %v3663_v19 = vsel %vm798_vm5, %v3156_v53, %v3548_v61  ;;  %v3398_v1 = vrot.slane %v3054_v55, %v14808_v14 }
0x15d2   :  { %v3852_v4 = vrot.slane %v15606_v62, 1  ;;  %v3764_v24 = vcombine.low %v3661_v51, %v3662_v6  ;;  %v3174_v52 = vcombine.high %v3166_v56, %v3166_v56  ;;  %v3175_v30 = vcombine.high %v3173_v49, %v3173_v49 }
0x15d3   :  { %13344 = vmatpush1.bf16.msra.mxu1 %v13343_v26  ;;  %v3664_v37 = vsel %vm798_vm5, %v3158_v46, %v3552_v5  ;;  %v3182_v8 = vrot.slane %v3166_v56, %v14808_v14  ;;  %v3189_v20 = vrot.slane %v3173_v49, %v14808_v14  ;;  %v3405_v45 = vrot.slane %v3391_v59, %v14808_v14 }
0x15d4   :  { %v15626_v17 = vsel %vm1435_vm10, %v3850_v34, %v3852_v4  ;;  %v3765_v39 = vcombine.low %v3663_v19, %v3664_v37  ;;  %v3772_v32 = vrot.slane %v3764_v24, %v14962_v50  ;;  %v18432_v58 = vpack.c.bf16 %v15430_v44, %v15426_v12 }
0x15d5   :  { %v3196_v11 = vrot.slane %v3174_v52, %v14808_v14  ;;  %4101 = vmatprep.mubr.f32.mxu1 %v15626_v17  ;;  %v3203_v40 = vrot.slane %v3175_v30, %v14808_v14  ;;  %v3204_v26 = vcombine.high %v3182_v8, %v3182_v8  ;;  %v3205_v33 = vcombine.high %v3189_v20, %v3189_v20  ;;  %v3923_v52 = vld [vmem:[%s18431_s13 + $0x150] sm:$0xff] }
0x15d6   :  { %13346 = vmatprep.subr.bf16.mxu1 %v18432_v58  ;;  %v3406_v42 = vcombine.high %v3398_v1, %v3398_v1  ;;  %4102 = vmatmul.mubr.f32.gmra.mrb[26].mxu1 %v15569_v60  ;;  %v3779_v34 = vrot.slane %v3765_v39, %v14962_v50  ;;  %v3407_v27 = vcombine.high %v3405_v45, %v3405_v45  ;;  %vm3039_vm8 = vcmp.ge.f32.partialorder %v15504_v63, 0.0  ;;  %v3927_v30 = vld [vmem:[%s18431_s13 + $0x170] sm:$0xff]  ;;  %v3932_v39 = vld [vmem:[%s18431_s13 + $0x198] sm:$0xff] }
0x15d7   :  { %v3206_v31 = vcombine.high %v3196_v11, %v3196_v11  ;;  %v3414_v53 = vrot.slane %v3398_v1, %v14808_v14  ;;  %v18433_v12 = vpack.c.bf16 %v15436_v43, %v15433_v47  ;;  %v3207_v44 = vcombine.high %v3203_v40, %v3203_v40 }
0x15d8   :  { %v3421_v22 = vrot.slane %v3405_v45, %v14808_v14  ;;  %v3428_v29 = vrot.slane %v3406_v42, %v14808_v14  ;;  %v15644_v54 = vcombine.low %v3772_v32, %v3779_v34  ;;  %v18434_v57 = vpack.c.bf16 %v15442_v7, %v15439_v2  ;;  %v3936_v32 = vld [vmem:[%s18431_s13 + $0x1b8] sm:$0xff]  ;;  %v3931_v42 = vld [vmem:[%s18431_s13 + $0x190] sm:$0xff] }
0x15d9   :  { %13348 = vmatpush1.bf16.msra.mxu1 %v18433_v12  ;;  %v3435_v46 = vrot.slane %v3407_v27, %v14808_v14  ;;  %v3436_v55 = vcombine.high %v3414_v53, %v3414_v53  ;;  %v3556_v23 = vrot.slane %v3414_v53, %v14792_v36  ;;  %v18435_v56 = vpack.c.bf16 %v15448_v13, %v15445_v10  ;;  %v3935_v12 = vld [vmem:[%s18431_s13 + $0x1b0] sm:$0xff] }
0x15da   :  { %13350 = vmatprep.subr.bf16.mxu1 %v18434_v57  ;;  %v3437_v47 = vcombine.high %v3421_v22, %v3421_v22  ;;  %v3438_v43 = vcombine.high %v3428_v29, %v3428_v29  ;;  %v3560_v48 = vrot.slane %v3428_v29, %v14792_v36  ;;  %v3572_v9 = vrot.slane %v3421_v22, %v14792_v36 }
0x15db   :  { %v15654_v61 = vrot.slane %v15644_v54, 1  ;;  %v3439_v51 = vcombine.high %v3435_v46, %v3435_v46  ;;  %v3564_v2 = vrot.slane %v3436_v55, %v14792_v36  ;;  %v3576_v7 = vrot.slane %v3435_v46, %v14792_v36 }
0x15dc   :  { %v3568_v49 = vrot.slane %v3438_v43, %v14792_v36  ;;  %v3580_v59 = vrot.slane %v3437_v47, %v14792_v36  ;;  %v3665_v5 = vsel %vm798_vm5, %v3182_v8, %v3556_v23  ;;  %v3666_v6 = vsel %vm798_vm5, %v3196_v11, %v3560_v48  ;;  %v3939_v23 = vld [vmem:[%s18431_s13 + $0x1d0] sm:$0xff] }
0x15dd   :  { %13352 = vmatpush1.bf16.msra.mxu1 %v18435_v56  ;;  %v15667_v19 = vsel %vm1435_vm10, %v3852_v4, %v15654_v61  ;;  %v3584_v1 = vrot.slane %v3439_v51, %v14792_v36  ;;  %v3667_v24 = vsel %vm798_vm5, %v3204_v26, %v3564_v2  ;;  %v3669_v10 = vsel %vm798_vm5, %v3189_v20, %v3572_v9  ;;  %v3943_v9 = vld [vmem:[%s18431_s13 + $0x1f0] sm:$0xff]  ;;  %v3948_v51 = vld [vmem:[%s18431_s13 + $0x218] sm:$0xff] }
0x15de   :  { %v18436_v13 = vpack.c.bf16 %v15454_v16, %v15451_v15  ;;  %4107 = vmatprep.mubr.f32.mxu1 %v15667_v19  ;;  %v3668_v37 = vsel %vm798_vm5, %v3206_v31, %v3568_v49  ;;  %v3670_v8 = vsel %vm798_vm5, %v3203_v40, %v3576_v7  ;;  %v3671_v4 = vsel %vm798_vm5, %v3205_v33, %v3580_v59  ;;  %v3952_v2 = vld [vmem:[%s18431_s13 + $0x238] sm:$0xff] }
0x15df   :  { %v3781_v45 = vcombine.low %v3665_v5, %v3666_v6  ;;  %4108 = vmatmul.mubr.f32.gmra.mrb[28].mxu1 %v15606_v62  ;;  %v3672_v15 = vsel %vm798_vm5, %v3207_v44, %v3584_v1  ;;  %v3782_v16 = vcombine.low %v3667_v24, %v3668_v37  ;;  %v3798_v20 = vcombine.low %v3669_v10, %v3670_v8  ;;  %v3940_v44 = vld [vmem:[%s18431_s13 + $0x1d8] sm:$0xff] }
0x15e0   :  { %13354 = vmatprep.subr.bf16.mxu1 %v18436_v13  ;;  %vm3040_vm9 = vcmp.ge.f32.partialorder %v15506_v3, 0.0  ;;  %12399 = vmatprep.mubr.msk.f32.mxu1 %vm1435_vm10, %v15654_v61  ;;  %v3799_v58 = vcombine.low %v3671_v4, %v3672_v15  ;;  %v18437_v11 = vpack.c.bf16 %v15484_v0, %v15477_v41  ;;  %v3047_v40 = vmul.f32 0.01, %v15504_v63  ;;  %v3944_v41 = vld [vmem:[%s18431_s13 + $0x1f8] sm:$0xff] }
0x15e1   :  { %v3048_v26 = vmul.f32 0.01, %v15506_v3  ;;  %v13359_v33 = vpack.c.bf16 %v3927_v30, %v3923_v52  ;;  %v3789_v34 = vrot.slane %v3781_v45, %v14962_v50  ;;  %v3796_v31 = vrot.slane %v3782_v16, %v14962_v50  ;;  %v3947_v45 = vld [vmem:[%s18431_s13 + $0x210] sm:$0xff] }
0x15e2   :  { %13356 = vmatpush1.bf16.msra.mxu1 %v18437_v11  ;;  %v18438_v27 = vpack.c.bf16 %v15490_v25, %v15487_v21  ;;  %v13361_v53 = vpack.c.bf16 %v3936_v32, %v3932_v39  ;;  %v3806_v0 = vrot.slane %v3798_v20, %v14962_v50  ;;  %v3813_v22 = vrot.slane %v3799_v58, %v14962_v50  ;;  %v3951_v20 = vld [vmem:[%s18431_s13 + $0x230] sm:$0xff]  ;;  %v3956_v58 = vld [vmem:[%s18431_s13 + $0x258] sm:$0xff] }
0x15e3   :  { %v3055_v29 = vsel %vm3039_vm8, %v15504_v63, %v3047_v40  ;;  %v3056_v21 = vsel %vm3040_vm9, %v15506_v3, %v3048_v26  ;;  %4114 = vmatmul.mubr.f32.gmra.mrb[30].mxu1 %v15644_v54  ;;  %v15711_v25 = vcombine.low %v3789_v34, %v3796_v31  ;;  %v13363_v48 = vpack.c.bf16 %v3935_v12, %v3931_v42  ;;  %v3960_v11 = vld [vmem:[%s18431_s13 + $0x278] sm:$0xff]  ;;  %v3955_v12 = vld [vmem:[%s18431_s13 + $0x250] sm:$0xff] }
0x15e4   :  { %13358 = vmatprep.subr.bf16.mxu1 %v18438_v27  ;;  %v3215_v57 = vrot.slane %v3055_v29, %v14808_v14  ;;  %v3447_v46 = vrot.slane %v3056_v21, %v14808_v14  ;;  %v3208_v55 = vcombine.high %v3055_v29, %v3055_v29  ;;  %v15716_v47 = vcombine.low %v3806_v0, %v3813_v22 }
0x15e5   :  { %v3440_v43 = vcombine.high %v3056_v21, %v3056_v21  ;;  %v13365_v63 = vpack.c.bf16 %v3944_v41, %v3940_v44  ;;  %v3856_v3 = vrot.slane %v15711_v25, 1  ;;  %v13367_v13 = vpack.c.bf16 %v3943_v9, %v3939_v23  ;;  %v3959_v44 = vld [vmem:[%s18431_s13 + $0x270] sm:$0xff]  ;;  %v3964_v9 = vld [vmem:[%s18431_s13 + $0x298] sm:$0xff] }
0x15e6   :  { %13360 = vmatpush1.bf16.msra.mxu1 %v13359_v33  ;;  %v3223_v7 = vcombine.high %v3215_v57, %v3215_v57  ;;  %v3231_v56 = vrot.slane %v3215_v57, %v14808_v14  ;;  %v3455_v49 = vcombine.high %v3447_v46, %v3447_v46  ;;  %v3857_v59 = vrot.slane %v15716_v47, 1 }
0x15e7   :  { %13362 = vmatprep.subr.bf16.mxu1 %v13361_v53  ;;  %v3463_v5 = vrot.slane %v3447_v46, %v14808_v14  ;;  %v3222_v6 = vrot.slane %v3208_v55, %v14808_v14  ;;  %v3454_v1 = vrot.slane %v3440_v43, %v14808_v14  ;;  %v13369_v52 = vpack.c.bf16 %v3952_v2, %v3948_v51  ;;  %v3968_v51 = vld [vmem:[%s18431_s13 + $0x2b8] sm:$0xff] }
0x15e8   :  { %v3245_v24 = vrot.slane %v3223_v7, %v14808_v14  ;;  %v3477_v10 = vrot.slane %v3455_v49, %v14808_v14  ;;  %v15732_v30 = vsel %vm1435_vm10, %v3856_v3, %v3857_v59  ;;  %v3253_v39 = vcombine.high %v3231_v56, %v3231_v56 }
0x15e9   :  { %v3485_v37 = vcombine.high %v3463_v5, %v3463_v5  ;;  %v3588_v8 = vrot.slane %v3463_v5, %v14792_v36  ;;  %v3224_v4 = vcombine.high %v3222_v6, %v3222_v6  ;;  %4119 = vmatprep.mubr.f32.mxu1 %v15732_v30  ;;  %v3238_v33 = vrot.slane %v3222_v6, %v14808_v14 }
0x15ea   :  { %13364 = vmatpush1.bf16.msra.mxu1 %v13363_v48  ;;  %v3255_v32 = vcombine.high %v3245_v24, %v3245_v24  ;;  %v3487_v15 = vcombine.high %v3477_v10, %v3477_v10  ;;  %v3592_v16 = vrot.slane %v3477_v10, %v14792_v36  ;;  %v3456_v42 = vcombine.high %v3454_v1, %v3454_v1 }
0x15eb   :  { %4120 = vmatmul.mubr.f32.gmra.mrb[32].mxu1 %v15711_v25  ;;  %v3596_v40 = vrot.slane %v3485_v37, %v14792_v36  ;;  %v3673_v26 = vsel %vm798_vm5, %v3231_v56, %v3588_v8  ;;  %v3252_v27 = vrot.slane %v3224_v4, %v14808_v14  ;;  %v3470_v53 = vrot.slane %v3454_v1, %v14808_v14  ;;  %v3963_v8 = vld [vmem:[%s18431_s13 + $0x290] sm:$0xff] }
0x15ec   :  { %v3600_v34 = vrot.slane %v3487_v15, %v14792_v36  ;;  %v3674_v31 = vsel %vm798_vm5, %v3245_v24, %v3592_v16  ;;  %13366 = vmatprep.subr.bf16.mxu1 %v13365_v63  ;;  %v3484_v0 = vrot.slane %v3456_v42, %v14808_v14  ;;  %v13371_v22 = vpack.c.bf16 %v3951_v20, %v3947_v45  ;;  %v3967_v4 = vld [vmem:[%s18431_s13 + $0x2b0] sm:$0xff] }
0x15ed   :  { %v3815_v41 = vcombine.low %v3673_v26, %v3674_v31  ;;  %v13373_v29 = vpack.c.bf16 %v3960_v11, %v3956_v58  ;;  %v3675_v21 = vsel %vm798_vm5, %v3253_v39, %v3596_v40  ;;  %v3486_v46 = vcombine.high %v3470_v53, %v3470_v53  ;;  %v3972_v39 = vld [vmem:[%s18431_s13 + $0x2d8] sm:$0xff]  ;;  %v3975_v42 = vld [vmem:[%s18431_s13 + $0x2f0] sm:$0xff] }
0x15ee   :  { %13368 = vmatpush1.bf16.msra.mxu1 %v13367_v13  ;;  %v3676_v57 = vsel %vm798_vm5, %v3255_v32, %v3600_v34  ;;  %v3604_v55 = vrot.slane %v3470_v53, %v14792_v36  ;;  %v3488_v43 = vcombine.high %v3484_v0, %v3484_v0  ;;  %v3608_v48 = vrot.slane %v3484_v0, %v14792_v36  ;;  %v3976_v32 = vld [vmem:[%s18431_s13 + $0x2f8] sm:$0xff] }
0x15ef   :  { %13370 = vmatprep.subr.bf16.mxu1 %v13369_v52  ;;  %v3816_v23 = vcombine.low %v3675_v21, %v3676_v57  ;;  %v13375_v63 = vpack.c.bf16 %v3959_v44, %v3955_v12  ;;  %v3823_v2 = vrot.slane %v3815_v41, %v14962_v50  ;;  %v3254_v3 = vcombine.high %v3238_v33, %v3238_v33  ;;  %v3980_v34 = vld [vmem:[%s18431_s13 + $0x318] sm:$0xff]  ;;  %v3979_v44 = vld [vmem:[%s18431_s13 + $0x310] sm:$0xff] }
0x15f0   :  { %v3256_v7 = vcombine.high %v3252_v27, %v3252_v27  ;;  %v3612_v56 = vrot.slane %v3486_v46, %v14792_v36  ;;  %v3616_v5 = vrot.slane %v3488_v43, %v14792_v36  ;;  %v3677_v6 = vsel %vm798_vm5, %v3238_v33, %v3604_v55  ;;  %v3971_v33 = vld [vmem:[%s18431_s13 + $0x2d0] sm:$0xff]  ;;  %v3984_v31 = vld [vmem:[%s18431_s13 + $0x338] sm:$0xff] }
0x15f1   :  { %v3830_v49 = vrot.slane %v3816_v23, %v14962_v50  ;;  %v3678_v1 = vsel %vm798_vm5, %v3252_v27, %v3608_v48  ;;  %v13377_v10 = vpack.c.bf16 %v3968_v51, %v3964_v9  ;;  %v13379_v58 = vpack.c.bf16 %v3967_v4, %v3963_v8  ;;  %v3983_v41 = vld [vmem:[%s18431_s13 + $0x330] sm:$0xff]  ;;  %v3988_v0 = vld [vmem:[%s18431_s13 + $0x358] sm:$0xff] }
0x15f2   :  { %13372 = vmatpush1.bf16.msra.mxu1 %v13371_v22  ;;  %v3832_v24 = vcombine.low %v3677_v6, %v3678_v1  ;;  %v3679_v52 = vsel %vm798_vm5, %v3254_v3, %v3612_v56  ;;  %v3680_v37 = vsel %vm798_vm5, %v3256_v7, %v3616_v5  ;;  %v13381_v40 = vpack.c.bf16 %v3976_v32, %v3972_v39  ;;  %v3992_v22 = vld [vmem:[%s18431_s13 + $0x378] sm:$0xff]  ;;  %v3987_v57 = vld [vmem:[%s18431_s13 + $0x350] sm:$0xff]  ;;  %v4329_v1 = vld [vmem:[%s18439_s11 + $0xa0] sm:$0xff] }
0x15f3   :  { %13374 = vmatprep.subr.bf16.mxu1 %v13373_v29  ;;  %v15764_v13 = vcombine.low %v3823_v2, %v3830_v49  ;;  %v3833_v45 = vcombine.low %v3679_v52, %v3680_v37  ;;  %v13383_v53 = vpack.c.bf16 %v3975_v42, %v3971_v33  ;;  %v13385_v12 = vpack.c.bf16 %v3984_v31, %v3980_v34  ;;  %v3991_v46 = vld [vmem:[%s18431_s13 + $0x370] sm:$0xff]  ;;  %v3996_v55 = vld [vmem:[%s18431_s13 + $0x398] sm:$0xff]  ;;  %v4314_v52 = vld [vmem:[%s18439_s11 + $0x28] sm:$0xff] }
0x15f4   :  { %v3840_v16 = vrot.slane %v3832_v24, %v14962_v50  ;;  %v13387_v29 = vpack.c.bf16 %v3983_v41, %v3979_v44  ;;  %v13389_v21 = vpack.c.bf16 %v3992_v22, %v3988_v0  ;;  %v4000_v23 = vld [vmem:[%s18431_s13 + $0x3b8] sm:$0xff]  ;;  %v13391_v43 = vpack.c.bf16 %v3991_v46, %v3987_v57  ;;  %v3999_v9 = vld [vmem:[%s18431_s13 + $0x3b0] sm:$0xff]  ;;  %v4330_v24 = vld [vmem:[%s18439_s11 + $0xa8] sm:$0xff] }
0x15f5   :  { %v3859_v15 = vrot.slane %v15764_v13, 1  ;;  %v3847_v20 = vrot.slane %v3833_v45, %v14962_v50  ;;  %v13393_v48 = vpack.c.bf16 %v4000_v23, %v3996_v55  ;;  %v4004_v51 = vld [vmem:[%s18431_s13 + $0x3d8] sm:$0xff]  ;;  %v4003_v56 = vld [vmem:[%s18431_s13 + $0x3d0] sm:$0xff]  ;;  %v4321_v41 = vld [vmem:[%s18439_s11 + $0x60] sm:$0xff] }
0x15f6   :  { %13376 = vmatpush1.bf16.msra.mxu1 %v13375_v63  ;;  %v3995_v63 = vld [vmem:[%s18431_s13 + $0x390] sm:$0xff]  ;;  %v4008_v2 = vld [vmem:[%s18431_s13 + $0x3f8] sm:$0xff]  ;;  %v4322_v0 = vld [vmem:[%s18439_s11 + $0x68] sm:$0xff] }
0x15f7   :  { %13378 = vmatprep.subr.bf16.mxu1 %v13377_v10  ;;  %v3860_v11 = vsel %vm1435_vm10, %v3857_v59, %v3859_v15  ;;  %v3848_v26 = vcombine.low %v3840_v16, %v3847_v20  ;;  %v13395_v3 = vpack.c.bf16 %v3999_v9, %v3995_v63  ;;  %v13397_v7 = vpack.c.bf16 %v4008_v2, %v4004_v51  ;;  %v4007_v49 = vld [vmem:[%s18431_s13 + $0x3f0] sm:$0xff]  ;;  %v4332_v4 = vld [vmem:[%s18439_s11 + $0xb8] sm:$0xff]  ;;  %v4334_v20 = vld [vmem:[%s18439_s11 + $0xc8] sm:$0xff] }
0x15f8   :  { %4125 = vmatprep.mubr.f32.mxu1 %v3860_v11  ;;  %v13399_v5 = vpack.c.bf16 %v4007_v49, %v4003_v56  ;;  %v15835_v10 = vpack.c.bf16 %v4330_v24, %v4329_v1  ;;  %v4331_v8 = vld [vmem:[%s18439_s11 + $0xb0] sm:$0xff]  ;;  %v4316_v32 = vld [vmem:[%s18439_s11 + $0x38] sm:$0xff]  ;;  %v4341_v63 = vld [vmem:[%s18439_s11 + $0x100] sm:$0xff] }
0x15f9   :  { %4126 = vmatmul.mubr.f32.gmra.mrb[34].mxu1 %v15716_v47  ;;  %v3861_v27 = vrot.slane %v3848_v26, 1  ;;  %v15845_v45 = vpack.c.bf16 %v4332_v4, %v4331_v8  ;;  %v4315_v39 = vld [vmem:[%s18439_s11 + $0x30] sm:$0xff]  ;;  %v4336_v33 = vld [vmem:[%s18439_s11 + $0xd8] sm:$0xff]  ;;  %v4342_v51 = vld [vmem:[%s18439_s11 + $0x108] sm:$0xff] }
0x15fa   :  { %13380 = vmatpush1.bf16.msra.mxu1 %v13379_v58  ;;  %v15852_v16 = vpack.c.bf16 %v4316_v32, %v4315_v39  ;;  %v4317_v58 = vld [vmem:[%s18439_s11 + $0x40] sm:$0xff]  ;;  %v4319_v31 = vld [vmem:[%s18439_s11 + $0x50] sm:$0xff]  ;;  %v4324_v55 = vld [vmem:[%s18439_s11 + $0x78] sm:$0xff]  ;;  %v15900_v2 = vpack.c.bf16 %v4342_v51, %v4341_v63 }
0x15fb   :  { %13382 = vmatprep.subr.bf16.mxu1 %v13381_v40  ;;  %v3862_v59 = vsel %vm1435_vm10, %v3859_v15, %v3861_v27  ;;  %v4333_v15 = vld [vmem:[%s18439_s11 + $0xc0] sm:$0xff]  ;;  %v4339_v22 = vld [vmem:[%s18439_s11 + $0xf0] sm:$0xff]  ;;  %v4364_v1 = vld [vmem:[%s18439_s11 + $0x1b8] sm:$0xff] }
0x15fc   :  { %4131 = vmatprep.mubr.f32.mxu1 %v3862_v59  ;;  %v15857_v40 = vpack.c.bf16 %v4334_v20, %v4333_v15  ;;  %v4323_v46 = vld [vmem:[%s18439_s11 + $0x70] sm:$0xff]  ;;  %v4365_v4 = vld [vmem:[%s18439_s11 + $0x1c0] sm:$0xff]  ;;  %v4366_v39 = vld [vmem:[%s18439_s11 + $0x1c8] sm:$0xff] }
0x15fd   :  { %4132 = vmatmul.mubr.f32.gmra.mrb[36].mxu1 %v15764_v13  ;;  %v15890_v23 = vpack.c.bf16 %v4324_v55, %v4323_v46  ;;  %v4343_v56 = vld [vmem:[%s18439_s11 + $0x110] sm:$0xff]  ;;  %v4349_v32 = vld [vmem:[%s18439_s11 + $0x140] sm:$0xff]  ;;  %v15937_v15 = vpack.c.bf16 %v4366_v39, %v4365_v4  ;;  %v4350_v20 = vld [vmem:[%s18439_s11 + $0x148] sm:$0xff] }
0x15fe   :  { %12400 = vmatprep.mubr.msk.f32.mxu1 %vm1435_vm10, %v3861_v27  ;;  %13384 = vmatpush1.bf16.msra.mxu1 %v13383_v53  ;;  %v4337_v53 = vld [vmem:[%s18439_s11 + $0xe0] sm:$0xff]  ;;  %v4347_v24 = vld [vmem:[%s18439_s11 + $0x130] sm:$0xff]  ;;  %v4372_v55 = vld [vmem:[%s18439_s11 + $0x1f8] sm:$0xff] }
0x15ff   :  { %13386 = vmatprep.subr.bf16.mxu1 %v13385_v12  ;;  %v4371_v46 = vld [vmem:[%s18439_s11 + $0x1f0] sm:$0xff]  ;;  %v4356_v51 = vld [vmem:[%s18439_s11 + $0x178] sm:$0xff] }
0x1600   :  { %v4355_v63 = vld [vmem:[%s18439_s11 + $0x170] sm:$0xff] }
0x1601   :  { %4138 = vmatmul.mubr.f32.gmra.mrb[38].mxu1 %v3848_v26 }
0x1602   :  { %4208 = vmatprep.mubr.f32.mxu1 %v15587_v28  ;;  %13388 = vmatpush1.bf16.msra.mxu1 %v13387_v29  ;;  %v4340_v29 = vld [vmem:[%s18439_s11 + $0xf8] sm:$0xff] }
0x1603   :  { %13390 = vmatprep.subr.bf16.mxu1 %v13389_v21  ;;  %v15882_v21 = vpack.c.bf16 %v4322_v0, %v4321_v41  ;;  %v15885_v57 = vpack.c.bf16 %v4340_v29, %v4339_v22  ;;  %v4353_v22 = vld [vmem:[%s18439_s11 + $0x160] sm:$0xff]  ;;  %v4354_v29 = vld [vmem:[%s18439_s11 + $0x168] sm:$0xff] }
0x1606   :  { %13392 = vmatpush1.bf16.msra.mxu1 %v13391_v43  ;;  %v4357_v43 = vld [vmem:[%s18439_s11 + $0x180] sm:$0xff] }
0x1607   :  { %13394 = vmatprep.subr.bf16.mxu1 %v13393_v48  ;;  %v4358_v48 = vld [vmem:[%s18439_s11 + $0x188] sm:$0xff] }
0x1608   :  { %v15897_v9 = vpack.c.bf16 %v4358_v48, %v4357_v43  ;;  %v15962_v43 = vpack.c.bf16 %v4354_v29, %v4353_v22  ;;  %v15965_v48 = vpack.c.bf16 %v4372_v55, %v4371_v46 }
0x160a   :  { %13396 = vmatpush1.bf16.msra.mxu1 %v13395_v3  ;;  %v4359_v3 = vld [vmem:[%s18439_s11 + $0x190] sm:$0xff] }
0x160b   :  { %13398 = vmatprep.subr.bf16.mxu1 %v13397_v7  ;;  %v4360_v7 = vld [vmem:[%s18439_s11 + $0x198] sm:$0xff] }
0x160c   :  { %v15907_v49 = vpack.c.bf16 %v4360_v7, %v4359_v3  ;;  %v15970_v3 = vpack.c.bf16 %v4356_v51, %v4355_v63 }
0x160e   :  { %13400 = vmatpush1.bf16.msra.mxu1 %v13399_v5  ;;  %v4344_v5 = vld [vmem:[%s18439_s11 + $0x118] sm:$0xff] }
0x160f   :  { %13434 = vmatprep.subr.bf16.mxu1 %v15897_v9 }
0x1611   :  { %4209 = vmatmul.mubr.f32.vlgmr.msra.gmra.mrb[40].mxu1 %v15559_v18  ;;  %v4325_v18 = vld [vmem:[%s18439_s11 + $0x80] sm:$0xff] }
0x1612   :  { %4214 = vmatprep.mubr.f32.mxu1 %v15626_v17  ;;  %v4310_v17 = vld [vmem:[%s18439_s11 + $0x8] sm:$0xff]  ;;  %13436 = vmatpush3.bf16.msra.mxu1 %v15900_v2 }
0x1613   :  { %13438 = vmatprep.subr.bf16.mxu1 %v15907_v49 }
0x1615   :  { %4215 = vmatmul.mubr.f32.gmra.mrb[42].mxu1 %v15569_v60  ;;  %v4326_v60 = vld [vmem:[%s18439_s11 + $0x88] sm:$0xff] }
0x1616   :  { %4220 = vmatprep.mubr.f32.mxu1 %v15667_v19  ;;  %v15816_v28 = vpack.c.bf16 %v4326_v60, %v4325_v18  ;;  %v4328_v19 = vld [vmem:[%s18439_s11 + $0x98] sm:$0xff]  ;;  %v15910_v18 = vpack.c.bf16 %v4344_v5, %v4343_v56  ;;  %v4361_v60 = vld [vmem:[%s18439_s11 + $0x1a0] sm:$0xff] }
0x1618   :  { %13402 = vmatprep.subr.bf16.mxu0 %v15816_v28  ;;  %13440 = vmatpush3.bf16.msra.mxu1 %v15910_v18 }
0x1619   :  { %4221 = vmatmul.mubr.f32.gmra.mrb[44].mxu1 %v15606_v62  ;;  %v4309_v62 = vld [vmem:[%s18439_s11] sm:$0xff] }
0x161a   :  { %12401 = vmatprep.mubr.msk.f32.mxu1 %vm1435_vm10, %v15654_v61  ;;  %v4327_v61 = vld [vmem:[%s18439_s11 + $0x90] sm:$0xff] }
0x161d   :  { %4227 = vmatmul.mubr.f32.gmra.mrb[46].mxu1 %v15644_v54  ;;  %v15821_v54 = vpack.c.bf16 %v4310_v17, %v4309_v62  ;;  %v4362_v62 = vld [vmem:[%s18439_s11 + $0x1a8] sm:$0xff]  ;;  %v4345_v17 = vld [vmem:[%s18439_s11 + $0x120] sm:$0xff] }
0x161e   :  { %4232 = vmatprep.mubr.f32.mxu1 %v15732_v30  ;;  %v4312_v30 = vld [vmem:[%s18439_s11 + $0x18] sm:$0xff] }
0x161f   :  { %13404 = vmatpush3.bf16.msra.mxu0 %v15821_v54 }
0x1621   :  { %4233 = vmatmul.mubr.f32.gmra.mrb[48].mxu1 %v15711_v25  ;;  %v15825_v25 = vpack.c.bf16 %v4328_v19, %v4327_v61  ;;  %v15917_v61 = vpack.c.bf16 %v4362_v62, %v4361_v60  ;;  %v4346_v19 = vld [vmem:[%s18439_s11 + $0x128] sm:$0xff] }
0x1622   :  { %4238 = vmatprep.mubr.f32.mxu1 %v3860_v11  ;;  %v4318_v11 = vld [vmem:[%s18439_s11 + $0x48] sm:$0xff] }
0x1623   :  { %13406 = vmatprep.subr.bf16.mxu0 %v15825_v25  ;;  %v15862_v42 = vpack.c.bf16 %v4318_v11, %v4317_v58  ;;  %13442 = vmatprep.subr.bf16.mxu1 %v15917_v61  ;;  %v4367_v58 = vld [vmem:[%s18439_s11 + $0x1d0] sm:$0xff]  ;;  %v4368_v11 = vld [vmem:[%s18439_s11 + $0x1d8] sm:$0xff] }
0x1625   :  { %4239 = vmatmul.mubr.f32.gmra.mrb[50].mxu1 %v15716_v47  ;;  %v4311_v47 = vld [vmem:[%s18439_s11 + $0x10] sm:$0xff] }
0x1626   :  { %4244 = vmatprep.mubr.f32.mxu1 %v3862_v59  ;;  %v15831_v6 = vpack.c.bf16 %v4312_v30, %v4311_v47  ;;  %v4338_v59 = vld [vmem:[%s18439_s11 + $0xe8] sm:$0xff]  ;;  %v15920_v47 = vpack.c.bf16 %v4346_v19, %v4345_v17  ;;  %v4363_v30 = vld [vmem:[%s18439_s11 + $0x1b0] sm:$0xff] }
0x1627   :  { %v15875_v44 = vpack.c.bf16 %v4338_v59, %v4337_v53  ;;  %v4369_v53 = vld [vmem:[%s18439_s11 + $0x1e0] sm:$0xff]  ;;  %v4370_v59 = vld [vmem:[%s18439_s11 + $0x1e8] sm:$0xff] }
0x1628   :  { %13408 = vmatpush3.bf16.msra.mxu0 %v15831_v6  ;;  %13444 = vmatpush3.bf16.msra.mxu1 %v15920_v47  ;;  %v15955_v0 = vpack.c.bf16 %v4370_v59, %v4369_v53 }
0x1629   :  { %4245 = vmatmul.mubr.f32.gmra.mrb[52].mxu1 %v15764_v13  ;;  %13410 = vmatprep.subr.bf16.mxu0 %v15835_v10  ;;  %v4313_v13 = vld [vmem:[%s18439_s11 + $0x20] sm:$0xff] }
0x162a   :  { %12402 = vmatprep.mubr.msk.f32.mxu1 %vm1435_vm10, %v3861_v27  ;;  %v15841_v37 = vpack.c.bf16 %v4314_v52, %v4313_v13  ;;  %v4320_v27 = vld [vmem:[%s18439_s11 + $0x58] sm:$0xff]  ;;  %v15927_v13 = vpack.c.bf16 %v4364_v1, %v4363_v30 }
0x162b   :  { %v15872_v12 = vpack.c.bf16 %v4320_v27, %v4319_v31  ;;  %v4348_v52 = vld [vmem:[%s18439_s11 + $0x138] sm:$0xff]  ;;  %v4351_v31 = vld [vmem:[%s18439_s11 + $0x150] sm:$0xff] }
0x162c   :  { %13412 = vmatpush3.bf16.msra.mxu0 %v15841_v37  ;;  %v15930_v8 = vpack.c.bf16 %v4348_v52, %v4347_v24  ;;  %13446 = vmatprep.subr.bf16.mxu1 %v15927_v13  ;;  %v4352_v27 = vld [vmem:[%s18439_s11 + $0x158] sm:$0xff]  ;;  %v15975_v52 = vld [vmem:[%s18440_s14] sm:$0xf] }
0x162d   :  { %4251 = vmatmul.mubr.f32.gmra.mrb[54].mxu1 %v3848_v26  ;;  %13414 = vmatprep.subr.bf16.mxu0 %v15845_v45  ;;  %v4335_v26 = vld [vmem:[%s18439_s11 + $0xd0] sm:$0xff]  ;;  %v15952_v41 = vpack.c.bf16 %v4352_v27, %v4351_v31  ;;  %v4014_v4 = vrot.slane %v15975_v52, %v14792_v36  ;;  %v4018_v39 = vrot.slane %v15975_v52, %v14795_v38 }
0x162e   :  { %v15865_v34 = vpack.c.bf16 %v4336_v33, %v4335_v26  ;;  %13448 = vmatpush3.bf16.msra.mxu1 %v15930_v8  ;;  %v15942_v26 = vpack.c.bf16 %v4350_v20, %v4349_v32  ;;  %v15944_v33 = vpack.c.bf16 %v4368_v11, %v4367_v58 }
0x162f   :  { %13450 = vmatprep.subr.bf16.mxu1 %v15937_v15 }
0x1630   :  { %13416 = vmatpush3.bf16.msra.mxu0 %v15852_v16 }
0x1631   :  { %13418 = vmatprep.subr.bf16.mxu0 %v15857_v40 }
0x1632   :  { %13452 = vmatpush3.bf16.msra.mxu1 %v15942_v26 }
0x1633   :  { %13454 = vmatprep.subr.bf16.mxu1 %v15944_v33 }
0x1634   :  { %13420 = vmatpush3.bf16.msra.mxu0 %v15862_v42 }
0x1635   :  { %13422 = vmatprep.subr.bf16.mxu0 %v15865_v34 }
0x1636   :  { %13456 = vmatpush3.bf16.msra.mxu1 %v15952_v41 }
0x1637   :  { %13458 = vmatprep.subr.bf16.mxu1 %v15955_v0 }
0x1638   :  { %13424 = vmatpush3.bf16.msra.mxu0 %v15872_v12 }
0x1639   :  { %13426 = vmatprep.subr.bf16.mxu0 %v15875_v44 }
0x163a   :  { %13460 = vmatpush3.bf16.msra.mxu1 %v15962_v43 }
0x163b   :  { %13462 = vmatprep.subr.bf16.mxu1 %v15965_v48 }
0x163c   :  { %13428 = vmatpush3.bf16.msra.mxu0 %v15882_v21 }
0x163d   :  { %13430 = vmatprep.subr.bf16.mxu0 %v15885_v57 }
0x163e   :  { %13464 = vmatpush3.bf16.msra.mxu1 %v15970_v3 }
0x1640   :  { %13432 = vmatpush3.bf16.msra.mxu0 %v15890_v23 }
0x16a1   :  { %v4097_v7 = vpop.f32.mrb[24].mxu1 }
0x16a2   :  { %v4099_v56 = vpop.f32.mrb[25].mxu1  ;;  %v15985_v58 = vadd.f32 %v4097_v7, %v4014_v4 }
0x16a3   :  { %v15989_v31 = vadd.f32 %v4099_v56, %v4018_v39 }
0x16a9   :  { %v4103_v5 = vpop.f32.mrb[26].mxu1 }
0x16aa   :  { %v4105_v60 = vpop.f32.mrb[27].mxu1  ;;  %v15981_v32 = vadd.f32 %v4103_v5, %v4014_v4 }
0x16ab   :  { %v15983_v20 = vadd.f32 %v4105_v60, %v4018_v39 }
0x16ac   :  { %18441 = vst [vmem:[#allocation73_spill] sm:$0xff] %v15981_v32  ;;  %v4257_v53 = vadd.f32 %v15981_v32, %v15985_v58 }
0x16ad   :  { %v4270_v29 = vadd.f32 %v15983_v20, %v15989_v31 }
0x16b2   :  { %v4109_v62 = vpop.f32.mrb[28].mxu1 }
0x16b3   :  { %v4111_v17 = vpop.f32.mrb[29].mxu1  ;;  %v15987_v11 = vadd.f32 %v4109_v62, %v4014_v4 }
0x16b4   :  { %v15991_v27 = vadd.f32 %v4111_v17, %v4018_v39 }
0x16b5   :  { %18442 = vst [vmem:[#allocation74_spill] sm:$0xff] %v15987_v11  ;;  %v4258_v63 = vadd.f32 %v4257_v53, %v15987_v11 }
0x16b6   :  { %v4115_v19 = vpop.f32.mrb[30].mxu1  ;;  %v4271_v7 = vadd.f32 %v4270_v29, %v15991_v27 }
0x16b7   :  { %v4117_v30 = vpop.f32.mrb[31].mxu1  ;;  %v15995_v59 = vadd.f32 %v4115_v19, %v4014_v4 }
0x16b8   :  { %v15999_v46 = vadd.f32 %v4117_v30, %v4018_v39 }
0x16b9   :  { %18443 = vst [vmem:[#allocation75_spill] sm:$0xff] %v15995_v59  ;;  %v4259_v5 = vadd.f32 %v4258_v63, %v15995_v59 }
0x16ba   :  { %v4272_v62 = vadd.f32 %v4271_v7, %v15999_v46 }
0x16be   :  { %v4121_v1 = vpop.f32.mrb[32].mxu1 }
0x16bf   :  { %v4123_v24 = vpop.f32.mrb[33].mxu1  ;;  %v16002_v51 = vadd.f32 %v4121_v1, %v4014_v4 }
0x16c0   :  { %v16005_v56 = vadd.f32 %v4123_v24, %v4018_v39 }
0x16c1   :  { %18444 = vst [vmem:[#allocation76_spill] sm:$0xff] %v16002_v51  ;;  %v4260_v30 = vadd.f32 %v4259_v5, %v16002_v51 }
0x16c2   :  { %v4273_v1 = vadd.f32 %v4272_v62, %v16005_v56 }
0x16cc   :  { %v4127_v22 = vpop.f32.mrb[34].mxu1 }
0x16cd   :  { %v4129_v55 = vpop.f32.mrb[35].mxu1  ;;  %v16008_v60 = vadd.f32 %v4127_v22, %v4014_v4 }
0x16ce   :  { %v16011_v17 = vadd.f32 %v4129_v55, %v4018_v39 }
0x16cf   :  { %18445 = vst [vmem:[#allocation77_spill] sm:$0xff] %v16008_v60  ;;  %v4261_v24 = vadd.f32 %v4260_v30, %v16008_v60 }
0x16d0   :  { %18446 = vst [vmem:[#allocation78_spill] sm:$0xff] %v16011_v17  ;;  %v4133_v19 = vpop.f32.mrb[36].mxu1  ;;  %v4274_v29 = vadd.f32 %v4273_v1, %v16011_v17 }
0x16d1   :  { %v16014_v50 = vadd.f32 %v4133_v19, %v4014_v4  ;;  %v4135_v53 = vpop.f32.mrb[37].mxu1 }
0x16d2   :  { %v16017_v38 = vadd.f32 %v4135_v53, %v4018_v39 }
0x16d3   :  { %18447 = vst [vmem:[#allocation79_spill] sm:$0xff] %v16014_v50  ;;  %v4262_v63 = vadd.f32 %v4261_v24, %v16014_v50 }
0x16d4   :  { %18448 = vst [vmem:[#allocation80_spill] sm:$0xff] %v16017_v38  ;;  %v4139_v22 = vpop.f32.mrb[38].mxu1  ;;  %v4275_v14 = vadd.f32 %v4274_v29, %v16017_v38 }
0x16d5   :  { %v16022_v7 = vadd.f32 %v4139_v22, %v4014_v4  ;;  %v4141_v55 = vpop.f32.mrb[39].mxu1 }
0x16d6   :  { %v16025_v5 = vadd.f32 %v4141_v55, %v4018_v39 }
0x16d7   :  { %18449 = vst [vmem:[#allocation81_spill] sm:$0xff] %v16022_v7  ;;  %v4263_v19 = vadd.f32 %v4262_v63, %v16022_v7  ;;  %v18451_v63 = vmov 0.0  }
0x16d8   :  { %18450 = vst [vmem:[#allocation82_spill] sm:$0xff] %v16025_v5  ;;  %v4276_v62 = vadd.f32 %v4275_v14, %v16025_v5 }
0x16d9   :  { %v4264_v53 = vrot.slane %v4263_v19, 4 }
0x16da   :  { %v4277_v51 = vrot.slane %v4276_v62, 4 }
0x16db   :  { %v4265_v59 = vadd.f32 %v4264_v53, %v4263_v19  ;;  %v16031_v19 = vsub.s32 2, %v14789_v35 }
0x16dc   :  { %v4278_v30 = vadd.f32 %v4277_v51, %v4276_v62 }
0x16dd   :  { %v4266_v60 = vrot.slane %v4265_v59, 2  ;;  %18452 = vst [vmem:[#allocation83_spill] sm:$0xff] %v16031_v19 }
0x16de   :  { %v4279_v1 = vrot.slane %v4278_v30, 2 }
0x16df   :  { %v4267_v11 = vadd.f32 %v4266_v60, %v4265_v59  ;;  %v16034_v59 = vsub.s32 3, %v14789_v35 }
0x16e0   :  { %v4280_v32 = vadd.f32 %v4279_v1, %v4278_v30 }
0x16e1   :  { %v4268_v24 = vrot.slane %v4267_v11, 1  ;;  %18453 = vst [vmem:[#allocation84_spill] sm:$0xff] %v16034_v59 }
0x16e2   :  { %v4281_v4 = vrot.slane %v4280_v32, 1 }
0x16e3   :  { %v4269_v17 = vadd.f32 %v4268_v24, %v4267_v11 }
0x16e4   :  { %v4282_v22 = vadd.f32 %v4281_v4, %v4280_v32  ;;  %v4210_v50 = vpop.f32.mrb[40].mxu1  ;;  %v4022_v32 = vrot.slane %v15975_v52, %v16031_v19 }
0x16e5   :  { %v4212_v29 = vpop.f32.mrb[41].mxu1 }
0x16e6   :  { %4437 = vmatprep.mubr.f32.mxu0 %v4282_v22  ;;  %v16044_v1 = vadd.f32 %v4210_v50, %v4022_v32 }
0x16e7   :  { %4438 = vmatmul.mubr.f32.vlgmr.msra.gmra.mrb[18].mxu0 %v4269_v17  ;;  %v4026_v17 = vrot.slane %v15975_v52, %v16034_v59 }
0x16e8   :  { %v4216_v39 = vpop.f32.mrb[42].mxu1  ;;  %4595 = vmatprep.mubr.f32.mxu0 %v18451_v63  ;;  %18456 = vst [vmem:[#allocation87_spill] sm:$0xff] %v16044_v1 }
0x16e9   :  { %v4218_v14 = vpop.f32.mrb[43].mxu1  ;;  %v16040_v62 = vadd.f32 %v4216_v39, %v4022_v32  ;;  %v16048_v35 = vadd.f32 %v4212_v29, %v4026_v17 }
0x16ea   :  { %v16042_v53 = vadd.f32 %v4218_v14, %v4026_v17 }
0x16eb   :  { %18454 = vst [vmem:[#allocation85_spill] sm:$0xff] %v16040_v62  ;;  %v4283_v19 = vadd.f32 %v16040_v62, %v16044_v1 }
0x16ec   :  { %v4222_v55 = vpop.f32.mrb[44].mxu1  ;;  %18455 = vst [vmem:[#allocation86_spill] sm:$0xff] %v16042_v53  ;;  %v4296_v52 = vadd.f32 %v16042_v53, %v16048_v35 }
0x16ed   :  { %v4224_v51 = vpop.f32.mrb[45].mxu1  ;;  %v16046_v24 = vadd.f32 %v4222_v55, %v4022_v32 }
0x16ee   :  { %v16050_v22 = vadd.f32 %v4224_v51, %v4026_v17 }
0x16ef   :  { %18457 = vst [vmem:[#allocation88_spill] sm:$0xff] %v16046_v24  ;;  %v4284_v50 = vadd.f32 %v4283_v19, %v16046_v24 }
0x16f0   :  { %v4228_v60 = vpop.f32.mrb[46].mxu1  ;;  %v4297_v29 = vadd.f32 %v4296_v52, %v16050_v22 }
0x16f1   :  { %v4230_v11 = vpop.f32.mrb[47].mxu1  ;;  %v16054_v7 = vadd.f32 %v4228_v60, %v4022_v32 }
0x16f2   :  { %v16058_v39 = vadd.f32 %v4230_v11, %v4026_v17 }
0x16f3   :  { %18458 = vst [vmem:[#allocation89_spill] sm:$0xff] %v16054_v7  ;;  %v4285_v5 = vadd.f32 %v4284_v50, %v16054_v7 }
0x16f4   :  { %v4234_v30 = vpop.f32.mrb[48].mxu1  ;;  %18459 = vst [vmem:[#allocation90_spill] sm:$0xff] %v16058_v39  ;;  %v4298_v60 = vadd.f32 %v4297_v29, %v16058_v39 }
0x16f5   :  { %v4236_v4 = vpop.f32.mrb[49].mxu1  ;;  %v16061_v55 = vadd.f32 %v4234_v30, %v4022_v32 }
0x16f6   :  { %v16064_v51 = vadd.f32 %v4236_v4, %v4026_v17 }
0x16f7   :  { %18460 = vst [vmem:[#allocation91_spill] sm:$0xff] %v16061_v55  ;;  %v4286_v38 = vadd.f32 %v4285_v5, %v16061_v55 }
0x16f8   :  { %v4240_v14 = vpop.f32.mrb[50].mxu1  ;;  %18461 = vst [vmem:[#allocation92_spill] sm:$0xff] %v16064_v51  ;;  %v4299_v30 = vadd.f32 %v4298_v60, %v16064_v51 }
0x16f9   :  { %v4242_v59 = vpop.f32.mrb[51].mxu1  ;;  %v16067_v62 = vadd.f32 %v4240_v14, %v4022_v32 }
0x16fa   :  { %v16070_v1 = vadd.f32 %v4242_v59, %v4026_v17 }
0x16fb   :  { %18462 = vst [vmem:[#allocation93_spill] sm:$0xff] %v16067_v62  ;;  %v4287_v4 = vadd.f32 %v4286_v38, %v16067_v62 }
0x16fc   :  { %18463 = vst [vmem:[#allocation94_spill] sm:$0xff] %v16070_v1  ;;  %v4246_v11 = vpop.f32.mrb[52].mxu1  ;;  %v4300_v52 = vadd.f32 %v4299_v30, %v16070_v1 }
0x16fd   :  { %v16073_v53 = vadd.f32 %v4246_v11, %v4022_v32  ;;  %v4248_v19 = vpop.f32.mrb[53].mxu1 }
0x16fe   :  { %v16076_v24 = vadd.f32 %v4248_v19, %v4026_v17 }
0x16ff   :  { %18464 = vst [vmem:[#allocation95_spill] sm:$0xff] %v16073_v53  ;;  %v4288_v50 = vadd.f32 %v4287_v4, %v16073_v53 }
0x1700   :  { %v4252_v14 = vpop.f32.mrb[54].mxu1  ;;  %v4301_v7 = vadd.f32 %v4300_v52, %v16076_v24  ;;  %v16091_v52 = vld [vmem:[#allocation35 + $0x8] sm:$0xff] }
0x1701   :  { %v16081_v29 = vadd.f32 %v4252_v14, %v4022_v32  ;;  %v4254_v59 = vpop.f32.mrb[55].mxu1 }
0x1702   :  { %v16084_v5 = vadd.f32 %v4254_v59, %v4026_v17  ;;  %v16089_v17 = vld [vmem:[#allocation35] sm:$0xff] }
0x1703   :  { %v4289_v11 = vadd.f32 %v4288_v50, %v16081_v29 }
0x1704   :  { %v4302_v60 = vadd.f32 %v4301_v7, %v16084_v5  ;;  %v4518_v7 = vcombine.high %v16089_v17, %v16089_v17 }
0x1705   :  { %v4290_v19 = vrot.slane %v4289_v11, 4 }
0x1706   :  { %v4303_v55 = vrot.slane %v4302_v60, 4  ;;  %12403 = vmatprep.subr.msk.mxu0 %vm2709_vm15, %v4518_v7 }
0x1707   :  { %v4291_v51 = vadd.f32 %v4290_v19, %v4289_v11  ;;  %12404 = vmatpush1.msk.msra.mxu0 %vm2709_vm15, %v16089_v17 }
0x1708   :  { %v4304_v38 = vadd.f32 %v4303_v55, %v4302_v60  ;;  %v4519_v55 = vcombine.high %v16091_v52, %v16091_v52  ;;  %13466 = vmatprep.subr.bf16.mxu0 %v15816_v28 }
0x1709   :  { %v4292_v62 = vrot.slane %v4291_v51, 2 }
0x170a   :  { %v4305_v30 = vrot.slane %v4304_v38, 2  ;;  %12406 = vmatprep.subr.msk.mxu1 %vm2709_vm15, %v4519_v55 }
0x170b   :  { %v4293_v1 = vadd.f32 %v4292_v62, %v4291_v51 }
0x170c   :  { %v4306_v39 = vadd.f32 %v4305_v30, %v4304_v38  ;;  %v18480_v38 = vld [vmem:[#allocation94_spill] sm:$0xff] }
0x170d   :  { %v4294_v4 = vrot.slane %v4293_v1, 1 }
0x170e   :  { %v4307_v32 = vrot.slane %v4306_v39, 1 }
0x170f   :  { %v4295_v53 = vadd.f32 %v4294_v4, %v4293_v1 }
0x1710   :  { %v4308_v14 = vadd.f32 %v4307_v32, %v4306_v39 }
0x1712   :  { %4507 = vmatprep.mubr.f32.mxu1 %v4308_v14 }
0x1713   :  { %4508 = vmatmul.mubr.f32.vlgmr.msra.gmra.mrb[56].mxu1 %v4295_v53 }
0x1714   :  { %4666 = vmatprep.mubr.f32.mxu1 %v18451_v63  ;;  %12407 = vmatpush1.msk.msra.mxu1 %vm2709_vm15, %v16091_v52 }
0x1715   :  { %13498 = vmatprep.subr.bf16.mxu1 %v15897_v9 }
0x17ba   :  { %v12663_v62 = vpop.f32.mrb[18].mxu0 }
0x17bb   :  { %v12664_v53 = vpop.f32.mrb[19].mxu0 }
0x17bc   :  { %v12665_v1 = vadd.f32 %v12664_v53, %v12663_v62  ;;  %v18483_v62 = vld [vmem:[#allocation75_spill] sm:$0xff] }
0x17e6   :  { %v12698_v39 = vpop.f32.mrb[56].mxu1 }
0x17e7   :  { %v12699_v51 = vpop.f32.mrb[57].mxu1 }
0x17e8   :  { %v12700_v50 = vadd.f32 %v12699_v51, %v12698_v39 }
0x17ea   :  { %v4510_v59 = vadd.f32 %v12700_v50, %v12665_v1 }
0x17ec   :  { %v4513_v11 = vmul.f32 0.00012207031, %v4510_v59 }
0x17ee   :  { %12405 = vmatmul.mubr.msk.f32.vlgmr.msra.gmra.mrb[20].mxu0 %vm2705_vm0, %v4513_v11  ;;  %12408 = vmatmul.mubr.msk.f32.vlgmr.msra.gmra.mrb[58].mxu1 %vm2705_vm0, %v4513_v11 }
0x17ef   :  { %13468 = vmatpush3.bf16.msra.mxu0 %v15821_v54  ;;  %13500 = vmatpush3.bf16.msra.mxu1 %v15900_v2 }
0x17f0   :  { %13470 = vmatprep.subr.bf16.mxu0 %v15825_v25  ;;  %13502 = vmatprep.subr.bf16.mxu1 %v15907_v49 }
0x17f3   :  { %13472 = vmatpush3.bf16.msra.mxu0 %v15831_v6  ;;  %13504 = vmatpush3.bf16.msra.mxu1 %v15910_v18  ;;  %v18467_v18 = vld [vmem:[#allocation86_spill] sm:$0xff] }
0x17f4   :  { %13474 = vmatprep.subr.bf16.mxu0 %v15835_v10  ;;  %13506 = vmatprep.subr.bf16.mxu1 %v15917_v61 }
0x17f7   :  { %13476 = vmatpush3.bf16.msra.mxu0 %v15841_v37  ;;  %13508 = vmatpush3.bf16.msra.mxu1 %v15920_v47 }
0x17f8   :  { %13478 = vmatprep.subr.bf16.mxu0 %v15845_v45  ;;  %13510 = vmatprep.subr.bf16.mxu1 %v15927_v13  ;;  %v18468_v13 = vld [vmem:[#allocation78_spill] sm:$0xff] }
0x17fb   :  { %13480 = vmatpush3.bf16.msra.mxu0 %v15852_v16  ;;  %13512 = vmatpush3.bf16.msra.mxu1 %v15930_v8 }
0x17fc   :  { %13482 = vmatprep.subr.bf16.mxu0 %v15857_v40  ;;  %13514 = vmatprep.subr.bf16.mxu1 %v15937_v15  ;;  %v18470_v15 = vld [vmem:[#allocation90_spill] sm:$0xff] }
0x17ff   :  { %13484 = vmatpush3.bf16.msra.mxu0 %v15862_v42  ;;  %13516 = vmatpush3.bf16.msra.mxu1 %v15942_v26 }
0x1800   :  { %13486 = vmatprep.subr.bf16.mxu0 %v15865_v34  ;;  %13518 = vmatprep.subr.bf16.mxu1 %v15944_v33  ;;  %v18472_v33 = vld [vmem:[#allocation73_spill] sm:$0xff] }
0x1803   :  { %13488 = vmatpush3.bf16.msra.mxu0 %v15872_v12  ;;  %13520 = vmatpush3.bf16.msra.mxu1 %v15952_v41 }
0x1804   :  { %13490 = vmatprep.subr.bf16.mxu0 %v15875_v44  ;;  %13522 = vmatprep.subr.bf16.mxu1 %v15955_v0  ;;  %v18473_v0 = vld [vmem:[#allocation74_spill] sm:$0xff] }
0x1807   :  { %13492 = vmatpush3.bf16.msra.mxu0 %v15882_v21  ;;  %13524 = vmatpush3.bf16.msra.mxu1 %v15962_v43 }
0x1808   :  { %13494 = vmatprep.subr.bf16.mxu0 %v15885_v57  ;;  %13526 = vmatprep.subr.bf16.mxu1 %v15965_v48 }
0x180b   :  { %13496 = vmatpush3.bf16.msra.mxu0 %v15890_v23  ;;  %13528 = vmatpush3.bf16.msra.mxu1 %v15970_v3 }
0x180c   :  { %12409 = vmatprep.subr.msk.mxu0 %vm2709_vm15, %v4518_v7  ;;  %12412 = vmatprep.subr.msk.mxu1 %vm2709_vm15, %v4519_v55 }
0x18c1   :  { %v4597_v28 = vpop.f32.mrb[20].mxu0  ;;  %v4668_v54 = vpop.f32.mrb[58].mxu1 }
0x18c2   :  { %v4599_v25 = vpop.f32.mrb[21].mxu0  ;;  %v4670_v6 = vpop.f32.mrb[59].mxu1  ;;  %v16141_v37 = vrot.slane %v4597_v28, %v14792_v36  ;;  %v16161_v21 = vrot.slane %v4668_v54, %v14792_v36 }
0x18c3   :  { %v4680_v10 = vrot.slane %v4599_v25, %v14792_v36  ;;  %v4688_v45 = vrot.slane %v4670_v6, %v14792_v36 }
0x18c4   :  { %v16170_v9 = vsub.f32 %v15985_v58, %v16141_v37  ;;  %v16189_v41 = vsub.f32 %v18472_v33, %v16141_v37  ;;  %v16193_v43 = vsub.f32 %v18473_v0, %v16141_v37  ;;  %v16226_v53 = vsub.f32 %v18483_v62, %v16141_v37  ;;  %v18490_v0 = vld [vmem:[#allocation77_spill] sm:$0xff] }
0x18c5   :  { %v16145_v16 = vsub.f32 %v15989_v31, %v4680_v10  ;;  %v16148_v40 = vsub.f32 %v15983_v20, %v4680_v10  ;;  %v16151_v42 = vsub.f32 %v15991_v27, %v4680_v10  ;;  %v16154_v34 = vsub.f32 %v15999_v46, %v4680_v10  ;;  %v18474_v31 = vld [vmem:[#allocation80_spill] sm:$0xff]  ;;  %v18476_v46 = vld [vmem:[#allocation82_spill] sm:$0xff]  ;;  %v18495_v62 = vld [vmem:[#allocation89_spill] sm:$0xff] }
0x18c6   :  { %v16164_v57 = vsub.f32 %v16005_v56, %v4680_v10  ;;  %v16173_v49 = vsub.f32 %v16048_v35, %v4688_v45  ;;  %v16176_v61 = vsub.f32 %v18467_v18, %v4688_v45  ;;  %v16179_v47 = vsub.f32 %v16050_v22, %v4688_v45  ;;  %v18478_v22 = vld [vmem:[#allocation92_spill] sm:$0xff] }
0x18c7   :  { %18465 = vst [vmem:[#allocation96_spill] sm:$0xff] %v16154_v34  ;;  %v4722_v12 = vmul.f32 %v16145_v16, %v16145_v16  ;;  %v4726_v44 = vmul.f32 %v16148_v40, %v16148_v40  ;;  %v4730_v23 = vmul.f32 %v16151_v42, %v16151_v42  ;;  %v16182_v8 = vsub.f32 %v18468_v13, %v4680_v10 }
0x18c8   :  { %18466 = vst [vmem:[#allocation97_spill] sm:$0xff] %v16164_v57  ;;  %v16185_v26 = vsub.f32 %v18470_v15, %v4688_v45  ;;  %v4734_v48 = vmul.f32 %v16154_v34, %v16154_v34  ;;  %v4724_v20 = vmul.f32 %v16173_v49, %v16173_v49  ;;  %v4728_v58 = vmul.f32 %v16176_v61, %v16176_v61 }
0x18c9   :  { %v4766_v2 = vadd.f32 %v4726_v44, %v4722_v12  ;;  %18469 = vst [vmem:[#allocation86_spill] sm:$0xff] %v16182_v8  ;;  %v16202_v27 = vsub.f32 %v18474_v31, %v4680_v10  ;;  %v16205_v56 = vsub.f32 %v18476_v46, %v4680_v10  ;;  %v4738_v35 = vmul.f32 %v16164_v57, %v16164_v57  ;;  %v18486_v10 = vld [vmem:[#allocation76_spill] sm:$0xff] }
0x18ca   :  { %18471 = vst [vmem:[#allocation78_spill] sm:$0xff] %v16185_v26  ;;  %v16210_v60 = vsub.f32 %v18478_v22, %v4688_v45  ;;  %v16213_v30 = vsub.f32 %v18480_v38, %v4688_v45  ;;  %v4732_v4 = vmul.f32 %v16179_v47, %v16179_v47  ;;  %v4792_v32 = vadd.f32 %v4728_v58, %v4724_v20  ;;  %v18494_v46 = vld [vmem:[#allocation88_spill] sm:$0xff] }
0x18cb   :  { %v4767_v3 = vadd.f32 %v4766_v2, %v4730_v23  ;;  %18475 = vst [vmem:[#allocation90_spill] sm:$0xff] %v16202_v27  ;;  %18477 = vst [vmem:[#allocation73_spill] sm:$0xff] %v16205_v56  ;;  %v4742_v14 = vmul.f32 %v16182_v8, %v16182_v8  ;;  %v16220_v7 = vsub.f32 %v16076_v24, %v4688_v45  ;;  %v18488_v2 = vld [vmem:[#allocation87_spill] sm:$0xff] }
0x18cc   :  { %18479 = vst [vmem:[#allocation74_spill] sm:$0xff] %v16210_v60  ;;  %18481 = vst [vmem:[#allocation80_spill] sm:$0xff] %v16213_v30  ;;  %v4736_v55 = vmul.f32 %v16185_v26, %v16185_v26  ;;  %v4793_v39 = vadd.f32 %v4792_v32, %v4732_v4  ;;  %v4721_v51 = vmul.f32 %v16170_v9, %v16170_v9 }
0x18cd   :  { %v4768_v19 = vadd.f32 %v4767_v3, %v4734_v48  ;;  %18482 = vst [vmem:[#allocation82_spill] sm:$0xff] %v16220_v7  ;;  %18484 = vst [vmem:[#allocation92_spill] sm:$0xff] %v16226_v53  ;;  %v4725_v50 = vmul.f32 %v16189_v41, %v16189_v41  ;;  %v4746_v59 = vmul.f32 %v16202_v27, %v16202_v27  ;;  %v18492_v3 = vld [vmem:[#allocation79_spill] sm:$0xff] }
0x18ce   :  { %v4750_v24 = vmul.f32 %v16205_v56, %v16205_v56  ;;  %v16237_v11 = vsub.f32 %v16084_v5, %v4688_v45  ;;  %v4740_v28 = vmul.f32 %v16210_v60, %v16210_v60  ;;  %v4744_v25 = vmul.f32 %v16213_v30, %v16213_v30  ;;  %v18489_v45 = vld [vmem:[#allocation85_spill] sm:$0xff]  ;;  %v16400_v27 = vld [vmem:[#allocation37 + $0x2c8] sm:$0xff] }
0x18cf   :  { %v4769_v1 = vadd.f32 %v4768_v19, %v4738_v35  ;;  %v4794_v6 = vadd.f32 %v4793_v39, %v4736_v55  ;;  %v16245_v12 = vsub.f32 %v18486_v10, %v16141_v37  ;;  %v4729_v44 = vmul.f32 %v16193_v43, %v16193_v43  ;;  %18519 = vst [vmem:[#allocation99_spill] sm:$0xff] %v16400_v27 }
0x18d0   :  { %18485 = vst [vmem:[#allocation94_spill] sm:$0xff] %v16237_v11  ;;  %v4753_v23 = vadd.f32 %v4725_v50, %v4721_v51  ;;  %v16251_v5 = vsub.f32 %v18488_v2, %v16161_v21  ;;  %v16255_v18 = vsub.f32 %v18489_v45, %v16161_v21  ;;  %v4748_v15 = vmul.f32 %v16220_v7, %v16220_v7  ;;  %v18497_v50 = vld [vmem:[#allocation81_spill] sm:$0xff] }
0x18d1   :  { %v4770_v54 = vadd.f32 %v4769_v1, %v4742_v14  ;;  %18487 = vst [vmem:[#allocation75_spill] sm:$0xff] %v16245_v12  ;;  %v4795_v33 = vadd.f32 %v4794_v6, %v4740_v28  ;;  %v16261_v48 = vsub.f32 %v18490_v0, %v16141_v37  ;;  %v16265_v20 = vsub.f32 %v18492_v3, %v16141_v37 }
0x18d2   :  { %v4733_v58 = vmul.f32 %v16226_v53, %v16226_v53  ;;  %v4754_v31 = vadd.f32 %v4753_v23, %v4729_v44  ;;  %v16271_v35 = vsub.f32 %v18494_v46, %v16161_v21  ;;  %v4723_v38 = vmul.f32 %v16251_v5, %v16251_v5  ;;  %v18503_v46 = vld [vmem:[#allocation95_spill] sm:$0xff] }
0x18d3   :  { %v4771_v13 = vadd.f32 %v4770_v54, %v4746_v59  ;;  %18491 = vst [vmem:[#allocation76_spill] sm:$0xff] %v16261_v48  ;;  %18493 = vst [vmem:[#allocation87_spill] sm:$0xff] %v16265_v20  ;;  %v4796_v19 = vadd.f32 %v4795_v33, %v4744_v25  ;;  %v4727_v4 = vmul.f32 %v16255_v18, %v16255_v18  ;;  %v18499_v54 = vld [vmem:[#allocation91_spill] sm:$0xff] }
0x18d4   :  { %v4752_v32 = vmul.f32 %v16237_v11, %v16237_v11  ;;  %v4737_v14 = vmul.f32 %v16245_v12, %v16245_v12  ;;  %v4755_v55 = vadd.f32 %v4754_v31, %v4733_v58  ;;  %v16283_v1 = vsub.f32 %v18495_v62, %v16161_v21  ;;  %v16386_v11 = vld [vmem:[#allocation37 + $0x2a8] sm:$0xff] }
0x18d5   :  { %v4772_v22 = vadd.f32 %v4771_v13, %v4750_v24  ;;  %v4797_v51 = vadd.f32 %v4796_v19, %v4748_v15  ;;  %v16287_v59 = vsub.f32 %v18497_v50, %v16141_v37  ;;  %v4741_v24 = vmul.f32 %v16261_v48, %v16261_v48  ;;  %v18501_v37 = vld [vmem:[#allocation93_spill] sm:$0xff] }
0x18d6   :  { %18496 = vst [vmem:[#allocation85_spill] sm:$0xff] %v16283_v1  ;;  %v4756_v28 = vadd.f32 %v4755_v55, %v4737_v14  ;;  %v16293_v25 = vsub.f32 %v18499_v54, %v16161_v21  ;;  %v4731_v6 = vmul.f32 %v16271_v35, %v16271_v35  ;;  %v4779_v10 = vadd.f32 %v4727_v4, %v4723_v38 }
0x18d7   :  { %v4773_v39 = vrot.slane %v4772_v22, 4  ;;  %18498 = vst [vmem:[#allocation77_spill] sm:$0xff] %v16287_v59  ;;  %v4798_v23 = vadd.f32 %v4797_v51, %v4752_v32  ;;  %v4745_v2 = vmul.f32 %v16265_v20, %v16265_v20  ;;  %v16301_v13 = vsub.f32 %v18501_v37, %v16161_v21 }
0x18d8   :  { %18500 = vst [vmem:[#allocation79_spill] sm:$0xff] %v16293_v25  ;;  %v4757_v45 = vadd.f32 %v4756_v28, %v4741_v24  ;;  %v4735_v15 = vmul.f32 %v16283_v1, %v16283_v1  ;;  %v4780_v33 = vadd.f32 %v4779_v10, %v4731_v6  ;;  %v4749_v58 = vmul.f32 %v16287_v59, %v16287_v59 }
0x18d9   :  { %v4774_v44 = vadd.f32 %v4773_v39, %v4772_v22  ;;  %18502 = vst [vmem:[#allocation88_spill] sm:$0xff] %v16301_v13  ;;  %v4799_v3 = vrot.slane %v4798_v23, 4  ;;  %v16309_v22 = vsub.f32 %v18503_v46, %v16161_v21  ;;  %v4739_v19 = vmul.f32 %v16293_v25, %v16293_v25 }
0x18da   :  { %v4758_v31 = vadd.f32 %v4757_v45, %v4745_v2  ;;  %v4781_v38 = vadd.f32 %v4780_v33, %v4735_v15  ;;  %v16315_v55 = vsub.f32 %v16081_v29, %v16161_v21  ;;  %v4743_v62 = vmul.f32 %v16301_v13, %v16301_v13 }
0x18db   :  { %v4775_v0 = vrot.slane %v4774_v44, 2  ;;  %18504 = vst [vmem:[#allocation89_spill] sm:$0xff] %v16309_v22  ;;  %v4800_v32 = vadd.f32 %v4799_v3, %v4798_v23  ;;  %v4747_v28 = vmul.f32 %v16309_v22, %v16309_v22  ;;  %v16398_v22 = vld [vmem:[#allocation37 + $0x2b0] sm:$0xff] }
0x18dc   :  { %v4759_v14 = vadd.f32 %v4758_v31, %v4749_v58  ;;  %18505 = vst [vmem:[#allocation81_spill] sm:$0xff] %v16315_v55  ;;  %v4782_v39 = vadd.f32 %v4781_v38, %v4739_v19  ;;  %v4751_v23 = vmul.f32 %v16315_v55, %v16315_v55  ;;  %v16390_v55 = vld [vmem:[#allocation37 + $0x2a0] sm:$0xff]  ;;  %18518 = vst [vmem:[#allocation98_spill] sm:$0xff] %v16398_v22 }
0x18dd   :  { %v4776_v4 = vadd.f32 %v4775_v0, %v4774_v44  ;;  %v4801_v50 = vrot.slane %v4800_v32, 2 }
0x18de   :  { %v4760_v24 = vrot.slane %v4759_v14, 4  ;;  %v4783_v54 = vadd.f32 %v4782_v39, %v4743_v62 }
0x18df   :  { %v4777_v51 = vrot.slane %v4776_v4, 1  ;;  %v4802_v10 = vadd.f32 %v4801_v50, %v4800_v32  ;;  %v8628_v32 = vld [vmem:[#allocation37 + $0x18] sm:$0xff] }
0x18e0   :  { %v4761_v44 = vadd.f32 %v4760_v24, %v4759_v14  ;;  %v4784_v2 = vadd.f32 %v4783_v54, %v4747_v28  ;;  %v8625_v28 = vld [vmem:[#allocation37] sm:$0xff]  ;;  %v8627_v54 = vld [vmem:[#allocation37 + $0x10] sm:$0xff] }
0x18e1   :  { %v4778_v6 = vadd.f32 %v4777_v51, %v4776_v4  ;;  %v4803_v29 = vrot.slane %v4802_v10, 1  ;;  %v8626_v4 = vld [vmem:[#allocation37 + $0x8] sm:$0xff] }
0x18e2   :  { %v4762_v21 = vrot.slane %v4761_v44, 2  ;;  %v4785_v45 = vadd.f32 %v4784_v2, %v4751_v23  ;;  %v13529_v14 = vpack.c.bf16 %v8628_v32, %v8626_v4  ;;  %v13531_v23 = vpack.c.bf16 %v8627_v54, %v8625_v28  ;;  %v8642_v4 = vld [vmem:[#allocation37 + $0x88] sm:$0xff]  ;;  %v8644_v32 = vld [vmem:[#allocation37 + $0x98] sm:$0xff]  ;;  %v8645_v54 = vld [vmem:[#allocation37 + $0xa0] sm:$0xff] }
0x18e3   :  { %4869 = vmatprep.mubr.f32.mxu0 %v4778_v6  ;;  %v4804_v37 = vadd.f32 %v4803_v29, %v4802_v10  ;;  %v8630_v6 = vld [vmem:[#allocation37 + $0x28] sm:$0xff]  ;;  %v8632_v10 = vld [vmem:[#allocation37 + $0x38] sm:$0xff]  ;;  %v8629_v29 = vld [vmem:[#allocation37 + $0x20] sm:$0xff] }
0x18e4   :  { %v4763_v15 = vadd.f32 %v4762_v21, %v4761_v44  ;;  %v4786_v33 = vrot.slane %v4785_v45, 4 }
0x18e5   :  { %4939 = vmatprep.mubr.f32.mxu1 %v4804_v37  ;;  %v8636_v37 = vld [vmem:[#allocation37 + $0x58] sm:$0xff] }
0x18e6   :  { %v4764_v0 = vrot.slane %v4763_v15, 1  ;;  %v4787_v3 = vadd.f32 %v4786_v33, %v4785_v45  ;;  %v8634_v45 = vld [vmem:[#allocation37 + $0x48] sm:$0xff] }
0x18e7   :  { %v13537_v33 = vpack.c.bf16 %v8636_v37, %v8634_v45 }
0x18e8   :  { %v4765_v58 = vadd.f32 %v4764_v0, %v4763_v15  ;;  %v4788_v31 = vrot.slane %v4787_v3, 2  ;;  %v8633_v15 = vld [vmem:[#allocation37 + $0x40] sm:$0xff]  ;;  %v8635_v0 = vld [vmem:[#allocation37 + $0x50] sm:$0xff] }
0x18ea   :  { %4870 = vmatmul.mubr.f32.vlgmr.msra.gmra.mrb[22].mxu0 %v4765_v58  ;;  %v4789_v46 = vadd.f32 %v4788_v31, %v4787_v3  ;;  %v8638_v3 = vld [vmem:[#allocation37 + $0x68] sm:$0xff]  ;;  %v8640_v58 = vld [vmem:[#allocation37 + $0x78] sm:$0xff]  ;;  %v13539_v31 = vpack.c.bf16 %v8635_v0, %v8633_v15  ;;  %v8653_v15 = vld [vmem:[#allocation37 + $0xe0] sm:$0xff] }
0x18eb   :  { %12410 = vmatpush1.msk.msra.mxu0 %vm2709_vm15, %v16089_v17  ;;  %5014 = vmatprep.mubr.f32.mxu0 %v18451_v63  ;;  %v8658_v0 = vld [vmem:[#allocation37 + $0x108] sm:$0xff] }
0x18ec   :  { %v4790_v19 = vrot.slane %v4789_v46, 1  ;;  %13530 = vmatprep.subr.bf16.mxu0 %v13529_v14 }
0x18ee   :  { %v4791_v38 = vadd.f32 %v4790_v19, %v4789_v46  ;;  %v13541_v46 = vpack.c.bf16 %v8640_v58, %v8638_v3  ;;  %v8637_v19 = vld [vmem:[#allocation37 + $0x60] sm:$0xff]  ;;  %v8660_v3 = vld [vmem:[#allocation37 + $0x118] sm:$0xff] }
0x18f0   :  { %4940 = vmatmul.mubr.f32.vlgmr.msra.gmra.mrb[60].mxu1 %v4791_v38  ;;  %v8639_v38 = vld [vmem:[#allocation37 + $0x70] sm:$0xff] }
0x18f1   :  { %12413 = vmatpush1.msk.msra.mxu1 %vm2709_vm15, %v16091_v52  ;;  %5085 = vmatprep.mubr.f32.mxu1 %v18451_v63  ;;  %v13533_v52 = vpack.c.bf16 %v8632_v10, %v8630_v6  ;;  %v8631_v63 = vld [vmem:[#allocation37 + $0x30] sm:$0xff]  ;;  %v13543_v14 = vpack.c.bf16 %v8639_v38, %v8637_v19  ;;  %v8650_v10 = vld [vmem:[#allocation37 + $0xc8] sm:$0xff] }
0x18f2   :  { %v13535_v21 = vpack.c.bf16 %v8631_v63, %v8629_v29  ;;  %v8647_v6 = vld [vmem:[#allocation37 + $0xb0] sm:$0xff]  ;;  %v8654_v63 = vld [vmem:[#allocation37 + $0xe8] sm:$0xff] }
0x18f3   :  { %v8651_v29 = vld [vmem:[#allocation37 + $0xd0] sm:$0xff]  ;;  %v8662_v38 = vld [vmem:[#allocation37 + $0x128] sm:$0xff] }
0x18f4   :  { %v8659_v19 = vld [vmem:[#allocation37 + $0x110] sm:$0xff] }
0x19bd   :  { %v12733_v62 = vpop.f32.mrb[22].mxu0 }
0x19be   :  { %v12734_v39 = vpop.f32.mrb[23].mxu0 }
0x19bf   :  { %v12735_v51 = vadd.f32 %v12734_v39, %v12733_v62  ;;  %v13545_v62 = vpack.c.bf16 %v8644_v32, %v8642_v4  ;;  %v8641_v39 = vld [vmem:[#allocation37 + $0x80] sm:$0xff]  ;;  %v8664_v4 = vld [vmem:[#allocation37 + $0x138] sm:$0xff] }
0x19c3   :  { %v12768_v50 = vpop.f32.mrb[60].mxu1 }
0x19c4   :  { %v12769_v24 = vpop.f32.mrb[61].mxu1 }
0x19c5   :  { %v12770_v17 = vadd.f32 %v12769_v24, %v12768_v50  ;;  %v8646_v50 = vld [vmem:[#allocation37 + $0xa8] sm:$0xff]  ;;  %v8648_v24 = vld [vmem:[#allocation37 + $0xb8] sm:$0xff] }
0x19c6   :  { %v13549_v28 = vpack.c.bf16 %v8648_v24, %v8646_v50  ;;  %v8668_v50 = vld [vmem:[#allocation37 + $0x158] sm:$0xff] }
0x19c7   :  { %v4942_v44 = vadd.f32 %v12770_v17, %v12735_v51  ;;  %v8643_v51 = vld [vmem:[#allocation37 + $0x90] sm:$0xff] }
0x19c8   :  { %v13547_v17 = vpack.c.bf16 %v8643_v51, %v8641_v39  ;;  %v8663_v39 = vld [vmem:[#allocation37 + $0x130] sm:$0xff]  ;;  %v8666_v51 = vld [vmem:[#allocation37 + $0x148] sm:$0xff] }
0x19c9   :  { %v4945_v2 = vmul.f32 0.00012207031, %v4942_v44  ;;  %v8652_v44 = vld [vmem:[#allocation37 + $0xd8] sm:$0xff] }
0x19cb   :  { %12411 = vmatmul.mubr.msk.f32.vlgmr.msra.gmra.mrb[24].mxu0 %vm2705_vm0, %v4945_v2  ;;  %12414 = vmatmul.mubr.msk.f32.vlgmr.msra.gmra.mrb[62].mxu1 %vm2705_vm0, %v4945_v2  ;;  %v13553_v2 = vpack.c.bf16 %v8652_v44, %v8650_v10  ;;  %v8672_v10 = vld [vmem:[#allocation37 + $0x178] sm:$0xff] }
0x19cc   :  { %13532 = vmatpush1.bf16.msra.mxu0 %v13531_v23  ;;  %v13551_v23 = vpack.c.bf16 %v8647_v6, %v8645_v54  ;;  %v8667_v54 = vld [vmem:[#allocation37 + $0x150] sm:$0xff]  ;;  %v8670_v6 = vld [vmem:[#allocation37 + $0x168] sm:$0xff] }
0x19cd   :  { %13534 = vmatprep.subr.bf16.mxu0 %v13533_v52  ;;  %v8649_v52 = vld [vmem:[#allocation37 + $0xc0] sm:$0xff] }
0x19ce   :  { %v13555_v45 = vpack.c.bf16 %v8651_v29, %v8649_v52  ;;  %v8671_v52 = vld [vmem:[#allocation37 + $0x170] sm:$0xff]  ;;  %v8674_v29 = vld [vmem:[#allocation37 + $0x188] sm:$0xff] }
0x19d0   :  { %13536 = vmatpush1.bf16.msra.mxu0 %v13535_v21  ;;  %v8656_v21 = vld [vmem:[#allocation37 + $0xf8] sm:$0xff] }
0x19d1   :  { %13538 = vmatprep.subr.bf16.mxu0 %v13537_v33  ;;  %v13557_v37 = vpack.c.bf16 %v8656_v21, %v8654_v63  ;;  %v8655_v33 = vld [vmem:[#allocation37 + $0xf0] sm:$0xff]  ;;  %v8676_v63 = vld [vmem:[#allocation37 + $0x198] sm:$0xff] }
0x19d2   :  { %v13559_v58 = vpack.c.bf16 %v8655_v33, %v8653_v15  ;;  %v8675_v15 = vld [vmem:[#allocation37 + $0x190] sm:$0xff]  ;;  %v8678_v33 = vld [vmem:[#allocation37 + $0x1a8] sm:$0xff] }
0x19d4   :  { %13540 = vmatpush1.bf16.msra.mxu0 %v13539_v31  ;;  %v13561_v31 = vpack.c.bf16 %v8660_v3, %v8658_v0  ;;  %v8680_v0 = vld [vmem:[#allocation37 + $0x1b8] sm:$0xff] }
0x19d5   :  { %13542 = vmatprep.subr.bf16.mxu0 %v13541_v46  ;;  %v8657_v46 = vld [vmem:[#allocation37 + $0x100] sm:$0xff] }
0x19d6   :  { %v13563_v32 = vpack.c.bf16 %v8659_v19, %v8657_v46  ;;  %v8679_v46 = vld [vmem:[#allocation37 + $0x1b0] sm:$0xff]  ;;  %v8682_v19 = vld [vmem:[#allocation37 + $0x1c8] sm:$0xff] }
0x19d8   :  { %13544 = vmatpush1.bf16.msra.mxu0 %v13543_v14  ;;  %v13565_v14 = vpack.c.bf16 %v8664_v4, %v8662_v38  ;;  %v8684_v38 = vld [vmem:[#allocation37 + $0x1d8] sm:$0xff] }
0x19d9   :  { %13546 = vmatprep.subr.bf16.mxu0 %v13545_v62  ;;  %v8661_v62 = vld [vmem:[#allocation37 + $0x120] sm:$0xff] }
0x19da   :  { %v13567_v24 = vpack.c.bf16 %v8663_v39, %v8661_v62  ;;  %v8683_v62 = vld [vmem:[#allocation37 + $0x1d0] sm:$0xff]  ;;  %v8686_v39 = vld [vmem:[#allocation37 + $0x1e8] sm:$0xff] }
0x19dc   :  { %13548 = vmatpush1.bf16.msra.mxu0 %v13547_v17  ;;  %v13569_v17 = vpack.c.bf16 %v8668_v50, %v8666_v51  ;;  %v8688_v51 = vld [vmem:[#allocation37 + $0x1f8] sm:$0xff] }
0x19dd   :  { %13550 = vmatprep.subr.bf16.mxu0 %v13549_v28  ;;  %v8665_v28 = vld [vmem:[#allocation37 + $0x140] sm:$0xff] }
0x19de   :  { %v13571_v44 = vpack.c.bf16 %v8667_v54, %v8665_v28  ;;  %v8687_v28 = vld [vmem:[#allocation37 + $0x1f0] sm:$0xff]  ;;  %v8690_v54 = vld [vmem:[#allocation37 + $0x208] sm:$0xff] }
0x19e0   :  { %13552 = vmatpush1.bf16.msra.mxu0 %v13551_v23  ;;  %v13573_v23 = vpack.c.bf16 %v8672_v10, %v8670_v6  ;;  %v8692_v6 = vld [vmem:[#allocation37 + $0x218] sm:$0xff] }
0x19e1   :  { %13554 = vmatprep.subr.bf16.mxu0 %v13553_v2  ;;  %v8669_v2 = vld [vmem:[#allocation37 + $0x160] sm:$0xff] }
0x19e2   :  { %v13575_v21 = vpack.c.bf16 %v8671_v52, %v8669_v2 }
0x19e4   :  { %13556 = vmatpush1.bf16.msra.mxu0 %v13555_v45  ;;  %v13577_v45 = vpack.c.bf16 %v8676_v63, %v8674_v29 }
0x19e5   :  { %13558 = vmatprep.subr.bf16.mxu0 %v13557_v37  ;;  %v8673_v37 = vld [vmem:[#allocation37 + $0x180] sm:$0xff] }
0x19e6   :  { %v13579_v3 = vpack.c.bf16 %v8675_v15, %v8673_v37 }
0x19e8   :  { %13560 = vmatpush1.bf16.msra.mxu0 %v13559_v58  ;;  %v13581_v58 = vpack.c.bf16 %v8680_v0, %v8678_v33 }
0x19e9   :  { %13562 = vmatprep.subr.bf16.mxu0 %v13561_v31  ;;  %v8677_v31 = vld [vmem:[#allocation37 + $0x1a0] sm:$0xff] }
0x19ea   :  { %v13583_v4 = vpack.c.bf16 %v8679_v46, %v8677_v31  ;;  %v18507_v46 = vld [vmem:[#allocation71_spill] sm:$0xff] }
0x19ec   :  { %13564 = vmatpush1.bf16.msra.mxu0 %v13563_v32  ;;  %v13585_v32 = vpack.c.bf16 %v8684_v38, %v8682_v19  ;;  %v5179_v38 = vld [vmem:[%s14606_s20] sm:$0xf] }
0x19ed   :  { %13566 = vmatprep.subr.bf16.mxu0 %v13565_v14  ;;  %v8681_v14 = vld [vmem:[#allocation37 + $0x1c0] sm:$0xff] }
0x19ee   :  { %v13587_v50 = vpack.c.bf16 %v8683_v62, %v8681_v14  ;;  %v16336_v14 = vld [vmem:[#allocation37 + $0x210] sm:$0xff]  ;;  %v4946_v62 = vld [vmem:[%s18506_s29] sm:$0xf] }
0x19f0   :  { %13568 = vmatpush1.bf16.msra.mxu0 %v13567_v24  ;;  %v13589_v24 = vpack.c.bf16 %v8688_v51, %v8686_v39  ;;  %v16339_v39 = vld [vmem:[#allocation37 + $0x228] sm:$0xff]  ;;  %v16341_v51 = vld [vmem:[#allocation37 + $0x238] sm:$0xff] }
0x19f1   :  { %13570 = vmatprep.subr.bf16.mxu0 %v13569_v17  ;;  %v8685_v17 = vld [vmem:[#allocation37 + $0x1e0] sm:$0xff] }
0x19f2   :  { %v13591_v10 = vpack.c.bf16 %v8687_v28, %v8685_v17  ;;  %v16347_v17 = vld [vmem:[#allocation37 + $0x248] sm:$0xff]  ;;  %v16349_v28 = vld [vmem:[#allocation37 + $0x258] sm:$0xff] }
0x19f4   :  { %13572 = vmatpush1.bf16.msra.mxu0 %v13571_v44  ;;  %v13593_v44 = vpack.c.bf16 %v8692_v6, %v8690_v54  ;;  %v16351_v6 = vld [vmem:[#allocation37 + $0x240] sm:$0xff] }
0x19f5   :  { %13574 = vmatprep.subr.bf16.mxu0 %v13573_v23 }
0x19f8   :  { %13576 = vmatpush1.bf16.msra.mxu0 %v13575_v21 }
0x19f9   :  { %13578 = vmatprep.subr.bf16.mxu0 %v13577_v45 }
0x19fc   :  { %13580 = vmatpush1.bf16.msra.mxu0 %v13579_v3 }
0x19fd   :  { %13582 = vmatprep.subr.bf16.mxu0 %v13581_v58 }
0x1a00   :  { %13584 = vmatpush1.bf16.msra.mxu0 %v13583_v4 }
0x1a01   :  { %13586 = vmatprep.subr.bf16.mxu0 %v13585_v32  ;;  %v16334_v32 = vld [vmem:[#allocation37 + $0x200] sm:$0xff] }
0x1a04   :  { %13588 = vmatpush1.bf16.msra.mxu0 %v13587_v50  ;;  %v16343_v50 = vld [vmem:[#allocation37 + $0x220] sm:$0xff] }
0x1a05   :  { %13590 = vmatprep.subr.bf16.mxu0 %v13589_v24  ;;  %v16345_v24 = vld [vmem:[#allocation37 + $0x230] sm:$0xff] }
0x1a08   :  { %13592 = vmatpush1.bf16.msra.mxu0 %v13591_v10  ;;  %v16353_v10 = vld [vmem:[#allocation37 + $0x250] sm:$0xff] }
0x1a09   :  { %13594 = vmatprep.subr.bf16.mxu0 %v13593_v44  ;;  %v16355_v44 = vld [vmem:[#allocation37 + $0x268] sm:$0xff] }
0x1a9e   :  { %v5016_v23 = vpop.f32.mrb[24].mxu0  ;;  %v5087_v2 = vpop.f32.mrb[62].mxu1 }
0x1a9f   :  { %v5017_v52 = vadd.f32 1e-05, %v5016_v23  ;;  %v5088_v29 = vadd.f32 1e-05, %v5087_v2  ;;  %v5018_v63 = vpop.f32.mrb[25].mxu0  ;;  %v5089_v21 = vpop.f32.mrb[63].mxu1 }
0x1aa0   :  { %v5019_v45 = vadd.f32 1e-05, %v5018_v63  ;;  %v5090_v37 = vadd.f32 1e-05, %v5089_v21  ;;  %v16357_v23 = vld [vmem:[#allocation37 + $0x278] sm:$0xff]  ;;  %v16359_v2 = vld [vmem:[#allocation37 + $0x260] sm:$0xff]  ;;  %v16366_v63 = vrot.slane %v5179_v38, %v14792_v36 }
0x1aa1   :  { %13807 = vrsqrt.f32 %v5017_v52  ;;  %v16361_v52 = vld [vmem:[#allocation37 + $0x270] sm:$0xff] }
0x1aa2   :  { %13809 = vrsqrt.f32 %v5088_v29  ;;  %v16363_v29 = vld [vmem:[#allocation37 + $0x288] sm:$0xff]  ;;  %18508 = vst [vmem:[#allocation91_spill] sm:$0xff] %v16366_v63 }
0x1aa3   :  { %13811 = vrsqrt.f32 %v5019_v45  ;;  %v16369_v45 = vld [vmem:[#allocation37 + $0x298] sm:$0xff] }
0x1aa4   :  { %13813 = vrsqrt.f32 %v5090_v37  ;;  %v16371_v37 = vld [vmem:[#allocation37 + $0x280] sm:$0xff] }
0x1aab   :  { %v13808_v15 = vpop.eup %13807 }
0x1aac   :  { %v13810_v33 = vpop.eup %13809 }
0x1aad   :  { %v13812_v0 = vpop.eup %13811 }
0x1aae   :  { %v13814_v3 = vpop.eup %13813  ;;  %v5100_v58 = vcombine.low %v13808_v15, %v13812_v0  ;;  %v16373_v15 = vld [vmem:[#allocation37 + $0x290] sm:$0xff] }
0x1aaf   :  { %v5101_v31 = vcombine.low %v13810_v33, %v13814_v3  ;;  %v18509_v33 = vld [vmem:[#allocation70_spill] sm:$0xff]  ;;  %v18511_v3 = vld [vmem:[#allocation83_spill] sm:$0xff] }
0x1ab0   :  { %v5108_v19 = vrot.slane %v5100_v58, %v18507_v46  ;;  %v16376_v0 = vrot.slane %v5179_v38, %v18509_v33  ;;  %v16379_v58 = vrot.slane %v5179_v38, %v18511_v3  ;;  %18515 = vst [vmem:[#allocation70_spill] sm:$0xff] %v16386_v11 }
0x1ab1   :  { %v5115_v4 = vrot.slane %v5101_v31, %v18507_v46  ;;  %v18513_v31 = vld [vmem:[#allocation84_spill] sm:$0xff] }
0x1ab2   :  { %18510 = vst [vmem:[#allocation93_spill] sm:$0xff] %v16376_v0  ;;  %18512 = vst [vmem:[#allocation95_spill] sm:$0xff] %v16379_v58 }
0x1ab3   :  { %v5116_v54 = vcombine.low %v5108_v19, %v5115_v4  ;;  %v16382_v19 = vrot.slane %v5179_v38, %v18513_v31  ;;  %18517 = vst [vmem:[#allocation84_spill] sm:$0xff] %v16390_v55  ;;  %v16402_v4 = vld [vmem:[#allocation37 + $0x2d8] sm:$0xff] }
0x1ab4   :  { %18520 = vst [vmem:[#allocation100_spill] sm:$0xff] %v16402_v4 }
0x1ab5   :  { %v5123_v21 = vrot.slane %v5116_v54, %v18507_v46  ;;  %18514 = vst [vmem:[#allocation71_spill] sm:$0xff] %v16382_v19  ;;  %v16388_v54 = vld [vmem:[#allocation37 + $0x2b8] sm:$0xff] }
0x1ab6   :  { %18516 = vst [vmem:[#allocation83_spill] sm:$0xff] %v16388_v54 }
0x1ab7   :  { %v5125_v56 = vmul.f32 %v5123_v21, %v4946_v62  ;;  %v16440_v62 = vld [vmem:[#allocation37 + $0x2c0] sm:$0xff]  ;;  %v16442_v21 = vld [vmem:[#allocation37 + $0x2d0] sm:$0xff] }
0x1ab8   :  { %18522 = vst [vmem:[#allocation102_spill] sm:$0xff] %v16440_v62  ;;  %18523 = vst [vmem:[#allocation103_spill] sm:$0xff] %v16442_v21 }
0x1ab9   :  { %v16413_v38 = vrot.slane %v5125_v56, %v14792_v36  ;;  %v16416_v59 = vrot.slane %v5125_v56, %v18509_v33  ;;  %v16419_v30 = vrot.slane %v5125_v56, %v18511_v3  ;;  %v16422_v20 = vrot.slane %v5125_v56, %v18513_v31 }
0x1abb   :  { %18521 = vst [vmem:[#allocation101_spill] sm:$0xff] %v16413_v38  ;;  %v5147_v8 = vmul.f32 %v16413_v38, %v16170_v9  ;;  %v5148_v3 = vmul.f32 %v16416_v59, %v16145_v16  ;;  %v5149_v56 = vmul.f32 %v16419_v30, %v16251_v5  ;;  %v5150_v31 = vmul.f32 %v16422_v20, %v16173_v49 }
0x1abc   :  { %v5151_v7 = vmul.f32 %v16413_v38, %v16189_v41  ;;  %v5152_v13 = vmul.f32 %v16416_v59, %v16148_v40  ;;  %v5153_v9 = vmul.f32 %v16419_v30, %v16255_v18  ;;  %v5154_v16 = vmul.f32 %v16422_v20, %v16176_v61 }
0x1abd   :  { %v5201_v5 = vadd.f32 %v16366_v63, %v5147_v8  ;;  %v5202_v49 = vadd.f32 %v16376_v0, %v5148_v3  ;;  %v5203_v48 = vadd.f32 %v16379_v58, %v5149_v56  ;;  %v5204_v60 = vadd.f32 %v16382_v19, %v5150_v31 }
0x1abe   :  { %v5205_v25 = vadd.f32 %v16366_v63, %v5151_v7  ;;  %v5206_v41 = vadd.f32 %v16376_v0, %v5152_v13  ;;  %v5207_v40 = vadd.f32 %v16379_v58, %v5153_v9  ;;  %v16462_v56 = vadd.f32 %v16382_v19, %v5154_v16 }
0x1abf   :  { %vm5233_vm11 = vcmp.ge.f32.partialorder %v5201_v5, 0.0  ;;  %vm5234_vm12 = vcmp.ge.f32.partialorder %v5202_v49, 0.0  ;;  %vm5235_vm13 = vcmp.ge.f32.partialorder %v5203_v48, 0.0  ;;  %vm5236_vm14 = vcmp.ge.f32.partialorder %v5204_v60, 0.0 }
0x1ac0   :  { %v5265_v61 = vmul.f32 0.01, %v5201_v5  ;;  %v5266_v8 = vmul.f32 0.01, %v5202_v49  ;;  %v5267_v3 = vmul.f32 0.01, %v5203_v48  ;;  %v16466_v7 = vmul.f32 %v16413_v38, %v16193_v43 }
0x1ac1   :  { %v5268_v31 = vmul.f32 0.01, %v5204_v60  ;;  %vm5237_vm15 = vcmp.ge.f32.partialorder %v5205_v25, 0.0  ;;  %vm5238_vm0 = vcmp.ge.f32.partialorder %v5206_v41, 0.0  ;;  %vm5239_vm1 = vcmp.ge.f32.partialorder %v5207_v40, 0.0 }
0x1ac2   :  { %18524 = vst [vmem:[#allocation104_spill] sm:$0xff] %v16466_v7  ;;  %v5297_v13 = vsel %vm5233_vm11, %v5201_v5, %v5265_v61  ;;  %v5298_v9 = vsel %vm5234_vm12, %v5202_v49, %v5266_v8  ;;  %v5299_v18 = vsel %vm5235_vm13, %v5203_v48, %v5267_v3  ;;  %v5269_v1 = vmul.f32 0.01, %v5205_v25 }
0x1ac3   :  { %v5300_v57 = vsel %vm5236_vm14, %v5204_v60, %v5268_v31  ;;  %v5345_v12 = vcombine.low %v5297_v13, %v5298_v9  ;;  %v5346_v26 = vcombine.high %v5297_v13, %v5298_v9  ;;  %v5270_v58 = vmul.f32 0.01, %v5206_v41 }
0x1ac4   :  { %v5761_v34 = vcombine.low %v5299_v18, %v5300_v57  ;;  %v5762_v53 = vcombine.high %v5299_v18, %v5300_v57  ;;  %v5271_v16 = vmul.f32 0.01, %v5207_v40  ;;  %v16471_v63 = vmul.f32 0.01, %v16462_v56 }
0x1ac5   :  { %v5353_v19 = vrot.slane %v5345_v12, %v18507_v46  ;;  %v5360_v0 = vrot.slane %v5346_v26, %v18507_v46  ;;  %v16474_v43 = vsel %vm5237_vm15, %v5205_v25, %v5269_v1  ;;  %v16479_v5 = vsel %vm5238_vm0, %v5206_v41, %v5270_v58 }
0x1ac6   :  { %v5769_v48 = vrot.slane %v5761_v34, %v18507_v46  ;;  %v5776_v60 = vrot.slane %v5762_v53, %v18507_v46  ;;  %v16482_v57 = vsel %vm5239_vm1, %v5207_v40, %v5271_v16  ;;  %vm5240_vm2 = vcmp.ge.f32.partialorder %v16462_v56, 0.0 }
0x1ac7   :  { %v5361_v49 = vcombine.high %v5353_v19, %v5353_v19  ;;  %v5369_v12 = vrot.slane %v5353_v19, %v18507_v46  ;;  %v5362_v26 = vcombine.high %v5360_v0, %v5360_v0  ;;  %v16486_v18 = vrot.slane %v5360_v0, %v18507_v46 }
0x1ac8   :  { %v5777_v61 = vcombine.high %v5769_v48, %v5769_v48  ;;  %v5785_v1 = vrot.slane %v5769_v48, %v18507_v46  ;;  %v5778_v25 = vcombine.high %v5776_v60, %v5776_v60  ;;  %v16490_v34 = vrot.slane %v5776_v60, %v18507_v46 }
0x1ac9   :  { %v5383_v53 = vrot.slane %v5361_v49, %v18507_v46  ;;  %v5391_v58 = vcombine.high %v5369_v12, %v5369_v12  ;;  %v6164_v41 = vrot.slane %v5369_v12, %v14792_v36  ;;  %v6168_v40 = vrot.slane %v5369_v12, %v18509_v33 }
0x1aca   :  { %v5799_v19 = vrot.slane %v5777_v61, %v18507_v46  ;;  %v5807_v8 = vcombine.high %v5785_v1, %v5785_v1  ;;  %v6804_v0 = vrot.slane %v5785_v1, %v14792_v36  ;;  %v6808_v3 = vrot.slane %v5785_v1, %v18509_v33 }
0x1acb   :  { %v5393_v31 = vcombine.high %v5383_v53, %v5383_v53  ;;  %v6172_v13 = vrot.slane %v5383_v53, %v14792_v36  ;;  %v6176_v9 = vrot.slane %v5383_v53, %v18509_v33  ;;  %v6180_v16 = vrot.slane %v5391_v58, %v14792_v36 }
0x1acc   :  { %v5809_v48 = vcombine.high %v5799_v19, %v5799_v19  ;;  %v6184_v60 = vrot.slane %v5391_v58, %v18509_v33  ;;  %v6812_v49 = vrot.slane %v5799_v19, %v14792_v36  ;;  %v6816_v12 = vrot.slane %v5799_v19, %v18509_v33 }
0x1acd   :  { %v6188_v61 = vrot.slane %v5393_v31, %v14792_v36  ;;  %v6192_v38 = vrot.slane %v5393_v31, %v18509_v33  ;;  %v6820_v1 = vrot.slane %v5807_v8, %v14792_v36  ;;  %v6824_v7 = vrot.slane %v5807_v8, %v18509_v33 }
0x1ace   :  { %v6828_v62 = vrot.slane %v5809_v48, %v14792_v36  ;;  %v6832_v53 = vrot.slane %v5809_v48, %v18509_v33  ;;  %v7441_v21 = vsel %vm798_vm5, %v6164_v41, %v6804_v0  ;;  %v7442_v58 = vsel %vm798_vm5, %v6168_v40, %v6808_v3  ;;  %v18525_v0 = vld [vmem:[#allocation72_spill] sm:$0xff] }
0x1acf   :  { %v7443_v27 = vsel %vm798_vm5, %v6172_v13, %v6812_v49  ;;  %v7444_v19 = vsel %vm798_vm5, %v6176_v9, %v6816_v12  ;;  %v7445_v4 = vsel %vm798_vm5, %v6180_v16, %v6820_v1  ;;  %v7446_v31 = vsel %vm798_vm5, %v6184_v60, %v6824_v7 }
0x1ad0   :  { %v7447_v55 = vsel %vm798_vm5, %v6188_v61, %v6828_v62  ;;  %v7448_v8 = vsel %vm798_vm5, %v6192_v38, %v6832_v53  ;;  %v7697_v22 = vcombine.low %v7441_v21, %v7442_v58  ;;  %v7705_v11 = vcombine.low %v7443_v27, %v7444_v19 }
0x1ad1   :  { %v7713_v54 = vcombine.low %v7445_v4, %v7446_v31  ;;  %v7721_v48 = vcombine.low %v7447_v55, %v7448_v8  ;;  %v5390_v41 = vrot.slane %v5362_v26, %v18507_v46  ;;  %v5392_v40 = vcombine.high %v16486_v18, %v16486_v18 }
0x1ad2   :  { %v7704_v3 = vrot.slane %v7697_v22, %v18525_v0  ;;  %v7712_v13 = vrot.slane %v7705_v11, %v18525_v0  ;;  %v5806_v9 = vrot.slane %v5778_v25, %v18507_v46  ;;  %v5808_v62 = vcombine.high %v16490_v34, %v16490_v34 }
0x1ad3   :  { %v7720_v27 = vrot.slane %v7713_v54, %v18525_v0  ;;  %v7728_v55 = vrot.slane %v7721_v48, %v18525_v0  ;;  %v5394_v4 = vcombine.high %v5390_v41, %v5390_v41  ;;  %v6196_v38 = vrot.slane %v16486_v18, %v14792_v36 }
0x1ad4   :  { %v8209_v21 = vcombine.low %v7704_v3, %v7712_v13  ;;  %v5810_v7 = vcombine.high %v5806_v9, %v5806_v9  ;;  %v6200_v11 = vrot.slane %v16486_v18, %v18509_v33  ;;  %v6204_v22 = vrot.slane %v5390_v41, %v14792_v36 }
0x1ad5   :  { %v8210_v26 = vcombine.low %v7720_v27, %v7728_v55  ;;  %v6208_v25 = vrot.slane %v5390_v41, %v18509_v33  ;;  %v6212_v16 = vrot.slane %v5392_v40, %v14792_v36  ;;  %v6216_v54 = vrot.slane %v5392_v40, %v18509_v33 }
0x1ad6   :  { %v8217_v60 = vrot.slane %v8209_v21, %v18525_v0  ;;  %v6220_v49 = vrot.slane %v5394_v4, %v14792_v36  ;;  %v6224_v12 = vrot.slane %v5394_v4, %v18509_v33  ;;  %v6836_v61 = vrot.slane %v16490_v34, %v14792_v36 }
0x1ad7   :  { %v8224_v18 = vrot.slane %v8210_v26, %v18525_v0  ;;  %v6840_v1 = vrot.slane %v16490_v34, %v18509_v33  ;;  %v6844_v53 = vrot.slane %v5806_v9, %v14792_v36  ;;  %v6848_v58 = vrot.slane %v5806_v9, %v18509_v33 }
0x1ad8   :  { %v6852_v19 = vrot.slane %v5808_v62, %v14792_v36  ;;  %v6856_v31 = vrot.slane %v5808_v62, %v18509_v33  ;;  %v6860_v8 = vrot.slane %v5810_v7, %v14792_v36  ;;  %v6864_v48 = vrot.slane %v5810_v7, %v18509_v33 }
0x1ad9   :  { %v16551_v41 = vcombine.high %v8217_v60, %v8224_v18  ;;  %v16553_v40 = vcombine.low %v8217_v60, %v8224_v18  ;;  %v7449_v3 = vsel %vm798_vm5, %v6196_v38, %v6836_v61  ;;  %v7450_v34 = vsel %vm798_vm5, %v6200_v11, %v6840_v1 }
0x1ada   :  { %v7451_v13 = vsel %vm798_vm5, %v6204_v22, %v6844_v53  ;;  %v7452_v9 = vsel %vm798_vm5, %v6208_v25, %v6848_v58  ;;  %v7453_v27 = vsel %vm798_vm5, %v6212_v16, %v6852_v19  ;;  %v7454_v62 = vsel %vm798_vm5, %v6216_v54, %v6856_v31 }
0x1adb   :  { %8829 = vmatprep.mubr.f32.mxu0 %v16551_v41  ;;  %v7455_v21 = vsel %vm798_vm5, %v6220_v49, %v6860_v8  ;;  %v7456_v38 = vsel %vm798_vm5, %v6224_v12, %v6864_v48  ;;  %v7729_v7 = vcombine.low %v7449_v3, %v7450_v34  ;;  %v7737_v11 = vcombine.low %v7451_v13, %v7452_v9 }
0x1adc   :  { %8830 = vmatmul.mubr.f32.vlgmr.msra.gmra.mrb[26].mxu0 %v16553_v40  ;;  %v7745_v22 = vcombine.low %v7453_v27, %v7454_v62  ;;  %v7753_v26 = vcombine.low %v7455_v21, %v7456_v38  ;;  %v18526_v25 = vpack.c.bf16 %v16336_v14, %v16334_v32  ;;  %v5304_v16 = vsel %vm5240_vm2, %v16462_v56, %v16471_v63 }
0x1add   :  { %v5395_v54 = vcombine.low %v16474_v43, %v16479_v5  ;;  %v5396_v60 = vcombine.high %v16474_v43, %v16479_v5  ;;  %v16580_v49 = vmul.f32 %v16416_v59, %v16151_v42  ;;  %v7736_v12 = vrot.slane %v7729_v7, %v18525_v0 }
0x1ade   :  { %13596 = vmatpush1.bf16.msra.mxu0 %v18526_v25  ;;  %v7744_v32 = vrot.slane %v7737_v11, %v18525_v0  ;;  %v7752_v14 = vrot.slane %v7745_v22, %v18525_v0  ;;  %v7760_v61 = vrot.slane %v7753_v26, %v18525_v0  ;;  %v18527_v63 = vpack.c.bf16 %v16341_v51, %v16339_v39 }
0x1adf   :  { %v5403_v56 = vrot.slane %v5395_v54, %v18507_v46  ;;  %v5811_v43 = vcombine.low %v16482_v57, %v5304_v16  ;;  %v16592_v5 = vrot.slane %v5396_v60, %v18507_v46  ;;  %v5812_v42 = vcombine.high %v16482_v57, %v5304_v16 }
0x1ae0   :  { %13598 = vmatprep.subr.bf16.mxu0 %v18527_v63  ;;  %v8227_v18 = vcombine.low %v7736_v12, %v7744_v32  ;;  %v8228_v1 = vcombine.low %v7752_v14, %v7760_v61  ;;  %v16597_v53 = vmul.f32 %v16419_v30, %v16271_v35  ;;  %v16601_v58 = vmul.f32 %v16422_v20, %v16179_v47 }
0x1ae1   :  { %v18528_v39 = vpack.c.bf16 %v16345_v24, %v16343_v50  ;;  %v5411_v51 = vcombine.high %v5403_v56, %v5403_v56  ;;  %v5419_v19 = vrot.slane %v5403_v56, %v18507_v46  ;;  %v5819_v31 = vrot.slane %v5811_v43, %v18507_v46 }
0x1ae2   :  { %v5412_v57 = vcombine.high %v16592_v5, %v16592_v5  ;;  %v8235_v8 = vrot.slane %v8227_v18, %v18525_v0  ;;  %v8242_v35 = vrot.slane %v8228_v1, %v18525_v0  ;;  %v18529_v47 = vpack.c.bf16 %v16349_v28, %v16347_v17 }
0x1ae3   :  { %13600 = vmatpush1.bf16.msra.mxu0 %v18528_v39  ;;  %v16617_v50 = vrot.slane %v16592_v5, %v18507_v46  ;;  %v5826_v24 = vrot.slane %v5812_v42, %v18507_v46  ;;  %v5433_v48 = vrot.slane %v5411_v51, %v18507_v46  ;;  %v5441_v3 = vcombine.high %v5419_v19, %v5419_v19 }
0x1ae4   :  { %13602 = vmatprep.subr.bf16.mxu0 %v18529_v47  ;;  %v5827_v34 = vcombine.high %v5819_v31, %v5819_v31  ;;  %v5835_v13 = vrot.slane %v5819_v31, %v18507_v46  ;;  %v16622_v9 = vcombine.high %v8235_v8, %v8242_v35  ;;  %v16624_v27 = vcombine.low %v8235_v8, %v8242_v35 }
0x1ae5   :  { %v6228_v62 = vrot.slane %v5419_v19, %v14792_v36  ;;  %v6232_v17 = vrot.slane %v5419_v19, %v18509_v33  ;;  %v5443_v28 = vcombine.high %v5433_v48, %v5433_v48  ;;  %v6236_v7 = vrot.slane %v5433_v48, %v14792_v36 }
0x1ae6   :  { %v5849_v21 = vrot.slane %v5827_v34, %v18507_v46  ;;  %v5857_v38 = vcombine.high %v5835_v13, %v5835_v13  ;;  %v18530_v11 = vpack.c.bf16 %v16353_v10, %v16351_v6  ;;  %8835 = vmatprep.mubr.f32.mxu0 %v16622_v9  ;;  %v6240_v25 = vrot.slane %v5433_v48, %v18509_v33 }
0x1ae7   :  { %v6244_v16 = vrot.slane %v5441_v3, %v14792_v36  ;;  %v18531_v54 = vpack.c.bf16 %v16357_v23, %v16355_v44  ;;  %8836 = vmatmul.mubr.f32.gmra.mrb[28].mxu0 %v16624_v27  ;;  %v6248_v6 = vrot.slane %v5441_v3, %v18509_v33  ;;  %v6252_v10 = vrot.slane %v5443_v28, %v14792_v36 }
0x1ae8   :  { %13604 = vmatpush1.bf16.msra.mxu0 %v18530_v11  ;;  %v5859_v60 = vcombine.high %v5849_v21, %v5849_v21  ;;  %v6256_v12 = vrot.slane %v5443_v28, %v18509_v33  ;;  %v6868_v32 = vrot.slane %v5835_v13, %v14792_v36  ;;  %v6872_v14 = vrot.slane %v5835_v13, %v18509_v33 }
0x1ae9   :  { %13606 = vmatprep.subr.bf16.mxu0 %v18531_v54  ;;  %v6876_v61 = vrot.slane %v5849_v21, %v14792_v36  ;;  %v6880_v63 = vrot.slane %v5849_v21, %v18509_v33  ;;  %v6884_v44 = vrot.slane %v5857_v38, %v14792_v36  ;;  %v6888_v23 = vrot.slane %v5857_v38, %v18509_v33  ;;  %v18535_v38 = vld [vmem:[#allocation83_spill] sm:$0xff] }
0x1aea   :  { %v6892_v56 = vrot.slane %v5859_v60, %v14792_v36  ;;  %v6896_v43 = vrot.slane %v5859_v60, %v18509_v33  ;;  %v18532_v5 = vpack.c.bf16 %v16361_v52, %v16359_v2  ;;  %v7457_v42 = vsel %vm798_vm5, %v6228_v62, %v6868_v32 }
0x1aeb   :  { %v7458_v18 = vsel %vm798_vm5, %v6232_v17, %v6872_v14  ;;  %v7459_v1 = vsel %vm798_vm5, %v6236_v7, %v6876_v61  ;;  %v7460_v39 = vsel %vm798_vm5, %v6240_v25, %v6880_v63  ;;  %v18533_v51 = vpack.c.bf16 %v16369_v45, %v16363_v29  ;;  %v18538_v14 = vld [vmem:[#allocation98_spill] sm:$0xff]  ;;  %v18539_v61 = vld [vmem:[#allocation84_spill] sm:$0xff] }
0x1aec   :  { %13608 = vmatpush1.bf16.msra.mxu0 %v18532_v5  ;;  %v7461_v19 = vsel %vm798_vm5, %v6244_v16, %v6884_v44  ;;  %v7462_v31 = vsel %vm798_vm5, %v6248_v6, %v6888_v23  ;;  %v7463_v8 = vsel %vm798_vm5, %v6252_v10, %v6892_v56  ;;  %v7464_v2 = vsel %vm798_vm5, %v6256_v12, %v6896_v43  ;;  %v18541_v43 = vld [vmem:[#allocation100_spill] sm:$0xff]  ;;  %v18542_v5 = vld [vmem:[#allocation99_spill] sm:$0xff] }
0x1aed   :  { %13610 = vmatprep.subr.bf16.mxu0 %v18533_v51  ;;  %v7761_v52 = vcombine.low %v7457_v42, %v7458_v18  ;;  %v7769_v35 = vcombine.low %v7459_v1, %v7460_v39  ;;  %v7777_v47 = vcombine.low %v7461_v19, %v7462_v31  ;;  %v7785_v48 = vcombine.low %v7463_v8, %v7464_v2 }
0x1aee   :  { %v5440_v3 = vrot.slane %v5412_v57, %v18507_v46  ;;  %v5442_v34 = vcombine.high %v16617_v50, %v16617_v50  ;;  %v5828_v13 = vcombine.high %v5826_v24, %v5826_v24  ;;  %v5842_v29 = vrot.slane %v5826_v24, %v18507_v46  ;;  %v18536_v57 = vld [vmem:[#allocation70_spill] sm:$0xff] }
0x1aef   :  { %v18534_v45 = vpack.c.bf16 %v16373_v15, %v16371_v37  ;;  %v7768_v62 = vrot.slane %v7761_v52, %v18525_v0  ;;  %v7776_v17 = vrot.slane %v7769_v35, %v18525_v0  ;;  %v7784_v28 = vrot.slane %v7777_v47, %v18525_v0 }
0x1af0   :  { %v7792_v21 = vrot.slane %v7785_v48, %v18525_v0  ;;  %v18537_v7 = vpack.c.bf16 %v18535_v38, %v18536_v57  ;;  %v5444_v11 = vcombine.high %v5440_v3, %v5440_v3  ;;  %v5856_v25 = vrot.slane %v5828_v13, %v18507_v46 }
0x1af1   :  { %13612 = vmatpush1.bf16.msra.mxu0 %v18534_v45  ;;  %v5858_v24 = vcombine.high %v5842_v29, %v5842_v29  ;;  %v6260_v37 = vrot.slane %v16617_v50, %v14792_v36  ;;  %v8245_v15 = vcombine.low %v7768_v62, %v7776_v17  ;;  %v6264_v54 = vrot.slane %v16617_v50, %v18509_v33 }
0x1af2   :  { %13614 = vmatprep.subr.bf16.mxu0 %v18537_v7  ;;  %v8246_v16 = vcombine.low %v7784_v28, %v7792_v21  ;;  %v6268_v60 = vrot.slane %v5440_v3, %v14792_v36  ;;  %v5860_v6 = vcombine.high %v5856_v25, %v5856_v25  ;;  %v6272_v10 = vrot.slane %v5440_v3, %v18509_v33  ;;  %v18544_v3 = vld [vmem:[#allocation103_spill] sm:$0xff] }
0x1af3   :  { %v6276_v12 = vrot.slane %v5442_v34, %v14792_v36  ;;  %v6280_v32 = vrot.slane %v5442_v34, %v18509_v33  ;;  %v18540_v63 = vpack.c.bf16 %v18538_v14, %v18539_v61  ;;  %v8253_v44 = vrot.slane %v8245_v15, %v18525_v0  ;;  %v18545_v34 = vld [vmem:[#allocation102_spill] sm:$0xff]  ;;  %v18548_v15 = vld [vmem:[#allocation91_spill] sm:$0xff] }
0x1af4   :  { %v8260_v23 = vrot.slane %v8246_v16, %v18525_v0  ;;  %v6284_v56 = vrot.slane %v5444_v11, %v14792_v36  ;;  %v6288_v50 = vrot.slane %v5444_v11, %v18509_v33  ;;  %v18543_v42 = vpack.c.bf16 %v18541_v43, %v18542_v5  ;;  %v18552_v5 = vld [vmem:[#allocation92_spill] sm:$0xff] }
0x1af5   :  { %13616 = vmatpush1.bf16.msra.mxu0 %v18540_v63  ;;  %v6900_v18 = vrot.slane %v5842_v29, %v14792_v36  ;;  %v6904_v1 = vrot.slane %v5842_v29, %v18509_v33  ;;  %v6908_v39 = vrot.slane %v5856_v25, %v14792_v36  ;;  %v6912_v51 = vrot.slane %v5856_v25, %v18509_v33 }
0x1af6   :  { %13618 = vmatprep.subr.bf16.mxu0 %v18543_v42  ;;  %v16704_v19 = vcombine.high %v8253_v44, %v8260_v23  ;;  %v16706_v31 = vcombine.low %v8253_v44, %v8260_v23  ;;  %v6916_v8 = vrot.slane %v5858_v24, %v14792_v36  ;;  %v6920_v2 = vrot.slane %v5858_v24, %v18509_v33 }
0x1af7   :  { %v6924_v52 = vrot.slane %v5860_v6, %v14792_v36  ;;  %v6928_v35 = vrot.slane %v5860_v6, %v18509_v33  ;;  %v7465_v47 = vsel %vm798_vm5, %v6260_v37, %v6900_v18  ;;  %v7466_v48 = vsel %vm798_vm5, %v6264_v54, %v6904_v1  ;;  %v18547_v37 = vld [vmem:[#allocation104_spill] sm:$0xff]  ;;  %v18549_v54 = vld [vmem:[#allocation93_spill] sm:$0xff]  ;;  %v18550_v6 = vld [vmem:[#allocation95_spill] sm:$0xff] }
0x1af8   :  { %v18546_v13 = vpack.c.bf16 %v18544_v3, %v18545_v34  ;;  %8841 = vmatprep.mubr.f32.mxu0 %v16704_v19  ;;  %v7467_v62 = vsel %vm798_vm5, %v6268_v60, %v6908_v39  ;;  %v7468_v17 = vsel %vm798_vm5, %v6272_v10, %v6912_v51  ;;  %v7469_v28 = vsel %vm798_vm5, %v6276_v12, %v6916_v8  ;;  %v18551_v12 = vld [vmem:[#allocation71_spill] sm:$0xff]  ;;  %v18554_v18 = vld [vmem:[#allocation96_spill] sm:$0xff] }
0x1af9   :  { %8842 = vmatmul.mubr.f32.gmra.mrb[30].mxu0 %v16706_v31  ;;  %v7470_v21 = vsel %vm798_vm5, %v6280_v32, %v6920_v2  ;;  %v7471_v38 = vsel %vm798_vm5, %v6284_v56, %v6924_v52  ;;  %v7472_v57 = vsel %vm798_vm5, %v6288_v50, %v6928_v35  ;;  %v7793_v7 = vcombine.low %v7465_v47, %v7466_v48 }
0x1afa   :  { %13620 = vmatpush1.bf16.msra.mxu0 %v18546_v13  ;;  %v7801_v11 = vcombine.low %v7467_v62, %v7468_v17  ;;  %v7809_v25 = vcombine.low %v7469_v28, %v7470_v21  ;;  %v7817_v24 = vcombine.low %v7471_v38, %v7472_v57  ;;  %v5209_v16 = vadd.f32 %v18548_v15, %v18547_v37  ;;  %v18555_v21 = vld [vmem:[#allocation85_spill] sm:$0xff]  ;;  %v18556_v57 = vld [vmem:[#allocation78_spill] sm:$0xff] }
0x1afb   :  { %v5210_v60 = vadd.f32 %v18549_v54, %v16580_v49  ;;  %v5211_v10 = vadd.f32 %v18550_v6, %v16597_v53  ;;  %v5212_v32 = vadd.f32 %v18551_v12, %v16601_v58  ;;  %v7800_v14 = vrot.slane %v7793_v7, %v18525_v0  ;;  %v18553_v58 = vld [vmem:[#allocation101_spill] sm:$0xff] }
0x1afc   :  { %v7808_v61 = vrot.slane %v7801_v11, %v18525_v0  ;;  %v7816_v63 = vrot.slane %v7809_v25, %v18525_v0  ;;  %v7824_v44 = vrot.slane %v7817_v24, %v18525_v0  ;;  %vm5241_vm3 = vcmp.ge.f32.partialorder %v5209_v16, 0.0 }
0x1afd   :  { %vm5242_vm4 = vcmp.ge.f32.partialorder %v5210_v60, 0.0  ;;  %vm5243_vm6 = vcmp.ge.f32.partialorder %v5211_v10, 0.0  ;;  %vm5244_vm7 = vcmp.ge.f32.partialorder %v5212_v32, 0.0  ;;  %v5273_v56 = vmul.f32 0.01, %v5209_v16 }
0x1afe   :  { %v8263_v23 = vcombine.low %v7800_v14, %v7808_v61  ;;  %v8264_v49 = vcombine.low %v7816_v63, %v7824_v44  ;;  %v5274_v50 = vmul.f32 0.01, %v5210_v60  ;;  %v5275_v53 = vmul.f32 0.01, %v5211_v10 }
0x1aff   :  { %v5276_v43 = vmul.f32 0.01, %v5212_v32  ;;  %v16741_v42 = vmul.f32 %v18553_v58, %v18552_v5  ;;  %v16745_v1 = vmul.f32 %v16416_v59, %v18554_v18  ;;  %v5305_v8 = vsel %vm5241_vm3, %v5209_v16, %v5273_v56 }
0x1b00   :  { %v8271_v39 = vrot.slane %v8263_v23, %v18525_v0  ;;  %v8278_v51 = vrot.slane %v8264_v49, %v18525_v0  ;;  %v5306_v2 = vsel %vm5242_vm4, %v5210_v60, %v5274_v50  ;;  %v5307_v52 = vsel %vm5243_vm6, %v5211_v10, %v5275_v53 }
0x1b01   :  { %v5308_v35 = vsel %vm5244_vm7, %v5212_v32, %v5276_v43  ;;  %v5445_v47 = vcombine.low %v5305_v8, %v5306_v2  ;;  %v5446_v48 = vcombine.high %v5305_v8, %v5306_v2  ;;  %v16757_v38 = vmul.f32 %v16419_v30, %v18555_v21 }
0x1b02   :  { %v16749_v3 = vcombine.high %v8271_v39, %v8278_v51  ;;  %v16751_v34 = vcombine.low %v8271_v39, %v8278_v51  ;;  %v5861_v13 = vcombine.low %v5307_v52, %v5308_v35  ;;  %v5862_v62 = vcombine.high %v5307_v52, %v5308_v35 }
0x1b03   :  { %v5453_v17 = vrot.slane %v5445_v47, %v18507_v46  ;;  %v5460_v28 = vrot.slane %v5446_v48, %v18507_v46  ;;  %v16761_v7 = vmul.f32 %v16422_v20, %v18556_v57 }
0x1b04   :  { %8847 = vmatprep.mubr.f32.mxu0 %v16749_v3  ;;  %v5869_v24 = vrot.slane %v5861_v13, %v18507_v46  ;;  %v5876_v37 = vrot.slane %v5862_v62, %v18507_v46 }
0x1b05   :  { %8848 = vmatmul.mubr.f32.gmra.mrb[32].mxu0 %v16751_v34  ;;  %v5461_v16 = vcombine.high %v5453_v17, %v5453_v17  ;;  %v5469_v60 = vrot.slane %v5453_v17, %v18507_v46  ;;  %v5462_v10 = vcombine.high %v5460_v28, %v5460_v28  ;;  %v16771_v32 = vrot.slane %v5460_v28, %v18507_v46 }
0x1b06   :  { %v5877_v14 = vcombine.high %v5869_v24, %v5869_v24  ;;  %v5885_v61 = vrot.slane %v5869_v24, %v18507_v46  ;;  %v5878_v63 = vcombine.high %v5876_v37, %v5876_v37  ;;  %v16775_v44 = vrot.slane %v5876_v37, %v18507_v46 }
0x1b07   :  { %v5483_v23 = vrot.slane %v5461_v16, %v18507_v46  ;;  %v5491_v49 = vcombine.high %v5469_v60, %v5469_v60  ;;  %v6292_v56 = vrot.slane %v5469_v60, %v14792_v36  ;;  %v6296_v50 = vrot.slane %v5469_v60, %v18509_v33 }
0x1b08   :  { %v5899_v53 = vrot.slane %v5877_v14, %v18507_v46  ;;  %v5907_v43 = vcombine.high %v5885_v61, %v5885_v61  ;;  %v6932_v5 = vrot.slane %v5885_v61, %v14792_v36  ;;  %v6936_v18 = vrot.slane %v5885_v61, %v18509_v33 }
0x1b09   :  { %v5493_v39 = vcombine.high %v5483_v23, %v5483_v23  ;;  %v6300_v51 = vrot.slane %v5483_v23, %v14792_v36  ;;  %v6304_v8 = vrot.slane %v5483_v23, %v18509_v33  ;;  %v6308_v2 = vrot.slane %v5491_v49, %v14792_v36 }
0x1b0a   :  { %v5909_v52 = vcombine.high %v5899_v53, %v5899_v53  ;;  %v6312_v35 = vrot.slane %v5491_v49, %v18509_v33  ;;  %v6940_v47 = vrot.slane %v5899_v53, %v14792_v36  ;;  %v6944_v48 = vrot.slane %v5899_v53, %v18509_v33 }
0x1b0b   :  { %v6316_v13 = vrot.slane %v5493_v39, %v14792_v36  ;;  %v6320_v62 = vrot.slane %v5493_v39, %v18509_v33  ;;  %v6948_v17 = vrot.slane %v5907_v43, %v14792_v36  ;;  %v6952_v28 = vrot.slane %v5907_v43, %v18509_v33 }
0x1b0c   :  { %v6956_v21 = vrot.slane %v5909_v52, %v14792_v36  ;;  %v6960_v57 = vrot.slane %v5909_v52, %v18509_v33  ;;  %v7473_v24 = vsel %vm798_vm5, %v6292_v56, %v6932_v5  ;;  %v7474_v37 = vsel %vm798_vm5, %v6296_v50, %v6936_v18 }
0x1b0d   :  { %v7475_v16 = vsel %vm798_vm5, %v6300_v51, %v6940_v47  ;;  %v7476_v60 = vsel %vm798_vm5, %v6304_v8, %v6944_v48  ;;  %v7477_v14 = vsel %vm798_vm5, %v6308_v2, %v6948_v17  ;;  %v7478_v61 = vsel %vm798_vm5, %v6312_v35, %v6952_v28 }
0x1b0e   :  { %v7479_v23 = vsel %vm798_vm5, %v6316_v13, %v6956_v21  ;;  %v7480_v49 = vsel %vm798_vm5, %v6320_v62, %v6960_v57  ;;  %v7825_v53 = vcombine.low %v7473_v24, %v7474_v37  ;;  %v7833_v43 = vcombine.low %v7475_v16, %v7476_v60 }
0x1b0f   :  { %v7841_v39 = vcombine.low %v7477_v14, %v7478_v61  ;;  %v7849_v52 = vcombine.low %v7479_v23, %v7480_v49  ;;  %v5490_v56 = vrot.slane %v5462_v10, %v18507_v46  ;;  %v5492_v50 = vcombine.high %v16771_v32, %v16771_v32 }
0x1b10   :  { %v7832_v5 = vrot.slane %v7825_v53, %v18525_v0  ;;  %v7840_v18 = vrot.slane %v7833_v43, %v18525_v0  ;;  %v5906_v51 = vrot.slane %v5878_v63, %v18507_v46  ;;  %v5908_v8 = vcombine.high %v16775_v44, %v16775_v44 }
0x1b11   :  { %v7848_v2 = vrot.slane %v7841_v39, %v18525_v0  ;;  %v7856_v35 = vrot.slane %v7849_v52, %v18525_v0  ;;  %v5494_v47 = vcombine.high %v5490_v56, %v5490_v56  ;;  %v6324_v10 = vrot.slane %v16771_v32, %v14792_v36 }
0x1b12   :  { %v8281_v48 = vcombine.low %v7832_v5, %v7840_v18  ;;  %v5910_v13 = vcombine.high %v5906_v51, %v5906_v51  ;;  %v6328_v62 = vrot.slane %v16771_v32, %v18509_v33  ;;  %v6332_v17 = vrot.slane %v5490_v56, %v14792_v36 }
0x1b13   :  { %v8282_v28 = vcombine.low %v7848_v2, %v7856_v35  ;;  %v6336_v63 = vrot.slane %v5490_v56, %v18509_v33  ;;  %v6340_v21 = vrot.slane %v5492_v50, %v14792_v36  ;;  %v6344_v57 = vrot.slane %v5492_v50, %v18509_v33 }
0x1b14   :  { %v8289_v24 = vrot.slane %v8281_v48, %v18525_v0  ;;  %v6348_v37 = vrot.slane %v5494_v47, %v14792_v36  ;;  %v6352_v16 = vrot.slane %v5494_v47, %v18509_v33  ;;  %v6964_v60 = vrot.slane %v16775_v44, %v14792_v36 }
0x1b15   :  { %v8296_v32 = vrot.slane %v8282_v28, %v18525_v0  ;;  %v6968_v14 = vrot.slane %v16775_v44, %v18509_v33  ;;  %v6972_v61 = vrot.slane %v5906_v51, %v14792_v36  ;;  %v6976_v23 = vrot.slane %v5906_v51, %v18509_v33 }
0x1b16   :  { %v6980_v49 = vrot.slane %v5908_v8, %v14792_v36  ;;  %v6984_v53 = vrot.slane %v5908_v8, %v18509_v33  ;;  %v6988_v43 = vrot.slane %v5910_v13, %v14792_v36  ;;  %v6992_v39 = vrot.slane %v5910_v13, %v18509_v33 }
0x1b17   :  { %v16835_v52 = vcombine.high %v8289_v24, %v8296_v32  ;;  %v16837_v56 = vcombine.low %v8289_v24, %v8296_v32  ;;  %v7481_v50 = vsel %vm798_vm5, %v6324_v10, %v6964_v60  ;;  %v7482_v44 = vsel %vm798_vm5, %v6328_v62, %v6968_v14  ;;  %v8718_v24 = vld [vmem:[#allocation37 + $0x2e8] sm:$0xff]  ;;  %v8720_v14 = vld [vmem:[#allocation37 + $0x2f8] sm:$0xff] }
0x1b18   :  { %v7483_v5 = vsel %vm798_vm5, %v6332_v17, %v6972_v61  ;;  %v7484_v18 = vsel %vm798_vm5, %v6336_v63, %v6976_v23  ;;  %v7485_v51 = vsel %vm798_vm5, %v6340_v21, %v6980_v49  ;;  %v7486_v8 = vsel %vm798_vm5, %v6344_v57, %v6984_v53  ;;  %v8719_v61 = vld [vmem:[#allocation37 + $0x2f0] sm:$0xff] }
0x1b19   :  { %8853 = vmatprep.mubr.f32.mxu0 %v16835_v52  ;;  %v7487_v47 = vsel %vm798_vm5, %v6348_v37, %v6988_v43  ;;  %v7488_v10 = vsel %vm798_vm5, %v6352_v16, %v6992_v39  ;;  %v7857_v48 = vcombine.low %v7481_v50, %v7482_v44  ;;  %v7865_v13 = vcombine.low %v7483_v5, %v7484_v18 }
0x1b1a   :  { %8854 = vmatmul.mubr.f32.gmra.mrb[34].mxu0 %v16837_v56  ;;  %v7873_v62 = vcombine.low %v7485_v51, %v7486_v8  ;;  %v7881_v17 = vcombine.low %v7487_v47, %v7488_v10  ;;  %v5213_v28 = vadd.f32 %v18548_v15, %v16741_v42  ;;  %v5214_v63 = vadd.f32 %v18549_v54, %v16745_v1  ;;  %v8717_v42 = vld [vmem:[#allocation37 + $0x2e0] sm:$0xff] }
0x1b1b   :  { %v5215_v21 = vadd.f32 %v18550_v6, %v16757_v38  ;;  %v5216_v57 = vadd.f32 %v18551_v12, %v16761_v7  ;;  %v7864_v37 = vrot.slane %v7857_v48, %v18525_v0  ;;  %v7872_v16 = vrot.slane %v7865_v13, %v18525_v0 }
0x1b1c   :  { %v7880_v60 = vrot.slane %v7873_v62, %v18525_v0  ;;  %v7888_v32 = vrot.slane %v7881_v17, %v18525_v0  ;;  %vm5245_vm8 = vcmp.ge.f32.partialorder %v5213_v28, 0.0  ;;  %vm5246_vm9 = vcmp.ge.f32.partialorder %v5214_v63, 0.0 }
0x1b1d   :  { %vm5247_vm11 = vcmp.ge.f32.partialorder %v5215_v21, 0.0  ;;  %vm5248_vm12 = vcmp.ge.f32.partialorder %v5216_v57, 0.0  ;;  %v8299_v1 = vcombine.low %v7864_v37, %v7872_v16  ;;  %v5277_v23 = vmul.f32 0.01, %v5213_v28  ;;  %v18557_v16 = vld [vmem:[#allocation75_spill] sm:$0xff] }
0x1b1e   :  { %v8300_v38 = vcombine.low %v7880_v60, %v7888_v32  ;;  %v5278_v7 = vmul.f32 0.01, %v5214_v63  ;;  %v5279_v49 = vmul.f32 0.01, %v5215_v21  ;;  %v5280_v53 = vmul.f32 0.01, %v5216_v57 }
0x1b1f   :  { %v13621_v43 = vpack.c.bf16 %v8720_v14, %v8718_v24  ;;  %v13623_v39 = vpack.c.bf16 %v8719_v61, %v8717_v42  ;;  %v8307_v50 = vrot.slane %v8299_v1, %v18525_v0  ;;  %v5309_v5 = vsel %vm5245_vm8, %v5213_v28, %v5277_v23 }
0x1b20   :  { %v8314_v44 = vrot.slane %v8300_v38, %v18525_v0  ;;  %v5310_v18 = vsel %vm5246_vm9, %v5214_v63, %v5278_v7  ;;  %v5311_v51 = vsel %vm5247_vm11, %v5215_v21, %v5279_v49  ;;  %v5312_v8 = vsel %vm5248_vm12, %v5216_v57, %v5280_v53  ;;  %v18558_v63 = vld [vmem:[#allocation97_spill] sm:$0xff] }
0x1b21   :  { %v5495_v47 = vcombine.low %v5309_v5, %v5310_v18  ;;  %v5496_v10 = vcombine.high %v5309_v5, %v5310_v18  ;;  %13622 = vmatprep.subr.bf16.mxu0 %v13621_v43  ;;  %v5911_v62 = vcombine.low %v5311_v51, %v5312_v8  ;;  %v5912_v17 = vcombine.high %v5311_v51, %v5312_v8 }
0x1b22   :  { %v16865_v48 = vcombine.high %v8307_v50, %v8314_v44  ;;  %v16867_v13 = vcombine.low %v8307_v50, %v8314_v44  ;;  %13624 = vmatpush1.bf16.msra.mxu0 %v13623_v39  ;;  %v16873_v28 = vmul.f32 %v18553_v58, %v18557_v16  ;;  %v16877_v21 = vmul.f32 %v16416_v59, %v18558_v63 }
0x1b23   :  { %v5503_v24 = vrot.slane %v5495_v47, %v18507_v46  ;;  %v5510_v37 = vrot.slane %v5496_v10, %v18507_v46  ;;  %v5919_v32 = vrot.slane %v5911_v62, %v18507_v46  ;;  %v5926_v14 = vrot.slane %v5912_v17, %v18507_v46 }
0x1b24   :  { %8859 = vmatprep.mubr.f32.mxu0 %v16865_v48 }
0x1b25   :  { %8860 = vmatmul.mubr.f32.gmra.mrb[36].mxu0 %v16867_v13  ;;  %v5511_v42 = vcombine.high %v5503_v24, %v5503_v24  ;;  %v5519_v61 = vrot.slane %v5503_v24, %v18507_v46  ;;  %v5512_v1 = vcombine.high %v5510_v37, %v5510_v37  ;;  %v16887_v38 = vrot.slane %v5510_v37, %v18507_v46 }
0x1b26   :  { %v5927_v23 = vcombine.high %v5919_v32, %v5919_v32  ;;  %v5935_v7 = vrot.slane %v5919_v32, %v18507_v46  ;;  %v5928_v49 = vcombine.high %v5926_v14, %v5926_v14  ;;  %v16891_v53 = vrot.slane %v5926_v14, %v18507_v46 }
0x1b27   :  { %v5533_v43 = vrot.slane %v5511_v42, %v18507_v46  ;;  %v5541_v39 = vcombine.high %v5519_v61, %v5519_v61  ;;  %v6356_v50 = vrot.slane %v5519_v61, %v14792_v36  ;;  %v6360_v44 = vrot.slane %v5519_v61, %v18509_v33 }
0x1b28   :  { %v5949_v5 = vrot.slane %v5927_v23, %v18507_v46  ;;  %v5957_v18 = vcombine.high %v5935_v7, %v5935_v7  ;;  %v6996_v51 = vrot.slane %v5935_v7, %v14792_v36  ;;  %v7000_v8 = vrot.slane %v5935_v7, %v18509_v33 }
0x1b29   :  { %v5543_v47 = vcombine.high %v5533_v43, %v5533_v43  ;;  %v6364_v10 = vrot.slane %v5533_v43, %v14792_v36  ;;  %v6368_v62 = vrot.slane %v5533_v43, %v18509_v33  ;;  %v6372_v17 = vrot.slane %v5541_v39, %v14792_v36 }
0x1b2a   :  { %v5959_v24 = vcombine.high %v5949_v5, %v5949_v5  ;;  %v6376_v37 = vrot.slane %v5541_v39, %v18509_v33  ;;  %v7004_v16 = vrot.slane %v5949_v5, %v14792_v36  ;;  %v7008_v63 = vrot.slane %v5949_v5, %v18509_v33 }
0x1b2b   :  { %v6380_v32 = vrot.slane %v5543_v47, %v14792_v36  ;;  %v6384_v14 = vrot.slane %v5543_v47, %v18509_v33  ;;  %v7012_v42 = vrot.slane %v5957_v18, %v14792_v36  ;;  %v7016_v61 = vrot.slane %v5957_v18, %v18509_v33 }
0x1b2c   :  { %v7020_v23 = vrot.slane %v5959_v24, %v14792_v36  ;;  %v7024_v7 = vrot.slane %v5959_v24, %v18509_v33  ;;  %v7489_v43 = vsel %vm798_vm5, %v6356_v50, %v6996_v51  ;;  %v7490_v39 = vsel %vm798_vm5, %v6360_v44, %v7000_v8 }
0x1b2d   :  { %v7491_v60 = vsel %vm798_vm5, %v6364_v10, %v7004_v16  ;;  %v7492_v5 = vsel %vm798_vm5, %v6368_v62, %v7008_v63  ;;  %v7493_v57 = vsel %vm798_vm5, %v6372_v17, %v7012_v42  ;;  %v7494_v47 = vsel %vm798_vm5, %v6376_v37, %v7016_v61 }
0x1b2e   :  { %v7495_v35 = vsel %vm798_vm5, %v6380_v32, %v7020_v23  ;;  %v7496_v18 = vsel %vm798_vm5, %v6384_v14, %v7024_v7  ;;  %v7889_v2 = vcombine.low %v7489_v43, %v7490_v39  ;;  %v7897_v25 = vcombine.low %v7491_v60, %v7492_v5 }
0x1b2f   :  { %v7905_v11 = vcombine.low %v7493_v57, %v7494_v47  ;;  %v7913_v24 = vcombine.low %v7495_v35, %v7496_v18  ;;  %v5540_v50 = vrot.slane %v5512_v1, %v18507_v46  ;;  %v5542_v44 = vcombine.high %v16887_v38, %v16887_v38 }
0x1b30   :  { %v7896_v51 = vrot.slane %v7889_v2, %v18525_v0  ;;  %v7904_v8 = vrot.slane %v7897_v25, %v18525_v0  ;;  %v5956_v10 = vrot.slane %v5928_v49, %v18507_v46  ;;  %v5958_v62 = vcombine.high %v16891_v53, %v16891_v53 }
0x1b31   :  { %v7912_v17 = vrot.slane %v7905_v11, %v18525_v0  ;;  %v7920_v60 = vrot.slane %v7913_v24, %v18525_v0  ;;  %v5544_v57 = vcombine.high %v5540_v50, %v5540_v50  ;;  %v6388_v35 = vrot.slane %v16887_v38, %v14792_v36 }
0x1b32   :  { %v8317_v1 = vcombine.low %v7896_v51, %v7904_v8  ;;  %v5960_v37 = vcombine.high %v5956_v10, %v5956_v10  ;;  %v6392_v2 = vrot.slane %v16887_v38, %v18509_v33  ;;  %v6396_v25 = vrot.slane %v5540_v50, %v14792_v36 }
0x1b33   :  { %v8318_v16 = vcombine.low %v7912_v17, %v7920_v60  ;;  %v6400_v49 = vrot.slane %v5540_v50, %v18509_v33  ;;  %v6404_v63 = vrot.slane %v5542_v44, %v14792_v36  ;;  %v6408_v11 = vrot.slane %v5542_v44, %v18509_v33 }
0x1b34   :  { %v8325_v32 = vrot.slane %v8317_v1, %v18525_v0  ;;  %v6412_v14 = vrot.slane %v5544_v57, %v14792_v36  ;;  %v6416_v42 = vrot.slane %v5544_v57, %v18509_v33  ;;  %v7028_v61 = vrot.slane %v16891_v53, %v14792_v36 }
0x1b35   :  { %v8332_v38 = vrot.slane %v8318_v16, %v18525_v0  ;;  %v7032_v23 = vrot.slane %v16891_v53, %v18509_v33  ;;  %v7036_v7 = vrot.slane %v5956_v10, %v14792_v36  ;;  %v7040_v43 = vrot.slane %v5956_v10, %v18509_v33  ;;  %v18559_v16 = vld [vmem:[#allocation79_spill] sm:$0xff] }
0x1b36   :  { %v7044_v39 = vrot.slane %v5958_v62, %v14792_v36  ;;  %v7048_v5 = vrot.slane %v5958_v62, %v18509_v33  ;;  %v7052_v47 = vrot.slane %v5960_v37, %v14792_v36  ;;  %v7056_v18 = vrot.slane %v5960_v37, %v18509_v33 }
0x1b37   :  { %v16951_v24 = vcombine.high %v8325_v32, %v8332_v38  ;;  %v16953_v50 = vcombine.low %v8325_v32, %v8332_v38  ;;  %v7497_v44 = vsel %vm798_vm5, %v6388_v35, %v7028_v61  ;;  %v7498_v53 = vsel %vm798_vm5, %v6392_v2, %v7032_v23 }
0x1b38   :  { %v7499_v51 = vsel %vm798_vm5, %v6396_v25, %v7036_v7  ;;  %v7500_v8 = vsel %vm798_vm5, %v6400_v49, %v7040_v43  ;;  %v7501_v10 = vsel %vm798_vm5, %v6404_v63, %v7044_v39  ;;  %v7502_v62 = vsel %vm798_vm5, %v6408_v11, %v7048_v5  ;;  %v18560_v63 = vld [vmem:[#allocation74_spill] sm:$0xff]  ;;  %v8722_v39 = vld [vmem:[#allocation37 + $0x308] sm:$0xff]  ;;  %v8724_v5 = vld [vmem:[#allocation37 + $0x318] sm:$0xff] }
0x1b39   :  { %8865 = vmatprep.mubr.f32.mxu0 %v16951_v24  ;;  %v7503_v57 = vsel %vm798_vm5, %v6412_v14, %v7052_v47  ;;  %v7504_v35 = vsel %vm798_vm5, %v6416_v42, %v7056_v18  ;;  %v7921_v1 = vcombine.low %v7497_v44, %v7498_v53  ;;  %v7929_v37 = vcombine.low %v7499_v51, %v7500_v8  ;;  %v8721_v44 = vld [vmem:[#allocation37 + $0x300] sm:$0xff]  ;;  %v8723_v53 = vld [vmem:[#allocation37 + $0x310] sm:$0xff] }
0x1b3a   :  { %8866 = vmatmul.mubr.f32.gmra.mrb[38].mxu0 %v16953_v50  ;;  %v7937_v2 = vcombine.low %v7501_v10, %v7502_v62  ;;  %v7945_v25 = vcombine.low %v7503_v57, %v7504_v35  ;;  %v5165_v49 = vmul.f32 %v16419_v30, %v18559_v16  ;;  %v5166_v11 = vmul.f32 %v16422_v20, %v18560_v63  ;;  %v8725_v63 = vld [vmem:[#allocation37 + $0x320] sm:$0xff] }
0x1b3b   :  { %v5217_v32 = vadd.f32 %v18548_v15, %v16873_v28  ;;  %v5218_v14 = vadd.f32 %v18549_v54, %v16877_v21  ;;  %v7928_v42 = vrot.slane %v7921_v1, %v18525_v0  ;;  %v7936_v61 = vrot.slane %v7929_v37, %v18525_v0  ;;  %v8726_v1 = vld [vmem:[#allocation37 + $0x328] sm:$0xff]  ;;  %v8728_v37 = vld [vmem:[#allocation37 + $0x338] sm:$0xff] }
0x1b3c   :  { %v7944_v38 = vrot.slane %v7937_v2, %v18525_v0  ;;  %v7952_v23 = vrot.slane %v7945_v25, %v18525_v0  ;;  %v5219_v7 = vadd.f32 %v18550_v6, %v5165_v49  ;;  %v5220_v43 = vadd.f32 %v18551_v12, %v5166_v11  ;;  %v8727_v11 = vld [vmem:[#allocation37 + $0x330] sm:$0xff] }
0x1b3d   :  { %vm5249_vm13 = vcmp.ge.f32.partialorder %v5217_v32, 0.0  ;;  %vm5250_vm14 = vcmp.ge.f32.partialorder %v5218_v14, 0.0  ;;  %v8335_v28 = vcombine.low %v7928_v42, %v7936_v61  ;;  %v5281_v18 = vmul.f32 0.01, %v5217_v32 }
0x1b3e   :  { %v8336_v47 = vcombine.low %v7944_v38, %v7952_v23  ;;  %v5282_v21 = vmul.f32 0.01, %v5218_v14  ;;  %vm5251_vm15 = vcmp.ge.f32.partialorder %v5219_v7, 0.0  ;;  %vm5252_vm0 = vcmp.ge.f32.partialorder %v5220_v43, 0.0 }
0x1b3f   :  { %v5283_v51 = vmul.f32 0.01, %v5219_v7  ;;  %v5284_v8 = vmul.f32 0.01, %v5220_v43  ;;  %v8343_v10 = vrot.slane %v8335_v28, %v18525_v0  ;;  %v5313_v57 = vsel %vm5249_vm13, %v5217_v32, %v5281_v18 }
0x1b40   :  { %v8350_v62 = vrot.slane %v8336_v47, %v18525_v0  ;;  %v5314_v35 = vsel %vm5250_vm14, %v5218_v14, %v5282_v21  ;;  %v13625_v49 = vpack.c.bf16 %v8724_v5, %v8722_v39  ;;  %v13627_v23 = vpack.c.bf16 %v8723_v53, %v8721_v44 }
0x1b41   :  { %v5315_v2 = vsel %vm5251_vm15, %v5219_v7, %v5283_v51  ;;  %v5316_v25 = vsel %vm5252_vm0, %v5220_v43, %v5284_v8  ;;  %v5545_v16 = vcombine.low %v5313_v57, %v5314_v35  ;;  %v5546_v32 = vcombine.high %v5313_v57, %v5314_v35  ;;  %v18562_v57 = vld [vmem:[#allocation86_spill] sm:$0xff] }
0x1b42   :  { %v16985_v42 = vcombine.high %v8343_v10, %v8350_v62  ;;  %v16987_v61 = vcombine.low %v8343_v10, %v8350_v62  ;;  %v5961_v38 = vcombine.low %v5315_v2, %v5316_v25  ;;  %13626 = vmatprep.subr.bf16.mxu0 %v13625_v49  ;;  %v5962_v47 = vcombine.high %v5315_v2, %v5316_v25  ;;  %v18561_v10 = vld [vmem:[#allocation76_spill] sm:$0xff] }
0x1b43   :  { %v5553_v28 = vrot.slane %v5545_v16, %v18507_v46  ;;  %v13629_v14 = vpack.c.bf16 %v8728_v37, %v8726_v1  ;;  %13628 = vmatpush1.bf16.msra.mxu0 %v13627_v23  ;;  %v13631_v39 = vpack.c.bf16 %v8727_v11, %v8725_v63  ;;  %v5560_v44 = vrot.slane %v5546_v32, %v18507_v46 }
0x1b44   :  { %8871 = vmatprep.mubr.f32.mxu0 %v16985_v42  ;;  %v5969_v43 = vrot.slane %v5961_v38, %v18507_v46  ;;  %v5976_v53 = vrot.slane %v5962_v47, %v18507_v46  ;;  %v17001_v62 = vmul.f32 %v18553_v58, %v18561_v10  ;;  %v17005_v35 = vmul.f32 %v16416_v59, %v18562_v57 }
0x1b45   :  { %8872 = vmatmul.mubr.f32.gmra.mrb[40].mxu0 %v16987_v61  ;;  %v5561_v5 = vcombine.high %v5553_v28, %v5553_v28  ;;  %v5569_v21 = vrot.slane %v5553_v28, %v18507_v46  ;;  %13630 = vmatprep.subr.bf16.mxu0 %v13629_v14  ;;  %v5562_v4 = vcombine.high %v5560_v44, %v5560_v44 }
0x1b46   :  { %v5977_v51 = vcombine.high %v5969_v43, %v5969_v43  ;;  %v5985_v8 = vrot.slane %v5969_v43, %v18507_v46 }
0x1b47   :  { %v5583_v1 = vrot.slane %v5561_v5, %v18507_v46  ;;  %v5591_v37 = vcombine.high %v5569_v21, %v5569_v21  ;;  %v6420_v2 = vrot.slane %v5569_v21, %v14792_v36  ;;  %v6424_v25 = vrot.slane %v5569_v21, %v18509_v33  ;;  %13632 = vmatpush1.bf16.msra.mxu0 %v13631_v39 }
0x1b48   :  { %v5999_v16 = vrot.slane %v5977_v51, %v18507_v46  ;;  %v6007_v49 = vcombine.high %v5985_v8, %v5985_v8  ;;  %v7060_v63 = vrot.slane %v5985_v8, %v14792_v36  ;;  %v7064_v11 = vrot.slane %v5985_v8, %v18509_v33 }
0x1b49   :  { %v5593_v38 = vcombine.high %v5583_v1, %v5583_v1  ;;  %v6428_v23 = vrot.slane %v5583_v1, %v14792_v36  ;;  %v6432_v28 = vrot.slane %v5583_v1, %v18509_v33  ;;  %v6436_v32 = vrot.slane %v5591_v37, %v14792_v36 }
0x1b4a   :  { %v6009_v47 = vcombine.high %v5999_v16, %v5999_v16  ;;  %v6440_v14 = vrot.slane %v5591_v37, %v18509_v33  ;;  %v7068_v43 = vrot.slane %v5999_v16, %v14792_v36  ;;  %v7072_v5 = vrot.slane %v5999_v16, %v18509_v33 }
0x1b4b   :  { %v6444_v21 = vrot.slane %v5593_v38, %v14792_v36  ;;  %v6448_v51 = vrot.slane %v5593_v38, %v18509_v33  ;;  %v7076_v39 = vrot.slane %v6007_v49, %v14792_v36  ;;  %v7080_v8 = vrot.slane %v6007_v49, %v18509_v33 }
0x1b4c   :  { %v7084_v10 = vrot.slane %v6009_v47, %v14792_v36  ;;  %v7088_v57 = vrot.slane %v6009_v47, %v18509_v33  ;;  %v7505_v1 = vsel %vm798_vm5, %v6420_v2, %v7060_v63  ;;  %v7506_v37 = vsel %vm798_vm5, %v6424_v25, %v7064_v11 }
0x1b4d   :  { %v7507_v7 = vsel %vm798_vm5, %v6428_v23, %v7068_v43  ;;  %v7508_v16 = vsel %vm798_vm5, %v6432_v28, %v7072_v5  ;;  %v7509_v18 = vsel %vm798_vm5, %v6436_v32, %v7076_v39  ;;  %v7510_v38 = vsel %vm798_vm5, %v6440_v14, %v7080_v8 }
0x1b4e   :  { %v7511_v60 = vsel %vm798_vm5, %v6444_v21, %v7084_v10  ;;  %v7512_v49 = vsel %vm798_vm5, %v6448_v51, %v7088_v57  ;;  %v7953_v17 = vcombine.low %v7505_v1, %v7506_v37  ;;  %v7961_v45 = vcombine.low %v7507_v7, %v7508_v16 }
0x1b4f   :  { %v7969_v29 = vcombine.low %v7509_v18, %v7510_v38  ;;  %v7977_v47 = vcombine.low %v7511_v60, %v7512_v49  ;;  %v5576_v2 = vrot.slane %v5560_v44, %v18507_v46  ;;  %v5978_v11 = vcombine.high %v5976_v53, %v5976_v53 }
0x1b50   :  { %v7960_v25 = vrot.slane %v7953_v17, %v18525_v0  ;;  %v7968_v63 = vrot.slane %v7961_v45, %v18525_v0  ;;  %v5992_v23 = vrot.slane %v5976_v53, %v18507_v46  ;;  %v5590_v14 = vrot.slane %v5562_v4, %v18507_v46 }
0x1b51   :  { %v7976_v28 = vrot.slane %v7969_v29, %v18525_v0  ;;  %v7984_v32 = vrot.slane %v7977_v47, %v18525_v0  ;;  %v5592_v43 = vcombine.high %v5576_v2, %v5576_v2  ;;  %v6006_v60 = vrot.slane %v5978_v11, %v18507_v46 }
0x1b52   :  { %v8353_v7 = vcombine.low %v7960_v25, %v7968_v63  ;;  %v6008_v18 = vcombine.high %v5992_v23, %v5992_v23  ;;  %v6452_v44 = vrot.slane %v5576_v2, %v14792_v36  ;;  %v5594_v17 = vcombine.high %v5590_v14, %v5590_v14 }
0x1b53   :  { %v8354_v5 = vcombine.low %v7976_v28, %v7984_v32  ;;  %v6456_v45 = vrot.slane %v5576_v2, %v18509_v33  ;;  %v6460_v21 = vrot.slane %v5590_v14, %v14792_v36  ;;  %v6010_v29 = vcombine.high %v6006_v60, %v6006_v60 }
0x1b54   :  { %v8361_v53 = vrot.slane %v8353_v7, %v18525_v0  ;;  %v6464_v51 = vrot.slane %v5590_v14, %v18509_v33  ;;  %v6468_v4 = vrot.slane %v5592_v43, %v14792_v36  ;;  %v6472_v8 = vrot.slane %v5592_v43, %v18509_v33 }
0x1b55   :  { %v8368_v39 = vrot.slane %v8354_v5, %v18525_v0  ;;  %v6476_v10 = vrot.slane %v5594_v17, %v14792_v36  ;;  %v6480_v57 = vrot.slane %v5594_v17, %v18509_v33  ;;  %v7092_v1 = vrot.slane %v5992_v23, %v14792_v36 }
0x1b56   :  { %v7096_v37 = vrot.slane %v5992_v23, %v18509_v33  ;;  %v7100_v16 = vrot.slane %v6006_v60, %v14792_v36  ;;  %v7104_v38 = vrot.slane %v6006_v60, %v18509_v33  ;;  %v7108_v2 = vrot.slane %v6008_v18, %v14792_v36 }
0x1b57   :  { %v17055_v49 = vcombine.high %v8361_v53, %v8368_v39  ;;  %v17057_v47 = vcombine.low %v8361_v53, %v8368_v39  ;;  %v7112_v25 = vrot.slane %v6008_v18, %v18509_v33  ;;  %v7116_v63 = vrot.slane %v6010_v29, %v14792_v36  ;;  %v18564_v39 = vld [vmem:[#allocation88_spill] sm:$0xff] }
0x1b58   :  { %v7120_v11 = vrot.slane %v6010_v29, %v18509_v33  ;;  %v7513_v28 = vsel %vm798_vm5, %v6452_v44, %v7092_v1  ;;  %v7514_v23 = vsel %vm798_vm5, %v6456_v45, %v7096_v37  ;;  %v7515_v43 = vsel %vm798_vm5, %v6460_v21, %v7100_v16  ;;  %v18565_v21 = vld [vmem:[#allocation80_spill] sm:$0xff] }
0x1b59   :  { %18563 = vst [vmem:[#allocation72_spill] sm:$0xff] %v17057_v47  ;;  %8877 = vmatprep.mubr.f32.mxu0 %v17055_v49  ;;  %v7516_v7 = vsel %vm798_vm5, %v6464_v51, %v7104_v38  ;;  %v7517_v60 = vsel %vm798_vm5, %v6468_v4, %v7108_v2  ;;  %v7518_v18 = vsel %vm798_vm5, %v6472_v8, %v7112_v25  ;;  %v8730_v25 = vld [vmem:[#allocation37 + $0x348] sm:$0xff] }
0x1b5a   :  { %8878 = vmatmul.mubr.f32.gmra.mrb[42].mxu0 %v17057_v47  ;;  %v7519_v44 = vsel %vm798_vm5, %v6476_v10, %v7116_v63  ;;  %v7520_v5 = vsel %vm798_vm5, %v6480_v57, %v7120_v11  ;;  %v7985_v17 = vcombine.low %v7513_v28, %v7514_v23  ;;  %v7993_v45 = vcombine.low %v7515_v43, %v7516_v7  ;;  %v8732_v63 = vld [vmem:[#allocation37 + $0x358] sm:$0xff]  ;;  %v8729_v23 = vld [vmem:[#allocation37 + $0x340] sm:$0xff]  ;;  %v8731_v43 = vld [vmem:[#allocation37 + $0x350] sm:$0xff] }
0x1b5b   :  { %v8001_v53 = vcombine.low %v7517_v60, %v7518_v18  ;;  %v8009_v29 = vcombine.low %v7519_v44, %v7520_v5  ;;  %v5169_v1 = vmul.f32 %v16419_v30, %v18564_v39  ;;  %v5170_v51 = vmul.f32 %v16422_v20, %v18565_v21 }
0x1b5c   :  { %v5221_v37 = vadd.f32 %v18548_v15, %v17001_v62  ;;  %v5222_v4 = vadd.f32 %v18549_v54, %v17005_v35  ;;  %v7992_v8 = vrot.slane %v7985_v17, %v18525_v0  ;;  %v8000_v10 = vrot.slane %v7993_v45, %v18525_v0  ;;  %v8734_v45 = vld [vmem:[#allocation37 + $0x368] sm:$0xff] }
0x1b5d   :  { %v8008_v57 = vrot.slane %v8001_v53, %v18525_v0  ;;  %v8016_v16 = vrot.slane %v8009_v29, %v18525_v0  ;;  %v5223_v38 = vadd.f32 %v18550_v6, %v5169_v1  ;;  %v5224_v2 = vadd.f32 %v18551_v12, %v5170_v51  ;;  %v8736_v53 = vld [vmem:[#allocation37 + $0x378] sm:$0xff]  ;;  %v8733_v51 = vld [vmem:[#allocation37 + $0x360] sm:$0xff] }
0x1b5e   :  { %vm5253_vm1 = vcmp.ge.f32.partialorder %v5221_v37, 0.0  ;;  %vm5254_vm2 = vcmp.ge.f32.partialorder %v5222_v4, 0.0  ;;  %v8371_v62 = vcombine.low %v7992_v8, %v8000_v10  ;;  %v5285_v28 = vmul.f32 0.01, %v5221_v37  ;;  %v8735_v8 = vld [vmem:[#allocation37 + $0x370] sm:$0xff] }
0x1b5f   :  { %v8372_v11 = vcombine.low %v8008_v57, %v8016_v16  ;;  %v5286_v35 = vmul.f32 0.01, %v5222_v4  ;;  %vm5255_vm3 = vcmp.ge.f32.partialorder %v5223_v38, 0.0  ;;  %vm5256_vm4 = vcmp.ge.f32.partialorder %v5224_v2, 0.0 }
0x1b60   :  { %v5287_v7 = vmul.f32 0.01, %v5223_v38  ;;  %v5288_v60 = vmul.f32 0.01, %v5224_v2  ;;  %v8379_v18 = vrot.slane %v8371_v62, %v18525_v0  ;;  %v5317_v5 = vsel %vm5253_vm1, %v5221_v37, %v5285_v28 }
0x1b61   :  { %v8386_v44 = vrot.slane %v8372_v11, %v18525_v0  ;;  %v5318_v17 = vsel %vm5254_vm2, %v5222_v4, %v5286_v35  ;;  %v13633_v21 = vpack.c.bf16 %v8732_v63, %v8730_v25  ;;  %v13635_v62 = vpack.c.bf16 %v8731_v43, %v8729_v23 }
0x1b62   :  { %v5319_v29 = vsel %vm5255_vm3, %v5223_v38, %v5287_v7  ;;  %v5320_v39 = vsel %vm5256_vm4, %v5224_v2, %v5288_v60  ;;  %v5595_v1 = vcombine.low %v5317_v5, %v5318_v17  ;;  %v5596_v37 = vcombine.high %v5317_v5, %v5318_v17  ;;  %v18567_v17 = vld [vmem:[#allocation90_spill] sm:$0xff] }
0x1b63   :  { %v17093_v10 = vcombine.high %v8379_v18, %v8386_v44  ;;  %v17095_v57 = vcombine.low %v8379_v18, %v8386_v44  ;;  %v6011_v16 = vcombine.low %v5319_v29, %v5320_v39  ;;  %13634 = vmatprep.subr.bf16.mxu0 %v13633_v21  ;;  %v6012_v28 = vcombine.high %v5319_v29, %v5320_v39  ;;  %v18566_v44 = vld [vmem:[#allocation87_spill] sm:$0xff] }
0x1b64   :  { %v5603_v11 = vrot.slane %v5595_v1, %v18507_v46  ;;  %v13637_v4 = vpack.c.bf16 %v8736_v53, %v8734_v45  ;;  %13636 = vmatpush1.bf16.msra.mxu0 %v13635_v62  ;;  %v13639_v25 = vpack.c.bf16 %v8735_v8, %v8733_v51  ;;  %v5610_v43 = vrot.slane %v5596_v37, %v18507_v46 }
0x1b65   :  { %8883 = vmatprep.mubr.f32.mxu0 %v17093_v10  ;;  %v6019_v2 = vrot.slane %v6011_v16, %v18507_v46  ;;  %v6026_v7 = vrot.slane %v6012_v28, %v18507_v46  ;;  %v17109_v5 = vmul.f32 %v18553_v58, %v18566_v44  ;;  %v17113_v45 = vmul.f32 %v16416_v59, %v18567_v17 }
0x1b66   :  { %8884 = vmatmul.mubr.f32.gmra.mrb[44].mxu0 %v17095_v57  ;;  %v5611_v63 = vcombine.high %v5603_v11, %v5603_v11  ;;  %v5619_v23 = vrot.slane %v5603_v11, %v18507_v46  ;;  %13638 = vmatprep.subr.bf16.mxu0 %v13637_v4  ;;  %v5612_v47 = vcombine.high %v5610_v43, %v5610_v43 }
0x1b67   :  { %v6027_v60 = vcombine.high %v6019_v2, %v6019_v2  ;;  %v6035_v18 = vrot.slane %v6019_v2, %v18507_v46 }
0x1b68   :  { %v5633_v53 = vrot.slane %v5611_v63, %v18507_v46  ;;  %v5641_v29 = vcombine.high %v5619_v23, %v5619_v23  ;;  %v6484_v39 = vrot.slane %v5619_v23, %v14792_v36  ;;  %v6488_v1 = vrot.slane %v5619_v23, %v18509_v33  ;;  %13640 = vmatpush1.bf16.msra.mxu0 %v13639_v25 }
0x1b69   :  { %v6049_v21 = vrot.slane %v6027_v60, %v18507_v46  ;;  %v6057_v51 = vcombine.high %v6035_v18, %v6035_v18  ;;  %v7124_v8 = vrot.slane %v6035_v18, %v14792_v36  ;;  %v7128_v16 = vrot.slane %v6035_v18, %v18509_v33 }
0x1b6a   :  { %v5643_v62 = vcombine.high %v5633_v53, %v5633_v53  ;;  %v6492_v11 = vrot.slane %v5633_v53, %v14792_v36  ;;  %v6496_v37 = vrot.slane %v5633_v53, %v18509_v33  ;;  %v6500_v28 = vrot.slane %v5641_v29, %v14792_v36 }
0x1b6b   :  { %v6059_v4 = vcombine.high %v6049_v21, %v6049_v21  ;;  %v6504_v2 = vrot.slane %v5641_v29, %v18509_v33  ;;  %v7132_v63 = vrot.slane %v6049_v21, %v14792_v36  ;;  %v7136_v23 = vrot.slane %v6049_v21, %v18509_v33 }
0x1b6c   :  { %v6508_v60 = vrot.slane %v5643_v62, %v14792_v36  ;;  %v6512_v44 = vrot.slane %v5643_v62, %v18509_v33  ;;  %v7140_v25 = vrot.slane %v6057_v51, %v14792_v36  ;;  %v7144_v18 = vrot.slane %v6057_v51, %v18509_v33 }
0x1b6d   :  { %v7148_v17 = vrot.slane %v6059_v4, %v14792_v36  ;;  %v7152_v53 = vrot.slane %v6059_v4, %v18509_v33  ;;  %v7521_v14 = vsel %vm798_vm5, %v6484_v39, %v7124_v8  ;;  %v7522_v29 = vsel %vm798_vm5, %v6488_v1, %v7128_v16 }
0x1b6e   :  { %v7523_v38 = vsel %vm798_vm5, %v6492_v11, %v7132_v63  ;;  %v7524_v21 = vsel %vm798_vm5, %v6496_v37, %v7136_v23  ;;  %v7525_v32 = vsel %vm798_vm5, %v6500_v28, %v7140_v25  ;;  %v7526_v62 = vsel %vm798_vm5, %v6504_v2, %v7144_v18 }
0x1b6f   :  { %v7527_v35 = vsel %vm798_vm5, %v6508_v60, %v7148_v17  ;;  %v7528_v51 = vsel %vm798_vm5, %v6512_v44, %v7152_v53  ;;  %v8017_v26 = vcombine.low %v7521_v14, %v7522_v29  ;;  %v8025_v55 = vcombine.low %v7523_v38, %v7524_v21 }
0x1b70   :  { %v8033_v22 = vcombine.low %v7525_v32, %v7526_v62  ;;  %v8041_v4 = vcombine.low %v7527_v35, %v7528_v51  ;;  %v5626_v39 = vrot.slane %v5610_v43, %v18507_v46  ;;  %v6028_v16 = vcombine.high %v6026_v7, %v6026_v7 }
0x1b71   :  { %v8024_v1 = vrot.slane %v8017_v26, %v18525_v0  ;;  %v8032_v8 = vrot.slane %v8025_v55, %v18525_v0  ;;  %v6042_v11 = vrot.slane %v6026_v7, %v18507_v46  ;;  %v5640_v2 = vrot.slane %v5612_v47, %v18507_v46 }
0x1b72   :  { %v8040_v37 = vrot.slane %v8033_v22, %v18525_v0  ;;  %v8048_v28 = vrot.slane %v8041_v4, %v18525_v0  ;;  %v5642_v14 = vcombine.high %v5626_v39, %v5626_v39  ;;  %v6056_v32 = vrot.slane %v6028_v16, %v18507_v46 }
0x1b73   :  { %v8389_v38 = vcombine.low %v8024_v1, %v8032_v8  ;;  %v6058_v35 = vcombine.high %v6042_v11, %v6042_v11  ;;  %v6516_v43 = vrot.slane %v5626_v39, %v14792_v36  ;;  %v5644_v26 = vcombine.high %v5640_v2, %v5640_v2 }
0x1b74   :  { %v8390_v63 = vcombine.low %v8040_v37, %v8048_v28  ;;  %v6520_v55 = vrot.slane %v5626_v39, %v18509_v33  ;;  %v6524_v23 = vrot.slane %v5640_v2, %v14792_v36  ;;  %v6060_v22 = vcombine.high %v6056_v32, %v6056_v32 }
0x1b75   :  { %v8397_v7 = vrot.slane %v8389_v38, %v18525_v0  ;;  %v6528_v60 = vrot.slane %v5640_v2, %v18509_v33  ;;  %v6532_v47 = vrot.slane %v5642_v14, %v14792_v36  ;;  %v6536_v25 = vrot.slane %v5642_v14, %v18509_v33 }
0x1b76   :  { %v8404_v44 = vrot.slane %v8390_v63, %v18525_v0  ;;  %v6540_v18 = vrot.slane %v5644_v26, %v14792_v36  ;;  %v6544_v17 = vrot.slane %v5644_v26, %v18509_v33  ;;  %v7156_v53 = vrot.slane %v6042_v11, %v14792_v36 }
0x1b77   :  { %v7160_v29 = vrot.slane %v6042_v11, %v18509_v33  ;;  %v7164_v21 = vrot.slane %v6056_v32, %v14792_v36  ;;  %v7168_v62 = vrot.slane %v6056_v32, %v18509_v33  ;;  %v7172_v39 = vrot.slane %v6058_v35, %v14792_v36 }
0x1b78   :  { %v17163_v51 = vcombine.high %v8397_v7, %v8404_v44  ;;  %v17165_v4 = vcombine.low %v8397_v7, %v8404_v44  ;;  %v7176_v1 = vrot.slane %v6058_v35, %v18509_v33  ;;  %v7180_v8 = vrot.slane %v6060_v22, %v14792_v36  ;;  %v18568_v44 = vld [vmem:[#allocation89_spill] sm:$0xff] }
0x1b79   :  { %v7184_v16 = vrot.slane %v6060_v22, %v18509_v33  ;;  %v7529_v37 = vsel %vm798_vm5, %v6516_v43, %v7156_v53  ;;  %v7530_v11 = vsel %vm798_vm5, %v6520_v55, %v7160_v29  ;;  %v7531_v14 = vsel %vm798_vm5, %v6524_v23, %v7164_v21  ;;  %v18569_v23 = vld [vmem:[#allocation82_spill] sm:$0xff] }
0x1b7a   :  { %8889 = vmatprep.mubr.f32.mxu0 %v17163_v51  ;;  %v7532_v38 = vsel %vm798_vm5, %v6528_v60, %v7168_v62  ;;  %v7533_v32 = vsel %vm798_vm5, %v6532_v47, %v7172_v39  ;;  %v7534_v35 = vsel %vm798_vm5, %v6536_v25, %v7176_v1  ;;  %v7535_v43 = vsel %vm798_vm5, %v6540_v18, %v7180_v8  ;;  %v8738_v1 = vld [vmem:[#allocation37 + $0x388] sm:$0xff]  ;;  %v8740_v8 = vld [vmem:[#allocation37 + $0x398] sm:$0xff] }
0x1b7b   :  { %8890 = vmatmul.mubr.f32.gmra.mrb[46].mxu0 %v17165_v4  ;;  %v7536_v63 = vsel %vm798_vm5, %v6544_v17, %v7184_v16  ;;  %v8049_v26 = vcombine.low %v7529_v37, %v7530_v11  ;;  %v8057_v55 = vcombine.low %v7531_v14, %v7532_v38  ;;  %v8065_v7 = vcombine.low %v7533_v32, %v7534_v35  ;;  %v8737_v11 = vld [vmem:[#allocation37 + $0x380] sm:$0xff]  ;;  %v8739_v14 = vld [vmem:[#allocation37 + $0x390] sm:$0xff] }
0x1b7c   :  { %v8073_v22 = vcombine.low %v7535_v43, %v7536_v63  ;;  %v5173_v53 = vmul.f32 %v16419_v30, %v18568_v44  ;;  %v5174_v60 = vmul.f32 %v16422_v20, %v18569_v23  ;;  %v5225_v29 = vadd.f32 %v18548_v15, %v17109_v5 }
0x1b7d   :  { %v5226_v47 = vadd.f32 %v18549_v54, %v17113_v45  ;;  %v8056_v25 = vrot.slane %v8049_v26, %v18525_v0  ;;  %v8064_v18 = vrot.slane %v8057_v55, %v18525_v0  ;;  %v8072_v17 = vrot.slane %v8065_v7, %v18525_v0  ;;  %v8742_v55 = vld [vmem:[#allocation37 + $0x3a8] sm:$0xff]  ;;  %v8744_v7 = vld [vmem:[#allocation37 + $0x3b8] sm:$0xff] }
0x1b7e   :  { %v8080_v21 = vrot.slane %v8073_v22, %v18525_v0  ;;  %v5227_v62 = vadd.f32 %v18550_v6, %v5173_v53  ;;  %v5228_v39 = vadd.f32 %v18551_v12, %v5174_v60  ;;  %vm5257_vm6 = vcmp.ge.f32.partialorder %v5225_v29, 0.0  ;;  %v8741_v60 = vld [vmem:[#allocation37 + $0x3a0] sm:$0xff] }
0x1b7f   :  { %vm5258_vm7 = vcmp.ge.f32.partialorder %v5226_v47, 0.0  ;;  %v8407_v5 = vcombine.low %v8056_v25, %v8064_v18  ;;  %v5289_v37 = vmul.f32 0.01, %v5225_v29  ;;  %v5290_v45 = vmul.f32 0.01, %v5226_v47  ;;  %v8743_v25 = vld [vmem:[#allocation37 + $0x3b0] sm:$0xff] }
0x1b80   :  { %v8408_v16 = vcombine.low %v8072_v17, %v8080_v21  ;;  %vm5259_vm8 = vcmp.ge.f32.partialorder %v5227_v62, 0.0  ;;  %vm5260_vm9 = vcmp.ge.f32.partialorder %v5228_v39, 0.0  ;;  %v5291_v38 = vmul.f32 0.01, %v5227_v62 }
0x1b81   :  { %v5292_v32 = vmul.f32 0.01, %v5228_v39  ;;  %v8415_v35 = vrot.slane %v8407_v5, %v18525_v0  ;;  %v5321_v63 = vsel %vm5257_vm6, %v5225_v29, %v5289_v37  ;;  %v5322_v26 = vsel %vm5258_vm7, %v5226_v47, %v5290_v45 }
0x1b82   :  { %v8422_v43 = vrot.slane %v8408_v16, %v18525_v0  ;;  %v5323_v22 = vsel %vm5259_vm8, %v5227_v62, %v5291_v38  ;;  %v5645_v53 = vcombine.low %v5321_v63, %v5322_v26  ;;  %v13641_v23 = vpack.c.bf16 %v8740_v8, %v8738_v1 }
0x1b83   :  { %v5324_v44 = vsel %vm5260_vm9, %v5228_v39, %v5292_v32  ;;  %v13643_v5 = vpack.c.bf16 %v8739_v14, %v8737_v11  ;;  %v5646_v29 = vcombine.high %v5321_v63, %v5322_v26  ;;  %v13645_v47 = vpack.c.bf16 %v8744_v7, %v8742_v55  ;;  %v18573_v26 = vld [vmem:[#allocation73_spill] sm:$0xff] }
0x1b84   :  { %v17201_v18 = vcombine.high %v8415_v35, %v8422_v43  ;;  %v17203_v17 = vcombine.low %v8415_v35, %v8422_v43  ;;  %v6061_v21 = vcombine.low %v5323_v22, %v5324_v44  ;;  %v5653_v16 = vrot.slane %v5645_v53, %v18507_v46  ;;  %13642 = vmatprep.subr.bf16.mxu0 %v13641_v23  ;;  %v18572_v43 = vld [vmem:[#allocation77_spill] sm:$0xff] }
0x1b85   :  { %v6062_v37 = vcombine.high %v5323_v22, %v5324_v44  ;;  %13644 = vmatpush1.bf16.msra.mxu0 %v13643_v5  ;;  %v13647_v1 = vpack.c.bf16 %v8743_v25, %v8741_v60  ;;  %v5660_v14 = vrot.slane %v5646_v29, %v18507_v46  ;;  %v17217_v63 = vmul.f32 %v18553_v58, %v18572_v43 }
0x1b86   :  { %18570 = vst [vmem:[#allocation83_spill] sm:$0xff] %v17201_v18  ;;  %18571 = vst [vmem:[#allocation70_spill] sm:$0xff] %v17203_v17  ;;  %8895 = vmatprep.mubr.f32.mxu0 %v17201_v18  ;;  %v6069_v39 = vrot.slane %v6061_v21, %v18507_v46  ;;  %v5661_v8 = vcombine.high %v5653_v16, %v5653_v16  ;;  %v5669_v11 = vrot.slane %v5653_v16, %v18507_v46 }
0x1b87   :  { %8896 = vmatmul.mubr.f32.gmra.mrb[48].mxu0 %v17203_v17  ;;  %v6076_v38 = vrot.slane %v6062_v37, %v18507_v46  ;;  %13646 = vmatprep.subr.bf16.mxu0 %v13645_v47  ;;  %v17221_v55 = vmul.f32 %v16416_v59, %v18573_v26  ;;  %v5662_v18 = vcombine.high %v5660_v14, %v5660_v14 }
0x1b88   :  { %v6077_v32 = vcombine.high %v6069_v39, %v6069_v39  ;;  %v6085_v35 = vrot.slane %v6069_v39, %v18507_v46  ;;  %v5683_v7 = vrot.slane %v5661_v8, %v18507_v46  ;;  %v5691_v22 = vcombine.high %v5669_v11, %v5669_v11 }
0x1b89   :  { %v6548_v44 = vrot.slane %v5669_v11, %v14792_v36  ;;  %v6552_v53 = vrot.slane %v5669_v11, %v18509_v33  ;;  %13648 = vmatpush1.bf16.msra.mxu0 %v13647_v1 }
0x1b8a   :  { %v6099_v23 = vrot.slane %v6077_v32, %v18507_v46  ;;  %v6107_v60 = vcombine.high %v6085_v35, %v6085_v35  ;;  %v7188_v25 = vrot.slane %v6085_v35, %v14792_v36  ;;  %v7192_v21 = vrot.slane %v6085_v35, %v18509_v33 }
0x1b8b   :  { %v5693_v58 = vcombine.high %v5683_v7, %v5683_v7  ;;  %v6556_v5 = vrot.slane %v5683_v7, %v14792_v36  ;;  %v6560_v59 = vrot.slane %v5683_v7, %v18509_v33  ;;  %v6564_v16 = vrot.slane %v5691_v22, %v14792_v36 }
0x1b8c   :  { %v6109_v29 = vcombine.high %v6099_v23, %v6099_v23  ;;  %v6568_v37 = vrot.slane %v5691_v22, %v18509_v33  ;;  %v7196_v47 = vrot.slane %v6099_v23, %v14792_v36  ;;  %v7200_v39 = vrot.slane %v6099_v23, %v18509_v33 }
0x1b8d   :  { %v6572_v8 = vrot.slane %v5693_v58, %v14792_v36  ;;  %v6576_v11 = vrot.slane %v5693_v58, %v18509_v33  ;;  %v7204_v1 = vrot.slane %v6107_v60, %v14792_v36  ;;  %v7208_v32 = vrot.slane %v6107_v60, %v18509_v33 }
0x1b8e   :  { %v7212_v35 = vrot.slane %v6109_v29, %v14792_v36  ;;  %v7216_v43 = vrot.slane %v6109_v29, %v18509_v33  ;;  %v7537_v26 = vsel %vm798_vm5, %v6548_v44, %v7188_v25  ;;  %v7538_v7 = vsel %vm798_vm5, %v6552_v53, %v7192_v21 }
0x1b8f   :  { %v7539_v22 = vsel %vm798_vm5, %v6556_v5, %v7196_v47  ;;  %v7540_v23 = vsel %vm798_vm5, %v6560_v59, %v7200_v39  ;;  %v7541_v62 = vsel %vm798_vm5, %v6564_v16, %v7204_v1  ;;  %v7542_v58 = vsel %vm798_vm5, %v6568_v37, %v7208_v32 }
0x1b90   :  { %v7543_v45 = vsel %vm798_vm5, %v6572_v8, %v7212_v35  ;;  %v7544_v60 = vsel %vm798_vm5, %v6576_v11, %v7216_v43  ;;  %v8081_v2 = vcombine.low %v7537_v26, %v7538_v7  ;;  %v8089_v28 = vcombine.low %v7539_v22, %v7540_v23 }
0x1b91   :  { %v8097_v17 = vcombine.low %v7541_v62, %v7542_v58  ;;  %v8105_v29 = vcombine.low %v7543_v45, %v7544_v60  ;;  %v5676_v44 = vrot.slane %v5660_v14, %v18507_v46  ;;  %v6078_v21 = vcombine.high %v6076_v38, %v6076_v38 }
0x1b92   :  { %v8088_v53 = vrot.slane %v8081_v2, %v18525_v0  ;;  %v8096_v25 = vrot.slane %v8089_v28, %v18525_v0  ;;  %v6092_v5 = vrot.slane %v6076_v38, %v18507_v46  ;;  %v5690_v37 = vrot.slane %v5662_v18, %v18507_v46 }
0x1b93   :  { %v8104_v59 = vrot.slane %v8097_v17, %v18525_v0  ;;  %v8112_v16 = vrot.slane %v8105_v29, %v18525_v0  ;;  %v5692_v47 = vcombine.high %v5676_v44, %v5676_v44  ;;  %v6106_v45 = vrot.slane %v6078_v21, %v18507_v46 }
0x1b94   :  { %v8425_v39 = vcombine.low %v8088_v53, %v8096_v25  ;;  %v6108_v62 = vcombine.high %v6092_v5, %v6092_v5  ;;  %v6580_v14 = vrot.slane %v5676_v44, %v14792_v36  ;;  %v5694_v2 = vcombine.high %v5690_v37, %v5690_v37 }
0x1b95   :  { %v8426_v8 = vcombine.low %v8104_v59, %v8112_v16  ;;  %v6584_v28 = vrot.slane %v5676_v44, %v18509_v33  ;;  %v6588_v11 = vrot.slane %v5690_v37, %v14792_v36  ;;  %v6110_v17 = vcombine.high %v6106_v45, %v6106_v45 }
0x1b96   :  { %v8433_v38 = vrot.slane %v8425_v39, %v18525_v0  ;;  %v6592_v1 = vrot.slane %v5690_v37, %v18509_v33  ;;  %v6596_v18 = vrot.slane %v5692_v47, %v14792_v36  ;;  %v6600_v35 = vrot.slane %v5692_v47, %v18509_v33 }
0x1b97   :  { %v8440_v32 = vrot.slane %v8426_v8, %v18525_v0  ;;  %v6604_v43 = vrot.slane %v5694_v2, %v14792_v36  ;;  %v6608_v26 = vrot.slane %v5694_v2, %v18509_v33  ;;  %v7220_v7 = vrot.slane %v6092_v5, %v14792_v36 }
0x1b98   :  { %v7224_v22 = vrot.slane %v6092_v5, %v18509_v33  ;;  %v7228_v23 = vrot.slane %v6106_v45, %v14792_v36  ;;  %v7232_v58 = vrot.slane %v6106_v45, %v18509_v33  ;;  %v7236_v44 = vrot.slane %v6108_v62, %v14792_v36 }
0x1b99   :  { %v17271_v60 = vcombine.high %v8433_v38, %v8440_v32  ;;  %v17273_v29 = vcombine.low %v8433_v38, %v8440_v32  ;;  %v7240_v53 = vrot.slane %v6108_v62, %v18509_v33  ;;  %v7244_v25 = vrot.slane %v6110_v17, %v14792_v36  ;;  %v18574_v32 = vld [vmem:[#allocation81_spill] sm:$0xff] }
0x1b9a   :  { %v7248_v21 = vrot.slane %v6110_v17, %v18509_v33  ;;  %v7545_v59 = vsel %vm798_vm5, %v6580_v14, %v7220_v7  ;;  %v7546_v5 = vsel %vm798_vm5, %v6584_v28, %v7224_v22  ;;  %v7547_v47 = vsel %vm798_vm5, %v6588_v11, %v7228_v23  ;;  %v18575_v11 = vld [vmem:[#allocation94_spill] sm:$0xff] }
0x1b9b   :  { %v8543_v16 = vrot.slane %v17271_v60, 1  ;;  %8901 = vmatprep.mubr.f32.mxu0 %v17271_v60  ;;  %v8541_v37 = vrot.slane %v17273_v29, 1  ;;  %v7548_v39 = vsel %vm798_vm5, %v6592_v1, %v7232_v58  ;;  %v7549_v45 = vsel %vm798_vm5, %v6596_v18, %v7236_v44  ;;  %v8748_v44 = vld [vmem:[#allocation37 + $0x3d8] sm:$0xff] }
0x1b9c   :  { %8902 = vmatmul.mubr.f32.gmra.mrb[50].mxu0 %v17273_v29  ;;  %v7550_v62 = vsel %vm798_vm5, %v6600_v35, %v7240_v53  ;;  %v7551_v14 = vsel %vm798_vm5, %v6604_v43, %v7244_v25  ;;  %v7552_v8 = vsel %vm798_vm5, %v6608_v26, %v7248_v21  ;;  %v8113_v2 = vcombine.low %v7545_v59, %v7546_v5  ;;  %v8747_v25 = vld [vmem:[#allocation37 + $0x3d0] sm:$0xff] }
0x1b9d   :  { %v8121_v28 = vcombine.low %v7547_v47, %v7548_v39  ;;  %v8129_v38 = vcombine.low %v7549_v45, %v7550_v62  ;;  %v8137_v17 = vcombine.low %v7551_v14, %v7552_v8  ;;  %v5177_v7 = vmul.f32 %v16419_v30, %v18574_v32  ;;  %v8750_v39 = vld [vmem:[#allocation37 + $0x3e8] sm:$0xff]  ;;  %v8752_v45 = vld [vmem:[#allocation37 + $0x3f8] sm:$0xff] }
0x1b9e   :  { %v5178_v1 = vmul.f32 %v16422_v20, %v18575_v11  ;;  %v5229_v22 = vadd.f32 %v18548_v15, %v17217_v63  ;;  %v5230_v18 = vadd.f32 %v18549_v54, %v17221_v55  ;;  %v8120_v35 = vrot.slane %v8113_v2, %v18525_v0  ;;  %v8746_v20 = vld [vmem:[#allocation37 + $0x3c8] sm:$0xff]  ;;  %v8745_v55 = vld [vmem:[#allocation37 + $0x3c0] sm:$0xff] }
0x1b9f   :  { %v8128_v43 = vrot.slane %v8121_v28, %v18525_v0  ;;  %v8136_v26 = vrot.slane %v8129_v38, %v18525_v0  ;;  %v8144_v23 = vrot.slane %v8137_v17, %v18525_v0  ;;  %v5231_v58 = vadd.f32 %v18550_v6, %v5177_v7  ;;  %v8749_v28 = vld [vmem:[#allocation37 + $0x3e0] sm:$0xff]  ;;  %v8751_v38 = vld [vmem:[#allocation37 + $0x3f0] sm:$0xff] }
0x1ba0   :  { %v5232_v30 = vadd.f32 %v18551_v12, %v5178_v1  ;;  %vm5261_vm11 = vcmp.ge.f32.partialorder %v5229_v22, 0.0  ;;  %vm5262_vm12 = vcmp.ge.f32.partialorder %v5230_v18, 0.0  ;;  %v5293_v53 = vmul.f32 0.01, %v5229_v22 }
0x1ba1   :  { %v8443_v15 = vcombine.low %v8120_v35, %v8128_v43  ;;  %v8444_v63 = vcombine.low %v8136_v26, %v8144_v23  ;;  %v5294_v54 = vmul.f32 0.01, %v5230_v18  ;;  %vm5263_vm13 = vcmp.ge.f32.partialorder %v5231_v58, 0.0 }
0x1ba2   :  { %vm5264_vm14 = vcmp.ge.f32.partialorder %v5232_v30, 0.0  ;;  %v5295_v21 = vmul.f32 0.01, %v5231_v58  ;;  %v5296_v59 = vmul.f32 0.01, %v5232_v30  ;;  %v5325_v12 = vsel %vm5261_vm11, %v5229_v22, %v5293_v53 }
0x1ba3   :  { %v8451_v5 = vrot.slane %v8443_v15, %v18525_v0  ;;  %v8458_v6 = vrot.slane %v8444_v63, %v18525_v0  ;;  %v5326_v47 = vsel %vm5262_vm12, %v5230_v18, %v5294_v54  ;;  %v13649_v2 = vpack.c.bf16 %v8748_v44, %v8746_v20 }
0x1ba4   :  { %v5327_v62 = vsel %vm5263_vm13, %v5231_v58, %v5295_v21  ;;  %v5328_v14 = vsel %vm5264_vm14, %v5232_v30, %v5296_v59  ;;  %v5695_v8 = vcombine.low %v5325_v12, %v5326_v47  ;;  %v13651_v11 = vpack.c.bf16 %v8747_v25, %v8745_v55 }
0x1ba5   :  { %v17309_v17 = vcombine.high %v8451_v5, %v8458_v6  ;;  %v17311_v32 = vcombine.low %v8451_v5, %v8458_v6  ;;  %v6111_v7 = vcombine.low %v5327_v62, %v5328_v14  ;;  %13650 = vmatprep.subr.bf16.mxu0 %v13649_v2  ;;  %v5696_v22 = vcombine.high %v5325_v12, %v5326_v47 }
0x1ba6   :  { %v5703_v1 = vrot.slane %v5695_v8, %v18507_v46  ;;  %v6112_v35 = vcombine.high %v5327_v62, %v5328_v14  ;;  %v13653_v18 = vpack.c.bf16 %v8752_v45, %v8750_v39  ;;  %13652 = vmatpush1.bf16.msra.mxu0 %v13651_v11  ;;  %v13655_v58 = vpack.c.bf16 %v8751_v38, %v8749_v28 }
0x1ba7   :  { %v8547_v43 = vrot.slane %v17309_v17, 1  ;;  %8907 = vmatprep.mubr.f32.mxu0 %v17309_v17  ;;  %v8545_v26 = vrot.slane %v17311_v32, 1  ;;  %v6119_v23 = vrot.slane %v6111_v7, %v18507_v46  ;;  %v5710_v44 = vrot.slane %v5696_v22, %v18507_v46 }
0x1ba8   :  { %8908 = vmatmul.mubr.f32.gmra.mrb[52].mxu0 %v17311_v32  ;;  %v5711_v30 = vcombine.high %v5703_v1, %v5703_v1  ;;  %v5719_v20 = vrot.slane %v5703_v1, %v18507_v46  ;;  %v6126_v15 = vrot.slane %v6112_v35, %v18507_v46  ;;  %13654 = vmatprep.subr.bf16.mxu0 %v13653_v18  ;;  %v18576_v54 = vrot.slane %v16622_v9, 1  ;;  %v8753_v32 = vld [vmem:[%s14616_s8] sm:$0x3]  ;;  %s14437_s8 = smov [#allocation38]  }
0x1ba9   :  { %v6127_v63 = vcombine.high %v6119_v23, %v6119_v23  ;;  %v6135_v53 = vrot.slane %v6119_v23, %v18507_v46  ;;  %v18577_v55 = vrot.slane %v16551_v41, 1  ;;  %v18578_v21 = vrot.slane %v16624_v27, 1  ;;  %s12324_s20 = sshll.u32 %s14437_s8, 4  ;;  %s12325_s20 = int_to_ptr.vmem [resolvable:$true] %s12324_s20 }
0x1baa   :  { %v18579_v59 = vrot.slane %v16553_v40, 1  ;;  %v5733_v6 = vrot.slane %v5711_v30, %v18507_v46  ;;  %v5741_v12 = vcombine.high %v5719_v20, %v5719_v20  ;;  %v6612_v47 = vrot.slane %v5719_v20, %v14792_v36  ;;  %13656 = vmatpush1.bf16.msra.mxu0 %v13655_v58  ;;  %s14321_s15 = scalar_lea.vmem %s12325_s20, 4096  ;;  %p14326_p3 = scmp.lt.s32.totalorder %s12325_s20, %s12325_s20 }
0x1bab   :  { %v17328_v25 = vsel %vm1435_vm10, %v18577_v55, %v18576_v54  ;;  %v6616_v39 = vrot.slane %v5719_v20, %v18509_v33  ;;  %v6149_v45 = vrot.slane %v6127_v63, %v18507_v46  ;;  %v6157_v41 = vcombine.high %v6135_v53, %v6135_v53  ;;  %p14322_p2 = scmp.ne.s32.totalorder %s12325_s20, %s14321_s15  ;;  %p14327_p4 = scmp.lt.s32.totalorder %s14321_s15, %s14321_s15 }
0x1bac   :  { %v17335_v5 = vsel %vm1435_vm10, %v18579_v59, %v18578_v21  ;;  %v7252_v62 = vrot.slane %v6135_v53, %v14792_v36  ;;  %v7256_v14 = vrot.slane %v6135_v53, %v18509_v33  ;;  %v5743_v8 = vcombine.high %v5733_v6, %v5733_v6 }
0x1bad   :  { %v6620_v40 = vrot.slane %v5733_v6, %v14792_v36  ;;  %v6624_v2 = vrot.slane %v5733_v6, %v18509_v33  ;;  %v6628_v28 = vrot.slane %v5741_v12, %v14792_v36  ;;  %v6159_v38 = vcombine.high %v6149_v45, %v6149_v45  ;;  %p14328_p5 = por %p14327_p4, %p14326_p3 }
0x1bae   :  { %v6632_v7 = vrot.slane %v5741_v12, %v18509_v33  ;;  %v7260_v11 = vrot.slane %v6149_v45, %v14792_v36  ;;  %v7264_v1 = vrot.slane %v6149_v45, %v18509_v33  ;;  %v6636_v22 = vrot.slane %v5743_v8, %v14792_v36 }
0x1baf   :  { %v6640_v35 = vrot.slane %v5743_v8, %v18509_v33  ;;  %v7268_v18 = vrot.slane %v6157_v41, %v14792_v36  ;;  %v7272_v23 = vrot.slane %v6157_v41, %v18509_v33  ;;  %v7276_v58 = vrot.slane %v6159_v38, %v14792_v36  ;;  %p14329_p6 = pnand %p14328_p5, %p14322_p2 }
0x1bb0   :  { %v7280_v30 = vrot.slane %v6159_v38, %v18509_v33  ;;  %v7553_v20 = vsel %vm798_vm5, %v6612_v47, %v7252_v62  ;;  %v7554_v63 = vsel %vm798_vm5, %v6616_v39, %v7256_v14  ;;  %v7555_v53 = vsel %vm798_vm5, %v6620_v40, %v7260_v11 }
0x1bb1   :  { %v7556_v54 = vsel %vm798_vm5, %v6624_v2, %v7264_v1  ;;  %v7557_v55 = vsel %vm798_vm5, %v6628_v28, %v7268_v18  ;;  %v7558_v21 = vsel %vm798_vm5, %v6632_v7, %v7272_v23  ;;  %v7559_v59 = vsel %vm798_vm5, %v6636_v22, %v7276_v58 }
0x1bb2   :  { %v7560_v6 = vsel %vm798_vm5, %v6640_v35, %v7280_v30  ;;  %v8145_v12 = vcombine.low %v7553_v20, %v7554_v63  ;;  %v8153_v45 = vcombine.low %v7555_v53, %v7556_v54  ;;  %v8161_v41 = vcombine.low %v7557_v55, %v7558_v21 }
0x1bb3   :  { %v8169_v8 = vcombine.low %v7559_v59, %v7560_v6  ;;  %v5712_v38 = vcombine.high %v5710_v44, %v5710_v44  ;;  %v5726_v47 = vrot.slane %v5710_v44, %v18507_v46  ;;  %v6128_v14 = vcombine.high %v6126_v15, %v6126_v15 }
0x1bb4   :  { %v8152_v39 = vrot.slane %v8145_v12, %v18525_v0  ;;  %v8160_v62 = vrot.slane %v8153_v45, %v18525_v0  ;;  %v6142_v40 = vrot.slane %v6126_v15, %v18507_v46  ;;  %v8168_v2 = vrot.slane %v8161_v41, %v18525_v0 }
0x1bb5   :  { %v8176_v28 = vrot.slane %v8169_v8, %v18525_v0  ;;  %v5740_v7 = vrot.slane %v5712_v38, %v18507_v46  ;;  %v5742_v11 = vcombine.high %v5726_v47, %v5726_v47  ;;  %v6156_v22 = vrot.slane %v6128_v14, %v18507_v46 }
0x1bb6   :  { %v8461_v1 = vcombine.low %v8152_v39, %v8160_v62  ;;  %v6158_v35 = vcombine.high %v6142_v40, %v6142_v40  ;;  %v6644_v44 = vrot.slane %v5726_v47, %v14792_v36  ;;  %v6648_v58 = vrot.slane %v5726_v47, %v18509_v33 }
0x1bb7   :  { %v8462_v18 = vcombine.low %v8168_v2, %v8176_v28  ;;  %v5744_v23 = vcombine.high %v5740_v7, %v5740_v7  ;;  %v6652_v30 = vrot.slane %v5740_v7, %v14792_v36  ;;  %v6160_v20 = vcombine.high %v6156_v22, %v6156_v22 }
0x1bb8   :  { %v8469_v15 = vrot.slane %v8461_v1, %v18525_v0  ;;  %v6656_v63 = vrot.slane %v5740_v7, %v18509_v33  ;;  %v6660_v53 = vrot.slane %v5742_v11, %v14792_v36  ;;  %v6664_v55 = vrot.slane %v5742_v11, %v18509_v33 }
0x1bb9   :  { %v8476_v54 = vrot.slane %v8462_v18, %v18525_v0  ;;  %v6668_v21 = vrot.slane %v5744_v23, %v14792_v36  ;;  %v6672_v59 = vrot.slane %v5744_v23, %v18509_v33  ;;  %v7284_v6 = vrot.slane %v6142_v40, %v14792_v36 }
0x1bba   :  { %v7288_v12 = vrot.slane %v6142_v40, %v18509_v33  ;;  %v7292_v45 = vrot.slane %v6156_v22, %v14792_v36  ;;  %v7296_v41 = vrot.slane %v6156_v22, %v18509_v33  ;;  %v7300_v47 = vrot.slane %v6158_v35, %v14792_v36 }
0x1bbb   :  { %v17385_v8 = vcombine.high %v8469_v15, %v8476_v54  ;;  %v17387_v38 = vcombine.low %v8469_v15, %v8476_v54  ;;  %v7304_v39 = vrot.slane %v6158_v35, %v18509_v33  ;;  %v7308_v62 = vrot.slane %v6160_v20, %v14792_v36 }
0x1bbc   :  { %v7312_v14 = vrot.slane %v6160_v20, %v18509_v33  ;;  %v7561_v2 = vsel %vm798_vm5, %v6644_v44, %v7284_v6  ;;  %v7562_v40 = vsel %vm798_vm5, %v6648_v58, %v7288_v12  ;;  %v7563_v11 = vsel %vm798_vm5, %v6652_v30, %v7292_v45 }
0x1bbd   :  { %v8551_v28 = vrot.slane %v17385_v8, 1  ;;  %8913 = vmatprep.mubr.f32.mxu0 %v17385_v8  ;;  %v8549_v7 = vrot.slane %v17387_v38, 1  ;;  %v7564_v1 = vsel %vm798_vm5, %v6656_v63, %v7296_v41  ;;  %v7565_v22 = vsel %vm798_vm5, %v6660_v53, %v7300_v47 }
0x1bbe   :  { %8914 = vmatmul.mubr.f32.gmra.mrb[54].mxu0 %v17387_v38  ;;  %v7566_v35 = vsel %vm798_vm5, %v6664_v55, %v7304_v39  ;;  %v7567_v44 = vsel %vm798_vm5, %v6668_v21, %v7308_v62  ;;  %v7568_v18 = vsel %vm798_vm5, %v6672_v59, %v7312_v14  ;;  %v8177_v23 = vcombine.low %v7561_v2, %v7562_v40 }
0x1bbf   :  { %v8185_v58 = vcombine.low %v7563_v11, %v7564_v1  ;;  %v8193_v15 = vcombine.low %v7565_v22, %v7566_v35  ;;  %v8201_v20 = vcombine.low %v7567_v44, %v7568_v18  ;;  %v18580_v54 = vrot.slane %v16704_v19, 1 }
0x1bc0   :  { %v18581_v30 = vrot.slane %v16622_v9, 1  ;;  %v18582_v6 = vrot.slane %v16706_v31, 1  ;;  %v18583_v53 = vrot.slane %v16624_v27, 1  ;;  %v18584_v21 = vrot.slane %v16749_v3, 1 }
0x1bc1   :  { %v18585_v59 = vmov %v18580_v54  ;;  %v18586_v45 = vrot.slane %v16751_v34, 1  ;;  %v8184_v47 = vrot.slane %v8177_v23, %v18525_v0  ;;  %v8192_v39 = vrot.slane %v8185_v58, %v18525_v0 }
0x1bc2   :  { %v8506_v63 = vsel %vm1435_vm10, %v18581_v30, %v18580_v54  ;;  %v8504_v55 = vsel %vm1435_vm10, %v18583_v53, %v18582_v6  ;;  %v8510_v12 = vsel %vm1435_vm10, %v18585_v59, %v18584_v21  ;;  %v18587_v41 = vmov %v18582_v6 }
0x1bc3   :  { %v8508_v9 = vsel %vm1435_vm10, %v18587_v41, %v18586_v45  ;;  %v8200_v27 = vrot.slane %v8193_v15, %v18525_v0  ;;  %v8208_v62 = vrot.slane %v8201_v20, %v18525_v0  ;;  %v18588_v14 = vrot.slane %v16835_v52, 1 }
0x1bc4   :  { %v18589_v19 = vmov %v18584_v21  ;;  %v18590_v40 = vrot.slane %v16837_v56, 1  ;;  %v18591_v31 = vmov %v18586_v45  ;;  %v18592_v1 = vrot.slane %v16865_v48, 1 }
0x1bc5   :  { %v8514_v2 = vsel %vm1435_vm10, %v18589_v19, %v18588_v14  ;;  %v18593_v22 = vmov %v18588_v14  ;;  %v18594_v44 = vrot.slane %v16867_v13, 1  ;;  %v8479_v23 = vcombine.low %v8184_v47, %v8192_v39  ;;  %v18607_v39 = vld [vmem:[#allocation72_spill] sm:$0xff] }
0x1bc6   :  { %v8512_v11 = vsel %vm1435_vm10, %v18591_v31, %v18590_v40  ;;  %v8518_v35 = vsel %vm1435_vm10, %v18593_v22, %v18592_v1  ;;  %v18595_v18 = vmov %v18590_v40  ;;  %v8480_v58 = vcombine.low %v8200_v27, %v8208_v62  ;;  %v18613_v22 = vld [vmem:[#allocation83_spill] sm:$0xff] }
0x1bc7   :  { %v8516_v3 = vsel %vm1435_vm10, %v18595_v18, %v18594_v44  ;;  %v18596_v15 = vrot.slane %v16951_v24, 1  ;;  %v18597_v34 = vmov %v18592_v1  ;;  %v18598_v54 = vrot.slane %v16953_v50, 1 }
0x1bc8   :  { %v18599_v52 = vmov %v18594_v44  ;;  %v18600_v6 = vrot.slane %v16985_v42, 1  ;;  %v18602_v21 = vrot.slane %v16987_v61, 1  ;;  %v18604_v45 = vrot.slane %v17093_v10, 1 }
0x1bc9   :  { %v8522_v20 = vsel %vm1435_vm10, %v18597_v34, %v18596_v15  ;;  %v8520_v30 = vsel %vm1435_vm10, %v18599_v52, %v18598_v54  ;;  %v18601_v56 = vmov %v18596_v15  ;;  %v18603_v59 = vmov %v18598_v54  ;;  %v18616_v15 = vld [vmem:[#allocation70_spill] sm:$0xff] }
0x1bca   :  { %v8526_v53 = vsel %vm1435_vm10, %v18601_v56, %v18600_v6  ;;  %v8524_v48 = vsel %vm1435_vm10, %v18603_v59, %v18602_v21  ;;  %v18605_v41 = vrot.slane %v17055_v49, 1  ;;  %v18606_v47 = vrot.slane %v17095_v57, 1 }
0x1bcb   :  { %v18608_v27 = vrot.slane %v18607_v39, 1  ;;  %v8487_v62 = vrot.slane %v8479_v23, %v18525_v0  ;;  %v8494_v14 = vrot.slane %v8480_v58, %v18525_v0  ;;  %v18609_v50 = vrot.slane %v17163_v51, 1 }
0x1bcc   :  { %v8532_v13 = vsel %vm1435_vm10, %v18605_v41, %v18604_v45  ;;  %v18610_v19 = vmov %v18604_v45  ;;  %v18611_v49 = vrot.slane %v17165_v4, 1  ;;  %v18612_v31 = vmov %v18606_v47 }
0x1bcd   :  { %v8529_v24 = vsel %vm1435_vm10, %v18608_v27, %v18606_v47  ;;  %v8536_v40 = vsel %vm1435_vm10, %v18610_v19, %v18609_v50  ;;  %v18614_v44 = vrot.slane %v18613_v22, 1  ;;  %v18615_v18 = vmov %v18609_v50 }
0x1bce   :  { %v8534_v1 = vsel %vm1435_vm10, %v18612_v31, %v18611_v49  ;;  %v18617_v58 = vrot.slane %v18616_v15, 1  ;;  %v18618_v34 = vmov %v18611_v49  ;;  %v8496_v6 = vcombine.high %v8487_v62, %v8494_v14 }
0x1bcf   :  { %v8540_v23 = vsel %vm1435_vm10, %v18615_v18, %v18614_v44  ;;  %v18619_v54 = vmov %v18614_v44  ;;  %v8548_v4 = vsel %vm1435_vm10, %v8543_v16, %v8547_v43  ;;  %v8546_v56 = vsel %vm1435_vm10, %v8541_v37, %v8545_v26 }
0x1bd0   :  { %v8538_v10 = vsel %vm1435_vm10, %v18618_v34, %v18617_v58  ;;  %v8544_v57 = vsel %vm1435_vm10, %v18619_v54, %v8543_v16  ;;  %v18620_v52 = vmov %v18617_v58  ;;  %v8495_v21 = vcombine.low %v8487_v62, %v8494_v14  ;;  %8919 = vmatprep.mubr.f32.mxu0 %v8496_v6 }
0x1bd1   :  { %v8542_v51 = vsel %vm1435_vm10, %v18620_v52, %v8541_v37  ;;  %v8552_v59 = vsel %vm1435_vm10, %v8547_v43, %v8551_v28  ;;  %v8550_v60 = vsel %vm1435_vm10, %v8545_v26, %v8549_v7  ;;  %v18621_v29 = vrot.slane %v16985_v42, 1 }
0x1bd2   :  { %8920 = vmatmul.mubr.f32.gmra.mrb[56].mxu0 %v8495_v21  ;;  %v18622_v16 = vrot.slane %v16987_v61, 1  ;;  %v8555_v37 = vrot.slane %v8496_v6, 1  ;;  %v8553_v42 = vrot.slane %v8495_v21, 1  ;;  %v17549_v43 = vrot.slane %v8753_v32, %v14792_v36 }
0x1bd3   :  { %8990 = vmatprep.mubr.f32.mxu0 %v17328_v25  ;;  %v17552_v26 = vrot.slane %v8753_v32, %v18509_v33 }
0x1bd4   :  { %v8556_v61 = vsel %vm1435_vm10, %v8551_v28, %v8555_v37  ;;  %v8554_v17 = vsel %vm1435_vm10, %v8549_v7, %v8553_v42 }
0x1bd6   :  { %8991 = vmatmul.mubr.f32.vlgmr.msra.gmra.mrb[26].mxu0 %v17335_v5 }
0x1bd7   :  { %8996 = vmatprep.mubr.f32.mxu0 %v8506_v63 }
0x1bda   :  { %8997 = vmatmul.mubr.f32.gmra.mrb[28].mxu0 %v8504_v55 }
0x1bdb   :  { %9002 = vmatprep.mubr.f32.mxu0 %v8510_v12 }
0x1bde   :  { %9003 = vmatmul.mubr.f32.gmra.mrb[30].mxu0 %v8508_v9 }
0x1bdf   :  { %9008 = vmatprep.mubr.f32.mxu0 %v8514_v2 }
0x1be2   :  { %9009 = vmatmul.mubr.f32.gmra.mrb[32].mxu0 %v8512_v11 }
0x1be3   :  { %9014 = vmatprep.mubr.f32.mxu0 %v8518_v35 }
0x1be6   :  { %9015 = vmatmul.mubr.f32.gmra.mrb[34].mxu0 %v8516_v3 }
0x1be7   :  { %9020 = vmatprep.mubr.f32.mxu0 %v8522_v20 }
0x1bea   :  { %9021 = vmatmul.mubr.f32.gmra.mrb[36].mxu0 %v8520_v30 }
0x1beb   :  { %9026 = vmatprep.mubr.f32.mxu0 %v8526_v53 }
0x1bee   :  { %9027 = vmatmul.mubr.f32.gmra.mrb[38].mxu0 %v8524_v48 }
0x1bef   :  { %12415 = vmatprep.mubr.msk.f32.mxu0 %vm1435_vm10, %v18621_v29 }
0x1bf2   :  { %12416 = vmatmul.mubr.msk.f32.gmra.mrb[40].mxu0 %vm1435_vm10, %v18622_v16 }
0x1bf3   :  { %9038 = vmatprep.mubr.f32.mxu0 %v8532_v13 }
0x1bf6   :  { %9039 = vmatmul.mubr.f32.gmra.mrb[42].mxu0 %v8529_v24 }
0x1bf7   :  { %9044 = vmatprep.mubr.f32.mxu0 %v8536_v40 }
0x1bfa   :  { %9045 = vmatmul.mubr.f32.gmra.mrb[44].mxu0 %v8534_v1 }
0x1bfb   :  { %9050 = vmatprep.mubr.f32.mxu0 %v8540_v23 }
0x1bfe   :  { %9051 = vmatmul.mubr.f32.gmra.mrb[46].mxu0 %v8538_v10 }
0x1bff   :  { %9056 = vmatprep.mubr.f32.mxu0 %v8544_v57 }
0x1c02   :  { %9057 = vmatmul.mubr.f32.gmra.mrb[48].mxu0 %v8542_v51 }
0x1c03   :  { %9062 = vmatprep.mubr.f32.mxu0 %v8548_v4 }
0x1c06   :  { %9063 = vmatmul.mubr.f32.gmra.mrb[50].mxu0 %v8546_v56 }
0x1c07   :  { %9068 = vmatprep.mubr.f32.mxu0 %v8552_v59 }
0x1c0a   :  { %9069 = vmatmul.mubr.f32.gmra.mrb[52].mxu0 %v8550_v60 }
0x1c0b   :  { %9074 = vmatprep.mubr.f32.mxu0 %v8556_v61 }
0x1c0e   :  { %9075 = vmatmul.mubr.f32.gmra.mrb[54].mxu0 %v8554_v17 }
0x1c0f   :  { %12417 = vmatprep.mubr.msk.f32.mxu0 %vm1435_vm10, %v8555_v37 }
0x1c12   :  { %12418 = vmatmul.mubr.msk.f32.gmra.mrb[56].mxu0 %vm1435_vm10, %v8553_v42 }
0x1ca9   :  { %v8992_v25 = vpop.f32.mrb[26].mxu0 }
0x1caa   :  { %v13657_v5 = vadd.f32 %v8992_v25, %v17549_v43  ;;  %v8994_v8 = vpop.f32.mrb[27].mxu0 }
0x1cab   :  { %v13658_v38 = vadd.f32 %v8994_v8, %v17552_v26 }
0x1cac   :  { %v9103_v28 = vcombine.high %v13657_v5, %v13657_v5  ;;  %v9110_v7 = vrot.slane %v13657_v5, %v18507_v46 }
0x1cad   :  { %v10031_v63 = vcombine.high %v13658_v38, %v13658_v38  ;;  %v10038_v55 = vrot.slane %v13658_v38, %v18507_v46  ;;  %v8998_v12 = vpop.f32.mrb[28].mxu0 }
0x1cae   :  { %v9117_v9 = vrot.slane %v9103_v28, %v18507_v46  ;;  %v9118_v2 = vcombine.high %v9110_v7, %v9110_v7  ;;  %v9126_v11 = vrot.slane %v9110_v7, %v18507_v46  ;;  %v13659_v33 = vadd.f32 %v8998_v12, %v17549_v43  ;;  %v9000_v35 = vpop.f32.mrb[29].mxu0 }
0x1caf   :  { %v10045_v3 = vrot.slane %v10031_v63, %v18507_v46  ;;  %v10046_v20 = vcombine.high %v10038_v55, %v10038_v55  ;;  %v10054_v30 = vrot.slane %v10038_v55, %v18507_v46  ;;  %v13660_v53 = vadd.f32 %v9000_v35, %v17552_v26 }
0x1cb0   :  { %v9119_v48 = vcombine.high %v9117_v9, %v9117_v9  ;;  %v9133_v45 = vrot.slane %v9117_v9, %v18507_v46  ;;  %v9140_v41 = vrot.slane %v9118_v2, %v18507_v46  ;;  %v9148_v13 = vcombine.high %v9126_v11, %v9126_v11 }
0x1cb1   :  { %v10047_v47 = vcombine.high %v10045_v3, %v10045_v3  ;;  %v10061_v39 = vrot.slane %v10045_v3, %v18507_v46  ;;  %v10068_v27 = vrot.slane %v10046_v20, %v18507_v46  ;;  %v10076_v24 = vcombine.high %v10054_v30, %v10054_v30  ;;  %v17568_v62 = vpop.f32.mrb[30].mxu0 }
0x1cb2   :  { %v9147_v14 = vrot.slane %v9119_v48, %v18507_v46  ;;  %v9149_v50 = vcombine.high %v9133_v45, %v9133_v45  ;;  %v9150_v19 = vcombine.high %v9140_v41, %v9140_v41  ;;  %v10818_v40 = vrot.slane %v10054_v30, %v14792_v36  ;;  %v17572_v49 = vpop.f32.mrb[31].mxu0 }
0x1cb3   :  { %v10075_v31 = vrot.slane %v10047_v47, %v18507_v46  ;;  %v10077_v1 = vcombine.high %v10061_v39, %v10061_v39  ;;  %v10078_v22 = vcombine.high %v10068_v27, %v10068_v27  ;;  %v10822_v44 = vrot.slane %v10068_v27, %v14792_v36 }
0x1cb4   :  { %v9151_v18 = vcombine.high %v9147_v14, %v9147_v14  ;;  %v10826_v23 = vrot.slane %v10076_v24, %v14792_v36  ;;  %v10834_v15 = vrot.slane %v10061_v39, %v14792_v36  ;;  %v11455_v58 = vsel %vm798_vm5, %v9126_v11, %v10818_v40 }
0x1cb5   :  { %v10079_v34 = vcombine.high %v10075_v31, %v10075_v31  ;;  %v10830_v10 = vrot.slane %v10078_v22, %v14792_v36  ;;  %v10838_v54 = vrot.slane %v10075_v31, %v14792_v36  ;;  %v10842_v57 = vrot.slane %v10077_v1, %v14792_v36  ;;  %v17582_v52 = vpop.f32.mrb[32].mxu0 }
0x1cb6   :  { %v11456_v51 = vsel %vm798_vm5, %v9140_v41, %v10822_v44  ;;  %v11457_v6 = vsel %vm798_vm5, %v9148_v13, %v10826_v23  ;;  %v11459_v4 = vsel %vm798_vm5, %v9133_v45, %v10834_v15  ;;  %v9152_v56 = vcombine.high %v13659_v33, %v13659_v33  ;;  %v17587_v21 = vpop.f32.mrb[33].mxu0 }
0x1cb7   :  { %v10846_v59 = vrot.slane %v10079_v34, %v14792_v36  ;;  %v11458_v60 = vsel %vm798_vm5, %v9150_v19, %v10830_v10  ;;  %v11460_v29 = vsel %vm798_vm5, %v9147_v14, %v10838_v54  ;;  %v11461_v16 = vsel %vm798_vm5, %v9149_v50, %v10842_v57 }
0x1cb8   :  { %v11711_v37 = vcombine.low %v11455_v58, %v11456_v51  ;;  %v11712_v42 = vcombine.low %v11457_v6, %v11458_v60  ;;  %v11728_v61 = vcombine.low %v11459_v4, %v11460_v29  ;;  %v9159_v17 = vrot.slane %v13659_v33, %v18507_v46 }
0x1cb9   :  { %v11462_v32 = vsel %vm798_vm5, %v9151_v18, %v10846_v59  ;;  %v9166_v25 = vrot.slane %v9152_v56, %v18507_v46  ;;  %v10080_v5 = vcombine.high %v13660_v53, %v13660_v53  ;;  %v10087_v8 = vrot.slane %v13660_v53, %v18507_v46  ;;  %v17597_v38 = vpop.f32.mrb[34].mxu0 }
0x1cba   :  { %v11719_v28 = vrot.slane %v11711_v37, %v18525_v0  ;;  %v11726_v7 = vrot.slane %v11712_v42, %v18525_v0  ;;  %v11729_v63 = vcombine.low %v11461_v16, %v11462_v32  ;;  %v11736_v55 = vrot.slane %v11728_v61, %v18525_v0  ;;  %v17602_v12 = vpop.f32.mrb[35].mxu0 }
0x1cbb   :  { %v9167_v9 = vcombine.high %v9159_v17, %v9159_v17  ;;  %v9168_v2 = vcombine.high %v9166_v25, %v9166_v25  ;;  %v9175_v11 = vrot.slane %v9159_v17, %v18507_v46  ;;  %v9182_v33 = vrot.slane %v9166_v25, %v18507_v46 }
0x1cbc   :  { %v11727_v35 = vcombine.low %v11719_v28, %v11726_v7  ;;  %v11743_v3 = vrot.slane %v11729_v63, %v18525_v0  ;;  %v10094_v20 = vrot.slane %v10080_v5, %v18507_v46  ;;  %v10095_v30 = vcombine.high %v10087_v8, %v10087_v8 }
0x1cbd   :  { %v9189_v53 = vrot.slane %v9167_v9, %v18507_v46  ;;  %v9196_v48 = vrot.slane %v9168_v2, %v18507_v46  ;;  %v9197_v45 = vcombine.high %v9175_v11, %v9175_v11  ;;  %v9198_v41 = vcombine.high %v9182_v33, %v9182_v33  ;;  %v17610_v13 = vpop.f32.mrb[36].mxu0 }
0x1cbe   :  { %v11744_v47 = vcombine.low %v11736_v55, %v11743_v3  ;;  %12287 = vst [vmem:[#allocation38] sm:$0xff] %v11727_v35  ;;  %v10096_v39 = vcombine.high %v10094_v20, %v10094_v20  ;;  %v10103_v27 = vrot.slane %v10087_v8, %v18507_v46  ;;  %v10110_v24 = vrot.slane %v10094_v20, %v18507_v46  ;;  %v17614_v14 = vpop.f32.mrb[37].mxu0 }
0x1cbf   :  { %v9199_v50 = vcombine.high %v9189_v53, %v9189_v53  ;;  %v9200_v19 = vcombine.high %v9196_v48, %v9196_v48  ;;  %v10117_v40 = vrot.slane %v10095_v30, %v18507_v46  ;;  %v13661_v31 = vadd.f32 %v17568_v62, %v17549_v43 }
0x1cc0   :  { %12288 = vst [vmem:[#allocation38 + $0x8] sm:$0xff] %v11744_v47  ;;  %v10124_v1 = vrot.slane %v10096_v39, %v18507_v46  ;;  %v10125_v22 = vcombine.high %v10103_v27, %v10103_v27  ;;  %v10126_v44 = vcombine.high %v10110_v24, %v10110_v24  ;;  %v10850_v18 = vrot.slane %v10103_v27, %v14792_v36 }
0x1cc1   :  { %v10127_v23 = vcombine.high %v10117_v40, %v10117_v40  ;;  %v10854_v15 = vrot.slane %v10117_v40, %v14792_v36  ;;  %v10866_v58 = vrot.slane %v10110_v24, %v14792_v36  ;;  %v9201_v34 = vcombine.high %v13661_v31, %v13661_v31  ;;  %v17623_v10 = vpop.f32.mrb[38].mxu0 }
0x1cc2   :  { %v10128_v54 = vcombine.high %v10124_v1, %v10124_v1  ;;  %v10858_v57 = vrot.slane %v10125_v22, %v14792_v36  ;;  %v10870_v62 = vrot.slane %v10124_v1, %v14792_v36  ;;  %v10874_v51 = vrot.slane %v10126_v44, %v14792_v36  ;;  %v17628_v6 = vpop.f32.mrb[39].mxu0 }
0x1cc3   :  { %v10862_v4 = vrot.slane %v10127_v23, %v14792_v36  ;;  %v11463_v56 = vsel %vm798_vm5, %v9175_v11, %v10850_v18  ;;  %v11464_v59 = vsel %vm798_vm5, %v9189_v53, %v10854_v15  ;;  %v11467_v60 = vsel %vm798_vm5, %v9182_v33, %v10866_v58 }
0x1cc4   :  { %v10878_v29 = vrot.slane %v10128_v54, %v14792_v36  ;;  %v11465_v16 = vsel %vm798_vm5, %v9197_v45, %v10858_v57  ;;  %v11468_v37 = vsel %vm798_vm5, %v9196_v48, %v10870_v62  ;;  %v11469_v42 = vsel %vm798_vm5, %v9198_v41, %v10874_v51 }
0x1cc5   :  { %v11466_v61 = vsel %vm798_vm5, %v9199_v50, %v10862_v4  ;;  %v11745_v17 = vcombine.low %v11463_v56, %v11464_v59  ;;  %v11762_v32 = vcombine.low %v11467_v60, %v11468_v37  ;;  %v9208_v25 = vrot.slane %v13661_v31, %v18507_v46  ;;  %v17640_v5 = vpop.f32.mrb[40].mxu0 }
0x1cc6   :  { %v11470_v8 = vsel %vm798_vm5, %v9200_v19, %v10878_v29  ;;  %v11746_v28 = vcombine.low %v11465_v16, %v11466_v61  ;;  %v9215_v7 = vrot.slane %v9201_v34, %v18507_v46  ;;  %v13662_v63 = vadd.f32 %v17572_v49, %v17552_v26  ;;  %v17646_v55 = vpop.f32.mrb[41].mxu0 }
0x1cc7   :  { %v11753_v9 = vrot.slane %v11745_v17, %v18525_v0  ;;  %v11763_v2 = vcombine.low %v11469_v42, %v11470_v8  ;;  %v11770_v11 = vrot.slane %v11762_v32, %v18525_v0  ;;  %v9216_v33 = vcombine.high %v9208_v25, %v9208_v25 }
0x1cc8   :  { %v11760_v35 = vrot.slane %v11746_v28, %v18525_v0  ;;  %v9217_v3 = vcombine.high %v9215_v7, %v9215_v7  ;;  %v9224_v20 = vrot.slane %v9208_v25, %v18507_v46  ;;  %v9231_v30 = vrot.slane %v9215_v7, %v18507_v46 }
0x1cc9   :  { %v11777_v53 = vrot.slane %v11763_v2, %v18525_v0  ;;  %v9238_v48 = vrot.slane %v9216_v33, %v18507_v46  ;;  %v10129_v49 = vcombine.high %v13662_v63, %v13662_v63  ;;  %v10136_v45 = vrot.slane %v13662_v63, %v18507_v46  ;;  %v17656_v41 = vpop.f32.mrb[42].mxu0 }
0x1cca   :  { %v11761_v47 = vcombine.low %v11753_v9, %v11760_v35  ;;  %v9245_v39 = vrot.slane %v9217_v3, %v18507_v46  ;;  %v9246_v27 = vcombine.high %v9224_v20, %v9224_v20  ;;  %v9247_v24 = vcombine.high %v9231_v30, %v9231_v30  ;;  %v17659_v50 = vpop.f32.mrb[43].mxu0 }
0x1ccb   :  { %v11778_v19 = vcombine.low %v11770_v11, %v11777_v53  ;;  %v9248_v40 = vcombine.high %v9238_v48, %v9238_v48  ;;  %v10143_v31 = vrot.slane %v10129_v49, %v18507_v46  ;;  %v10144_v1 = vcombine.high %v10136_v45, %v10136_v45 }
0x1ccc   :  { %12289 = vst [vmem:[#allocation38 + $0x10] sm:$0xff] %v11761_v47  ;;  %v9249_v22 = vcombine.high %v9245_v39, %v9245_v39  ;;  %v10152_v44 = vrot.slane %v10136_v45, %v18507_v46  ;;  %v13663_v18 = vadd.f32 %v17582_v52, %v17549_v43  ;;  %v17667_v23 = vadd.f32 %v17587_v21, %v17552_v26 }
0x1ccd   :  { %12290 = vst [vmem:[#allocation38 + $0x18] sm:$0xff] %v11778_v19  ;;  %v10145_v15 = vcombine.high %v10143_v31, %v10143_v31  ;;  %v10159_v58 = vrot.slane %v10143_v31, %v18507_v46  ;;  %v10166_v34 = vrot.slane %v10144_v1, %v18507_v46  ;;  %v17673_v54 = vadd.f32 %v17597_v38, %v17549_v43  ;;  %v17675_v57 = vpop.f32.mrb[44].mxu0 }
0x1cce   :  { %v10174_v62 = vcombine.high %v10152_v44, %v10152_v44  ;;  %v10882_v51 = vrot.slane %v10152_v44, %v14792_v36  ;;  %v9250_v52 = vcombine.high %v13663_v18, %v13663_v18  ;;  %v9257_v4 = vrot.slane %v13663_v18, %v18507_v46  ;;  %v17679_v21 = vpop.f32.mrb[45].mxu0 }
0x1ccf   :  { %v10173_v56 = vrot.slane %v10145_v15, %v18507_v46  ;;  %v10175_v59 = vcombine.high %v10159_v58, %v10159_v58  ;;  %v10176_v60 = vcombine.high %v10166_v34, %v10166_v34  ;;  %v10886_v29 = vrot.slane %v10166_v34, %v14792_v36 }
0x1cd0   :  { %v10890_v16 = vrot.slane %v10174_v62, %v14792_v36  ;;  %v10898_v38 = vrot.slane %v10159_v58, %v14792_v36  ;;  %v11471_v37 = vsel %vm798_vm5, %v9224_v20, %v10882_v51  ;;  %v9264_v42 = vrot.slane %v9250_v52, %v18507_v46 }
0x1cd1   :  { %v10177_v61 = vcombine.high %v10173_v56, %v10173_v56  ;;  %v10894_v17 = vrot.slane %v10176_v60, %v14792_v36  ;;  %v10902_v32 = vrot.slane %v10173_v56, %v14792_v36  ;;  %v10906_v25 = vrot.slane %v10175_v59, %v14792_v36  ;;  %v17690_v8 = vpop.f32.mrb[46].mxu0 }
0x1cd2   :  { %v11472_v28 = vsel %vm798_vm5, %v9238_v48, %v10886_v29  ;;  %v11473_v7 = vsel %vm798_vm5, %v9246_v27, %v10890_v16  ;;  %v11475_v63 = vsel %vm798_vm5, %v9231_v30, %v10898_v38  ;;  %v9265_v9 = vcombine.high %v9257_v4, %v9257_v4  ;;  %v17695_v2 = vpop.f32.mrb[47].mxu0 }
0x1cd3   :  { %v10910_v11 = vrot.slane %v10177_v61, %v14792_v36  ;;  %v11474_v33 = vsel %vm798_vm5, %v9248_v40, %v10894_v17  ;;  %v11476_v35 = vsel %vm798_vm5, %v9245_v39, %v10902_v32  ;;  %v11477_v3 = vsel %vm798_vm5, %v9247_v24, %v10906_v25 }
0x1cd4   :  { %v11779_v20 = vcombine.low %v11471_v37, %v11472_v28  ;;  %v11780_v53 = vcombine.low %v11473_v7, %v11474_v33  ;;  %v11796_v49 = vcombine.low %v11475_v63, %v11476_v35  ;;  %v9266_v45 = vcombine.high %v9264_v42, %v9264_v42 }
0x1cd5   :  { %v11478_v48 = vsel %vm798_vm5, %v9249_v22, %v10910_v11  ;;  %v9273_v47 = vrot.slane %v9257_v4, %v18507_v46  ;;  %v17704_v30 = vrot.slane %v9264_v42, %v18507_v46  ;;  %v9287_v27 = vrot.slane %v9265_v9, %v18507_v46  ;;  %v17707_v19 = vpop.f32.mrb[48].mxu0 }
0x1cd6   :  { %v11787_v40 = vrot.slane %v11779_v20, %v18525_v0  ;;  %v11794_v39 = vrot.slane %v11780_v53, %v18525_v0  ;;  %v11797_v24 = vcombine.low %v11477_v3, %v11478_v48  ;;  %v11804_v31 = vrot.slane %v11796_v49, %v18525_v0  ;;  %v17712_v1 = vpop.f32.mrb[49].mxu0 }
0x1cd7   :  { %v9294_v22 = vrot.slane %v9266_v45, %v18507_v46  ;;  %v9295_v44 = vcombine.high %v9273_v47, %v9273_v47  ;;  %v9296_v18 = vcombine.high %v17704_v30, %v17704_v30  ;;  %v9297_v15 = vcombine.high %v9287_v27, %v9287_v27 }
0x1cd8   :  { %v11795_v58 = vcombine.low %v11787_v40, %v11794_v39  ;;  %v11811_v34 = vrot.slane %v11797_v24, %v18525_v0  ;;  %v10178_v62 = vcombine.high %v17667_v23, %v17667_v23  ;;  %v10185_v51 = vrot.slane %v17667_v23, %v18507_v46 }
0x1cd9   :  { %v9298_v52 = vcombine.high %v9294_v22, %v9294_v22  ;;  %v9299_v4 = vcombine.high %v17673_v54, %v17673_v54  ;;  %v9306_v56 = vrot.slane %v17673_v54, %v18507_v46  ;;  %v13666_v59 = vadd.f32 %v17602_v12, %v17552_v26  ;;  %v17728_v60 = vpop.f32.mrb[50].mxu0 }
0x1cda   :  { %v11812_v29 = vcombine.low %v11804_v31, %v11811_v34  ;;  %12291 = vst [vmem:[#allocation38 + $0x20] sm:$0xff] %v11795_v58  ;;  %v10192_v16 = vrot.slane %v10178_v62, %v18507_v46  ;;  %v10193_v38 = vcombine.high %v10185_v51, %v10185_v51  ;;  %v10201_v37 = vrot.slane %v10185_v51, %v18507_v46  ;;  %v17732_v23 = vpop.f32.mrb[51].mxu0 }
0x1cdb   :  { %v9313_v42 = vrot.slane %v9299_v4, %v18507_v46  ;;  %v9314_v61 = vcombine.high %v9306_v56, %v9306_v56  ;;  %v17736_v17 = vrot.slane %v9306_v56, %v18507_v46  ;;  %v10227_v54 = vcombine.high %v13666_v59, %v13666_v59 }
0x1cdc   :  { %12292 = vst [vmem:[#allocation38 + $0x28] sm:$0xff] %v11812_v29  ;;  %v10194_v12 = vcombine.high %v10192_v16, %v10192_v16  ;;  %v10208_v32 = vrot.slane %v10192_v16, %v18507_v46  ;;  %v10215_v25 = vrot.slane %v10193_v38, %v18507_v46  ;;  %v10223_v28 = vcombine.high %v10201_v37, %v10201_v37 }
0x1cdd   :  { %v10914_v7 = vrot.slane %v10201_v37, %v14792_v36  ;;  %v9315_v63 = vcombine.high %v9313_v42, %v9313_v42  ;;  %v17742_v9 = vrot.slane %v9313_v42, %v18507_v46  ;;  %v17745_v11 = vrot.slane %v9314_v61, %v18507_v46  ;;  %v17747_v33 = vpop.f32.mrb[52].mxu0 }
0x1cde   :  { %v10222_v35 = vrot.slane %v10194_v12, %v18507_v46  ;;  %v10224_v3 = vcombine.high %v10208_v32, %v10208_v32  ;;  %v10225_v20 = vcombine.high %v10215_v25, %v10215_v25  ;;  %v10918_v53 = vrot.slane %v10215_v25, %v14792_v36  ;;  %v17751_v49 = vpop.f32.mrb[53].mxu0 }
0x1cdf   :  { %v10922_v45 = vrot.slane %v10223_v28, %v14792_v36  ;;  %v10930_v48 = vrot.slane %v10208_v32, %v14792_v36  ;;  %v11479_v40 = vsel %vm798_vm5, %v9273_v47, %v10914_v7  ;;  %v17757_v39 = vrot.slane %v9315_v63, %v18507_v46 }
0x1ce0   :  { %v10226_v24 = vcombine.high %v10222_v35, %v10222_v35  ;;  %v10926_v31 = vrot.slane %v10225_v20, %v14792_v36  ;;  %v10934_v58 = vrot.slane %v10222_v35, %v14792_v36  ;;  %v10938_v34 = vrot.slane %v10224_v3, %v14792_v36 }
0x1ce1   :  { %v11480_v62 = vsel %vm798_vm5, %v9287_v27, %v10918_v53  ;;  %v11481_v51 = vsel %vm798_vm5, %v9295_v44, %v10922_v45  ;;  %v11483_v4 = vsel %vm798_vm5, %v17704_v30, %v10930_v48  ;;  %v9344_v47 = vcombine.high %v17736_v17, %v17736_v17  ;;  %v17768_v56 = vpop.f32.mrb[54].mxu0 }
0x1ce2   :  { %v10942_v29 = vrot.slane %v10226_v24, %v14792_v36  ;;  %v11482_v16 = vsel %vm798_vm5, %v9297_v15, %v10926_v31  ;;  %v11484_v38 = vsel %vm798_vm5, %v9294_v22, %v10934_v58  ;;  %v11485_v37 = vsel %vm798_vm5, %v9296_v18, %v10938_v34  ;;  %v17776_v30 = vpop.f32.mrb[55].mxu0 }
0x1ce3   :  { %v11813_v42 = vcombine.low %v11479_v40, %v11480_v62  ;;  %v11814_v27 = vcombine.low %v11481_v51, %v11482_v16  ;;  %v11830_v61 = vcombine.low %v11483_v4, %v11484_v38  ;;  %v9345_v44 = vcombine.high %v17742_v9, %v17742_v9 }
0x1ce4   :  { %v11486_v12 = vsel %vm798_vm5, %v9298_v52, %v10942_v29  ;;  %v9346_v32 = vcombine.high %v17745_v11, %v17745_v11  ;;  %v9347_v15 = vcombine.high %v17757_v39, %v17757_v39  ;;  %v10234_v22 = vrot.slane %v13666_v59, %v18507_v46 }
0x1ce5   :  { %v11821_v18 = vrot.slane %v11813_v42, %v18525_v0  ;;  %v11828_v25 = vrot.slane %v11814_v27, %v18525_v0  ;;  %v11831_v28 = vcombine.low %v11485_v37, %v11486_v12  ;;  %v11838_v7 = vrot.slane %v11830_v61, %v18525_v0 }
0x1ce6   :  { %v10241_v63 = vrot.slane %v10227_v54, %v18507_v46  ;;  %v10242_v35 = vcombine.high %v10234_v22, %v10234_v22  ;;  %v10250_v52 = vrot.slane %v10234_v22, %v18507_v46  ;;  %v13667_v3 = vadd.f32 %v17610_v13, %v17549_v43 }
0x1ce7   :  { %v11829_v20 = vcombine.low %v11821_v18, %v11828_v25  ;;  %v11845_v53 = vrot.slane %v11831_v28, %v18525_v0  ;;  %v13668_v59 = vadd.f32 %v17614_v14, %v17552_v26  ;;  %v17796_v45 = vadd.f32 %v17623_v10, %v17549_v43  ;;  %v17817_v28 = vpop.f32.mrb[56].mxu0 }
0x1ce8   :  { %v10243_v48 = vcombine.high %v10241_v63, %v10241_v63  ;;  %v10257_v40 = vrot.slane %v10241_v63, %v18507_v46  ;;  %v10264_v54 = vrot.slane %v10242_v35, %v18507_v46  ;;  %v10272_v24 = vcombine.high %v10250_v52, %v10250_v52 }
0x1ce9   :  { %v11846_v31 = vcombine.low %v11838_v7, %v11845_v53  ;;  %12293 = vst [vmem:[#allocation38 + $0x30] sm:$0xff] %v11829_v20  ;;  %v10946_v13 = vrot.slane %v10250_v52, %v14792_v36  ;;  %v9348_v58 = vcombine.high %v13667_v3, %v13667_v3  ;;  %v9355_v34 = vrot.slane %v13667_v3, %v18507_v46 }
0x1cea   :  { %v10271_v62 = vrot.slane %v10243_v48, %v18507_v46  ;;  %v10273_v14 = vcombine.high %v10257_v40, %v10257_v40  ;;  %v10274_v51 = vcombine.high %v10264_v54, %v10264_v54  ;;  %v10950_v10 = vrot.slane %v10264_v54, %v14792_v36 }
0x1ceb   :  { %12294 = vst [vmem:[#allocation38 + $0x38] sm:$0xff] %v11846_v31  ;;  %v10954_v4 = vrot.slane %v10272_v24, %v14792_v36  ;;  %v10962_v29 = vrot.slane %v10257_v40, %v14792_v36  ;;  %v11487_v16 = vsel %vm798_vm5, %v17736_v17, %v10946_v13  ;;  %v9362_v38 = vrot.slane %v9348_v58, %v18507_v46 }
0x1cec   :  { %v10275_v37 = vcombine.high %v10271_v62, %v10271_v62  ;;  %v10958_v42 = vrot.slane %v10274_v51, %v14792_v36  ;;  %v10966_v27 = vrot.slane %v10271_v62, %v14792_v36  ;;  %v10970_v61 = vrot.slane %v10273_v14, %v14792_v36  ;;  %v17834_v14 = vpop.f32.mrb[57].mxu0 }
0x1ced   :  { %v11488_v12 = vsel %vm798_vm5, %v17745_v11, %v10950_v10  ;;  %v11489_v22 = vsel %vm798_vm5, %v9344_v47, %v10954_v4  ;;  %v11491_v18 = vsel %vm798_vm5, %v17742_v9, %v10962_v29  ;;  %v9363_v25 = vcombine.high %v9355_v34, %v9355_v34 }
0x1cee   :  { %v10974_v17 = vrot.slane %v10275_v37, %v14792_v36  ;;  %v11490_v7 = vsel %vm798_vm5, %v9346_v32, %v10958_v42  ;;  %v11492_v63 = vsel %vm798_vm5, %v17757_v39, %v10966_v27  ;;  %v11493_v35 = vsel %vm798_vm5, %v9345_v44, %v10970_v61 }
0x1cef   :  { %v11847_v52 = vcombine.low %v11487_v16, %v11488_v12  ;;  %v11848_v3 = vcombine.low %v11489_v22, %v11490_v7  ;;  %v11864_v11 = vcombine.low %v11491_v18, %v11492_v63  ;;  %v9364_v20 = vcombine.high %v9362_v38, %v9362_v38 }
0x1cf0   :  { %v11494_v47 = vsel %vm798_vm5, %v9347_v15, %v10974_v17  ;;  %v9371_v9 = vrot.slane %v9355_v34, %v18507_v46  ;;  %v9378_v53 = vrot.slane %v9362_v38, %v18507_v46  ;;  %v9385_v48 = vrot.slane %v9363_v25, %v18507_v46 }
0x1cf1   :  { %v11855_v40 = vrot.slane %v11847_v52, %v18525_v0  ;;  %v11862_v32 = vrot.slane %v11848_v3, %v18525_v0  ;;  %v11865_v54 = vcombine.low %v11493_v35, %v11494_v47  ;;  %v11872_v39 = vrot.slane %v11864_v11, %v18525_v0 }
0x1cf2   :  { %v9392_v44 = vrot.slane %v9364_v20, %v18507_v46  ;;  %v9393_v24 = vcombine.high %v9371_v9, %v9371_v9  ;;  %v9394_v31 = vcombine.high %v9378_v53, %v9378_v53  ;;  %v9395_v13 = vcombine.high %v9385_v48, %v9385_v48 }
0x1cf3   :  { %v11863_v58 = vcombine.low %v11855_v40, %v11862_v32  ;;  %v11879_v15 = vrot.slane %v11865_v54, %v18525_v0  ;;  %v10276_v34 = vcombine.high %v13668_v59, %v13668_v59  ;;  %v10283_v62 = vrot.slane %v13668_v59, %v18507_v46 }
0x1cf4   :  { %v9396_v51 = vcombine.high %v9392_v44, %v9392_v44  ;;  %v9397_v10 = vcombine.high %v17796_v45, %v17796_v45  ;;  %v9404_v4 = vrot.slane %v17796_v45, %v18507_v46  ;;  %v13670_v29 = vadd.f32 %v17628_v6, %v17552_v26 }
0x1cf5   :  { %v11880_v16 = vcombine.low %v11872_v39, %v11879_v15  ;;  %12295 = vst [vmem:[#allocation38 + $0x40] sm:$0xff] %v11863_v58  ;;  %v10290_v38 = vrot.slane %v10276_v34, %v18507_v46  ;;  %v10291_v37 = vcombine.high %v10283_v62, %v10283_v62  ;;  %v10299_v42 = vrot.slane %v10283_v62, %v18507_v46 }
0x1cf6   :  { %v9411_v59 = vrot.slane %v9397_v10, %v18507_v46  ;;  %v9412_v27 = vcombine.high %v9404_v4, %v9404_v4  ;;  %v17846_v61 = vrot.slane %v9404_v4, %v18507_v46  ;;  %v10325_v12 = vcombine.high %v13670_v29, %v13670_v29 }
0x1cf7   :  { %12296 = vst [vmem:[#allocation38 + $0x48] sm:$0xff] %v11880_v16  ;;  %v10292_v22 = vcombine.high %v10290_v38, %v10290_v38  ;;  %v10306_v45 = vrot.slane %v10290_v38, %v18507_v46  ;;  %v10313_v6 = vrot.slane %v10291_v37, %v18507_v46  ;;  %v10321_v18 = vcombine.high %v10299_v42, %v10299_v42 }
0x1cf8   :  { %v10978_v25 = vrot.slane %v10299_v42, %v14792_v36  ;;  %v9413_v17 = vcombine.high %v9411_v59, %v9411_v59  ;;  %v17852_v7 = vrot.slane %v9411_v59, %v18507_v46  ;;  %v17855_v63 = vrot.slane %v9412_v27, %v18507_v46 }
0x1cf9   :  { %v10320_v35 = vrot.slane %v10292_v22, %v18507_v46  ;;  %v10322_v52 = vcombine.high %v10306_v45, %v10306_v45  ;;  %v10323_v3 = vcombine.high %v10313_v6, %v10313_v6  ;;  %v10982_v11 = vrot.slane %v10313_v6, %v14792_v36 }
0x1cfa   :  { %v10986_v20 = vrot.slane %v10321_v18, %v14792_v36  ;;  %v10994_v47 = vrot.slane %v10306_v45, %v14792_v36  ;;  %v11495_v40 = vsel %vm798_vm5, %v9371_v9, %v10978_v25  ;;  %v17863_v32 = vrot.slane %v9413_v17, %v18507_v46 }
0x1cfb   :  { %v10324_v54 = vcombine.high %v10320_v35, %v10320_v35  ;;  %v10990_v39 = vrot.slane %v10323_v3, %v14792_v36  ;;  %v10998_v58 = vrot.slane %v10320_v35, %v14792_v36  ;;  %v11002_v15 = vrot.slane %v10322_v52, %v14792_v36 }
0x1cfc   :  { %v11496_v34 = vsel %vm798_vm5, %v9385_v48, %v10982_v11  ;;  %v11497_v62 = vsel %vm798_vm5, %v9393_v24, %v10986_v20  ;;  %v11499_v10 = vsel %vm798_vm5, %v9378_v53, %v10994_v47  ;;  %v9442_v4 = vcombine.high %v17846_v61, %v17846_v61 }
0x1cfd   :  { %v11006_v9 = vrot.slane %v10324_v54, %v14792_v36  ;;  %v11498_v16 = vsel %vm798_vm5, %v9395_v13, %v10990_v39  ;;  %v11500_v38 = vsel %vm798_vm5, %v9392_v44, %v10998_v58  ;;  %v11501_v37 = vsel %vm798_vm5, %v9394_v31, %v11002_v15 }
0x1cfe   :  { %v11881_v42 = vcombine.low %v11495_v40, %v11496_v34  ;;  %v11882_v59 = vcombine.low %v11497_v62, %v11498_v16  ;;  %v11898_v27 = vcombine.low %v11499_v10, %v11500_v38  ;;  %v9443_v48 = vcombine.high %v17852_v7, %v17852_v7 }
0x1cff   :  { %v11502_v24 = vsel %vm798_vm5, %v9396_v51, %v11006_v9  ;;  %v9444_v53 = vcombine.high %v17855_v63, %v17855_v63  ;;  %v9445_v22 = vcombine.high %v17863_v32, %v17863_v32  ;;  %v10332_v13 = vrot.slane %v13670_v29, %v18507_v46 }
0x1d00   :  { %v11889_v44 = vrot.slane %v11881_v42, %v18525_v0  ;;  %v11896_v31 = vrot.slane %v11882_v59, %v18525_v0  ;;  %v11899_v45 = vcombine.low %v11501_v37, %v11502_v24  ;;  %v11906_v6 = vrot.slane %v11898_v27, %v18525_v0 }
0x1d01   :  { %v10339_v18 = vrot.slane %v10325_v12, %v18507_v46  ;;  %v10340_v25 = vcombine.high %v10332_v13, %v10332_v13  ;;  %v10348_v51 = vrot.slane %v10332_v13, %v18507_v46  ;;  %v13671_v17 = vadd.f32 %v17640_v5, %v17549_v43 }
0x1d02   :  { %v11897_v35 = vcombine.low %v11889_v44, %v11896_v31  ;;  %v11913_v52 = vrot.slane %v11899_v45, %v18525_v0  ;;  %v13672_v29 = vadd.f32 %v17646_v55, %v17552_v26  ;;  %v13673_v3 = vadd.f32 %v17656_v41, %v17549_v43 }
0x1d03   :  { %v10341_v11 = vcombine.high %v10339_v18, %v10339_v18  ;;  %v10355_v20 = vrot.slane %v10339_v18, %v18507_v46  ;;  %v10362_v12 = vrot.slane %v10340_v25, %v18507_v46  ;;  %v10370_v47 = vcombine.high %v10348_v51, %v10348_v51 }
0x1d04   :  { %v11914_v40 = vcombine.low %v11906_v6, %v11913_v52  ;;  %12297 = vst [vmem:[#allocation38 + $0x50] sm:$0xff] %v11897_v35  ;;  %v11010_v54 = vrot.slane %v10348_v51, %v14792_v36  ;;  %v9446_v5 = vcombine.high %v13671_v17, %v13671_v17  ;;  %v9453_v39 = vrot.slane %v13671_v17, %v18507_v46 }
0x1d05   :  { %v10369_v58 = vrot.slane %v10341_v11, %v18507_v46  ;;  %v10371_v15 = vcombine.high %v10355_v20, %v10355_v20  ;;  %v10372_v55 = vcombine.high %v10362_v12, %v10362_v12  ;;  %v11014_v34 = vrot.slane %v10362_v12, %v14792_v36 }
0x1d06   :  { %12298 = vst [vmem:[#allocation38 + $0x58] sm:$0xff] %v11914_v40  ;;  %v11018_v41 = vrot.slane %v10370_v47, %v14792_v36  ;;  %v11026_v62 = vrot.slane %v10355_v20, %v14792_v36  ;;  %v11503_v10 = vsel %vm798_vm5, %v17846_v61, %v11010_v54  ;;  %v9460_v9 = vrot.slane %v9446_v5, %v18507_v46 }
0x1d07   :  { %v10373_v16 = vcombine.high %v10369_v58, %v10369_v58  ;;  %v11022_v38 = vrot.slane %v10372_v55, %v14792_v36  ;;  %v11030_v37 = vrot.slane %v10369_v58, %v14792_v36  ;;  %v11034_v42 = vrot.slane %v10371_v15, %v14792_v36 }
0x1d08   :  { %v11504_v59 = vsel %vm798_vm5, %v17855_v63, %v11014_v34  ;;  %v11505_v27 = vsel %vm798_vm5, %v9442_v4, %v11018_v41  ;;  %v11507_v24 = vsel %vm798_vm5, %v17852_v7, %v11026_v62  ;;  %v9461_v13 = vcombine.high %v9453_v39, %v9453_v39 }
0x1d09   :  { %v11038_v61 = vrot.slane %v10373_v16, %v14792_v36  ;;  %v11506_v44 = vsel %vm798_vm5, %v9444_v53, %v11022_v38  ;;  %v11508_v31 = vsel %vm798_vm5, %v17863_v32, %v11030_v37  ;;  %v11509_v45 = vsel %vm798_vm5, %v9443_v48, %v11034_v42 }
0x1d0a   :  { %v11915_v6 = vcombine.low %v11503_v10, %v11504_v59  ;;  %v11916_v18 = vcombine.low %v11505_v27, %v11506_v44  ;;  %v11932_v25 = vcombine.low %v11507_v24, %v11508_v31  ;;  %v9462_v51 = vcombine.high %v9460_v9, %v9460_v9 }
0x1d0b   :  { %v11510_v63 = vsel %vm798_vm5, %v9445_v22, %v11038_v61  ;;  %v9469_v4 = vrot.slane %v9453_v39, %v18507_v46  ;;  %v9476_v7 = vrot.slane %v9460_v9, %v18507_v46  ;;  %v9483_v17 = vrot.slane %v9461_v13, %v18507_v46 }
0x1d0c   :  { %v11923_v35 = vrot.slane %v11915_v6, %v18525_v0  ;;  %v11930_v53 = vrot.slane %v11916_v18, %v18525_v0  ;;  %v11933_v52 = vcombine.low %v11509_v45, %v11510_v63  ;;  %v11940_v32 = vrot.slane %v11932_v25, %v18525_v0 }
0x1d0d   :  { %v9490_v48 = vrot.slane %v9462_v51, %v18507_v46  ;;  %v9491_v11 = vcombine.high %v9469_v4, %v9469_v4  ;;  %v9492_v20 = vcombine.high %v9476_v7, %v9476_v7  ;;  %v9493_v12 = vcombine.high %v9483_v17, %v9483_v17 }
0x1d0e   :  { %v11931_v47 = vcombine.low %v11923_v35, %v11930_v53  ;;  %v11947_v22 = vrot.slane %v11933_v52, %v18525_v0  ;;  %v10374_v40 = vcombine.high %v13672_v29, %v13672_v29  ;;  %v10381_v54 = vrot.slane %v13672_v29, %v18507_v46 }
0x1d0f   :  { %v9494_v5 = vcombine.high %v9490_v48, %v9490_v48  ;;  %v9495_v39 = vcombine.high %v13673_v3, %v13673_v3  ;;  %v9502_v58 = vrot.slane %v13673_v3, %v18507_v46  ;;  %v13674_v15 = vadd.f32 %v17659_v50, %v17552_v26 }
0x1d10   :  { %v11948_v55 = vcombine.low %v11940_v32, %v11947_v22  ;;  %12299 = vst [vmem:[#allocation38 + $0x60] sm:$0xff] %v11931_v47  ;;  %v10388_v34 = vrot.slane %v10374_v40, %v18507_v46  ;;  %v10389_v41 = vcombine.high %v10381_v54, %v10381_v54  ;;  %v10397_v62 = vrot.slane %v10381_v54, %v18507_v46 }
0x1d11   :  { %v9509_v10 = vrot.slane %v9495_v39, %v18507_v46  ;;  %v9510_v9 = vcombine.high %v9502_v58, %v9502_v58  ;;  %v17938_v16 = vrot.slane %v9502_v58, %v18507_v46  ;;  %v10423_v29 = vcombine.high %v13674_v15, %v13674_v15 }
0x1d12   :  { %12300 = vst [vmem:[#allocation38 + $0x68] sm:$0xff] %v11948_v55  ;;  %v10390_v38 = vcombine.high %v10388_v34, %v10388_v34  ;;  %v10404_v3 = vrot.slane %v10388_v34, %v18507_v46  ;;  %v10411_v50 = vrot.slane %v10389_v41, %v18507_v46  ;;  %v10419_v37 = vcombine.high %v10397_v62, %v10397_v62 }
0x1d13   :  { %v11042_v42 = vrot.slane %v10397_v62, %v14792_v36  ;;  %v9511_v59 = vcombine.high %v9509_v10, %v9509_v10  ;;  %v17944_v27 = vrot.slane %v9509_v10, %v18507_v46  ;;  %v17947_v24 = vrot.slane %v9510_v9, %v18507_v46 }
0x1d14   :  { %v10418_v13 = vrot.slane %v10390_v38, %v18507_v46  ;;  %v10420_v61 = vcombine.high %v10404_v3, %v10404_v3  ;;  %v10421_v44 = vcombine.high %v10411_v50, %v10411_v50  ;;  %v11046_v31 = vrot.slane %v10411_v50, %v14792_v36 }
0x1d15   :  { %v11050_v45 = vrot.slane %v10419_v37, %v14792_v36  ;;  %v11058_v6 = vrot.slane %v10404_v3, %v14792_v36  ;;  %v11511_v18 = vsel %vm798_vm5, %v9469_v4, %v11042_v42  ;;  %v17955_v25 = vrot.slane %v9511_v59, %v18507_v46 }
0x1d16   :  { %v10422_v51 = vcombine.high %v10418_v13, %v10418_v13  ;;  %v11054_v63 = vrot.slane %v10421_v44, %v14792_v36  ;;  %v11062_v35 = vrot.slane %v10418_v13, %v14792_v36  ;;  %v11066_v53 = vrot.slane %v10420_v61, %v14792_v36 }
0x1d17   :  { %v11512_v52 = vsel %vm798_vm5, %v9483_v17, %v11046_v31  ;;  %v11513_v32 = vsel %vm798_vm5, %v9491_v11, %v11050_v45  ;;  %v11515_v47 = vsel %vm798_vm5, %v9476_v7, %v11058_v6  ;;  %v9540_v22 = vcombine.high %v17938_v16, %v17938_v16 }
0x1d18   :  { %v11070_v4 = vrot.slane %v10422_v51, %v14792_v36  ;;  %v11514_v40 = vsel %vm798_vm5, %v9493_v12, %v11054_v63  ;;  %v11516_v54 = vsel %vm798_vm5, %v9490_v48, %v11062_v35  ;;  %v11517_v39 = vsel %vm798_vm5, %v9492_v20, %v11066_v53 }
0x1d19   :  { %v11949_v58 = vcombine.low %v11511_v18, %v11512_v52  ;;  %v11950_v55 = vcombine.low %v11513_v32, %v11514_v40  ;;  %v11966_v34 = vcombine.low %v11515_v47, %v11516_v54  ;;  %v9541_v17 = vcombine.high %v17944_v27, %v17944_v27 }
0x1d1a   :  { %v11518_v11 = vsel %vm798_vm5, %v9494_v5, %v11070_v4  ;;  %v9542_v7 = vcombine.high %v17947_v24, %v17947_v24  ;;  %v9543_v41 = vcombine.high %v17955_v25, %v17955_v25  ;;  %v10430_v12 = vrot.slane %v13674_v15, %v18507_v46 }
0x1d1b   :  { %v11957_v48 = vrot.slane %v11949_v58, %v18525_v0  ;;  %v11964_v20 = vrot.slane %v11950_v55, %v18525_v0  ;;  %v11967_v62 = vcombine.low %v11517_v39, %v11518_v11  ;;  %v11974_v10 = vrot.slane %v11966_v34, %v18525_v0 }
0x1d1c   :  { %v10437_v9 = vrot.slane %v10423_v29, %v18507_v46  ;;  %v10438_v38 = vcombine.high %v10430_v12, %v10430_v12  ;;  %v10446_v5 = vrot.slane %v10430_v12, %v18507_v46  ;;  %v13675_v3 = vadd.f32 %v17675_v57, %v17549_v43 }
0x1d1d   :  { %v11965_v50 = vcombine.low %v11957_v48, %v11964_v20  ;;  %v11981_v37 = vrot.slane %v11967_v62, %v18525_v0  ;;  %v13676_v15 = vadd.f32 %v17679_v21, %v17552_v26  ;;  %v13677_v42 = vadd.f32 %v17690_v8, %v17549_v43 }
0x1d1e   :  { %v10439_v59 = vcombine.high %v10437_v9, %v10437_v9  ;;  %v10453_v13 = vrot.slane %v10437_v9, %v18507_v46  ;;  %v10460_v29 = vrot.slane %v10438_v38, %v18507_v46  ;;  %v10468_v61 = vcombine.high %v10446_v5, %v10446_v5 }
0x1d1f   :  { %v11982_v44 = vcombine.low %v11974_v10, %v11981_v37  ;;  %12301 = vst [vmem:[#allocation38 + $0x70] sm:$0xff] %v11965_v50  ;;  %v11074_v31 = vrot.slane %v10446_v5, %v14792_v36  ;;  %v9544_v57 = vcombine.high %v13675_v3, %v13675_v3  ;;  %v9551_v45 = vrot.slane %v13675_v3, %v18507_v46 }
0x1d20   :  { %v10467_v6 = vrot.slane %v10439_v59, %v18507_v46  ;;  %v10469_v18 = vcombine.high %v10453_v13, %v10453_v13  ;;  %v10470_v21 = vcombine.high %v10460_v29, %v10460_v29  ;;  %v11078_v51 = vrot.slane %v10460_v29, %v14792_v36 }
0x1d21   :  { %12302 = vst [vmem:[#allocation38 + $0x78] sm:$0xff] %v11982_v44  ;;  %v11082_v8 = vrot.slane %v10468_v61, %v14792_v36  ;;  %v11090_v63 = vrot.slane %v10453_v13, %v14792_v36  ;;  %v11519_v35 = vsel %vm798_vm5, %v17938_v16, %v11074_v31  ;;  %v9558_v53 = vrot.slane %v9544_v57, %v18507_v46 }
0x1d22   :  { %v10471_v52 = vcombine.high %v10467_v6, %v10467_v6  ;;  %v11086_v32 = vrot.slane %v10470_v21, %v14792_v36  ;;  %v11094_v47 = vrot.slane %v10467_v6, %v14792_v36  ;;  %v11098_v4 = vrot.slane %v10469_v18, %v14792_v36 }
0x1d23   :  { %v11520_v40 = vsel %vm798_vm5, %v17947_v24, %v11078_v51  ;;  %v11521_v54 = vsel %vm798_vm5, %v9540_v22, %v11082_v8  ;;  %v11523_v39 = vsel %vm798_vm5, %v17944_v27, %v11090_v63  ;;  %v9559_v58 = vcombine.high %v9551_v45, %v9551_v45 }
0x1d24   :  { %v11102_v16 = vrot.slane %v10471_v52, %v14792_v36  ;;  %v11522_v55 = vsel %vm798_vm5, %v9542_v7, %v11086_v32  ;;  %v11524_v34 = vsel %vm798_vm5, %v17955_v25, %v11094_v47  ;;  %v11525_v11 = vsel %vm798_vm5, %v9541_v17, %v11098_v4 }
0x1d25   :  { %v11983_v12 = vcombine.low %v11519_v35, %v11520_v40  ;;  %v11984_v48 = vcombine.low %v11521_v54, %v11522_v55  ;;  %v12000_v20 = vcombine.low %v11523_v39, %v11524_v34  ;;  %v9560_v62 = vcombine.high %v9558_v53, %v9558_v53 }
0x1d26   :  { %v11526_v24 = vsel %vm798_vm5, %v9543_v41, %v11102_v16  ;;  %v9567_v22 = vrot.slane %v9551_v45, %v18507_v46  ;;  %v9574_v27 = vrot.slane %v9558_v53, %v18507_v46  ;;  %v9581_v10 = vrot.slane %v9559_v58, %v18507_v46 }
0x1d27   :  { %v11991_v9 = vrot.slane %v11983_v12, %v18525_v0  ;;  %v11998_v7 = vrot.slane %v11984_v48, %v18525_v0  ;;  %v12001_v38 = vcombine.low %v11525_v11, %v11526_v24  ;;  %v12008_v25 = vrot.slane %v12000_v20, %v18525_v0 }
0x1d28   :  { %v9588_v17 = vrot.slane %v9560_v62, %v18507_v46  ;;  %v9589_v5 = vcombine.high %v9567_v22, %v9567_v22  ;;  %v9590_v3 = vcombine.high %v9574_v27, %v9574_v27  ;;  %v9591_v50 = vcombine.high %v9581_v10, %v9581_v10 }
0x1d29   :  { %v11999_v37 = vcombine.low %v11991_v9, %v11998_v7  ;;  %v12015_v41 = vrot.slane %v12001_v38, %v18525_v0  ;;  %v10472_v59 = vcombine.high %v13676_v15, %v13676_v15  ;;  %v10479_v13 = vrot.slane %v13676_v15, %v18507_v46 }
0x1d2a   :  { %v9592_v29 = vcombine.high %v9588_v17, %v9588_v17  ;;  %v9593_v61 = vcombine.high %v13677_v42, %v13677_v42  ;;  %v9600_v44 = vrot.slane %v13677_v42, %v18507_v46  ;;  %v13678_v31 = vadd.f32 %v17695_v2, %v17552_v26 }
0x1d2b   :  { %v12016_v57 = vcombine.low %v12008_v25, %v12015_v41  ;;  %12303 = vst [vmem:[#allocation38 + $0x80] sm:$0xff] %v11999_v37  ;;  %v10486_v45 = vrot.slane %v10472_v59, %v18507_v46  ;;  %v10487_v6 = vcombine.high %v10479_v13, %v10479_v13  ;;  %v10495_v18 = vrot.slane %v10479_v13, %v18507_v46 }
0x1d2c   :  { %v9607_v21 = vrot.slane %v9593_v61, %v18507_v46  ;;  %v9608_v51 = vcombine.high %v9600_v44, %v9600_v44  ;;  %v18030_v8 = vrot.slane %v9600_v44, %v18507_v46  ;;  %v10521_v15 = vcombine.high %v13678_v31, %v13678_v31 }
0x1d2d   :  { %12304 = vst [vmem:[#allocation38 + $0x88] sm:$0xff] %v12016_v57  ;;  %v10488_v63 = vcombine.high %v10486_v45, %v10486_v45  ;;  %v10502_v42 = vrot.slane %v10486_v45, %v18507_v46  ;;  %v10509_v2 = vrot.slane %v10487_v6, %v18507_v46  ;;  %v10517_v35 = vcombine.high %v10495_v18, %v10495_v18 }
0x1d2e   :  { %v11106_v53 = vrot.slane %v10495_v18, %v14792_v36  ;;  %v9609_v52 = vcombine.high %v9607_v21, %v9607_v21  ;;  %v18036_v32 = vrot.slane %v9607_v21, %v18507_v46  ;;  %v18039_v47 = vrot.slane %v9608_v51, %v18507_v46 }
0x1d2f   :  { %v10516_v4 = vrot.slane %v10488_v63, %v18507_v46  ;;  %v10518_v40 = vcombine.high %v10502_v42, %v10502_v42  ;;  %v10519_v54 = vcombine.high %v10509_v2, %v10509_v2  ;;  %v11110_v39 = vrot.slane %v10509_v2, %v14792_v36 }
0x1d30   :  { %v11114_v58 = vrot.slane %v10517_v35, %v14792_v36  ;;  %v11122_v16 = vrot.slane %v10502_v42, %v14792_v36  ;;  %v11527_v55 = vsel %vm798_vm5, %v9567_v22, %v11106_v53  ;;  %v18047_v34 = vrot.slane %v9609_v52, %v18507_v46 }
0x1d31   :  { %v10520_v11 = vcombine.high %v10516_v4, %v10516_v4  ;;  %v11118_v12 = vrot.slane %v10519_v54, %v14792_v36  ;;  %v11126_v48 = vrot.slane %v10516_v4, %v14792_v36  ;;  %v11130_v20 = vrot.slane %v10518_v40, %v14792_v36 }
0x1d32   :  { %v11528_v62 = vsel %vm798_vm5, %v9581_v10, %v11110_v39  ;;  %v11529_v24 = vsel %vm798_vm5, %v9589_v5, %v11114_v58  ;;  %v11531_v9 = vsel %vm798_vm5, %v9574_v27, %v11122_v16  ;;  %v9638_v7 = vcombine.high %v18030_v8, %v18030_v8 }
0x1d33   :  { %v11134_v22 = vrot.slane %v10520_v11, %v14792_v36  ;;  %v11530_v38 = vsel %vm798_vm5, %v9591_v50, %v11118_v12  ;;  %v11532_v25 = vsel %vm798_vm5, %v9588_v17, %v11126_v48  ;;  %v11533_v37 = vsel %vm798_vm5, %v9590_v3, %v11130_v20 }
0x1d34   :  { %v12017_v41 = vcombine.low %v11527_v55, %v11528_v62  ;;  %v12018_v59 = vcombine.low %v11529_v24, %v11530_v38  ;;  %v12034_v13 = vcombine.low %v11531_v9, %v11532_v25  ;;  %v9639_v10 = vcombine.high %v18036_v32, %v18036_v32 }
0x1d35   :  { %v11534_v5 = vsel %vm798_vm5, %v9592_v29, %v11134_v22  ;;  %v9640_v27 = vcombine.high %v18039_v47, %v18039_v47  ;;  %v9641_v61 = vcombine.high %v18047_v34, %v18047_v34  ;;  %v10528_v50 = vrot.slane %v13678_v31, %v18507_v46 }
0x1d36   :  { %v12025_v17 = vrot.slane %v12017_v41, %v18525_v0  ;;  %v12032_v3 = vrot.slane %v12018_v59, %v18525_v0  ;;  %v12035_v44 = vcombine.low %v11533_v37, %v11534_v5  ;;  %v12042_v57 = vrot.slane %v12034_v13, %v18525_v0 }
0x1d37   :  { %v10535_v45 = vrot.slane %v10521_v15, %v18507_v46  ;;  %v10536_v6 = vcombine.high %v10528_v50, %v10528_v50  ;;  %v10544_v29 = vrot.slane %v10528_v50, %v18507_v46  ;;  %v13679_v18 = vadd.f32 %v17707_v19, %v17549_v43 }
0x1d38   :  { %v12033_v21 = vcombine.low %v12025_v17, %v12032_v3  ;;  %v12049_v51 = vrot.slane %v12035_v44, %v18525_v0  ;;  %v13680_v31 = vadd.f32 %v17712_v1, %v17552_v26  ;;  %v13681_v63 = vadd.f32 %v17728_v60, %v17549_v43 }
0x1d39   :  { %v10537_v42 = vcombine.high %v10535_v45, %v10535_v45  ;;  %v10551_v2 = vrot.slane %v10535_v45, %v18507_v46  ;;  %v10558_v15 = vrot.slane %v10536_v6, %v18507_v46  ;;  %v10566_v35 = vcombine.high %v10544_v29, %v10544_v29 }
0x1d3a   :  { %v12050_v53 = vcombine.low %v12042_v57, %v12049_v51  ;;  %12305 = vst [vmem:[#allocation38 + $0x90] sm:$0xff] %v12033_v21  ;;  %v11138_v52 = vrot.slane %v10544_v29, %v14792_v36  ;;  %v9642_v19 = vcombine.high %v13679_v18, %v13679_v18  ;;  %v9649_v4 = vrot.slane %v13679_v18, %v18507_v46 }
0x1d3b   :  { %v10565_v40 = vrot.slane %v10537_v42, %v18507_v46  ;;  %v10567_v54 = vcombine.high %v10551_v2, %v10551_v2  ;;  %v10568_v1 = vcombine.high %v10558_v15, %v10558_v15  ;;  %v11142_v39 = vrot.slane %v10558_v15, %v14792_v36 }
0x1d3c   :  { %12306 = vst [vmem:[#allocation38 + $0x98] sm:$0xff] %v12050_v53  ;;  %v11146_v60 = vrot.slane %v10566_v35, %v14792_v36  ;;  %v11154_v58 = vrot.slane %v10551_v2, %v14792_v36  ;;  %v11535_v16 = vsel %vm798_vm5, %v18030_v8, %v11138_v52  ;;  %v9656_v55 = vrot.slane %v9642_v19, %v18507_v46 }
0x1d3d   :  { %v10569_v11 = vcombine.high %v10565_v40, %v10565_v40  ;;  %v11150_v12 = vrot.slane %v10568_v1, %v14792_v36  ;;  %v11158_v48 = vrot.slane %v10565_v40, %v14792_v36  ;;  %v11162_v20 = vrot.slane %v10567_v54, %v14792_v36 }
0x1d3e   :  { %v11536_v62 = vsel %vm798_vm5, %v18039_v47, %v11142_v39  ;;  %v11537_v24 = vsel %vm798_vm5, %v9638_v7, %v11146_v60  ;;  %v11539_v9 = vsel %vm798_vm5, %v18036_v32, %v11154_v58  ;;  %v9657_v22 = vcombine.high %v9649_v4, %v9649_v4 }
0x1d3f   :  { %v11166_v8 = vrot.slane %v10569_v11, %v14792_v36  ;;  %v11538_v38 = vsel %vm798_vm5, %v9640_v27, %v11150_v12  ;;  %v11540_v25 = vsel %vm798_vm5, %v18047_v34, %v11158_v48  ;;  %v11541_v37 = vsel %vm798_vm5, %v9639_v10, %v11162_v20 }
0x1d40   :  { %v12051_v41 = vcombine.low %v11535_v16, %v11536_v62  ;;  %v12052_v59 = vcombine.low %v11537_v24, %v11538_v38  ;;  %v12068_v13 = vcombine.low %v11539_v9, %v11540_v25  ;;  %v9658_v5 = vcombine.high %v9656_v55, %v9656_v55 }
0x1d41   :  { %v11542_v47 = vsel %vm798_vm5, %v9641_v61, %v11166_v8  ;;  %v9665_v7 = vrot.slane %v9649_v4, %v18507_v46  ;;  %v9672_v32 = vrot.slane %v9656_v55, %v18507_v46  ;;  %v9679_v50 = vrot.slane %v9657_v22, %v18507_v46 }
0x1d42   :  { %v12059_v17 = vrot.slane %v12051_v41, %v18525_v0  ;;  %v12066_v27 = vrot.slane %v12052_v59, %v18525_v0  ;;  %v12069_v3 = vcombine.low %v11541_v37, %v11542_v47  ;;  %v12076_v34 = vrot.slane %v12068_v13, %v18525_v0 }
0x1d43   :  { %v9686_v10 = vrot.slane %v9658_v5, %v18507_v46  ;;  %v9687_v44 = vcombine.high %v9665_v7, %v9665_v7  ;;  %v9688_v57 = vcombine.high %v9672_v32, %v9672_v32  ;;  %v10570_v6 = vcombine.high %v13680_v31, %v13680_v31 }
0x1d44   :  { %v12067_v45 = vcombine.low %v12059_v17, %v12066_v27  ;;  %v12083_v61 = vrot.slane %v12069_v3, %v18525_v0  ;;  %v10577_v29 = vrot.slane %v13680_v31, %v18507_v46  ;;  %v9689_v18 = vcombine.high %v9679_v50, %v9679_v50 }
0x1d45   :  { %v9691_v21 = vcombine.high %v13681_v63, %v13681_v63  ;;  %v9698_v51 = vrot.slane %v13681_v63, %v18507_v46  ;;  %v13682_v42 = vadd.f32 %v17732_v23, %v17552_v26  ;;  %v10584_v15 = vrot.slane %v10570_v6, %v18507_v46 }
0x1d46   :  { %v12084_v2 = vcombine.low %v12076_v34, %v12083_v61  ;;  %12307 = vst [vmem:[#allocation38 + $0xa0] sm:$0xff] %v12067_v45  ;;  %v10585_v35 = vcombine.high %v10577_v29, %v10577_v29  ;;  %v10593_v53 = vrot.slane %v10577_v29, %v18507_v46  ;;  %v9690_v52 = vcombine.high %v9686_v10, %v9686_v10 }
0x1d47   :  { %v9705_v19 = vrot.slane %v9691_v21, %v18507_v46  ;;  %v9706_v4 = vcombine.high %v9698_v51, %v9698_v51  ;;  %v18122_v31 = vrot.slane %v9698_v51, %v18507_v46  ;;  %v10586_v40 = vcombine.high %v10584_v15, %v10584_v15 }
0x1d48   :  { %12308 = vst [vmem:[#allocation38 + $0xa8] sm:$0xff] %v12084_v2  ;;  %v10600_v63 = vrot.slane %v10584_v15, %v18507_v46  ;;  %v10607_v23 = vrot.slane %v10585_v35, %v18507_v46  ;;  %v10615_v54 = vcombine.high %v10593_v53, %v10593_v53  ;;  %v11170_v1 = vrot.slane %v10593_v53, %v14792_v36 }
0x1d49   :  { %v9707_v39 = vcombine.high %v9705_v19, %v9705_v19  ;;  %v18128_v60 = vrot.slane %v9705_v19, %v18507_v46  ;;  %v10619_v58 = vcombine.high %v13682_v42, %v13682_v42  ;;  %v10614_v16 = vrot.slane %v10586_v40, %v18507_v46 }
0x1d4a   :  { %v10616_v55 = vcombine.high %v10600_v63, %v10600_v63  ;;  %v10617_v11 = vcombine.high %v10607_v23, %v10607_v23  ;;  %v11174_v12 = vrot.slane %v10607_v23, %v14792_v36  ;;  %v11178_v48 = vrot.slane %v10615_v54, %v14792_v36 }
0x1d4b   :  { %v11186_v20 = vrot.slane %v10600_v63, %v14792_v36  ;;  %v11543_v62 = vsel %vm798_vm5, %v9665_v7, %v11170_v1  ;;  %v9728_v24 = vrot.slane %v9706_v4, %v18507_v46  ;;  %v10618_v9 = vcombine.high %v10614_v16, %v10614_v16 }
0x1d4c   :  { %v11182_v22 = vrot.slane %v10617_v11, %v14792_v36  ;;  %v11190_v8 = vrot.slane %v10614_v16, %v14792_v36  ;;  %v11194_v38 = vrot.slane %v10616_v55, %v14792_v36  ;;  %v11544_v25 = vsel %vm798_vm5, %v9679_v50, %v11174_v12 }
0x1d4d   :  { %v11545_v37 = vsel %vm798_vm5, %v9687_v44, %v11178_v48  ;;  %v11547_v41 = vsel %vm798_vm5, %v9672_v32, %v11186_v20  ;;  %v9735_v59 = vrot.slane %v9707_v39, %v18507_v46  ;;  %v11198_v13 = vrot.slane %v10618_v9, %v14792_v36 }
0x1d4e   :  { %v11546_v5 = vsel %vm798_vm5, %v9689_v18, %v11182_v22  ;;  %v11548_v47 = vsel %vm798_vm5, %v9686_v10, %v11190_v8  ;;  %v11549_v7 = vsel %vm798_vm5, %v9688_v57, %v11194_v38  ;;  %v12085_v17 = vcombine.low %v11543_v62, %v11544_v25 }
0x1d4f   :  { %v12086_v27 = vcombine.low %v11545_v37, %v11546_v5  ;;  %v12102_v3 = vcombine.low %v11547_v41, %v11548_v47  ;;  %v9736_v50 = vcombine.high %v18122_v31, %v18122_v31  ;;  %v11550_v34 = vsel %vm798_vm5, %v9690_v52, %v11198_v13 }
0x1d50   :  { %v9737_v32 = vcombine.high %v18128_v60, %v18128_v60  ;;  %v9738_v44 = vcombine.high %v9728_v24, %v9728_v24  ;;  %v10626_v45 = vrot.slane %v13682_v42, %v18507_v46  ;;  %v12093_v61 = vrot.slane %v12085_v17, %v18525_v0 }
0x1d51   :  { %v12100_v10 = vrot.slane %v12086_v27, %v18525_v0  ;;  %v12103_v6 = vcombine.low %v11549_v7, %v11550_v34  ;;  %v9739_v57 = vcombine.high %v9735_v59, %v9735_v59  ;;  %v10633_v29 = vrot.slane %v10619_v58, %v18507_v46 }
0x1d52   :  { %v10634_v18 = vcombine.high %v10626_v45, %v10626_v45  ;;  %v10642_v21 = vrot.slane %v10626_v45, %v18507_v46  ;;  %v13683_v51 = vadd.f32 %v17747_v33, %v17549_v43  ;;  %v12110_v15 = vrot.slane %v12102_v3, %v18525_v0 }
0x1d53   :  { %v12101_v2 = vcombine.low %v12093_v61, %v12100_v10  ;;  %v12117_v35 = vrot.slane %v12103_v6, %v18525_v0  ;;  %v13684_v42 = vadd.f32 %v17751_v49, %v17552_v26  ;;  %v10635_v53 = vcombine.high %v10633_v29, %v10633_v29 }
0x1d54   :  { %v10649_v52 = vrot.slane %v10633_v29, %v18507_v46  ;;  %v10656_v19 = vrot.slane %v10634_v18, %v18507_v46  ;;  %v10664_v4 = vcombine.high %v10642_v21, %v10642_v21  ;;  %v11202_v63 = vrot.slane %v10642_v21, %v14792_v36 }
0x1d55   :  { %v12118_v40 = vcombine.low %v12110_v15, %v12117_v35  ;;  %12309 = vst [vmem:[#allocation38 + $0xb0] sm:$0xff] %v12101_v2  ;;  %v9740_v23 = vcombine.high %v13683_v51, %v13683_v51  ;;  %v9747_v33 = vrot.slane %v13683_v51, %v18507_v46  ;;  %v10663_v54 = vrot.slane %v10635_v53, %v18507_v46 }
0x1d56   :  { %v10665_v1 = vcombine.high %v10649_v52, %v10649_v52  ;;  %v10666_v39 = vcombine.high %v10656_v19, %v10656_v19  ;;  %v11206_v58 = vrot.slane %v10656_v19, %v14792_v36  ;;  %v11210_v49 = vrot.slane %v10664_v4, %v14792_v36 }
0x1d57   :  { %12310 = vst [vmem:[#allocation38 + $0xb8] sm:$0xff] %v12118_v40  ;;  %v11218_v16 = vrot.slane %v10649_v52, %v14792_v36  ;;  %v11551_v55 = vsel %vm798_vm5, %v18122_v31, %v11202_v63  ;;  %v9754_v11 = vrot.slane %v9740_v23, %v18507_v46  ;;  %v10667_v12 = vcombine.high %v10663_v54, %v10663_v54 }
0x1d58   :  { %v11214_v48 = vrot.slane %v10666_v39, %v14792_v36  ;;  %v11222_v20 = vrot.slane %v10663_v54, %v14792_v36  ;;  %v11226_v62 = vrot.slane %v10665_v1, %v14792_v36  ;;  %v11552_v9 = vsel %vm798_vm5, %v9728_v24, %v11206_v58 }
0x1d59   :  { %v11553_v22 = vsel %vm798_vm5, %v9736_v50, %v11210_v49  ;;  %v11555_v8 = vsel %vm798_vm5, %v18128_v60, %v11218_v16  ;;  %v9755_v38 = vcombine.high %v9747_v33, %v9747_v33  ;;  %v11230_v25 = vrot.slane %v10667_v12, %v14792_v36 }
0x1d5a   :  { %v11554_v31 = vsel %vm798_vm5, %v9738_v44, %v11214_v48  ;;  %v11556_v37 = vsel %vm798_vm5, %v9735_v59, %v11222_v20  ;;  %v11557_v41 = vsel %vm798_vm5, %v9737_v32, %v11226_v62  ;;  %v12119_v13 = vcombine.low %v11551_v55, %v11552_v9 }
0x1d5b   :  { %v12120_v5 = vcombine.low %v11553_v22, %v11554_v31  ;;  %v12136_v47 = vcombine.low %v11555_v8, %v11556_v37  ;;  %v9756_v7 = vcombine.high %v9754_v11, %v9754_v11  ;;  %v11558_v24 = vsel %vm798_vm5, %v9739_v57, %v11230_v25 }
0x1d5c   :  { %v9763_v17 = vrot.slane %v9747_v33, %v18507_v46  ;;  %v13685_v60 = vadd.f32 %v17768_v56, %v17549_v43  ;;  %v12127_v27 = vrot.slane %v12119_v13, %v18525_v0  ;;  %v12137_v50 = vcombine.low %v11557_v41, %v11558_v24 }
0x1d5d   :  { %v12134_v3 = vrot.slane %v12120_v5, %v18525_v0  ;;  %v12144_v59 = vrot.slane %v12136_v47, %v18525_v0  ;;  %v9770_v34 = vrot.slane %v9754_v11, %v18507_v46  ;;  %v9777_v32 = vrot.slane %v9755_v38, %v18507_v46 }
0x1d5e   :  { %v9784_v44 = vrot.slane %v9756_v7, %v18507_v46  ;;  %v12151_v61 = vrot.slane %v12137_v50, %v18525_v0  ;;  %v10668_v10 = vcombine.high %v13684_v42, %v13684_v42  ;;  %v10675_v6 = vrot.slane %v13684_v42, %v18507_v46 }
0x1d5f   :  { %v12135_v45 = vcombine.low %v12127_v27, %v12134_v3  ;;  %v9785_v56 = vcombine.high %v9763_v17, %v9763_v17  ;;  %v9789_v57 = vcombine.high %v13685_v60, %v13685_v60  ;;  %v9796_v29 = vrot.slane %v13685_v60, %v18507_v46 }
0x1d60   :  { %v13686_v18 = vadd.f32 %v17776_v30, %v17552_v26  ;;  %v12152_v21 = vcombine.low %v12144_v59, %v12151_v61  ;;  %v10682_v51 = vrot.slane %v10668_v10, %v18507_v46  ;;  %v10683_v2 = vcombine.high %v10675_v6, %v10675_v6 }
0x1d61   :  { %12311 = vst [vmem:[#allocation38 + $0xc0] sm:$0xff] %v12135_v45  ;;  %v10691_v15 = vrot.slane %v10675_v6, %v18507_v46  ;;  %v9786_v35 = vcombine.high %v9770_v34, %v9770_v34  ;;  %v9787_v53 = vcombine.high %v9777_v32, %v9777_v32  ;;  %v9788_v52 = vcombine.high %v9784_v44, %v9784_v44 }
0x1d62   :  { %v9803_v19 = vrot.slane %v9789_v57, %v18507_v46  ;;  %12312 = vst [vmem:[#allocation38 + $0xc8] sm:$0xff] %v12152_v21  ;;  %v10684_v42 = vcombine.high %v10682_v51, %v10682_v51  ;;  %v10698_v4 = vrot.slane %v10682_v51, %v18507_v46  ;;  %v10705_v40 = vrot.slane %v10683_v2, %v18507_v46 }
0x1d63   :  { %v10713_v63 = vcombine.high %v10691_v15, %v10691_v15  ;;  %v11234_v30 = vrot.slane %v10691_v15, %v14792_v36  ;;  %v9804_v23 = vcombine.high %v9796_v29, %v9796_v29  ;;  %v18207_v33 = vrot.slane %v9796_v29, %v18507_v46 }
0x1d64   :  { %v10717_v54 = vcombine.high %v13686_v18, %v13686_v18  ;;  %v10712_v1 = vrot.slane %v10684_v42, %v18507_v46  ;;  %v10714_v39 = vcombine.high %v10698_v4, %v10698_v4  ;;  %v10715_v58 = vcombine.high %v10705_v40, %v10705_v40 }
0x1d65   :  { %v11238_v49 = vrot.slane %v10705_v40, %v14792_v36  ;;  %v11242_v16 = vrot.slane %v10713_v63, %v14792_v36  ;;  %v11250_v55 = vrot.slane %v10698_v4, %v14792_v36  ;;  %v11559_v11 = vsel %vm798_vm5, %v9763_v17, %v11234_v30 }
0x1d66   :  { %v9805_v12 = vcombine.high %v9803_v19, %v9803_v19  ;;  %v10716_v48 = vcombine.high %v10712_v1, %v10712_v1  ;;  %v11246_v20 = vrot.slane %v10715_v58, %v14792_v36  ;;  %v11254_v62 = vrot.slane %v10712_v1, %v14792_v36 }
0x1d67   :  { %v11258_v9 = vrot.slane %v10714_v39, %v14792_v36  ;;  %v11560_v22 = vsel %vm798_vm5, %v9777_v32, %v11238_v49  ;;  %v11561_v8 = vsel %vm798_vm5, %v9785_v56, %v11242_v16  ;;  %v11563_v38 = vsel %vm798_vm5, %v9770_v34, %v11250_v55 }
0x1d68   :  { %v9819_v25 = vrot.slane %v9803_v19, %v18507_v46  ;;  %v11262_v31 = vrot.slane %v10716_v48, %v14792_v36  ;;  %v11562_v37 = vsel %vm798_vm5, %v9787_v53, %v11246_v20  ;;  %v11564_v41 = vsel %vm798_vm5, %v9784_v44, %v11254_v62 }
0x1d69   :  { %v11565_v13 = vsel %vm798_vm5, %v9786_v35, %v11258_v9  ;;  %v12153_v5 = vcombine.low %v11559_v11, %v11560_v22  ;;  %v12154_v47 = vcombine.low %v11561_v8, %v11562_v37  ;;  %v12170_v7 = vcombine.low %v11563_v38, %v11564_v41 }
0x1d6a   :  { %v11566_v24 = vsel %vm798_vm5, %v9788_v52, %v11262_v31  ;;  %v9826_v17 = vrot.slane %v9804_v23, %v18507_v46  ;;  %v9833_v60 = vrot.slane %v9805_v12, %v18507_v46  ;;  %v10724_v27 = vrot.slane %v13686_v18, %v18507_v46 }
0x1d6b   :  { %v12161_v3 = vrot.slane %v12153_v5, %v18525_v0  ;;  %v12168_v50 = vrot.slane %v12154_v47, %v18525_v0  ;;  %v12171_v59 = vcombine.low %v11565_v13, %v11566_v24  ;;  %v9834_v34 = vcombine.high %v18207_v33, %v18207_v33 }
0x1d6c   :  { %v9835_v32 = vcombine.high %v9819_v25, %v9819_v25  ;;  %v10731_v44 = vrot.slane %v10717_v54, %v18507_v46  ;;  %v10732_v45 = vcombine.high %v10724_v27, %v10724_v27  ;;  %v10740_v61 = vrot.slane %v10724_v27, %v18507_v46 }
0x1d6d   :  { %v12169_v10 = vcombine.low %v12161_v3, %v12168_v50  ;;  %v12178_v6 = vrot.slane %v12170_v7, %v18525_v0  ;;  %v12185_v56 = vrot.slane %v12171_v59, %v18525_v0  ;;  %v13687_v57 = vadd.f32 %v17817_v28, %v17549_v43 }
0x1d6e   :  { %v10733_v29 = vcombine.high %v10731_v44, %v10731_v44  ;;  %v10747_v18 = vrot.slane %v10731_v44, %v18507_v46  ;;  %v10754_v21 = vrot.slane %v10732_v45, %v18507_v46  ;;  %v10762_v51 = vcombine.high %v10740_v61, %v10740_v61 }
0x1d6f   :  { %v12186_v2 = vcombine.low %v12178_v6, %v12185_v56  ;;  %12313 = vst [vmem:[#allocation38 + $0xd0] sm:$0xff] %v12169_v10  ;;  %v9836_v15 = vcombine.high %v9826_v17, %v9826_v17  ;;  %v9837_v35 = vcombine.high %v9833_v60, %v9833_v60  ;;  %v11266_v53 = vrot.slane %v10740_v61, %v14792_v36 }
0x1d70   :  { %v10761_v52 = vrot.slane %v10733_v29, %v18507_v46  ;;  %v10763_v19 = vcombine.high %v10747_v18, %v10747_v18  ;;  %v10764_v42 = vcombine.high %v10754_v21, %v10754_v21  ;;  %v11270_v4 = vrot.slane %v10754_v21, %v14792_v36 }
0x1d71   :  { %12314 = vst [vmem:[#allocation38 + $0xd8] sm:$0xff] %v12186_v2  ;;  %v11274_v43 = vrot.slane %v10762_v51, %v14792_v36  ;;  %v11282_v28 = vrot.slane %v10747_v18, %v14792_v36  ;;  %v11567_v40 = vsel %vm798_vm5, %v18207_v33, %v11266_v53  ;;  %v9838_v63 = vcombine.high %v13687_v57, %v13687_v57 }
0x1d72   :  { %v10765_v30 = vcombine.high %v10761_v52, %v10761_v52  ;;  %v11278_v23 = vrot.slane %v10764_v42, %v14792_v36  ;;  %v11286_v54 = vrot.slane %v10761_v52, %v14792_v36  ;;  %v11290_v1 = vrot.slane %v10763_v19, %v14792_v36 }
0x1d73   :  { %v11568_v39 = vsel %vm798_vm5, %v9826_v17, %v11270_v4  ;;  %v11569_v58 = vsel %vm798_vm5, %v9834_v34, %v11274_v43  ;;  %v11571_v49 = vsel %vm798_vm5, %v9819_v25, %v11282_v28  ;;  %v9845_v16 = vrot.slane %v13687_v57, %v18507_v46 }
0x1d74   :  { %v11294_v55 = vrot.slane %v10765_v30, %v14792_v36  ;;  %v11570_v33 = vsel %vm798_vm5, %v9836_v15, %v11278_v23  ;;  %v11572_v11 = vsel %vm798_vm5, %v9833_v60, %v11286_v54  ;;  %v11573_v12 = vsel %vm798_vm5, %v9835_v32, %v11290_v1 }
0x1d75   :  { %v12187_v48 = vcombine.low %v11567_v40, %v11568_v39  ;;  %v12188_v20 = vcombine.low %v11569_v58, %v11570_v33  ;;  %v12204_v62 = vcombine.low %v11571_v49, %v11572_v11  ;;  %v13688_v9 = vadd.f32 %v17834_v14, %v17552_v26 }
0x1d76   :  { %v11574_v22 = vsel %vm798_vm5, %v9837_v35, %v11294_v55  ;;  %v9852_v8 = vrot.slane %v9838_v63, %v18507_v46  ;;  %v9853_v41 = vcombine.high %v9845_v16, %v9845_v16  ;;  %v9861_v26 = vrot.slane %v9845_v16, %v18507_v46 }
0x1d77   :  { %v12195_v38 = vrot.slane %v12187_v48, %v18525_v0  ;;  %v12202_v25 = vrot.slane %v12188_v20, %v18525_v0  ;;  %v12205_v31 = vcombine.low %v11573_v12, %v11574_v22  ;;  %v12212_v37 = vrot.slane %v12204_v62, %v18525_v0 }
0x1d78   :  { %v10766_v47 = vcombine.high %v13688_v9, %v13688_v9  ;;  %v10773_v7 = vrot.slane %v13688_v9, %v18507_v46  ;;  %v9854_v24 = vcombine.high %v9852_v8, %v9852_v8  ;;  %v9868_v14 = vrot.slane %v9852_v8, %v18507_v46 }
0x1d79   :  { %v12203_v13 = vcombine.low %v12195_v38, %v12202_v25  ;;  %v12219_v5 = vrot.slane %v12205_v31, %v18525_v0  ;;  %v9875_v50 = vrot.slane %v9853_v41, %v18507_v46  ;;  %v9883_v61 = vcombine.high %v9861_v26, %v9861_v26 }
0x1d7a   :  { %v10780_v60 = vrot.slane %v10766_v47, %v18507_v46  ;;  %v10781_v27 = vcombine.high %v10773_v7, %v10773_v7  ;;  %v10789_v3 = vrot.slane %v10773_v7, %v18507_v46  ;;  %v9882_v45 = vrot.slane %v9854_v24, %v18507_v46 }
0x1d7b   :  { %v12220_v17 = vcombine.low %v12212_v37, %v12219_v5  ;;  %12315 = vst [vmem:[#allocation38 + $0xe0] sm:$0xff] %v12203_v13  ;;  %v9884_v10 = vcombine.high %v9868_v14, %v9868_v14  ;;  %v9885_v21 = vcombine.high %v9875_v50, %v9875_v50 }
0x1d7c   :  { %v10782_v59 = vcombine.high %v10780_v60, %v10780_v60  ;;  %v10796_v34 = vrot.slane %v10780_v60, %v18507_v46  ;;  %v10803_v32 = vrot.slane %v10781_v27, %v18507_v46  ;;  %v10811_v44 = vcombine.high %v10789_v3, %v10789_v3 }
0x1d7d   :  { %12316 = vst [vmem:[#allocation38 + $0xe8] sm:$0xff] %v12220_v17  ;;  %v11298_v6 = vrot.slane %v10789_v3, %v14792_v36  ;;  %v9886_v42 = vcombine.high %v9882_v45, %v9882_v45 }
0x1d7e   :  { %v10810_v56 = vrot.slane %v10782_v59, %v18507_v46  ;;  %v10812_v57 = vcombine.high %v10796_v34, %v10796_v34  ;;  %v10813_v29 = vcombine.high %v10803_v32, %v10803_v32  ;;  %v11302_v18 = vrot.slane %v10803_v32, %v14792_v36 }
0x1d7f   :  { %v11306_v51 = vrot.slane %v10811_v44, %v14792_v36  ;;  %v11314_v2 = vrot.slane %v10796_v34, %v14792_v36  ;;  %v11575_v15 = vsel %vm798_vm5, %v9861_v26, %v11298_v6 }
0x1d80   :  { %v10814_v35 = vcombine.high %v10810_v56, %v10810_v56  ;;  %v11310_v53 = vrot.slane %v10813_v29, %v14792_v36  ;;  %v11318_v52 = vrot.slane %v10810_v56, %v14792_v36  ;;  %v11322_v19 = vrot.slane %v10812_v57, %v14792_v36 }
0x1d81   :  { %v11576_v46 = vsel %vm798_vm5, %v9875_v50, %v11302_v18  ;;  %v11577_v4 = vsel %vm798_vm5, %v9883_v61, %v11306_v51  ;;  %v11579_v43 = vsel %vm798_vm5, %v9868_v14, %v11314_v2 }
0x1d82   :  { %v11326_v28 = vrot.slane %v10814_v35, %v14792_v36  ;;  %v11578_v40 = vsel %vm798_vm5, %v9885_v21, %v11310_v53  ;;  %v11580_v63 = vsel %vm798_vm5, %v9882_v45, %v11318_v52  ;;  %v11581_v30 = vsel %vm798_vm5, %v9884_v10, %v11322_v19 }
0x1d83   :  { %v12221_v23 = vcombine.low %v11575_v15, %v11576_v46  ;;  %v12222_v54 = vcombine.low %v11577_v4, %v11578_v40  ;;  %v12238_v1 = vcombine.low %v11579_v43, %v11580_v63 }
0x1d84   :  { %v11582_v39 = vsel %vm798_vm5, %v9886_v42, %v11326_v28 }
0x1d85   :  { %v12229_v58 = vrot.slane %v12221_v23, %v18525_v0  ;;  %v12236_v49 = vrot.slane %v12222_v54, %v18525_v0  ;;  %v12239_v16 = vcombine.low %v11581_v30, %v11582_v39  ;;  %v12246_v36 = vrot.slane %v12238_v1, %v18525_v0 }
0x1d87   :  { %v12237_v55 = vcombine.low %v12229_v58, %v12236_v49  ;;  %v12253_v33 = vrot.slane %v12239_v16, %v18525_v0 }
0x1d89   :  { %v12254_v11 = vcombine.low %v12246_v36, %v12253_v33  ;;  %12317 = vst [vmem:[#allocation38 + $0xf0] sm:$0xff] %v12237_v55 }
0x1d8b   :  { %12318 = vst [vmem:[#allocation38 + $0xf8] sm:$0xff] %v12254_v11 }
0x1d8c   :  { %14332 = shalt.err (!%p14329_p6)
}
0x1d8d   :  { %s14333_s16 = scalar_lea.hbm %s14621_s25, 4096 }
0x1d8e   :  { %p14334_p7 = scmp.ne.s32.totalorder %s14621_s25, %s14333_s16  ;;  %p14337_p8 = scmp.lt.u32.totalorder %s14333_s16, %s14621_s25 }
0x1d90   :  { %p14339_p9 = pnand %p14337_p8, %p14334_p7 }
0x1d92   :  { %14342 = shalt.err (!%p14339_p9)
}
0x1d93   :  { %12330 = dma.vmem_to_hbm [thread:$0]  %s12325_s20, 4096, %s14621_s25, [#allocation4], %s14405_s28, %s14405_s28, %s14406_s1  }
0x1d94   :  { %14367 = dma.done.wait [#allocation4], 4096  }
0x1d95   :  { %14368 = vsyncadd [#allocation4], 4294963200 }
0x1d96   :  { %12334 = vsyncpa [#allocation3], 1 }
0x1d97   :  { %12335 = vsyncpa [#allocation6], 1 }
0x1d98   :  { %12336 = vsyncpa [#allocation9], 1 }
0x1d99   :  { %12337 = vsyncpa [#allocation12], 1 }
0x1d9a   :  { %12338 = vsyncpa [#allocation15], 1 }
0x1d9b   :  { %12339 = vsyncpa [#allocation18], 1 }
0x1d9c   :  { %12340 = vsyncpa [#allocation21], 1 }
0x1d9d   :  { %12341 = vsyncpa [#allocation24], 1 }
0x1d9e   :  { %12342 = vsyncpa [#allocation27], 1 }
0x1d9f   :  { %12343 = vsyncpa [#allocation30], 1 }
0x1da0   :  { %12344 = vsyncpa [#allocation33], 1 }
0x1da1   :  { %12345 = vsyncpa [#allocation36], 1 }
0x1da2   :  { %12346 = vsyncpa [#allocation4], 1 }

</bundles_post_ra>
